<compile_context>
chip_gen: v6e
topology: v6e:2x2x1
jax: 0.10.0
libtpu: 0.0.40
codegen_flags: <defaults>
</compile_context>

<pallas_src>
import functools

import numpy as np

import jax
import jax.numpy as jnp
from jax.experimental import pallas as pl
from jax.experimental.pallas import tpu as pltpu


# ----------------------------------------------------------------------------
# Host-side constant builders (conv boundary masks, pool row-selection matrix)
# ----------------------------------------------------------------------------
def _conv_masks(H, W):
    """(9, H*W, 1) f32: mask[k, r] = 1 iff tap k=(di*3+dj) is in-bounds at row r."""
    HW = H * W
    m = np.zeros((9, HW, 1), np.float32)
    for di in range(3):
        for dj in range(3):
            k = di * 3 + dj
            for r in range(HW):
                h, w = divmod(r, W)
                if 0 <= h + di - 1 < H and 0 <= w + dj - 1 < W:
                    m[k, r, 0] = 1.0
    return jnp.asarray(m)


def _pool_select(H, W):
    """(H/2*W/2, H*W) 0/1 matrix selecting the even-row/even-col positions."""
    Hh, Wh = H // 2, W // 2
    s = np.zeros((Hh * Wh, H * W), np.float32)
    for p in range(Hh * Wh):
        r2, c2 = divmod(p, Wh)
        s[p, (2 * r2) * W + 2 * c2] = 1.0
    return jnp.asarray(s)


# ----------------------------------------------------------------------------
# Pallas kernels
# ----------------------------------------------------------------------------
def _conv3x3_relu(x_f32, w_ref, b_ref, m_ref, H, W):
    """Direct 3x3 conv (pad=1, stride=1) + bias + ReLU on a row-flattened
    (H*W, Cin) f32 activation: 9 shifted (pltpu.roll) + masked bf16 matmuls
    accumulated in f32 on the MXU."""
    HW = H * W
    acc = None
    for di in range(3):
        for dj in range(3):
            k = di * 3 + dj
            d = (di - 1) * W + (dj - 1)        # out row r needs input row r + d
            shift = (-d) % HW
            shifted = x_f32 if shift == 0 else pltpu.roll(x_f32, shift=shift, axis=0)
            patch = (shifted * m_ref[k]).astype(jnp.bfloat16)
            part = jnp.dot(patch, w_ref[k], preferred_element_type=jnp.float32)
            acc = part if acc is None else acc + part
    return jnp.maximum(acc + b_ref[...], 0.0)


def _stage_kernel(x_ref, w1_ref, b1_ref, w2_ref, b2_ref, m_ref, s_ref, o_ref,
                  *, H, W):
    """conv3x3+ReLU -> conv3x3+ReLU -> 2x2 max-pool for one image (one grid step)."""
    HW = H * W
    x = x_ref[0].astype(jnp.float32)                        # (HW, C1)
    a1 = _conv3x3_relu(x, w1_ref, b1_ref, m_ref, H, W)      # (HW, C2) f32
    a2 = _conv3x3_relu(a1, w2_ref, b2_ref, m_ref, H, W)     # (HW, C3) f32
    # Fused 2x2/stride-2 max pool: pair-max along W, pair-max along H, then an
    # exact 0/1 row-selection matmul picking the (even h, even w) rows.
    m1 = jnp.maximum(a2, pltpu.roll(a2, shift=HW - 1, axis=0))
    m2 = jnp.maximum(m1, pltpu.roll(m1, shift=HW - W, axis=0))
    pooled = jnp.dot(s_ref[...], m2, preferred_element_type=jnp.float32)
    o_ref[0] = pooled.astype(o_ref.dtype)


def conv_stage(x, w1, b1, w2, b2, masks, pool_s, *, H, W):
    """x: (N, H*W, C1) bf16 -> (N, (H//2)*(W//2), Cout) bf16."""
    N, HW, C1 = x.shape
    assert HW == H * W and H % 2 == 0 and W % 2 == 0
    C2 = w1.shape[-1]
    C3 = w2.shape[-1]
    Hh, Wh = H // 2, W // 2
    kernel = functools.partial(_stage_kernel, H=H, W=W)
    return pl.pallas_call(
        kernel,
        out_shape=jax.ShapeDtypeStruct((N, Hh * Wh, C3), jnp.bfloat16),
        grid_spec=pltpu.PrefetchScalarGridSpec(
            num_scalar_prefetch=0,
            grid=(N,),
            in_specs=[
                pl.BlockSpec((1, HW, C1), lambda i: (i, 0, 0)),       # x (per image)
                pl.BlockSpec((9, C1, C2), lambda i: (0, 0, 0)),       # w1 (resident)
                pl.BlockSpec((1, C2), lambda i: (0, 0)),              # b1
                pl.BlockSpec((9, C2, C3), lambda i: (0, 0, 0)),       # w2 (resident)
                pl.BlockSpec((1, C3), lambda i: (0, 0)),              # b2
                pl.BlockSpec((9, HW, 1), lambda i: (0, 0, 0)),        # boundary masks
                pl.BlockSpec((Hh * Wh, HW), lambda i: (0, 0)),        # pool selector
            ],
            out_specs=pl.BlockSpec((1, Hh * Wh, C3), lambda i: (i, 0, 0)),
        ),
        compiler_params=pltpu.CompilerParams(
            dimension_semantics=("parallel",)),
    )(x, w1, b1, w2, b2, masks, pool_s)


def _head_kernel(h_ref, w1_ref, b1_ref, w2_ref, b2_ref, o_ref):
    """y = (relu(h @ W1 + b1)) @ W2 + b2 ; bf16 MXU feeds, f32 epilogue."""
    h = h_ref[...].astype(jnp.bfloat16)
    z = jnp.dot(h, w1_ref[...], preferred_element_type=jnp.float32)
    z = jnp.maximum(z + b1_ref[...], 0.0)
    y = jnp.dot(z.astype(jnp.bfloat16), w2_ref[...],
                preferred_element_type=jnp.float32)
    o_ref[...] = y + b2_ref[...]


def mlp_head(h, w1, b1, w2, b2):
    Mp = h.shape[0]
    Npad = w2.shape[-1]
    return pl.pallas_call(
        _head_kernel,
        out_shape=jax.ShapeDtypeStruct((Mp, Npad), jnp.float32),
    )(h, w1, b1, w2, b2)


# ----------------------------------------------------------------------------
# Parameters
# ----------------------------------------------------------------------------
def init_params(key, ncha, size, taskcla, mul=1):
    c32, c64, c128, c256 = int(32 * mul), int(64 * mul), int(128 * mul), int(256 * mul)
    s = size // 2 // 2 // 2
    fc_in = s * s * c128

    def conv_w(k, cin, cout):
        # Stored as (9, cin, cout) bf16 for the MXU.  To port a torch Conv2d
        # weight W_t of shape (cout, cin, 3, 3): W_t.transpose(2, 3, 1, 0).reshape(9, cin, cout).
        std = (2.0 / (cin * 9)) ** 0.5
        w = jax.random.normal(k, (9, cin, cout), jnp.float32) * std
        return w.astype(jnp.bfloat16)

    def lin_w(k, fin, fout):
        std = (2.0 / fin) ** 0.5
        return (jax.random.normal(k, (fin, fout), jnp.float32) * std).astype(jnp.bfloat16)

    ks = jax.random.split(key, 7 + len(taskcla))
    p = {
        "conv1_w": conv_w(ks[0], ncha, c32), "conv1_b": jnp.zeros((1, c32), jnp.float32),
        "conv2_w": conv_w(ks[1], c32, c32),  "conv2_b": jnp.zeros((1, c32), jnp.float32),
        "conv3_w": conv_w(ks[2], c32, c64),  "conv3_b": jnp.zeros((1, c64), jnp.float32),
        "conv4_w": conv_w(ks[3], c64, c64),  "conv4_b": jnp.zeros((1, c64), jnp.float32),
        "conv5_w": conv_w(ks[4], c64, c128), "conv5_b": jnp.zeros((1, c128), jnp.float32),
        "conv6_w": conv_w(ks[5], c128, c128), "conv6_b": jnp.zeros((1, c128), jnp.float32),
        # fc1 rows are in NHWC flatten order (h, w, c).  To port a torch fc1
        # weight W_t (256, c128*s*s, flattened (c,h,w)):
        #   W_t.reshape(256, c128, s, s).transpose(0, 2, 3, 1).reshape(256, fc_in).T
        "fc1_w": lin_w(ks[6], fc_in, c256), "fc1_b": jnp.zeros((1, c256), jnp.float32),
    }
    # Per-task classifier heads, output dim padded to a multiple of 128 lanes.
    p["last_w"], p["last_b"], p["last_n"] = [], [], []
    for i, (_, n) in enumerate(taskcla):
        npad = ((n + 127) // 128) * 128
        w = lin_w(ks[7 + i], c256, n)
        wpad = jnp.zeros((c256, npad), jnp.bfloat16).at[:, :n].set(w)
        p["last_w"].append(wpad)
        p["last_b"].append(jnp.zeros((1, npad), jnp.float32))
        p["last_n"].append(n)
    return p


# ----------------------------------------------------------------------------
# VGG8 forward (eval mode: dropouts are identity)
# ----------------------------------------------------------------------------
def vgg8_forward(params, t, x_nchw):
    N, C, H, W = x_nchw.shape
    # NCHW input -> row-flattened NHWC: rows in (h, w) order, channels on lanes.
    x = jnp.transpose(x_nchw, (0, 2, 3, 1)).reshape(N, H * W, C).astype(jnp.bfloat16)

    stages = [
        ((H, W),             params["conv1_w"], params["conv1_b"],
                             params["conv2_w"], params["conv2_b"]),
        ((H // 2, W // 2),   params["conv3_w"], params["conv3_b"],
                             params["conv4_w"], params["conv4_b"]),
        ((H // 4, W // 4),   params["conv5_w"], params["conv5_b"],
                             params["conv6_w"], params["conv6_b"]),
    ]
    h = x
    for (sh, sw), w1, b1, w2, b2 in stages:
        masks = _conv_masks(sh, sw)
        pool_s = _pool_select(sh, sw)
        h = conv_stage(h, w1, b1, w2, b2, masks, pool_s, H=sh, W=sw)
        # drop1 is identity in eval mode

    # Flatten (N, s*s, c128) -> (N, fc_in); fc1_w rows already match this order,
    # so no NCHW transpose is needed here.
    h = h.reshape(N, -1)
    Mp = ((N + 7) // 8) * 8                       # pad batch rows to 8 sublanes
    h = jnp.pad(h, ((0, Mp - N), (0, 0)))
    y = mlp_head(h, params["fc1_w"], params["fc1_b"],
                 params["last_w"][t], params["last_b"][t])
    # drop2 identity in eval; strip batch/lane padding.
    return y[:N, :params["last_n"][t]]


if __name__ == "__main__":
    # small deterministic setup: batch=2, ncha=4, spatial=16x16, mul=1
    NCHA, SIZE, MUL = 4, 16, 1
    taskcla = [(0, 10), (1, 5)]

    key = jax.random.PRNGKey(0)
    k_param, k_x = jax.random.split(key)
    params = init_params(k_param, NCHA, SIZE, taskcla, mul=MUL)

    x = jax.random.normal(k_x, (2, NCHA, SIZE, SIZE), jnp.float32)  # NCHW input

    y = vgg8_forward(params, t=0, x_nchw=x)
    jax.block_until_ready(y)
    assert y.shape == (2, taskcla[0][1]), y.shape
    print("KERNEL_OK")
</pallas_src>

<mosaic_0001>
module attributes {stable_mosaic.version = 11 : i64} {
  func.func @_stage_kernel(%arg0: i32, %arg1: memref<1x256x4xbf16, #tpu.memory_space<vmem>>, %arg2: memref<9x4x32xbf16, #tpu.memory_space<vmem>>, %arg3: memref<1x32xf32, #tpu.memory_space<vmem>>, %arg4: memref<9x32x32xbf16, #tpu.memory_space<vmem>>, %arg5: memref<1x32xf32, #tpu.memory_space<vmem>>, %arg6: memref<9x256x1xf32, #tpu.memory_space<vmem>>, %arg7: memref<64x256xf32, #tpu.memory_space<vmem>>, %arg8: memref<1x64x32xbf16, #tpu.memory_space<vmem>>) attributes {dimension_semantics = [#tpu.dimension_semantics<parallel>], iteration_bounds = array<i64: 2>, scalar_prefetch = 0 : i64, scratch_operands = 0 : i64, tpu.core_type = #tpu.core_type<tc>, window_params = [{transform_indices = @transform_0, window_bounds = array<i64: 1, 256, 4>}, {pipeline_mode = #tpu.pipeline_mode<synchronous>, transform_indices = @transform_1, window_bounds = array<i64: 9, 4, 32>}, {pipeline_mode = #tpu.pipeline_mode<synchronous>, transform_indices = @transform_2, window_bounds = array<i64: 1, 32>}, {pipeline_mode = #tpu.pipeline_mode<synchronous>, transform_indices = @transform_3, window_bounds = array<i64: 9, 32, 32>}, {pipeline_mode = #tpu.pipeline_mode<synchronous>, transform_indices = @transform_4, window_bounds = array<i64: 1, 32>}, {pipeline_mode = #tpu.pipeline_mode<synchronous>, transform_indices = @transform_5, window_bounds = array<i64: 9, 256, 1>}, {pipeline_mode = #tpu.pipeline_mode<synchronous>, transform_indices = @transform_6, window_bounds = array<i64: 64, 256>}, {transform_indices = @transform_7, window_bounds = array<i64: 1, 64, 32>}]} {
    %c0 = arith.constant 0 : index
    %c0_0 = arith.constant 0 : index
    %c0_1 = arith.constant 0 : index
    %0 = vector.load %arg1[%c0, %c0_0, %c0_1] : memref<1x256x4xbf16, #tpu.memory_space<vmem>>, vector<1x256x4xbf16>
    %1 = vector.shape_cast %0 : vector<1x256x4xbf16> to vector<256x4xbf16>
    %2 = arith.extf %1 : vector<256x4xbf16> to vector<256x4xf32>
    %c17_i32 = arith.constant 17 : i32
    %3 = tpu.dynamic_rotate %2 by %c17_i32 dim 0 : vector<256x4xf32>, i32 -> vector<256x4xf32>
    %c0_2 = arith.constant 0 : index
    %c0_3 = arith.constant 0 : index
    %c0_4 = arith.constant 0 : index
    %4 = vector.load %arg6[%c0_2, %c0_3, %c0_4] : memref<9x256x1xf32, #tpu.memory_space<vmem>>, vector<1x256x1xf32>
    %5 = vector.shape_cast %4 : vector<1x256x1xf32> to vector<256x1xf32>
    %6 = vector.broadcast %5 : vector<256x1xf32> to vector<256x4xf32>
    %7 = arith.mulf %3, %6 : vector<256x4xf32>
    %8 = arith.truncf %7 : vector<256x4xf32> to vector<256x4xbf16>
    %c0_5 = arith.constant 0 : index
    %c0_6 = arith.constant 0 : index
    %c0_7 = arith.constant 0 : index
    %9 = vector.load %arg2[%c0_5, %c0_6, %c0_7] : memref<9x4x32xbf16, #tpu.memory_space<vmem>>, vector<1x4x32xbf16>
    %10 = vector.shape_cast %9 : vector<1x4x32xbf16> to vector<4x32xbf16>
    %cst = arith.constant dense<0.000000e+00> : vector<256x32xf32>
    %11 = tpu.matmul %8, %10, %cst {dimension_numbers = #tpu.dot_dimension_numbers<[1], [0], [0], [1], [0, 0, 1, 1], [], []>} : vector<256x4xbf16>, vector<4x32xbf16>, vector<256x32xf32> -> vector<256x32xf32>
    %c16_i32 = arith.constant 16 : i32
    %12 = tpu.dynamic_rotate %2 by %c16_i32 dim 0 : vector<256x4xf32>, i32 -> vector<256x4xf32>
    %c1 = arith.constant 1 : index
    %c0_8 = arith.constant 0 : index
    %c0_9 = arith.constant 0 : index
    %13 = vector.load %arg6[%c1, %c0_8, %c0_9] : memref<9x256x1xf32, #tpu.memory_space<vmem>>, vector<1x256x1xf32>
    %14 = vector.shape_cast %13 : vector<1x256x1xf32> to vector<256x1xf32>
    %15 = vector.broadcast %14 : vector<256x1xf32> to vector<256x4xf32>
    %16 = arith.mulf %12, %15 : vector<256x4xf32>
    %17 = arith.truncf %16 : vector<256x4xf32> to vector<256x4xbf16>
    %c1_10 = arith.constant 1 : index
    %c0_11 = arith.constant 0 : index
    %c0_12 = arith.constant 0 : index
    %18 = vector.load %arg2[%c1_10, %c0_11, %c0_12] : memref<9x4x32xbf16, #tpu.memory_space<vmem>>, vector<1x4x32xbf16>
    %19 = vector.shape_cast %18 : vector<1x4x32xbf16> to vector<4x32xbf16>
    %cst_13 = arith.constant dense<0.000000e+00> : vector<256x32xf32>
    %20 = tpu.matmul %17, %19, %cst_13 {dimension_numbers = #tpu.dot_dimension_numbers<[1], [0], [0], [1], [0, 0, 1, 1], [], []>} : vector<256x4xbf16>, vector<4x32xbf16>, vector<256x32xf32> -> vector<256x32xf32>
    %21 = arith.addf %11, %20 : vector<256x32xf32>
    %c15_i32 = arith.constant 15 : i32
    %22 = tpu.dynamic_rotate %2 by %c15_i32 dim 0 : vector<256x4xf32>, i32 -> vector<256x4xf32>
    %c2 = arith.constant 2 : index
    %c0_14 = arith.constant 0 : index
    %c0_15 = arith.constant 0 : index
    %23 = vector.load %arg6[%c2, %c0_14, %c0_15] : memref<9x256x1xf32, #tpu.memory_space<vmem>>, vector<1x256x1xf32>
    %24 = vector.shape_cast %23 : vector<1x256x1xf32> to vector<256x1xf32>
    %25 = vector.broadcast %24 : vector<256x1xf32> to vector<256x4xf32>
    %26 = arith.mulf %22, %25 : vector<256x4xf32>
    %27 = arith.truncf %26 : vector<256x4xf32> to vector<256x4xbf16>
    %c2_16 = arith.constant 2 : index
    %c0_17 = arith.constant 0 : index
    %c0_18 = arith.constant 0 : index
    %28 = vector.load %arg2[%c2_16, %c0_17, %c0_18] : memref<9x4x32xbf16, #tpu.memory_space<vmem>>, vector<1x4x32xbf16>
    %29 = vector.shape_cast %28 : vector<1x4x32xbf16> to vector<4x32xbf16>
    %cst_19 = arith.constant dense<0.000000e+00> : vector<256x32xf32>
    %30 = tpu.matmul %27, %29, %cst_19 {dimension_numbers = #tpu.dot_dimension_numbers<[1], [0], [0], [1], [0, 0, 1, 1], [], []>} : vector<256x4xbf16>, vector<4x32xbf16>, vector<256x32xf32> -> vector<256x32xf32>
    %31 = arith.addf %21, %30 : vector<256x32xf32>
    %c1_i32 = arith.constant 1 : i32
    %32 = tpu.dynamic_rotate %2 by %c1_i32 dim 0 : vector<256x4xf32>, i32 -> vector<256x4xf32>
    %c3 = arith.constant 3 : index
    %c0_20 = arith.constant 0 : index
    %c0_21 = arith.constant 0 : index
    %33 = vector.load %arg6[%c3, %c0_20, %c0_21] : memref<9x256x1xf32, #tpu.memory_space<vmem>>, vector<1x256x1xf32>
    %34 = vector.shape_cast %33 : vector<1x256x1xf32> to vector<256x1xf32>
    %35 = vector.broadcast %34 : vector<256x1xf32> to vector<256x4xf32>
    %36 = arith.mulf %32, %35 : vector<256x4xf32>
    %37 = arith.truncf %36 : vector<256x4xf32> to vector<256x4xbf16>
    %c3_22 = arith.constant 3 : index
    %c0_23 = arith.constant 0 : index
    %c0_24 = arith.constant 0 : index
    %38 = vector.load %arg2[%c3_22, %c0_23, %c0_24] : memref<9x4x32xbf16, #tpu.memory_space<vmem>>, vector<1x4x32xbf16>
    %39 = vector.shape_cast %38 : vector<1x4x32xbf16> to vector<4x32xbf16>
    %cst_25 = arith.constant dense<0.000000e+00> : vector<256x32xf32>
    %40 = tpu.matmul %37, %39, %cst_25 {dimension_numbers = #tpu.dot_dimension_numbers<[1], [0], [0], [1], [0, 0, 1, 1], [], []>} : vector<256x4xbf16>, vector<4x32xbf16>, vector<256x32xf32> -> vector<256x32xf32>
    %41 = arith.addf %31, %40 : vector<256x32xf32>
    %c4 = arith.constant 4 : index
    %c0_26 = arith.constant 0 : index
    %c0_27 = arith.constant 0 : index
    %42 = vector.load %arg6[%c4, %c0_26, %c0_27] : memref<9x256x1xf32, #tpu.memory_space<vmem>>, vector<1x256x1xf32>
    %43 = vector.shape_cast %42 : vector<1x256x1xf32> to vector<256x1xf32>
    %44 = vector.broadcast %43 : vector<256x1xf32> to vector<256x4xf32>
    %45 = arith.mulf %2, %44 : vector<256x4xf32>
    %46 = arith.truncf %45 : vector<256x4xf32> to vector<256x4xbf16>
    %c4_28 = arith.constant 4 : index
    %c0_29 = arith.constant 0 : index
    %c0_30 = arith.constant 0 : index
    %47 = vector.load %arg2[%c4_28, %c0_29, %c0_30] : memref<9x4x32xbf16, #tpu.memory_space<vmem>>, vector<1x4x32xbf16>
    %48 = vector.shape_cast %47 : vector<1x4x32xbf16> to vector<4x32xbf16>
    %cst_31 = arith.constant dense<0.000000e+00> : vector<256x32xf32>
    %49 = tpu.matmul %46, %48, %cst_31 {dimension_numbers = #tpu.dot_dimension_numbers<[1], [0], [0], [1], [0, 0, 1, 1], [], []>} : vector<256x4xbf16>, vector<4x32xbf16>, vector<256x32xf32> -> vector<256x32xf32>
    %50 = arith.addf %41, %49 : vector<256x32xf32>
    %c255_i32 = arith.constant 255 : i32
    %51 = tpu.dynamic_rotate %2 by %c255_i32 dim 0 : vector<256x4xf32>, i32 -> vector<256x4xf32>
    %c5 = arith.constant 5 : index
    %c0_32 = arith.constant 0 : index
    %c0_33 = arith.constant 0 : index
    %52 = vector.load %arg6[%c5, %c0_32, %c0_33] : memref<9x256x1xf32, #tpu.memory_space<vmem>>, vector<1x256x1xf32>
    %53 = vector.shape_cast %52 : vector<1x256x1xf32> to vector<256x1xf32>
    %54 = vector.broadcast %53 : vector<256x1xf32> to vector<256x4xf32>
    %55 = arith.mulf %51, %54 : vector<256x4xf32>
    %56 = arith.truncf %55 : vector<256x4xf32> to vector<256x4xbf16>
    %c5_34 = arith.constant 5 : index
    %c0_35 = arith.constant 0 : index
    %c0_36 = arith.constant 0 : index
    %57 = vector.load %arg2[%c5_34, %c0_35, %c0_36] : memref<9x4x32xbf16, #tpu.memory_space<vmem>>, vector<1x4x32xbf16>
    %58 = vector.shape_cast %57 : vector<1x4x32xbf16> to vector<4x32xbf16>
    %cst_37 = arith.constant dense<0.000000e+00> : vector<256x32xf32>
    %59 = tpu.matmul %56, %58, %cst_37 {dimension_numbers = #tpu.dot_dimension_numbers<[1], [0], [0], [1], [0, 0, 1, 1], [], []>} : vector<256x4xbf16>, vector<4x32xbf16>, vector<256x32xf32> -> vector<256x32xf32>
    %60 = arith.addf %50, %59 : vector<256x32xf32>
    %c241_i32 = arith.constant 241 : i32
    %61 = tpu.dynamic_rotate %2 by %c241_i32 dim 0 : vector<256x4xf32>, i32 -> vector<256x4xf32>
    %c6 = arith.constant 6 : index
    %c0_38 = arith.constant 0 : index
    %c0_39 = arith.constant 0 : index
    %62 = vector.load %arg6[%c6, %c0_38, %c0_39] : memref<9x256x1xf32, #tpu.memory_space<vmem>>, vector<1x256x1xf32>
    %63 = vector.shape_cast %62 : vector<1x256x1xf32> to vector<256x1xf32>
    %64 = vector.broadcast %63 : vector<256x1xf32> to vector<256x4xf32>
    %65 = arith.mulf %61, %64 : vector<256x4xf32>
    %66 = arith.truncf %65 : vector<256x4xf32> to vector<256x4xbf16>
    %c6_40 = arith.constant 6 : index
    %c0_41 = arith.constant 0 : index
    %c0_42 = arith.constant 0 : index
    %67 = vector.load %arg2[%c6_40, %c0_41, %c0_42] : memref<9x4x32xbf16, #tpu.memory_space<vmem>>, vector<1x4x32xbf16>
    %68 = vector.shape_cast %67 : vector<1x4x32xbf16> to vector<4x32xbf16>
    %cst_43 = arith.constant dense<0.000000e+00> : vector<256x32xf32>
    %69 = tpu.matmul %66, %68, %cst_43 {dimension_numbers = #tpu.dot_dimension_numbers<[1], [0], [0], [1], [0, 0, 1, 1], [], []>} : vector<256x4xbf16>, vector<4x32xbf16>, vector<256x32xf32> -> vector<256x32xf32>
    %70 = arith.addf %60, %69 : vector<256x32xf32>
    %c240_i32 = arith.constant 240 : i32
    %71 = tpu.dynamic_rotate %2 by %c240_i32 dim 0 : vector<256x4xf32>, i32 -> vector<256x4xf32>
    %c7 = arith.constant 7 : index
    %c0_44 = arith.constant 0 : index
    %c0_45 = arith.constant 0 : index
    %72 = vector.load %arg6[%c7, %c0_44, %c0_45] : memref<9x256x1xf32, #tpu.memory_space<vmem>>, vector<1x256x1xf32>
    %73 = vector.shape_cast %72 : vector<1x256x1xf32> to vector<256x1xf32>
    %74 = vector.broadcast %73 : vector<256x1xf32> to vector<256x4xf32>
    %75 = arith.mulf %71, %74 : vector<256x4xf32>
    %76 = arith.truncf %75 : vector<256x4xf32> to vector<256x4xbf16>
    %c7_46 = arith.constant 7 : index
    %c0_47 = arith.constant 0 : index
    %c0_48 = arith.constant 0 : index
    %77 = vector.load %arg2[%c7_46, %c0_47, %c0_48] : memref<9x4x32xbf16, #tpu.memory_space<vmem>>, vector<1x4x32xbf16>
    %78 = vector.shape_cast %77 : vector<1x4x32xbf16> to vector<4x32xbf16>
    %cst_49 = arith.constant dense<0.000000e+00> : vector<256x32xf32>
    %79 = tpu.matmul %76, %78, %cst_49 {dimension_numbers = #tpu.dot_dimension_numbers<[1], [0], [0], [1], [0, 0, 1, 1], [], []>} : vector<256x4xbf16>, vector<4x32xbf16>, vector<256x32xf32> -> vector<256x32xf32>
    %80 = arith.addf %70, %79 : vector<256x32xf32>
    %c239_i32 = arith.constant 239 : i32
    %81 = tpu.dynamic_rotate %2 by %c239_i32 dim 0 : vector<256x4xf32>, i32 -> vector<256x4xf32>
    %c8 = arith.constant 8 : index
    %c0_50 = arith.constant 0 : index
    %c0_51 = arith.constant 0 : index
    %82 = vector.load %arg6[%c8, %c0_50, %c0_51] : memref<9x256x1xf32, #tpu.memory_space<vmem>>, vector<1x256x1xf32>
    %83 = vector.shape_cast %82 : vector<1x256x1xf32> to vector<256x1xf32>
    %84 = vector.broadcast %83 : vector<256x1xf32> to vector<256x4xf32>
    %85 = arith.mulf %81, %84 : vector<256x4xf32>
    %86 = arith.truncf %85 : vector<256x4xf32> to vector<256x4xbf16>
    %c8_52 = arith.constant 8 : index
    %c0_53 = arith.constant 0 : index
    %c0_54 = arith.constant 0 : index
    %87 = vector.load %arg2[%c8_52, %c0_53, %c0_54] : memref<9x4x32xbf16, #tpu.memory_space<vmem>>, vector<1x4x32xbf16>
    %88 = vector.shape_cast %87 : vector<1x4x32xbf16> to vector<4x32xbf16>
    %cst_55 = arith.constant dense<0.000000e+00> : vector<256x32xf32>
    %89 = tpu.matmul %86, %88, %cst_55 {dimension_numbers = #tpu.dot_dimension_numbers<[1], [0], [0], [1], [0, 0, 1, 1], [], []>} : vector<256x4xbf16>, vector<4x32xbf16>, vector<256x32xf32> -> vector<256x32xf32>
    %90 = arith.addf %80, %89 : vector<256x32xf32>
    %c0_56 = arith.constant 0 : index
    %c0_57 = arith.constant 0 : index
    %91 = vector.load %arg3[%c0_56, %c0_57] : memref<1x32xf32, #tpu.memory_space<vmem>>, vector<1x32xf32>
    %92 = vector.broadcast %91 : vector<1x32xf32> to vector<256x32xf32>
    %93 = arith.addf %90, %92 : vector<256x32xf32>
    %cst_58 = arith.constant 0.000000e+00 : f32
    %94 = vector.broadcast %cst_58 : f32 to vector<256x32xf32>
    %95 = arith.maximumf %93, %94 : vector<256x32xf32>
    %c17_i32_59 = arith.constant 17 : i32
    %96 = tpu.dynamic_rotate %95 by %c17_i32_59 dim 0 : vector<256x32xf32>, i32 -> vector<256x32xf32>
    %c0_60 = arith.constant 0 : index
    %c0_61 = arith.constant 0 : index
    %c0_62 = arith.constant 0 : index
    %97 = vector.load %arg6[%c0_60, %c0_61, %c0_62] : memref<9x256x1xf32, #tpu.memory_space<vmem>>, vector<1x256x1xf32>
    %98 = vector.shape_cast %97 : vector<1x256x1xf32> to vector<256x1xf32>
    %99 = vector.broadcast %98 : vector<256x1xf32> to vector<256x32xf32>
    %100 = arith.mulf %96, %99 : vector<256x32xf32>
    %101 = arith.truncf %100 : vector<256x32xf32> to vector<256x32xbf16>
    %c0_63 = arith.constant 0 : index
    %c0_64 = arith.constant 0 : index
    %c0_65 = arith.constant 0 : index
    %102 = vector.load %arg4[%c0_63, %c0_64, %c0_65] : memref<9x32x32xbf16, #tpu.memory_space<vmem>>, vector<1x32x32xbf16>
    %103 = vector.shape_cast %102 : vector<1x32x32xbf16> to vector<32x32xbf16>
    %cst_66 = arith.constant dense<0.000000e+00> : vector<256x32xf32>
    %104 = tpu.matmul %101, %103, %cst_66 {dimension_numbers = #tpu.dot_dimension_numbers<[1], [0], [0], [1], [0, 0, 1, 1], [], []>} : vector<256x32xbf16>, vector<32x32xbf16>, vector<256x32xf32> -> vector<256x32xf32>
    %c16_i32_67 = arith.constant 16 : i32
    %105 = tpu.dynamic_rotate %95 by %c16_i32_67 dim 0 : vector<256x32xf32>, i32 -> vector<256x32xf32>
    %c1_68 = arith.constant 1 : index
    %c0_69 = arith.constant 0 : index
    %c0_70 = arith.constant 0 : index
    %106 = vector.load %arg6[%c1_68, %c0_69, %c0_70] : memref<9x256x1xf32, #tpu.memory_space<vmem>>, vector<1x256x1xf32>
    %107 = vector.shape_cast %106 : vector<1x256x1xf32> to vector<256x1xf32>
    %108 = vector.broadcast %107 : vector<256x1xf32> to vector<256x32xf32>
    %109 = arith.mulf %105, %108 : vector<256x32xf32>
    %110 = arith.truncf %109 : vector<256x32xf32> to vector<256x32xbf16>
    %c1_71 = arith.constant 1 : index
    %c0_72 = arith.constant 0 : index
    %c0_73 = arith.constant 0 : index
    %111 = vector.load %arg4[%c1_71, %c0_72, %c0_73] : memref<9x32x32xbf16, #tpu.memory_space<vmem>>, vector<1x32x32xbf16>
    %112 = vector.shape_cast %111 : vector<1x32x32xbf16> to vector<32x32xbf16>
    %cst_74 = arith.constant dense<0.000000e+00> : vector<256x32xf32>
    %113 = tpu.matmul %110, %112, %cst_74 {dimension_numbers = #tpu.dot_dimension_numbers<[1], [0], [0], [1], [0, 0, 1, 1], [], []>} : vector<256x32xbf16>, vector<32x32xbf16>, vector<256x32xf32> -> vector<256x32xf32>
    %114 = arith.addf %104, %113 : vector<256x32xf32>
    %c15_i32_75 = arith.constant 15 : i32
    %115 = tpu.dynamic_rotate %95 by %c15_i32_75 dim 0 : vector<256x32xf32>, i32 -> vector<256x32xf32>
    %c2_76 = arith.constant 2 : index
    %c0_77 = arith.constant 0 : index
    %c0_78 = arith.constant 0 : index
    %116 = vector.load %arg6[%c2_76, %c0_77, %c0_78] : memref<9x256x1xf32, #tpu.memory_space<vmem>>, vector<1x256x1xf32>
    %117 = vector.shape_cast %116 : vector<1x256x1xf32> to vector<256x1xf32>
    %118 = vector.broadcast %117 : vector<256x1xf32> to vector<256x32xf32>
    %119 = arith.mulf %115, %118 : vector<256x32xf32>
    %120 = arith.truncf %119 : vector<256x32xf32> to vector<256x32xbf16>
    %c2_79 = arith.constant 2 : index
    %c0_80 = arith.constant 0 : index
    %c0_81 = arith.constant 0 : index
    %121 = vector.load %arg4[%c2_79, %c0_80, %c0_81] : memref<9x32x32xbf16, #tpu.memory_space<vmem>>, vector<1x32x32xbf16>
    %122 = vector.shape_cast %121 : vector<1x32x32xbf16> to vector<32x32xbf16>
    %cst_82 = arith.constant dense<0.000000e+00> : vector<256x32xf32>
    %123 = tpu.matmul %120, %122, %cst_82 {dimension_numbers = #tpu.dot_dimension_numbers<[1], [0], [0], [1], [0, 0, 1, 1], [], []>} : vector<256x32xbf16>, vector<32x32xbf16>, vector<256x32xf32> -> vector<256x32xf32>
    %124 = arith.addf %114, %123 : vector<256x32xf32>
    %c1_i32_83 = arith.constant 1 : i32
    %125 = tpu.dynamic_rotate %95 by %c1_i32_83 dim 0 : vector<256x32xf32>, i32 -> vector<256x32xf32>
    %c3_84 = arith.constant 3 : index
    %c0_85 = arith.constant 0 : index
    %c0_86 = arith.constant 0 : index
    %126 = vector.load %arg6[%c3_84, %c0_85, %c0_86] : memref<9x256x1xf32, #tpu.memory_space<vmem>>, vector<1x256x1xf32>
    %127 = vector.shape_cast %126 : vector<1x256x1xf32> to vector<256x1xf32>
    %128 = vector.broadcast %127 : vector<256x1xf32> to vector<256x32xf32>
    %129 = arith.mulf %125, %128 : vector<256x32xf32>
    %130 = arith.truncf %129 : vector<256x32xf32> to vector<256x32xbf16>
    %c3_87 = arith.constant 3 : index
    %c0_88 = arith.constant 0 : index
    %c0_89 = arith.constant 0 : index
    %131 = vector.load %arg4[%c3_87, %c0_88, %c0_89] : memref<9x32x32xbf16, #tpu.memory_space<vmem>>, vector<1x32x32xbf16>
    %132 = vector.shape_cast %131 : vector<1x32x32xbf16> to vector<32x32xbf16>
    %cst_90 = arith.constant dense<0.000000e+00> : vector<256x32xf32>
    %133 = tpu.matmul %130, %132, %cst_90 {dimension_numbers = #tpu.dot_dimension_numbers<[1], [0], [0], [1], [0, 0, 1, 1], [], []>} : vector<256x32xbf16>, vector<32x32xbf16>, vector<256x32xf32> -> vector<256x32xf32>
    %134 = arith.addf %124, %133 : vector<256x32xf32>
    %c4_91 = arith.constant 4 : index
    %c0_92 = arith.constant 0 : index
    %c0_93 = arith.constant 0 : index
    %135 = vector.load %arg6[%c4_91, %c0_92, %c0_93] : memref<9x256x1xf32, #tpu.memory_space<vmem>>, vector<1x256x1xf32>
    %136 = vector.shape_cast %135 : vector<1x256x1xf32> to vector<256x1xf32>
    %137 = vector.broadcast %136 : vector<256x1xf32> to vector<256x32xf32>
    %138 = arith.mulf %95, %137 : vector<256x32xf32>
    %139 = arith.truncf %138 : vector<256x32xf32> to vector<256x32xbf16>
    %c4_94 = arith.constant 4 : index
    %c0_95 = arith.constant 0 : index
    %c0_96 = arith.constant 0 : index
    %140 = vector.load %arg4[%c4_94, %c0_95, %c0_96] : memref<9x32x32xbf16, #tpu.memory_space<vmem>>, vector<1x32x32xbf16>
    %141 = vector.shape_cast %140 : vector<1x32x32xbf16> to vector<32x32xbf16>
    %cst_97 = arith.constant dense<0.000000e+00> : vector<256x32xf32>
    %142 = tpu.matmul %139, %141, %cst_97 {dimension_numbers = #tpu.dot_dimension_numbers<[1], [0], [0], [1], [0, 0, 1, 1], [], []>} : vector<256x32xbf16>, vector<32x32xbf16>, vector<256x32xf32> -> vector<256x32xf32>
    %143 = arith.addf %134, %142 : vector<256x32xf32>
    %c255_i32_98 = arith.constant 255 : i32
    %144 = tpu.dynamic_rotate %95 by %c255_i32_98 dim 0 : vector<256x32xf32>, i32 -> vector<256x32xf32>
    %c5_99 = arith.constant 5 : index
    %c0_100 = arith.constant 0 : index
    %c0_101 = arith.constant 0 : index
    %145 = vector.load %arg6[%c5_99, %c0_100, %c0_101] : memref<9x256x1xf32, #tpu.memory_space<vmem>>, vector<1x256x1xf32>
    %146 = vector.shape_cast %145 : vector<1x256x1xf32> to vector<256x1xf32>
    %147 = vector.broadcast %146 : vector<256x1xf32> to vector<256x32xf32>
    %148 = arith.mulf %144, %147 : vector<256x32xf32>
    %149 = arith.truncf %148 : vector<256x32xf32> to vector<256x32xbf16>
    %c5_102 = arith.constant 5 : index
    %c0_103 = arith.constant 0 : index
    %c0_104 = arith.constant 0 : index
    %150 = vector.load %arg4[%c5_102, %c0_103, %c0_104] : memref<9x32x32xbf16, #tpu.memory_space<vmem>>, vector<1x32x32xbf16>
    %151 = vector.shape_cast %150 : vector<1x32x32xbf16> to vector<32x32xbf16>
    %cst_105 = arith.constant dense<0.000000e+00> : vector<256x32xf32>
    %152 = tpu.matmul %149, %151, %cst_105 {dimension_numbers = #tpu.dot_dimension_numbers<[1], [0], [0], [1], [0, 0, 1, 1], [], []>} : vector<256x32xbf16>, vector<32x32xbf16>, vector<256x32xf32> -> vector<256x32xf32>
    %153 = arith.addf %143, %152 : vector<256x32xf32>
    %c241_i32_106 = arith.constant 241 : i32
    %154 = tpu.dynamic_rotate %95 by %c241_i32_106 dim 0 : vector<256x32xf32>, i32 -> vector<256x32xf32>
    %c6_107 = arith.constant 6 : index
    %c0_108 = arith.constant 0 : index
    %c0_109 = arith.constant 0 : index
    %155 = vector.load %arg6[%c6_107, %c0_108, %c0_109] : memref<9x256x1xf32, #tpu.memory_space<vmem>>, vector<1x256x1xf32>
    %156 = vector.shape_cast %155 : vector<1x256x1xf32> to vector<256x1xf32>
    %157 = vector.broadcast %156 : vector<256x1xf32> to vector<256x32xf32>
    %158 = arith.mulf %154, %157 : vector<256x32xf32>
    %159 = arith.truncf %158 : vector<256x32xf32> to vector<256x32xbf16>
    %c6_110 = arith.constant 6 : index
    %c0_111 = arith.constant 0 : index
    %c0_112 = arith.constant 0 : index
    %160 = vector.load %arg4[%c6_110, %c0_111, %c0_112] : memref<9x32x32xbf16, #tpu.memory_space<vmem>>, vector<1x32x32xbf16>
    %161 = vector.shape_cast %160 : vector<1x32x32xbf16> to vector<32x32xbf16>
    %cst_113 = arith.constant dense<0.000000e+00> : vector<256x32xf32>
    %162 = tpu.matmul %159, %161, %cst_113 {dimension_numbers = #tpu.dot_dimension_numbers<[1], [0], [0], [1], [0, 0, 1, 1], [], []>} : vector<256x32xbf16>, vector<32x32xbf16>, vector<256x32xf32> -> vector<256x32xf32>
    %163 = arith.addf %153, %162 : vector<256x32xf32>
    %c240_i32_114 = arith.constant 240 : i32
    %164 = tpu.dynamic_rotate %95 by %c240_i32_114 dim 0 : vector<256x32xf32>, i32 -> vector<256x32xf32>
    %c7_115 = arith.constant 7 : index
    %c0_116 = arith.constant 0 : index
    %c0_117 = arith.constant 0 : index
    %165 = vector.load %arg6[%c7_115, %c0_116, %c0_117] : memref<9x256x1xf32, #tpu.memory_space<vmem>>, vector<1x256x1xf32>
    %166 = vector.shape_cast %165 : vector<1x256x1xf32> to vector<256x1xf32>
    %167 = vector.broadcast %166 : vector<256x1xf32> to vector<256x32xf32>
    %168 = arith.mulf %164, %167 : vector<256x32xf32>
    %169 = arith.truncf %168 : vector<256x32xf32> to vector<256x32xbf16>
    %c7_118 = arith.constant 7 : index
    %c0_119 = arith.constant 0 : index
    %c0_120 = arith.constant 0 : index
    %170 = vector.load %arg4[%c7_118, %c0_119, %c0_120] : memref<9x32x32xbf16, #tpu.memory_space<vmem>>, vector<1x32x32xbf16>
    %171 = vector.shape_cast %170 : vector<1x32x32xbf16> to vector<32x32xbf16>
    %cst_121 = arith.constant dense<0.000000e+00> : vector<256x32xf32>
    %172 = tpu.matmul %169, %171, %cst_121 {dimension_numbers = #tpu.dot_dimension_numbers<[1], [0], [0], [1], [0, 0, 1, 1], [], []>} : vector<256x32xbf16>, vector<32x32xbf16>, vector<256x32xf32> -> vector<256x32xf32>
    %173 = arith.addf %163, %172 : vector<256x32xf32>
    %c239_i32_122 = arith.constant 239 : i32
    %174 = tpu.dynamic_rotate %95 by %c239_i32_122 dim 0 : vector<256x32xf32>, i32 -> vector<256x32xf32>
    %c8_123 = arith.constant 8 : index
    %c0_124 = arith.constant 0 : index
    %c0_125 = arith.constant 0 : index
    %175 = vector.load %arg6[%c8_123, %c0_124, %c0_125] : memref<9x256x1xf32, #tpu.memory_space<vmem>>, vector<1x256x1xf32>
    %176 = vector.shape_cast %175 : vector<1x256x1xf32> to vector<256x1xf32>
    %177 = vector.broadcast %176 : vector<256x1xf32> to vector<256x32xf32>
    %178 = arith.mulf %174, %177 : vector<256x32xf32>
    %179 = arith.truncf %178 : vector<256x32xf32> to vector<256x32xbf16>
    %c8_126 = arith.constant 8 : index
    %c0_127 = arith.constant 0 : index
    %c0_128 = arith.constant 0 : index
    %180 = vector.load %arg4[%c8_126, %c0_127, %c0_128] : memref<9x32x32xbf16, #tpu.memory_space<vmem>>, vector<1x32x32xbf16>
    %181 = vector.shape_cast %180 : vector<1x32x32xbf16> to vector<32x32xbf16>
    %cst_129 = arith.constant dense<0.000000e+00> : vector<256x32xf32>
    %182 = tpu.matmul %179, %181, %cst_129 {dimension_numbers = #tpu.dot_dimension_numbers<[1], [0], [0], [1], [0, 0, 1, 1], [], []>} : vector<256x32xbf16>, vector<32x32xbf16>, vector<256x32xf32> -> vector<256x32xf32>
    %183 = arith.addf %173, %182 : vector<256x32xf32>
    %c0_130 = arith.constant 0 : index
    %c0_131 = arith.constant 0 : index
    %184 = vector.load %arg5[%c0_130, %c0_131] : memref<1x32xf32, #tpu.memory_space<vmem>>, vector<1x32xf32>
    %185 = vector.broadcast %184 : vector<1x32xf32> to vector<256x32xf32>
    %186 = arith.addf %183, %185 : vector<256x32xf32>
    %cst_132 = arith.constant 0.000000e+00 : f32
    %187 = vector.broadcast %cst_132 : f32 to vector<256x32xf32>
    %188 = arith.maximumf %186, %187 : vector<256x32xf32>
    %c255_i32_133 = arith.constant 255 : i32
    %189 = tpu.dynamic_rotate %188 by %c255_i32_133 dim 0 : vector<256x32xf32>, i32 -> vector<256x32xf32>
    %190 = arith.maximumf %188, %189 : vector<256x32xf32>
    %c240_i32_134 = arith.constant 240 : i32
    %191 = tpu.dynamic_rotate %190 by %c240_i32_134 dim 0 : vector<256x32xf32>, i32 -> vector<256x32xf32>
    %192 = arith.maximumf %190, %191 : vector<256x32xf32>
    %c0_135 = arith.constant 0 : index
    %c0_136 = arith.constant 0 : index
    %193 = vector.load %arg7[%c0_135, %c0_136] : memref<64x256xf32, #tpu.memory_space<vmem>>, vector<64x256xf32>
    %cst_137 = arith.constant dense<0.000000e+00> : vector<64x32xf32>
    %194 = tpu.matmul %193, %192, %cst_137 {dimension_numbers = #tpu.dot_dimension_numbers<[1], [0], [0], [1], [0, 0, 1, 1], [], []>} : vector<64x256xf32>, vector<256x32xf32>, vector<64x32xf32> -> vector<64x32xf32>
    %195 = arith.truncf %194 : vector<64x32xf32> to vector<64x32xbf16>
    %c0_138 = arith.constant 0 : index
    %c0_139 = arith.constant 0 : index
    %c0_140 = arith.constant 0 : index
    %196 = vector.load %arg8[%c0_138, %c0_139, %c0_140] : memref<1x64x32xbf16, #tpu.memory_space<vmem>>, vector<1x64x32xbf16>
    %197 = vector.shape_cast %196 : vector<1x64x32xbf16> to vector<64x32xbf16>
    %198 = vector.shape_cast %195 : vector<64x32xbf16> to vector<1x64x32xbf16>
    tpu.vector_store %arg8[%c0_138, %c0_139, %c0_140], %198 {strides = array<i32>} : memref<1x64x32xbf16, #tpu.memory_space<vmem>>, vector<1x64x32xbf16>,
    return
  }
  func.func @transform_0(%arg0: i32) -> (i32, i32, i32) {
    %c0_i32 = arith.constant 0 : i32
    %c0_i32_0 = arith.constant 0 : i32
    %c0_i32_1 = arith.constant 0 : i32
    return %arg0, %c0_i32, %c0_i32_0 : i32, i32, i32
  }
  func.func @transform_1(%arg0: i32) -> (i32, i32, i32) {
    %c0_i32 = arith.constant 0 : i32
    %c0_i32_0 = arith.constant 0 : i32
    %c0_i32_1 = arith.constant 0 : i32
    %c0_i32_2 = arith.constant 0 : i32
    return %c0_i32, %c0_i32_0, %c0_i32_1 : i32, i32, i32
  }
  func.func @transform_2(%arg0: i32) -> (i32, i32) {
    %c0_i32 = arith.constant 0 : i32
    %c0_i32_0 = arith.constant 0 : i32
    %c0_i32_1 = arith.constant 0 : i32
    return %c0_i32, %c0_i32_0 : i32, i32
  }
  func.func @transform_3(%arg0: i32) -> (i32, i32, i32) {
    %c0_i32 = arith.constant 0 : i32
    %c0_i32_0 = arith.constant 0 : i32
    %c0_i32_1 = arith.constant 0 : i32
    %c0_i32_2 = arith.constant 0 : i32
    return %c0_i32, %c0_i32_0, %c0_i32_1 : i32, i32, i32
  }
  func.func @transform_4(%arg0: i32) -> (i32, i32) {
    %c0_i32 = arith.constant 0 : i32
    %c0_i32_0 = arith.constant 0 : i32
    %c0_i32_1 = arith.constant 0 : i32
    return %c0_i32, %c0_i32_0 : i32, i32
  }
  func.func @transform_5(%arg0: i32) -> (i32, i32, i32) {
    %c0_i32 = arith.constant 0 : i32
    %c0_i32_0 = arith.constant 0 : i32
    %c0_i32_1 = arith.constant 0 : i32
    %c0_i32_2 = arith.constant 0 : i32
    return %c0_i32, %c0_i32_0, %c0_i32_1 : i32, i32, i32
  }
  func.func @transform_6(%arg0: i32) -> (i32, i32) {
    %c0_i32 = arith.constant 0 : i32
    %c0_i32_0 = arith.constant 0 : i32
    %c0_i32_1 = arith.constant 0 : i32
    return %c0_i32, %c0_i32_0 : i32, i32
  }
  func.func @transform_7(%arg0: i32) -> (i32, i32, i32) {
    %c0_i32 = arith.constant 0 : i32
    %c0_i32_0 = arith.constant 0 : i32
    %c0_i32_1 = arith.constant 0 : i32
    return %arg0, %c0_i32, %c0_i32_0 : i32, i32, i32
  }
}

</mosaic_0001>

<bundles_post_ra>
// kernel: tpu_custom_call.1
= control target key start
LH: loop header
LB: loop body
LE: loop exit
PB: predicated region body
PF: predicated region fallthrough
CT: control target
= control target key end

     0   :  { %s9903_s24 = smov 0   ;;  %s15728_s0 = inlined_call_operand.vmem [shape: bf16[2,256,4], index: 0, kind: input, shape index: {}]   ;;  %s15729_s1 = inlined_call_operand.vmem [shape: bf16[9,4,32], index: 1, kind: input, shape index: {}]   ;;  %s15730_s2 = inlined_call_operand.vmem [shape: f32[1,32], index: 2, kind: input, shape index: {}]   ;;  %s15731_s3 = inlined_call_operand.vmem [shape: bf16[9,32,32], index: 3, kind: input, shape index: {}]   ;;  %s15732_s4 = inlined_call_operand.vmem [shape: f32[1,32], index: 4, kind: input, shape index: {}]   ;;  %s15733_s5 = inlined_call_operand.vmem [shape: f32[9,256,1], index: 5, kind: input, shape index: {}]   ;;  %s15734_s6 = inlined_call_operand.vmem [shape: f32[64,256], index: 6, kind: input, shape index: {}]   ;;  %s15735_s7 = inlined_call_operand.vmem [shape: bf16[2,64,32], index: 7, kind: output, shape index: {}]  }
   0x1 LB: > { %s8100_s25 = sadd.s32 4294967295, %s9860_s24   ;;  %p8104_p0 = scmp.ge.s32.totalorder %s9860_s24, 1  ;;  %s9860_s24 = sphi %s9903_s24, %s17_s24  }
   0x2   : > { %p237_p1 = scmp.lt.s32.totalorder %s9860_s24, 3 }
   0x4   : > { %p238_p2 = pnand %p8104_p0, %p237_p1 }
   0x6   : > { %241 = sbr.rel (%p238_p2) target bundleno = 1710 (0x6ae), region = 48 }
   0xb   : > { %v8111_v0 = vld [vmem:[%s15733_s5 + $0x110] sm:$0xff]  ;;  %v8109_v1 = vld [vmem:[%s15733_s5 + $0x100] sm:$0xff]  ;;  %v9862_v2 = vmov 0   ;;  %v8112_v3 = vld [vmem:[%s15733_s5 + $0x118] sm:$0xff]  ;;  %vm944_vm0 = vcmask 1041408   ;;  %p269_p3 = scmp.lt.s32.totalorder %s8100_s25, 1 }
   0xc   : > { %9835 = vset.pattern.permute.xlu1 %v9862_v2  ;;  %9834 = vset.pattern.permute.xlu0 %v9862_v2  ;;  %v8110_v4 = vld [vmem:[%s15733_s5 + $0x108] sm:$0xff]  ;;  %v8113_v6 = vld [vmem:[%s15733_s5 + $0x120] sm:$0xff]  ;;  %v8116_v7 = vld [vmem:[%s15733_s5 + $0x138] sm:$0xff]  ;;  %vm895_vm1 = vcmask 31744   ;;  %vm5047_vm4 = vcmask 261120   ;;  %vm8036_vm5 = vcmask 257024  }
   0xd   : > { %697 = vperm.xlu1 %9835, %v8111_v0   ;;  %687 = vperm.xlu0 %9834, %v8109_v1   ;;  %v8114_v5 = vld [vmem:[%s15733_s5 + $0x128] sm:$0xff]  ;;  %v8115_v8 = vld [vmem:[%s15733_s5 + $0x130] sm:$0xff]  ;;  %v8117_v10 = vld [vmem:[%s15733_s5 + $0x140] sm:$0xff]  ;;  %s17611_s25 = smov (!%p269_p3, %s8100_s25), 1 }
   0xe   : > { %v8118_v9 = vld [vmem:[%s15733_s5 + $0x148] sm:$0xff]  ;;  %v8120_v11 = vld [vmem:[%s15733_s5 + $0x158] sm:$0xff]  ;;  %v8119_v12 = vld [vmem:[%s15733_s5 + $0x150] sm:$0xff]  ;;  %s8723_s26 = sshll.u32 %s17611_s25, 7 }
   0xf   : > { %v8141_v13 = vld [vmem:[%s15729_s1 + $0x2] sm:$0x3]  ;;  %v8122_v14 = vld [vmem:[%s15733_s5 + $0x168] sm:$0xff]  ;;  %v8124_v17 = vld [vmem:[%s15733_s5 + $0x178] sm:$0xff]  ;;  %s10127_s10 = scalar_lea.vmem %s15728_s0, %s8723_s26  ;;  %s8724_s26 = sshll.u32 %s17611_s25, 5 }
  0x10   : > { %v8121_v15 = vld [vmem:[%s15733_s5 + $0x160] sm:$0xff]  ;;  %9815 = vmatprep.subr.msk.bf16.mxu0 %vm944_vm0, %v8141_v13  ;;  %v946_v16 = vsel %vm944_vm0, %v8141_v13, 0  ;;  %9816 = vmatprep.subr.msk.bf16.mxu1 %vm944_vm0, %v8141_v13  ;;  %v8123_v18 = vld [vmem:[%s15733_s5 + $0x170] sm:$0xff]  ;;  %v8134_v19 = vld [vmem:[%s15733_s5 + $0x1c8] sm:$0xff]  ;;  %s15707_s29 = scalar_lea.vmem %s15735_s7, %s8724_s26 }
  0x11   : > { %702 = vperm.xlu1 %9835, %v8112_v3   ;;  %692 = vperm.xlu0 %9834, %v8110_v4   ;;  %v8133_v20 = vld [vmem:[%s15733_s5 + $0x1c0] sm:$0xff]  ;;  %v8136_v21 = vld [vmem:[%s15733_s5 + $0x1d8] sm:$0xff]  ;;  %v8135_v22 = vld [vmem:[%s15733_s5 + $0x1d0] sm:$0xff] }
  0x12   : > { %9184 = vmatpush3.bf16.msra.mxu0 %v946_v16  ;;  %9814 = vmatpush3.bf16.msra.mxu1 %v946_v16  ;;  %v8126_v23 = vld [vmem:[%s15733_s5 + $0x188] sm:$0xff]  ;;  %v8125_v24 = vld [vmem:[%s15733_s5 + $0x180] sm:$0xff]  ;;  %v8128_v25 = vld [vmem:[%s15733_s5 + $0x198] sm:$0xff] }
  0x13   : > { %v8127_v26 = vld [vmem:[%s15733_s5 + $0x190] sm:$0xff]  ;;  %v8138_v27 = vld [vmem:[%s15733_s5 + $0x1e8] sm:$0xff]  ;;  %v8137_v28 = vld [vmem:[%s15733_s5 + $0x1e0] sm:$0xff] }
  0x14   : > { %v8140_v29 = vld [vmem:[%s15733_s5 + $0x1f8] sm:$0xff]  ;;  %v8139_v30 = vld [vmem:[%s15733_s5 + $0x1f0] sm:$0xff]  ;;  %v8130_v31 = vld [vmem:[%s15733_s5 + $0x1a8] sm:$0xff] }
  0x15   : > { %712 = vperm.xlu1 %9835, %v8114_v5   ;;  %707 = vperm.xlu0 %9834, %v8113_v6   ;;  %v8129_v32 = vld [vmem:[%s15733_s5 + $0x1a0] sm:$0xff]  ;;  %v8132_v33 = vld [vmem:[%s15733_s5 + $0x1b8] sm:$0xff]  ;;  %v8131_v34 = vld [vmem:[%s15733_s5 + $0x1b0] sm:$0xff] }
  0x16   : > { %v412_v35 = vld [vmem:[%s15733_s5 + $0x8] sm:$0xff]  ;;  %v411_v36 = vld [vmem:[%s15733_s5] sm:$0xff]  ;;  %v414_v38 = vld [vmem:[%s15733_s5 + $0x18] sm:$0xff] }
  0x17   : > { %v10022_v37 = vld [vmem:[%s15729_s1] sm:$0x3]  ;;  %v413_v39 = vld [vmem:[%s15733_s5 + $0x10] sm:$0xff]  ;;  %v8175_v40 = vld [vmem:[%s15733_s5 + $0x208] sm:$0xff] }
  0x18   : > { %9817 = vmatprep.subr.msk.bf16.mxu1 %vm944_vm0, %v10022_v37  ;;  %v8174_v41 = vld [vmem:[%s15733_s5 + $0x200] sm:$0xff]  ;;  %v8177_v43 = vld [vmem:[%s15733_s5 + $0x218] sm:$0xff]  ;;  %v8176_v44 = vld [vmem:[%s15733_s5 + $0x210] sm:$0xff] }
  0x19   : > { %722 = vperm.xlu1 %9835, %v8116_v7   ;;  %717 = vperm.xlu0 %9834, %v8115_v8   ;;  %v10041_v42 = vld [vmem:[%s15729_s1 + $0x4] sm:$0x3]  ;;  %v416_v45 = vld [vmem:[%s15733_s5 + $0x28] sm:$0xff]  ;;  %v418_v47 = vld [vmem:[%s15733_s5 + $0x38] sm:$0xff] }
  0x1a   : > { %9818 = vmatprep.subr.msk.bf16.mxu0 %vm944_vm0, %v10041_v42  ;;  %v415_v46 = vld [vmem:[%s15733_s5 + $0x20] sm:$0xff]  ;;  %v417_v48 = vld [vmem:[%s15733_s5 + $0x30] sm:$0xff]  ;;  %v8179_v49 = vld [vmem:[%s15733_s5 + $0x228] sm:$0xff] }
  0x1b   : > { %v8178_v50 = vld [vmem:[%s15733_s5 + $0x220] sm:$0xff]  ;;  %v8181_v51 = vld [vmem:[%s15733_s5 + $0x238] sm:$0xff]  ;;  %v8180_v52 = vld [vmem:[%s15733_s5 + $0x230] sm:$0xff] }
  0x1c   : > { %v420_v53 = vld [vmem:[%s15733_s5 + $0x48] sm:$0xff]  ;;  %v419_v54 = vld [vmem:[%s15733_s5 + $0x40] sm:$0xff]  ;;  %v422_v55 = vld [vmem:[%s15733_s5 + $0x58] sm:$0xff] }
  0x1d   : > { %732 = vperm.xlu1 %9835, %v8118_v9   ;;  %727 = vperm.xlu0 %9834, %v8117_v10   ;;  %v421_v56 = vld [vmem:[%s15733_s5 + $0x50] sm:$0xff]  ;;  %v8183_v57 = vld [vmem:[%s15733_s5 + $0x248] sm:$0xff]  ;;  %v8182_v58 = vld [vmem:[%s15733_s5 + $0x240] sm:$0xff] }
  0x1e   : > { %v8185_v59 = vld [vmem:[%s15733_s5 + $0x258] sm:$0xff]  ;;  %v8184_v60 = vld [vmem:[%s15733_s5 + $0x250] sm:$0xff]  ;;  %v424_v61 = vld [vmem:[%s15733_s5 + $0x68] sm:$0xff] }
  0x1f   : > { %v423_v62 = vld [vmem:[%s15733_s5 + $0x60] sm:$0xff]  ;;  %v426_v63 = vld [vmem:[%s15733_s5 + $0x78] sm:$0xff]  ;;  %v425_v0 = vld [vmem:[%s15733_s5 + $0x70] sm:$0xff] }
  0x20   : > { %v8187_v1 = vld [vmem:[%s15733_s5 + $0x268] sm:$0xff]  ;;  %v8186_v2 = vld [vmem:[%s15733_s5 + $0x260] sm:$0xff]  ;;  %v8189_v4 = vld [vmem:[%s15733_s5 + $0x278] sm:$0xff] }
  0x21   : > { %742 = vperm.xlu1 %9835, %v8120_v11   ;;  %737 = vperm.xlu0 %9834, %v8119_v12   ;;  %v8734_v3 = vld [vmem:[%s10127_s10] sm:$0xff]   ;;  %v8188_v5 = vld [vmem:[%s15733_s5 + $0x270] sm:$0xff]  ;;  %v8811_v6 = vld [vmem:[%s10127_s10 + $0x78] sm:$0xff]  }
  0x22   : > { %v10139_v8 = vunpack.c.l.bf16 %v8734_v3  ;;  %v10143_v10 = vunpack.c.h.bf16 %v8734_v3  ;;  %v8797_v11 = vld [vmem:[%s10127_s10 + $0x8] sm:$0xff]   ;;  %v10146_v12 = vunpack.c.l.bf16 %v8811_v6  ;;  %v10148_v13 = vunpack.c.h.bf16 %v8811_v6  ;;  %v434_v3 = vld [vmem:[%s15733_s5 + $0xb8] sm:$0xff] }
  0x24   : > { %16331 = vst [vmem:[#allocation3_spill] sm:$0xff] %v10139_v8  ;;  %16333 = vst [vmem:[#allocation5_spill] sm:$0xff] %v10143_v10 }
  0x25   : > { %752 = vperm.xlu1 %9835, %v8122_v14   ;;  %747 = vperm.xlu0 %9834, %v8121_v15   ;;  %16334 = vst [vmem:[#allocation6_spill] sm:$0xff] %v10146_v12  ;;  %16335 = vst [vmem:[#allocation7_spill] sm:$0xff] %v10148_v13  ;;  %v428_v14 = vld [vmem:[%s15733_s5 + $0x88] sm:$0xff]  ;;  %v427_v15 = vld [vmem:[%s15733_s5 + $0x80] sm:$0xff] }
  0x29   : > { %762 = vperm.xlu1 %9835, %v8124_v17   ;;  %757 = vperm.xlu0 %9834, %v8123_v18  }
  0x2d   : > { %812 = vperm.xlu1 %9835, %v8134_v19   ;;  %807 = vperm.xlu0 %9834, %v8133_v20   ;;  %v10162_v19 = vunpack.c.h.bf16 %v8797_v11 }
  0x2f   : > { %16338 = vst [vmem:[#allocation10_spill] sm:$0xff] %v10162_v19 }
  0x31   : > { %822 = vperm.xlu1 %9835, %v8136_v21   ;;  %817 = vperm.xlu0 %9834, %v8135_v22   ;;  %v10166_v21 = vunpack.c.l.bf16 %v8797_v11 }
  0x33   : > { %16339 = vst [vmem:[#allocation11_spill] sm:$0xff] %v10166_v21 }
  0x35   : > { %772 = vperm.xlu1 %9835, %v8126_v23   ;;  %767 = vperm.xlu0 %9834, %v8125_v24   ;;  %v8798_v24 = vld [vmem:[%s10127_s10 + $0x10] sm:$0xff]  }
  0x39   : > { %782 = vperm.xlu1 %9835, %v8128_v25   ;;  %777 = vperm.xlu0 %9834, %v8127_v26   ;;  %v430_v25 = vld [vmem:[%s15733_s5 + $0x98] sm:$0xff]  ;;  %v429_v26 = vld [vmem:[%s15733_s5 + $0x90] sm:$0xff] }
  0x3d   : > { %832 = vperm.xlu1 %9835, %v8138_v27   ;;  %827 = vperm.xlu0 %9834, %v8137_v28  }
  0x41   : > { %842 = vperm.xlu1 %9835, %v8140_v29   ;;  %837 = vperm.xlu0 %9834, %v8139_v30  }
  0x45   : > { %792 = vperm.xlu1 %9835, %v8130_v31   ;;  %787 = vperm.xlu0 %9834, %v8129_v32   ;;  %v10183_v31 = vunpack.c.h.bf16 %v8798_v24 }
  0x47   : > { %16342 = vst [vmem:[#allocation14_spill] sm:$0xff] %v10183_v31 }
  0x49   : > { %802 = vperm.xlu1 %9835, %v8132_v33   ;;  %797 = vperm.xlu0 %9834, %v8131_v34   ;;  %v10189_v34 = vunpack.c.l.bf16 %v8798_v24  ;;  %v8194_v24 = vld [vmem:[%s15733_s5 + $0x2a0] sm:$0xff] }
  0x4b   : > { %16343 = vst [vmem:[#allocation15_spill] sm:$0xff] %v10189_v34 }
  0x4d   : > { %450 = vperm.xlu1 %9835, %v412_v35   ;;  %445 = vperm.xlu0 %9834, %v411_v36   ;;  %v1678_v35 = vsel %vm944_vm0, %v10041_v42, 0  ;;  %v8191_v36 = vld [vmem:[%s15733_s5 + $0x288] sm:$0xff] }
  0x51   : > { %460 = vperm.xlu1 %9835, %v414_v38   ;;  %455 = vperm.xlu0 %9834, %v413_v39   ;;  %v8190_v38 = vld [vmem:[%s15733_s5 + $0x280] sm:$0xff]  ;;  %v8799_v39 = vld [vmem:[%s10127_s10 + $0x18] sm:$0xff]  }
  0x55   : > { %1426 = vperm.xlu1 %9835, %v8175_v40   ;;  %1421 = vperm.xlu0 %9834, %v8174_v41  }
  0x59   : > { %1436 = vperm.xlu1 %9835, %v8177_v43   ;;  %1431 = vperm.xlu0 %9834, %v8176_v44  }
  0x5d   : > { %470 = vperm.xlu1 %9835, %v416_v45   ;;  %465 = vperm.xlu0 %9834, %v415_v46   ;;  %v10210_v45 = vunpack.c.h.bf16 %v8799_v39  ;;  %v10212_v46 = vunpack.c.l.bf16 %v8799_v39  ;;  %v8196_v39 = vld [vmem:[%s15733_s5 + $0x2b0] sm:$0xff] }
  0x5f   : > { %16346 = vst [vmem:[#allocation18_spill] sm:$0xff] %v10210_v45  ;;  %16347 = vst [vmem:[#allocation19_spill] sm:$0xff] %v10212_v46 }
  0x61   : > { %480 = vperm.xlu1 %9835, %v418_v47   ;;  %475 = vperm.xlu0 %9834, %v417_v48   ;;  %v8193_v47 = vld [vmem:[%s15733_s5 + $0x298] sm:$0xff]  ;;  %v8192_v48 = vld [vmem:[%s15733_s5 + $0x290] sm:$0xff] }
  0x65   : > { %1446 = vperm.xlu1 %9835, %v8179_v49   ;;  %1441 = vperm.xlu0 %9834, %v8178_v50   ;;  %v8800_v49 = vld [vmem:[%s10127_s10 + $0x20] sm:$0xff]  }
  0x69   : > { %1456 = vperm.xlu1 %9835, %v8181_v51   ;;  %1451 = vperm.xlu0 %9834, %v8180_v52  }
  0x6d   : > { %490 = vperm.xlu1 %9835, %v420_v53   ;;  %485 = vperm.xlu0 %9834, %v419_v54  }
  0x71   : > { %500 = vperm.xlu1 %9835, %v422_v55   ;;  %495 = vperm.xlu0 %9834, %v421_v56   ;;  %v10230_v55 = vunpack.c.h.bf16 %v8800_v49  ;;  %v10232_v56 = vunpack.c.l.bf16 %v8800_v49 }
  0x73   : > { %16350 = vst [vmem:[#allocation22_spill] sm:$0xff] %v10230_v55  ;;  %16351 = vst [vmem:[#allocation23_spill] sm:$0xff] %v10232_v56 }
  0x75   : > { %1466 = vperm.xlu1 %9835, %v8183_v57   ;;  %1461 = vperm.xlu0 %9834, %v8182_v58   ;;  %v432_v57 = vld [vmem:[%s15733_s5 + $0xa8] sm:$0xff]  ;;  %v431_v58 = vld [vmem:[%s15733_s5 + $0xa0] sm:$0xff] }
  0x79   : > { %1476 = vperm.xlu1 %9835, %v8185_v59   ;;  %1471 = vperm.xlu0 %9834, %v8184_v60   ;;  %v8801_v59 = vld [vmem:[%s10127_s10 + $0x28] sm:$0xff]  }
  0x7d   : > { %510 = vperm.xlu1 %9835, %v424_v61   ;;  %505 = vperm.xlu0 %9834, %v423_v62  }
  0x81   : > { %520 = vperm.xlu1 %9835, %v426_v63   ;;  %515 = vperm.xlu0 %9834, %v425_v0  }
  0x85   : > { %1486 = vperm.xlu1 %9835, %v8187_v1   ;;  %1481 = vperm.xlu0 %9834, %v8186_v2   ;;  %v10250_v1 = vunpack.c.h.bf16 %v8801_v59  ;;  %v10252_v2 = vunpack.c.l.bf16 %v8801_v59 }
  0x87   : > { %16354 = vst [vmem:[#allocation26_spill] sm:$0xff] %v10250_v1  ;;  %16355 = vst [vmem:[#allocation27_spill] sm:$0xff] %v10252_v2 }
  0x88   : > { %v10137_v7 = vpop.permute.xlu1 %697  ;;  %v10141_v9 = vpop.permute.xlu0 %687 }
  0x89   : > { %16330 = vst [vmem:[#allocation2_spill] sm:$0xff] %v10137_v7  ;;  %16332 = vst [vmem:[#allocation4_spill] sm:$0xff] %v10141_v9  ;;  %1496 = vperm.xlu1 %9835, %v8189_v4   ;;  %1491 = vperm.xlu0 %9834, %v8188_v5   ;;  %v847_v16 = vmul.f32 %v10139_v8, %v10137_v7  ;;  %v845_v22 = vmul.f32 %v10146_v12, %v10141_v9  ;;  %v433_v4 = vld [vmem:[%s15733_s5 + $0xb0] sm:$0xff] }
  0x8a   : > { %v8802_v5 = vld [vmem:[%s10127_s10 + $0x30] sm:$0xff]  }
  0x8c   : > { %v10158_v17 = vpop.permute.xlu1 %702  ;;  %v10160_v18 = vpop.permute.xlu0 %692 }
  0x8d   : > { %16336 = vst [vmem:[#allocation8_spill] sm:$0xff] %v10158_v17  ;;  %16337 = vst [vmem:[#allocation9_spill] sm:$0xff] %v10160_v18  ;;  %v848_v20 = vmul.f32 %v10143_v10, %v10158_v17  ;;  %530 = vperm.xlu1 %9835, %v428_v14   ;;  %525 = vperm.xlu0 %9834, %v427_v15   ;;  %v846_v23 = vmul.f32 %v10148_v13, %v10160_v18 }
  0x8f   : > { %v878_v27 = vpack.c.bf16 %v848_v20, %v847_v16  ;;  %v877_v28 = vpack.c.bf16 %v846_v23, %v845_v22  ;;  %v10270_v20 = vunpack.c.h.bf16 %v8802_v5  ;;  %v10272_v22 = vunpack.c.l.bf16 %v8802_v5  ;;  %v8195_v23 = vld [vmem:[%s15733_s5 + $0x2a8] sm:$0xff] }
  0x90   : > { %v10179_v29 = vpop.permute.xlu1 %712  ;;  %v10181_v30 = vpop.permute.xlu0 %707 }
  0x91   : > { %16340 = vst [vmem:[#allocation12_spill] sm:$0xff] %v10179_v29  ;;  %16341 = vst [vmem:[#allocation13_spill] sm:$0xff] %v10181_v30  ;;  %v850_v32 = vmul.f32 %v10162_v19, %v10179_v29  ;;  %v849_v33 = vmul.f32 %v10166_v21, %v10181_v30  ;;  %540 = vperm.xlu1 %9835, %v430_v25   ;;  %535 = vperm.xlu0 %9834, %v429_v26   ;;  %v8807_v25 = vld [vmem:[%s10127_s10 + $0x58] sm:$0xff]  }
  0x92   : > { %9185 = vmatprep.mubr.msk.bf16.mxu0 %vm895_vm1, %v877_v28  ;;  %16358 = vst [vmem:[#allocation30_spill] sm:$0xff] %v10270_v20  ;;  %16359 = vst [vmem:[#allocation31_spill] sm:$0xff] %v10272_v22 }
  0x93   : > { %v879_v40 = vpack.c.bf16 %v850_v32, %v849_v33  ;;  %9186 = vmatmul.mubr.msk.bf16.vlgmr.msra.gmra.mxu0 %vm895_vm1, %v878_v27 }
  0x94   : > { %v10202_v41 = vpop.permute.xlu1 %722  ;;  %v10204_v43 = vpop.permute.xlu0 %717  ;;  %9252 = vmatpush3.bf16.msra.mxu0 %v1678_v35  ;;  %v10290_v35 = vunpack.c.l.bf16 %v8807_v25 }
  0x95   : > { %16344 = vst [vmem:[#allocation16_spill] sm:$0xff] %v10202_v41  ;;  %16345 = vst [vmem:[#allocation17_spill] sm:$0xff] %v10204_v43  ;;  %v852_v42 = vmul.f32 %v10183_v31, %v10202_v41  ;;  %v851_v44 = vmul.f32 %v10189_v34, %v10204_v43  ;;  %1506 = vperm.xlu1 %9835, %v8191_v36   ;;  %1501 = vperm.xlu0 %9834, %v8190_v38   ;;  %v10292_v36 = vunpack.c.h.bf16 %v8807_v25  ;;  %v8197_v38 = vld [vmem:[%s15733_s5 + $0x2b8] sm:$0xff] }
  0x96   : > { %9189 = vmatprep.mubr.msk.bf16.mxu0 %vm895_vm1, %v879_v40  ;;  %16362 = vst [vmem:[#allocation34_spill] sm:$0xff] %v10290_v35  ;;  %v8808_v40 = vld [vmem:[%s10127_s10 + $0x60] sm:$0xff]  }
  0x97   : > { %v880_v50 = vpack.c.bf16 %v852_v42, %v851_v44  ;;  %16363 = vst [vmem:[#allocation35_spill] sm:$0xff] %v10292_v36  ;;  %v10308_v49 = vunpack.c.l.bf16 %v8808_v40 }
  0x98   : > { %v10222_v51 = vpop.permute.xlu1 %732  ;;  %v10224_v52 = vpop.permute.xlu0 %727 }
  0x99   : > { %16348 = vst [vmem:[#allocation20_spill] sm:$0xff] %v10222_v51  ;;  %16349 = vst [vmem:[#allocation21_spill] sm:$0xff] %v10224_v52  ;;  %v854_v53 = vmul.f32 %v10210_v45, %v10222_v51  ;;  %v853_v54 = vmul.f32 %v10212_v46, %v10224_v52  ;;  %1516 = vperm.xlu1 %9835, %v8193_v47   ;;  %1511 = vperm.xlu0 %9834, %v8192_v48   ;;  %v10306_v48 = vunpack.c.h.bf16 %v8808_v40  ;;  %v8199_v40 = vld [vmem:[%s15733_s5 + $0x2c8] sm:$0xff] }
  0x9a   : > { %16367 = vst [vmem:[#allocation39_spill] sm:$0xff] %v10308_v49 }
  0x9b   : > { %v881_v60 = vpack.c.bf16 %v854_v53, %v853_v54  ;;  %9190 = vmatmul.mubr.msk.bf16.gmra.mxu0 %vm895_vm1, %v880_v50  ;;  %16366 = vst [vmem:[#allocation38_spill] sm:$0xff] %v10306_v48  ;;  %v436_v54 = vld [vmem:[%s15733_s5 + $0xc8] sm:$0xff] }
  0x9c   : > { %v10242_v61 = vpop.permute.xlu1 %742  ;;  %v10244_v62 = vpop.permute.xlu0 %737 }
  0x9d   : > { %16352 = vst [vmem:[#allocation24_spill] sm:$0xff] %v10242_v61  ;;  %16353 = vst [vmem:[#allocation25_spill] sm:$0xff] %v10244_v62  ;;  %v856_v63 = vmul.f32 %v10230_v55, %v10242_v61  ;;  %v855_v0 = vmul.f32 %v10232_v56, %v10244_v62  ;;  %550 = vperm.xlu1 %9835, %v432_v57   ;;  %545 = vperm.xlu0 %9834, %v431_v58   ;;  %v435_v57 = vld [vmem:[%s15733_s5 + $0xc0] sm:$0xff]  ;;  %v8803_v58 = vld [vmem:[%s10127_s10 + $0x38] sm:$0xff]  }
  0x9e   : > { %9193 = vmatprep.mubr.msk.bf16.mxu0 %vm895_vm1, %v881_v60  ;;  %v10332_v5 = vunpack.c.l.bf16 %v8803_v58 }
  0x9f   : > { %v882_v6 = vpack.c.bf16 %v856_v63, %v855_v0 }
  0xa0   : > { %v10262_v11 = vpop.permute.xlu1 %752  ;;  %v10264_v14 = vpop.permute.xlu0 %747  ;;  %16371 = vst [vmem:[#allocation43_spill] sm:$0xff] %v10332_v5 }
  0xa1   : > { %16356 = vst [vmem:[#allocation28_spill] sm:$0xff] %v10262_v11  ;;  %16357 = vst [vmem:[#allocation29_spill] sm:$0xff] %v10264_v14  ;;  %v858_v15 = vmul.f32 %v10250_v1, %v10262_v11  ;;  %v857_v16 = vmul.f32 %v10252_v2, %v10264_v14  ;;  %560 = vperm.xlu1 %9835, %v434_v3   ;;  %555 = vperm.xlu0 %9834, %v433_v4   ;;  %v10330_v4 = vunpack.c.h.bf16 %v8803_v58  ;;  %v8304_v14 = vld [vmem:[%s15729_s1 + $0x8] sm:$0x3] }
  0xa2   : > { %9820 = vmatprep.subr.msk.bf16.mxu0 %vm944_vm0, %v8304_v14 }
  0xa3   : > { %v883_v26 = vpack.c.bf16 %v858_v15, %v857_v16  ;;  %9194 = vmatmul.mubr.msk.bf16.gmra.mxu0 %vm895_vm1, %v882_v6  ;;  %16370 = vst [vmem:[#allocation42_spill] sm:$0xff] %v10330_v4  ;;  %v438_v6 = vld [vmem:[%s15733_s5 + $0xd8] sm:$0xff]  ;;  %v437_v15 = vld [vmem:[%s15733_s5 + $0xd0] sm:$0xff]  ;;  %v8804_v16 = vld [vmem:[%s10127_s10 + $0x40] sm:$0xff]  }
  0xa4   : > { %v10282_v27 = vpop.permute.xlu1 %762  ;;  %v10284_v28 = vpop.permute.xlu0 %757 }
  0xa5   : > { %16360 = vst [vmem:[#allocation32_spill] sm:$0xff] %v10282_v27  ;;  %16361 = vst [vmem:[#allocation33_spill] sm:$0xff] %v10284_v28  ;;  %v860_v32 = vmul.f32 %v10270_v20, %v10282_v27  ;;  %v859_v33 = vmul.f32 %v10272_v22, %v10284_v28  ;;  %1526 = vperm.xlu1 %9835, %v8195_v23   ;;  %1521 = vperm.xlu0 %9834, %v8194_v24  }
  0xa6   : > { %9197 = vmatprep.mubr.msk.bf16.mxu0 %vm895_vm1, %v883_v26  ;;  %v1158_v26 = vsel %vm944_vm0, %v10022_v37, 0  ;;  %v8198_v37 = vld [vmem:[%s15733_s5 + $0x2c0] sm:$0xff] }
  0xa7   : > { %v884_v42 = vpack.c.bf16 %v860_v32, %v859_v33 }
  0xa8   : > { %v10302_v44 = vpop.permute.xlu1 %812  ;;  %v10304_v47 = vpop.permute.xlu0 %807 }
  0xa9   : > { %16364 = vst [vmem:[#allocation36_spill] sm:$0xff] %v10302_v44  ;;  %16365 = vst [vmem:[#allocation37_spill] sm:$0xff] %v10304_v47  ;;  %1536 = vperm.xlu1 %9835, %v8197_v38   ;;  %1531 = vperm.xlu0 %9834, %v8196_v39   ;;  %v869_v50 = vmul.f32 %v10290_v35, %v10304_v47  ;;  %v870_v53 = vmul.f32 %v10292_v36, %v10302_v44  ;;  %v10352_v38 = vunpack.c.h.bf16 %v8804_v16 }
  0xaa   : > { %v10354_v39 = vunpack.c.l.bf16 %v8804_v16 }
  0xab   : > { %9198 = vmatmul.mubr.msk.bf16.gmra.mxu0 %vm895_vm1, %v884_v42  ;;  %v889_v59 = vpack.c.bf16 %v870_v53, %v869_v50  ;;  %16374 = vst [vmem:[#allocation46_spill] sm:$0xff] %v10352_v38  ;;  %v8809_v42 = vld [vmem:[%s10127_s10 + $0x68] sm:$0xff]  }
  0xac   : > { %v10322_v60 = vpop.permute.xlu1 %822  ;;  %v10324_v63 = vpop.permute.xlu0 %817  ;;  %16375 = vst [vmem:[#allocation47_spill] sm:$0xff] %v10354_v39 }
  0xad   : > { %16368 = vst [vmem:[#allocation40_spill] sm:$0xff] %v10322_v60  ;;  %16369 = vst [vmem:[#allocation41_spill] sm:$0xff] %v10324_v63  ;;  %v872_v0 = vmul.f32 %v10306_v48, %v10322_v60  ;;  %v871_v3 = vmul.f32 %v10308_v49, %v10324_v63  ;;  %570 = vperm.xlu1 %9835, %v436_v54   ;;  %565 = vperm.xlu0 %9834, %v435_v57   ;;  %v376_v63 = vlaneseq }
  0xae   : > { %9209 = vmatprep.mubr.msk.bf16.mxu1 %vm895_vm1, %v889_v59  ;;  %v10372_v59 = vunpack.c.h.bf16 %v8809_v42 }
  0xaf   : > { %v890_v23 = vpack.c.bf16 %v872_v0, %v871_v3  ;;  %v10374_v0 = vunpack.c.l.bf16 %v8809_v42  ;;  %v8201_v3 = vld [vmem:[%s15733_s5 + $0x2d8] sm:$0xff]  ;;  %v440_v42 = vld [vmem:[%s15733_s5 + $0xe8] sm:$0xff] }
  0xb0   : > { %v10342_v24 = vpop.permute.xlu1 %772  ;;  %v10344_v25 = vpop.permute.xlu0 %767  ;;  %16378 = vst [vmem:[#allocation50_spill] sm:$0xff] %v10372_v59 }
  0xb1   : > { %16372 = vst [vmem:[#allocation44_spill] sm:$0xff] %v10342_v24  ;;  %16373 = vst [vmem:[#allocation45_spill] sm:$0xff] %v10344_v25  ;;  %v862_v32 = vmul.f32 %v10330_v4, %v10342_v24  ;;  %v861_v33 = vmul.f32 %v10332_v5, %v10344_v25  ;;  %580 = vperm.xlu1 %9835, %v438_v6   ;;  %575 = vperm.xlu0 %9834, %v437_v15   ;;  %v8200_v6 = vld [vmem:[%s15733_s5 + $0x2d0] sm:$0xff]  ;;  %v344_v24 = vrot.slane %v10139_v8, 7  ;;  %v8255_v25 = vld [vmem:[%s15729_s1 + $0x6] sm:$0x3] }
  0xb2   : > { %9210 = vmatmul.mubr.msk.bf16.vlgmr.msra.gmra.mxu1 %vm895_vm1, %v890_v23  ;;  %16379 = vst [vmem:[#allocation51_spill] sm:$0xff] %v10374_v0  ;;  %v8810_v15 = vld [vmem:[%s10127_s10 + $0x70] sm:$0xff]  }
  0xb3   : > { %v885_v50 = vpack.c.bf16 %v862_v32, %v861_v33  ;;  %9218 = vmatpush3.bf16.msra.mxu1 %v1158_v26 }
  0xb4   : > { %v10364_v53 = vpop.permute.xlu1 %782  ;;  %v10366_v54 = vpop.permute.xlu0 %777  ;;  %9819 = vmatprep.subr.msk.bf16.mxu1 %vm944_vm0, %v8255_v25 }
  0xb5   : > { %16376 = vst [vmem:[#allocation48_spill] sm:$0xff] %v10364_v53  ;;  %16377 = vst [vmem:[#allocation49_spill] sm:$0xff] %v10366_v54  ;;  %v864_v57 = vmul.f32 %v10352_v38, %v10364_v53  ;;  %v863_v58 = vmul.f32 %v10354_v39, %v10366_v54  ;;  %1546 = vperm.xlu1 %9835, %v8199_v40   ;;  %1541 = vperm.xlu0 %9834, %v8198_v37   ;;  %v10392_v40 = vunpack.c.h.bf16 %v8810_v15 }
  0xb6   : > { %9201 = vmatprep.mubr.msk.bf16.mxu0 %vm895_vm1, %v885_v50  ;;  %v10394_v37 = vunpack.c.l.bf16 %v8810_v15  ;;  %v439_v50 = vld [vmem:[%s15733_s5 + $0xe0] sm:$0xff]  ;;  %v10424_v54 = vshrl.u32 %v376_v63, 7  ;;  %v8203_v63 = vld [vmem:[%s15733_s5 + $0x2e8] sm:$0xff] }
  0xb7   : > { %v886_v16 = vpack.c.bf16 %v864_v57, %v863_v58  ;;  %16382 = vst [vmem:[#allocation54_spill] sm:$0xff] %v10392_v40  ;;  %v8805_v57 = vld [vmem:[%s10127_s10 + $0x48] sm:$0xff]  }
  0xb8   : > { %v10384_v23 = vpop.permute.xlu1 %832  ;;  %v10386_v26 = vpop.permute.xlu0 %827  ;;  %16383 = vst [vmem:[#allocation55_spill] sm:$0xff] %v10394_v37  ;;  %v10412_v60 = vunpack.c.h.bf16 %v8805_v57  ;;  %v10414_v44 = vunpack.c.l.bf16 %v8805_v57  ;;  %16388 = vst [vmem:[#allocation60_spill] sm:$0xff] %v10424_v54  ;;  %vm378_vm2 = vcmp.lt.s32.totalorder %v10424_v54, 1  ;;  %vm1353_vm3 = vcmp.lt.s32.totalorder %v10424_v54, 7 }
  0xb9   : > { %16380 = vst [vmem:[#allocation52_spill] sm:$0xff] %v10384_v23  ;;  %16381 = vst [vmem:[#allocation53_spill] sm:$0xff] %v10386_v26  ;;  %v874_v32 = vmul.f32 %v10372_v59, %v10384_v23  ;;  %v873_v33 = vmul.f32 %v10374_v0, %v10386_v26  ;;  %1556 = vperm.xlu1 %9835, %v8201_v3   ;;  %1551 = vperm.xlu0 %9834, %v8200_v6  }
  0xba   : > { %9202 = vmatmul.mubr.msk.bf16.gmra.mxu0 %vm895_vm1, %v886_v16  ;;  %16386 = vst [vmem:[#allocation58_spill] sm:$0xff] %v10412_v60  ;;  %16387 = vst [vmem:[#allocation59_spill] sm:$0xff] %v10414_v44 }
  0xbb   : > { %v891_v58 = vpack.c.bf16 %v874_v32, %v873_v33  ;;  %v442_v32 = vld [vmem:[%s15733_s5 + $0xf8] sm:$0xff]  ;;  %v441_v33 = vld [vmem:[%s15733_s5 + $0xf0] sm:$0xff] }
  0xbc   : > { %v10404_v3 = vpop.permute.xlu1 %842  ;;  %v10406_v6 = vpop.permute.xlu0 %837 }
  0xbd   : > { %16384 = vst [vmem:[#allocation56_spill] sm:$0xff] %v10404_v3  ;;  %16385 = vst [vmem:[#allocation57_spill] sm:$0xff] %v10406_v6  ;;  %v876_v15 = vmul.f32 %v10392_v40, %v10404_v3  ;;  %v875_v16 = vmul.f32 %v10394_v37, %v10406_v6  ;;  %590 = vperm.xlu1 %9835, %v440_v42   ;;  %585 = vperm.xlu0 %9834, %v439_v50   ;;  %v8806_v3 = vld [vmem:[%s10127_s10 + $0x50] sm:$0xff]  }
  0xbe   : > { %9213 = vmatprep.mubr.msk.bf16.mxu1 %vm895_vm1, %v891_v58  ;;  %v10434_v6 = vunpack.c.h.bf16 %v8806_v3  ;;  %v10436_v53 = vunpack.c.l.bf16 %v8806_v3 }
  0xbf   : > { %v892_v47 = vpack.c.bf16 %v876_v15, %v875_v16  ;;  %v8202_v15 = vld [vmem:[%s15733_s5 + $0x2e0] sm:$0xff]  ;;  %v374_v16 = vrot.slane %v10146_v12, 7 }
  0xc0   : > { %v10426_v42 = vpop.permute.xlu1 %792  ;;  %v10428_v50 = vpop.permute.xlu0 %787  ;;  %16391 = vst [vmem:[#allocation63_spill] sm:$0xff] %v10434_v6  ;;  %16392 = vst [vmem:[#allocation64_spill] sm:$0xff] %v10436_v53 }
  0xc1   : > { %16389 = vst [vmem:[#allocation61_spill] sm:$0xff] %v10426_v42  ;;  %16390 = vst [vmem:[#allocation62_spill] sm:$0xff] %v10428_v50  ;;  %v866_v57 = vmul.f32 %v10412_v60, %v10426_v42  ;;  %v865_v58 = vmul.f32 %v10414_v44, %v10428_v50  ;;  %600 = vperm.xlu1 %9835, %v442_v32   ;;  %595 = vperm.xlu0 %9834, %v441_v33   ;;  %v375_v50 = vrot.slane %v10148_v13, 7 }
  0xc2   : > { %9214 = vmatmul.mubr.msk.bf16.gmra.mxu1 %vm895_vm1, %v892_v47  ;;  %v15751_v32 = vrot.slane %v10392_v40, 7 }
  0xc3   : > { %v887_v33 = vpack.c.bf16 %v866_v57, %v865_v58  ;;  %v10462_v57 = vsel %vm378_vm2, %v374_v16, %v375_v50 }
  0xc4   : > { %v10449_v3 = vpop.permute.xlu1 %802  ;;  %v10451_v47 = vpop.permute.xlu0 %797  ;;  %16395 = vst [vmem:[#allocation67_spill] sm:$0xff] %v10462_v57  ;;  %v10468_v58 = vsel %vm378_vm2, %v15751_v32, %v374_v16  ;;  %v16399_v32 = vrot.slane %v10143_v10, 7 }
  0xc5   : > { %16393 = vst [vmem:[#allocation65_spill] sm:$0xff] %v10449_v3  ;;  %16394 = vst [vmem:[#allocation66_spill] sm:$0xff] %v10451_v47  ;;  %v868_v42 = vmul.f32 %v10434_v6, %v10449_v3  ;;  %v867_v27 = vmul.f32 %v10436_v53, %v10451_v47  ;;  %1566 = vperm.xlu1 %9835, %v8203_v63   ;;  %1561 = vperm.xlu0 %9834, %v8202_v15   ;;  %v8205_v63 = vld [vmem:[%s15733_s5 + $0x2f8] sm:$0xff]  ;;  %v8204_v15 = vld [vmem:[%s15733_s5 + $0x2f0] sm:$0xff] }
  0xc6   : > { %9205 = vmatprep.mubr.msk.bf16.mxu0 %vm895_vm1, %v887_v33  ;;  %16396 = vst [vmem:[#allocation68_spill] sm:$0xff] %v10468_v58  ;;  %v10488_v9 = vsel %vm378_vm2, %v344_v24, %v16399_v32  ;;  %v15761_v32 = vrot.slane %v10146_v12, 1 }
  0xc7   : > { %v888_v18 = vpack.c.bf16 %v868_v42, %v867_v27  ;;  %16400 = vst [vmem:[#allocation71_spill] sm:$0xff] %v10488_v9  ;;  %v10493_v27 = vsel %vm378_vm2, %v375_v50, %v344_v24  ;;  %v8224_v42 = vld [vmem:[%s15733_s5 + $0x308] sm:$0xff] }
  0xc8   : > { %v10476_v33 = vpop.permute.xlu1 %450  ;;  %v10478_v47 = vpop.permute.xlu0 %445  ;;  %16401 = vst [vmem:[#allocation72_spill] sm:$0xff] %v10493_v27 }
  0xc9   : > { %16397 = vst [vmem:[#allocation69_spill] sm:$0xff] %v10476_v33  ;;  %16398 = vst [vmem:[#allocation70_spill] sm:$0xff] %v10478_v47  ;;  %v604_v3 = vmul.f32 %v10476_v33, %v10462_v57  ;;  %v603_v16 = vmul.f32 %v10478_v47, %v10468_v58  ;;  %1576 = vperm.xlu1 %9835, %v8205_v63   ;;  %1571 = vperm.xlu0 %9834, %v8204_v15   ;;  %v8223_v63 = vld [vmem:[%s15733_s5 + $0x300] sm:$0xff]  ;;  %v1321_v15 = vrot.slane %v10139_v8, 1 }
  0xca   : > { %9206 = vmatmul.mubr.msk.bf16.gmra.mxu0 %vm895_vm1, %v888_v18  ;;  %v1352_v33 = vrot.slane %v10148_v13, 1 }
  0xcb   : > { %v635_v47 = vpack.c.bf16 %v604_v3, %v603_v16 }
  0xcc   : > { %v10505_v18 = vpop.permute.xlu1 %460  ;;  %v10507_v24 = vpop.permute.xlu0 %455  ;;  %v10519_v3 = vsel %vm1353_vm3, %v1352_v33, %v1321_v15  ;;  %v10525_v16 = vsel %vm1353_vm3, %v15761_v32, %v1352_v33  ;;  %v2165_v33 = vsel %vm944_vm0, %v8255_v25, 0  ;;  %v8273_v25 = vld [vmem:[%s15733_s5 + $0x408] sm:$0xff] }
  0xcd   : > { %16402 = vst [vmem:[#allocation73_spill] sm:$0xff] %v10505_v18  ;;  %16403 = vst [vmem:[#allocation74_spill] sm:$0xff] %v10507_v24  ;;  %v606_v50 = vmul.f32 %v10505_v18, %v10488_v9  ;;  %v605_v28 = vmul.f32 %v10507_v24, %v10493_v27  ;;  %1913 = vperm.xlu1 %9835, %v8224_v42   ;;  %1908 = vperm.xlu0 %9834, %v8223_v63   ;;  %v8226_v42 = vld [vmem:[%s15733_s5 + $0x318] sm:$0xff]  ;;  %v8225_v63 = vld [vmem:[%s15733_s5 + $0x310] sm:$0xff]  ;;  %v1323_v24 = vrot.slane %v10166_v21, 1 }
  0xce   : > { %9219 = vmatprep.mubr.msk.bf16.mxu1 %vm895_vm1, %v635_v47  ;;  %16404 = vst [vmem:[#allocation75_spill] sm:$0xff] %v10519_v3  ;;  %16405 = vst [vmem:[#allocation76_spill] sm:$0xff] %v10525_v16  ;;  %v1322_v47 = vrot.slane %v10143_v10, 1 }
  0xcf   : > { %v636_v23 = vpack.c.bf16 %v606_v50, %v605_v28  ;;  %v8272_v50 = vld [vmem:[%s15733_s5 + $0x400] sm:$0xff] }
  0xd0   : > { %v10536_v26 = vpop.permute.xlu1 %1426  ;;  %v10538_v61 = vpop.permute.xlu0 %1421  ;;  %v10548_v11 = vsel %vm1353_vm3, %v1322_v47, %v1323_v24  ;;  %v10552_v28 = vsel %vm1353_vm3, %v1321_v15, %v1322_v47 }
  0xd1   : > { %16406 = vst [vmem:[#allocation77_spill] sm:$0xff] %v10536_v26  ;;  %16407 = vst [vmem:[#allocation78_spill] sm:$0xff] %v10538_v61  ;;  %v1580_v32 = vmul.f32 %v10536_v26, %v10519_v3  ;;  %v1579_v62 = vmul.f32 %v10538_v61, %v10525_v16  ;;  %1923 = vperm.xlu1 %9835, %v8226_v42   ;;  %1918 = vperm.xlu0 %9834, %v8225_v63   ;;  %v346_v42 = vrot.slane %v10166_v21, 7 }
  0xd2   : > { %9220 = vmatmul.mubr.msk.bf16.vlgmr.msra.gmra.mxu1 %vm895_vm1, %v636_v23  ;;  %16408 = vst [vmem:[#allocation79_spill] sm:$0xff] %v10548_v11  ;;  %16409 = vst [vmem:[#allocation80_spill] sm:$0xff] %v10552_v28  ;;  %v347_v23 = vrot.slane %v10162_v19, 7 }
  0xd3   : > { %v1611_v63 = vpack.c.bf16 %v1580_v32, %v1579_v62  ;;  %9286 = vmatpush3.bf16.msra.mxu1 %v2165_v33  ;;  %v16412_v32 = vrot.slane %v10143_v10, 7 }
  0xd4   : > { %v10562_v26 = vpop.permute.xlu1 %1436  ;;  %v10564_v61 = vpop.permute.xlu0 %1431  ;;  %v10576_v62 = vsel %vm378_vm2, %v346_v42, %v347_v23 }
  0xd5   : > { %16410 = vst [vmem:[#allocation81_spill] sm:$0xff] %v10562_v26  ;;  %16411 = vst [vmem:[#allocation82_spill] sm:$0xff] %v10564_v61  ;;  %v1582_v15 = vmul.f32 %v10562_v26, %v10548_v11  ;;  %v1581_v47 = vmul.f32 %v10564_v61, %v10552_v28  ;;  %2400 = vperm.xlu1 %9835, %v8273_v25   ;;  %2395 = vperm.xlu0 %9834, %v8272_v50   ;;  %v8275_v25 = vld [vmem:[%s15733_s5 + $0x418] sm:$0xff]  ;;  %v8274_v50 = vld [vmem:[%s15733_s5 + $0x410] sm:$0xff]  ;;  %v349_v26 = vrot.slane %v10183_v31, 7 }
  0xd6   : > { %9253 = vmatprep.mubr.msk.bf16.mxu0 %vm895_vm1, %v1611_v63  ;;  %v10582_v33 = vsel %vm378_vm2, %v16412_v32, %v346_v42  ;;  %v348_v63 = vrot.slane %v10189_v34, 7  ;;  %v2652_v42 = vsel %vm944_vm0, %v8304_v14, 0  ;;  %v8228_v14 = vld [vmem:[%s15733_s5 + $0x328] sm:$0xff] }
  0xd7   : > { %v1612_v61 = vpack.c.bf16 %v1582_v15, %v1581_v47  ;;  %v8227_v47 = vld [vmem:[%s15733_s5 + $0x320] sm:$0xff] }
  0xd8   : > { %v10593_v43 = vpop.permute.xlu1 %470  ;;  %v10595_v18 = vpop.permute.xlu0 %465  ;;  %v10605_v41 = vsel %vm378_vm2, %v348_v63, %v349_v26  ;;  %v10609_v15 = vsel %vm378_vm2, %v347_v23, %v348_v63 }
  0xd9   : > { %16413 = vst [vmem:[#allocation83_spill] sm:$0xff] %v10593_v43  ;;  %16414 = vst [vmem:[#allocation84_spill] sm:$0xff] %v10595_v18  ;;  %v608_v32 = vmul.f32 %v10593_v43, %v10576_v62  ;;  %v607_v52 = vmul.f32 %v10595_v18, %v10582_v33  ;;  %2410 = vperm.xlu1 %9835, %v8275_v25   ;;  %2405 = vperm.xlu0 %9834, %v8274_v50   ;;  %v1324_v25 = vrot.slane %v10162_v19, 1 }
  0xda   : > { %9254 = vmatmul.mubr.msk.bf16.vlgmr.msra.gmra.mxu0 %vm895_vm1, %v1612_v61  ;;  %v1325_v61 = vrot.slane %v10189_v34, 1 }
  0xdb   : > { %v637_v50 = vpack.c.bf16 %v608_v32, %v607_v52  ;;  %9320 = vmatpush3.bf16.msra.mxu0 %v2652_v42  ;;  %v10634_v52 = vsel %vm1353_vm3, %v1323_v24, %v1324_v25  ;;  %v8230_v42 = vld [vmem:[%s15733_s5 + $0x338] sm:$0xff]  ;;  %v8229_v32 = vld [vmem:[%s15733_s5 + $0x330] sm:$0xff] }
  0xdc   : > { %v10619_v43 = vpop.permute.xlu1 %480  ;;  %v10621_v51 = vpop.permute.xlu0 %475  ;;  %v10630_v18 = vsel %vm1353_vm3, %v1324_v25, %v1325_v61  ;;  %16418 = vst [vmem:[#allocation88_spill] sm:$0xff] %v10634_v52 }
  0xdd   : > { %16415 = vst [vmem:[#allocation85_spill] sm:$0xff] %v10619_v43  ;;  %16416 = vst [vmem:[#allocation86_spill] sm:$0xff] %v10621_v51  ;;  %v610_v23 = vmul.f32 %v10619_v43, %v10605_v41  ;;  %v609_v63 = vmul.f32 %v10621_v51, %v10609_v15  ;;  %1933 = vperm.xlu1 %9835, %v8228_v14   ;;  %1928 = vperm.xlu0 %9834, %v8227_v47   ;;  %v1326_v14 = vrot.slane %v10183_v31, 1 }
  0xde   : > { %9223 = vmatprep.mubr.msk.bf16.mxu1 %vm895_vm1, %v637_v50  ;;  %16417 = vst [vmem:[#allocation87_spill] sm:$0xff] %v10630_v18  ;;  %v1327_v47 = vrot.slane %v10212_v46, 1 }
  0xdf   : > { %v638_v50 = vpack.c.bf16 %v610_v23, %v609_v63  ;;  %v10659_v23 = vsel %vm1353_vm3, %v1325_v61, %v1326_v14  ;;  %v8277_v63 = vld [vmem:[%s15733_s5 + $0x428] sm:$0xff] }
  0xe0   : > { %v10644_v17 = vpop.permute.xlu1 %1446  ;;  %v10646_v7 = vpop.permute.xlu0 %1441  ;;  %v10655_v43 = vsel %vm1353_vm3, %v1326_v14, %v1327_v47  ;;  %16422 = vst [vmem:[#allocation92_spill] sm:$0xff] %v10659_v23 }
  0xe1   : > { %16419 = vst [vmem:[#allocation89_spill] sm:$0xff] %v10644_v17  ;;  %16420 = vst [vmem:[#allocation90_spill] sm:$0xff] %v10646_v7  ;;  %v1584_v24 = vmul.f32 %v10644_v17, %v10630_v18  ;;  %v1583_v25 = vmul.f32 %v10646_v7, %v10634_v52  ;;  %1943 = vperm.xlu1 %9835, %v8230_v42   ;;  %1938 = vperm.xlu0 %9834, %v8229_v32   ;;  %v8276_v7 = vld [vmem:[%s15733_s5 + $0x420] sm:$0xff]  ;;  %v350_v42 = vrot.slane %v10212_v46, 7 }
  0xe2   : > { %9224 = vmatmul.mubr.msk.bf16.gmra.mxu1 %vm895_vm1, %v638_v50  ;;  %16421 = vst [vmem:[#allocation91_spill] sm:$0xff] %v10655_v43  ;;  %v351_v32 = vrot.slane %v10210_v45, 7 }
  0xe3   : > { %v1613_v50 = vpack.c.bf16 %v1584_v24, %v1583_v25  ;;  %v10684_v24 = vsel %vm378_vm2, %v349_v26, %v350_v42  ;;  %v8279_v25 = vld [vmem:[%s15733_s5 + $0x438] sm:$0xff] }
  0xe4   : > { %v10669_v17 = vpop.permute.xlu1 %1456  ;;  %v10671_v51 = vpop.permute.xlu0 %1451  ;;  %v10680_v29 = vsel %vm378_vm2, %v350_v42, %v351_v32 }
  0xe5   : > { %16423 = vst [vmem:[#allocation93_spill] sm:$0xff] %v10669_v17  ;;  %16424 = vst [vmem:[#allocation94_spill] sm:$0xff] %v10671_v51  ;;  %v1586_v61 = vmul.f32 %v10669_v17, %v10655_v43  ;;  %v1585_v14 = vmul.f32 %v10671_v51, %v10659_v23  ;;  %2420 = vperm.xlu1 %9835, %v8277_v63   ;;  %2415 = vperm.xlu0 %9834, %v8276_v7   ;;  %v8278_v17 = vld [vmem:[%s15733_s5 + $0x430] sm:$0xff]  ;;  %v352_v7 = vrot.slane %v10232_v56, 7 }
  0xe6   : > { %9257 = vmatprep.mubr.msk.bf16.mxu0 %vm895_vm1, %v1613_v50  ;;  %v353_v63 = vrot.slane %v10230_v55, 7 }
  0xe7   : > { %v1614_v50 = vpack.c.bf16 %v1586_v61, %v1585_v14  ;;  %v10709_v61 = vsel %vm378_vm2, %v351_v32, %v352_v7  ;;  %v8232_v14 = vld [vmem:[%s15733_s5 + $0x348] sm:$0xff] }
  0xe8   : > { %v10694_v51 = vpop.permute.xlu1 %490  ;;  %v10696_v30 = vpop.permute.xlu0 %485  ;;  %v10705_v16 = vsel %vm378_vm2, %v352_v7, %v353_v63 }
  0xe9   : > { %16425 = vst [vmem:[#allocation95_spill] sm:$0xff] %v10694_v51  ;;  %16426 = vst [vmem:[#allocation96_spill] sm:$0xff] %v10696_v30  ;;  %v612_v26 = vmul.f32 %v10694_v51, %v10680_v29  ;;  %v611_v42 = vmul.f32 %v10696_v30, %v10684_v24  ;;  %2430 = vperm.xlu1 %9835, %v8279_v25   ;;  %2425 = vperm.xlu0 %9834, %v8278_v17   ;;  %v8231_v51 = vld [vmem:[%s15733_s5 + $0x340] sm:$0xff]  ;;  %v1328_v17 = vrot.slane %v10210_v45, 1 }
  0xea   : > { %9258 = vmatmul.mubr.msk.bf16.gmra.mxu0 %vm895_vm1, %v1614_v50  ;;  %v1329_v25 = vrot.slane %v10232_v56, 1 }
  0xeb   : > { %v639_v50 = vpack.c.bf16 %v612_v26, %v611_v42  ;;  %v10734_v26 = vsel %vm1353_vm3, %v1327_v47, %v1328_v17  ;;  %v8234_v42 = vld [vmem:[%s15733_s5 + $0x358] sm:$0xff] }
  0xec   : > { %v10719_v30 = vpop.permute.xlu1 %500  ;;  %v10721_v3 = vpop.permute.xlu0 %495  ;;  %v10730_v23 = vsel %vm1353_vm3, %v1328_v17, %v1329_v25  ;;  %16430 = vst [vmem:[#allocation100_spill] sm:$0xff] %v10734_v26 }
  0xed   : > { %16427 = vst [vmem:[#allocation97_spill] sm:$0xff] %v10719_v30  ;;  %16428 = vst [vmem:[#allocation98_spill] sm:$0xff] %v10721_v3  ;;  %v614_v32 = vmul.f32 %v10719_v30, %v10705_v16  ;;  %v613_v7 = vmul.f32 %v10721_v3, %v10709_v61  ;;  %1953 = vperm.xlu1 %9835, %v8232_v14   ;;  %1948 = vperm.xlu0 %9834, %v8231_v51   ;;  %v8233_v30 = vld [vmem:[%s15733_s5 + $0x350] sm:$0xff]  ;;  %v1330_v51 = vrot.slane %v10230_v55, 1 }
  0xee   : > { %9227 = vmatprep.mubr.msk.bf16.mxu1 %vm895_vm1, %v639_v50  ;;  %16429 = vst [vmem:[#allocation99_spill] sm:$0xff] %v10730_v23  ;;  %v1331_v14 = vrot.slane %v10252_v2, 1 }
  0xef   : > { %v640_v50 = vpack.c.bf16 %v614_v32, %v613_v7  ;;  %v10759_v32 = vsel %vm1353_vm3, %v1329_v25, %v1330_v51  ;;  %v8281_v7 = vld [vmem:[%s15733_s5 + $0x448] sm:$0xff] }
  0xf0   : > { %v10744_v3 = vpop.permute.xlu1 %1466  ;;  %v10746_v43 = vpop.permute.xlu0 %1461  ;;  %v10755_v52 = vsel %vm1353_vm3, %v1330_v51, %v1331_v14  ;;  %16434 = vst [vmem:[#allocation104_spill] sm:$0xff] %v10759_v32 }
  0xf1   : > { %16431 = vst [vmem:[#allocation101_spill] sm:$0xff] %v10744_v3  ;;  %16432 = vst [vmem:[#allocation102_spill] sm:$0xff] %v10746_v43  ;;  %v1588_v47 = vmul.f32 %v10744_v3, %v10730_v23  ;;  %v1587_v17 = vmul.f32 %v10746_v43, %v10734_v26  ;;  %1963 = vperm.xlu1 %9835, %v8234_v42   ;;  %1958 = vperm.xlu0 %9834, %v8233_v30   ;;  %v8280_v43 = vld [vmem:[%s15733_s5 + $0x440] sm:$0xff]  ;;  %v354_v30 = vrot.slane %v10252_v2, 7 }
  0xf2   : > { %9228 = vmatmul.mubr.msk.bf16.gmra.mxu1 %vm895_vm1, %v640_v50  ;;  %16433 = vst [vmem:[#allocation103_spill] sm:$0xff] %v10755_v52  ;;  %v355_v42 = vrot.slane %v10250_v1, 7 }
  0xf3   : > { %v1615_v50 = vpack.c.bf16 %v1588_v47, %v1587_v17  ;;  %v10784_v47 = vsel %vm378_vm2, %v353_v63, %v354_v30  ;;  %v8283_v17 = vld [vmem:[%s15733_s5 + $0x458] sm:$0xff] }
  0xf4   : > { %v10769_v3 = vpop.permute.xlu1 %1476  ;;  %v10771_v26 = vpop.permute.xlu0 %1471  ;;  %v10780_v23 = vsel %vm378_vm2, %v354_v30, %v355_v42 }
  0xf5   : > { %16435 = vst [vmem:[#allocation105_spill] sm:$0xff] %v10769_v3  ;;  %16436 = vst [vmem:[#allocation106_spill] sm:$0xff] %v10771_v26  ;;  %v1590_v25 = vmul.f32 %v10769_v3, %v10755_v52  ;;  %v1589_v51 = vmul.f32 %v10771_v26, %v10759_v32  ;;  %2440 = vperm.xlu1 %9835, %v8281_v7   ;;  %2435 = vperm.xlu0 %9834, %v8280_v43   ;;  %v8282_v3 = vld [vmem:[%s15733_s5 + $0x450] sm:$0xff]  ;;  %v356_v43 = vrot.slane %v10272_v22, 7 }
  0xf6   : > { %9261 = vmatprep.mubr.msk.bf16.mxu0 %vm895_vm1, %v1615_v50  ;;  %v357_v7 = vrot.slane %v10270_v20, 7 }
  0xf7   : > { %v1616_v50 = vpack.c.bf16 %v1590_v25, %v1589_v51  ;;  %v10809_v25 = vsel %vm378_vm2, %v355_v42, %v356_v43  ;;  %v8236_v51 = vld [vmem:[%s15733_s5 + $0x368] sm:$0xff] }
  0xf8   : > { %v10794_v26 = vpop.permute.xlu1 %510  ;;  %v10796_v32 = vpop.permute.xlu0 %505  ;;  %v10805_v52 = vsel %vm378_vm2, %v356_v43, %v357_v7 }
  0xf9   : > { %16437 = vst [vmem:[#allocation107_spill] sm:$0xff] %v10794_v26  ;;  %16438 = vst [vmem:[#allocation108_spill] sm:$0xff] %v10796_v32  ;;  %v616_v63 = vmul.f32 %v10794_v26, %v10780_v23  ;;  %v615_v30 = vmul.f32 %v10796_v32, %v10784_v47  ;;  %2450 = vperm.xlu1 %9835, %v8283_v17   ;;  %2445 = vperm.xlu0 %9834, %v8282_v3   ;;  %v8235_v32 = vld [vmem:[%s15733_s5 + $0x360] sm:$0xff]  ;;  %v1332_v3 = vrot.slane %v10250_v1, 1 }
  0xfa   : > { %9262 = vmatmul.mubr.msk.bf16.gmra.mxu0 %vm895_vm1, %v1616_v50  ;;  %v1333_v17 = vrot.slane %v10272_v22, 1 }
  0xfb   : > { %v641_v50 = vpack.c.bf16 %v616_v63, %v615_v30  ;;  %v10834_v63 = vsel %vm1353_vm3, %v1331_v14, %v1332_v3  ;;  %v8238_v30 = vld [vmem:[%s15733_s5 + $0x378] sm:$0xff] }
  0xfc   : > { %v10819_v26 = vpop.permute.xlu1 %520  ;;  %v10821_v18 = vpop.permute.xlu0 %515  ;;  %v10830_v28 = vsel %vm1353_vm3, %v1332_v3, %v1333_v17  ;;  %16442 = vst [vmem:[#allocation112_spill] sm:$0xff] %v10834_v63 }
  0xfd   : > { %16439 = vst [vmem:[#allocation109_spill] sm:$0xff] %v10819_v26  ;;  %16440 = vst [vmem:[#allocation110_spill] sm:$0xff] %v10821_v18  ;;  %v618_v42 = vmul.f32 %v10819_v26, %v10805_v52  ;;  %v617_v43 = vmul.f32 %v10821_v18, %v10809_v25  ;;  %1973 = vperm.xlu1 %9835, %v8236_v51   ;;  %1968 = vperm.xlu0 %9834, %v8235_v32   ;;  %v8237_v26 = vld [vmem:[%s15733_s5 + $0x370] sm:$0xff]  ;;  %v1334_v32 = vrot.slane %v10270_v20, 1 }
  0xfe   : > { %9231 = vmatprep.mubr.msk.bf16.mxu1 %vm895_vm1, %v641_v50  ;;  %16441 = vst [vmem:[#allocation111_spill] sm:$0xff] %v10830_v28  ;;  %v1335_v51 = vrot.slane %v10332_v5, 1 }
  0xff   : > { %v642_v50 = vpack.c.bf16 %v618_v42, %v617_v43  ;;  %v10859_v42 = vsel %vm1353_vm3, %v1333_v17, %v1334_v32  ;;  %v8285_v43 = vld [vmem:[%s15733_s5 + $0x468] sm:$0xff] }
 0x100   : > { %v10844_v18 = vpop.permute.xlu1 %1486  ;;  %v10846_v11 = vpop.permute.xlu0 %1481  ;;  %v10855_v13 = vsel %vm1353_vm3, %v1334_v32, %v1335_v51  ;;  %16446 = vst [vmem:[#allocation116_spill] sm:$0xff] %v10859_v42 }
 0x101   : > { %16443 = vst [vmem:[#allocation113_spill] sm:$0xff] %v10844_v18  ;;  %16444 = vst [vmem:[#allocation114_spill] sm:$0xff] %v10846_v11  ;;  %v1592_v14 = vmul.f32 %v10844_v18, %v10830_v28  ;;  %v1591_v3 = vmul.f32 %v10846_v11, %v10834_v63  ;;  %1983 = vperm.xlu1 %9835, %v8238_v30   ;;  %1978 = vperm.xlu0 %9834, %v8237_v26   ;;  %v8284_v11 = vld [vmem:[%s15733_s5 + $0x460] sm:$0xff]  ;;  %v358_v26 = vrot.slane %v10332_v5, 7 }
 0x102   : > { %9232 = vmatmul.mubr.msk.bf16.gmra.mxu1 %vm895_vm1, %v642_v50  ;;  %16445 = vst [vmem:[#allocation115_spill] sm:$0xff] %v10855_v13  ;;  %v359_v30 = vrot.slane %v10330_v4, 7 }
 0x103   : > { %v1617_v50 = vpack.c.bf16 %v1592_v14, %v1591_v3  ;;  %v10884_v14 = vsel %vm378_vm2, %v357_v7, %v358_v26  ;;  %v8287_v3 = vld [vmem:[%s15733_s5 + $0x478] sm:$0xff] }
 0x104   : > { %v10869_v18 = vpop.permute.xlu1 %1496  ;;  %v10871_v63 = vpop.permute.xlu0 %1491  ;;  %v10880_v28 = vsel %vm378_vm2, %v358_v26, %v359_v30 }
 0x105   : > { %16447 = vst [vmem:[#allocation117_spill] sm:$0xff] %v10869_v18  ;;  %16448 = vst [vmem:[#allocation118_spill] sm:$0xff] %v10871_v63  ;;  %v1594_v17 = vmul.f32 %v10869_v18, %v10855_v13  ;;  %v1593_v32 = vmul.f32 %v10871_v63, %v10859_v42  ;;  %2460 = vperm.xlu1 %9835, %v8285_v43   ;;  %2455 = vperm.xlu0 %9834, %v8284_v11   ;;  %v8286_v18 = vld [vmem:[%s15733_s5 + $0x470] sm:$0xff]  ;;  %v360_v11 = vrot.slane %v10354_v39, 7 }
 0x106   : > { %9265 = vmatprep.mubr.msk.bf16.mxu0 %vm895_vm1, %v1617_v50  ;;  %v361_v43 = vrot.slane %v10352_v38, 7 }
 0x107   : > { %v1618_v50 = vpack.c.bf16 %v1594_v17, %v1593_v32  ;;  %v10909_v17 = vsel %vm378_vm2, %v359_v30, %v360_v11  ;;  %v8240_v32 = vld [vmem:[%s15733_s5 + $0x388] sm:$0xff] }
 0x108   : > { %v10894_v63 = vpop.permute.xlu1 %530  ;;  %v10896_v42 = vpop.permute.xlu0 %525  ;;  %v10905_v13 = vsel %vm378_vm2, %v360_v11, %v361_v43  ;;  %16451 = vst [vmem:[#allocation121_spill] sm:$0xff] %v10909_v17 }
 0x109   : > { %16449 = vst [vmem:[#allocation119_spill] sm:$0xff] %v10894_v63  ;;  %16450 = vst [vmem:[#allocation120_spill] sm:$0xff] %v10896_v42  ;;  %v620_v7 = vmul.f32 %v10894_v63, %v10880_v28  ;;  %v619_v26 = vmul.f32 %v10896_v42, %v10884_v14  ;;  %2470 = vperm.xlu1 %9835, %v8287_v3   ;;  %2465 = vperm.xlu0 %9834, %v8286_v18   ;;  %v8239_v63 = vld [vmem:[%s15733_s5 + $0x380] sm:$0xff]  ;;  %v1336_v18 = vrot.slane %v10330_v4, 1 }
 0x10a   : > { %9266 = vmatmul.mubr.msk.bf16.gmra.mxu0 %vm895_vm1, %v1618_v50  ;;  %v1337_v3 = vrot.slane %v10354_v39, 1 }
 0x10b   : > { %v643_v50 = vpack.c.bf16 %v620_v7, %v619_v26  ;;  %v10934_v7 = vsel %vm1353_vm3, %v1335_v51, %v1336_v18  ;;  %v8242_v26 = vld [vmem:[%s15733_s5 + $0x398] sm:$0xff] }
 0x10c   : > { %v10919_v42 = vpop.permute.xlu1 %540  ;;  %v10921_v58 = vpop.permute.xlu0 %535  ;;  %v10930_v57 = vsel %vm1353_vm3, %v1336_v18, %v1337_v3  ;;  %16455 = vst [vmem:[#allocation125_spill] sm:$0xff] %v10934_v7 }
 0x10d   : > { %16452 = vst [vmem:[#allocation122_spill] sm:$0xff] %v10919_v42  ;;  %16453 = vst [vmem:[#allocation123_spill] sm:$0xff] %v10921_v58  ;;  %v622_v30 = vmul.f32 %v10919_v42, %v10905_v13  ;;  %v621_v11 = vmul.f32 %v10921_v58, %v10909_v17  ;;  %1993 = vperm.xlu1 %9835, %v8240_v32   ;;  %1988 = vperm.xlu0 %9834, %v8239_v63   ;;  %v8241_v58 = vld [vmem:[%s15733_s5 + $0x390] sm:$0xff]  ;;  %v1338_v63 = vrot.slane %v10352_v38, 1 }
 0x10e   : > { %9235 = vmatprep.mubr.msk.bf16.mxu1 %vm895_vm1, %v643_v50  ;;  %16454 = vst [vmem:[#allocation124_spill] sm:$0xff] %v10930_v57  ;;  %v1339_v32 = vrot.slane %v10414_v44, 1 }
 0x10f   : > { %v644_v50 = vpack.c.bf16 %v622_v30, %v621_v11  ;;  %v10959_v30 = vsel %vm1353_vm3, %v1337_v3, %v1338_v63  ;;  %v8289_v11 = vld [vmem:[%s15733_s5 + $0x488] sm:$0xff] }
 0x110   : > { %v10944_v42 = vpop.permute.xlu1 %1506  ;;  %v10946_v39 = vpop.permute.xlu0 %1501  ;;  %v10955_v38 = vsel %vm1353_vm3, %v1338_v63, %v1339_v32  ;;  %16459 = vst [vmem:[#allocation129_spill] sm:$0xff] %v10959_v30 }
 0x111   : > { %16456 = vst [vmem:[#allocation126_spill] sm:$0xff] %v10944_v42  ;;  %16457 = vst [vmem:[#allocation127_spill] sm:$0xff] %v10946_v39  ;;  %v1596_v51 = vmul.f32 %v10944_v42, %v10930_v57  ;;  %v1595_v18 = vmul.f32 %v10946_v39, %v10934_v7  ;;  %2003 = vperm.xlu1 %9835, %v8242_v26   ;;  %1998 = vperm.xlu0 %9834, %v8241_v58   ;;  %v8288_v39 = vld [vmem:[%s15733_s5 + $0x480] sm:$0xff]  ;;  %v362_v58 = vrot.slane %v10414_v44, 7 }
 0x112   : > { %9236 = vmatmul.mubr.msk.bf16.gmra.mxu1 %vm895_vm1, %v644_v50  ;;  %16458 = vst [vmem:[#allocation128_spill] sm:$0xff] %v10955_v38  ;;  %v363_v26 = vrot.slane %v10412_v60, 7 }
 0x113   : > { %v1619_v50 = vpack.c.bf16 %v1596_v51, %v1595_v18  ;;  %v10984_v51 = vsel %vm378_vm2, %v361_v43, %v362_v58  ;;  %v8291_v18 = vld [vmem:[%s15733_s5 + $0x498] sm:$0xff] }
 0x114   : > { %v10969_v42 = vpop.permute.xlu1 %1516  ;;  %v10971_v7 = vpop.permute.xlu0 %1511  ;;  %v10980_v57 = vsel %vm378_vm2, %v362_v58, %v363_v26  ;;  %16463 = vst [vmem:[#allocation133_spill] sm:$0xff] %v10984_v51 }
 0x115   : > { %16460 = vst [vmem:[#allocation130_spill] sm:$0xff] %v10969_v42  ;;  %16461 = vst [vmem:[#allocation131_spill] sm:$0xff] %v10971_v7  ;;  %v1598_v3 = vmul.f32 %v10969_v42, %v10955_v38  ;;  %v1597_v63 = vmul.f32 %v10971_v7, %v10959_v30  ;;  %2480 = vperm.xlu1 %9835, %v8289_v11   ;;  %2475 = vperm.xlu0 %9834, %v8288_v39   ;;  %v8290_v42 = vld [vmem:[%s15733_s5 + $0x490] sm:$0xff]  ;;  %v364_v39 = vrot.slane %v10436_v53, 7 }
 0x116   : > { %9269 = vmatprep.mubr.msk.bf16.mxu0 %vm895_vm1, %v1619_v50  ;;  %16462 = vst [vmem:[#allocation132_spill] sm:$0xff] %v10980_v57  ;;  %v365_v11 = vrot.slane %v10434_v6, 7 }
 0x117   : > { %v1620_v50 = vpack.c.bf16 %v1598_v3, %v1597_v63  ;;  %v11009_v3 = vsel %vm378_vm2, %v363_v26, %v364_v39  ;;  %v8244_v63 = vld [vmem:[%s15733_s5 + $0x3a8] sm:$0xff] }
 0x118   : > { %v10994_v7 = vpop.permute.xlu1 %550  ;;  %v10996_v30 = vpop.permute.xlu0 %545  ;;  %v11005_v38 = vsel %vm378_vm2, %v364_v39, %v365_v11 }
 0x119   : > { %16464 = vst [vmem:[#allocation134_spill] sm:$0xff] %v10994_v7  ;;  %16465 = vst [vmem:[#allocation135_spill] sm:$0xff] %v10996_v30  ;;  %v624_v43 = vmul.f32 %v10994_v7, %v10980_v57  ;;  %v623_v58 = vmul.f32 %v10996_v30, %v10984_v51  ;;  %2490 = vperm.xlu1 %9835, %v8291_v18   ;;  %2485 = vperm.xlu0 %9834, %v8290_v42   ;;  %v8243_v7 = vld [vmem:[%s15733_s5 + $0x3a0] sm:$0xff]  ;;  %v1340_v42 = vrot.slane %v10412_v60, 1 }
 0x11a   : > { %9270 = vmatmul.mubr.msk.bf16.gmra.mxu0 %vm895_vm1, %v1620_v50  ;;  %v1341_v18 = vrot.slane %v10436_v53, 1 }
 0x11b   : > { %v645_v50 = vpack.c.bf16 %v624_v43, %v623_v58  ;;  %v11034_v43 = vsel %vm1353_vm3, %v1339_v32, %v1340_v42  ;;  %v8246_v58 = vld [vmem:[%s15733_s5 + $0x3b8] sm:$0xff] }
 0x11c   : > { %v11019_v30 = vpop.permute.xlu1 %560  ;;  %v11021_v44 = vpop.permute.xlu0 %555  ;;  %v11030_v60 = vsel %vm1353_vm3, %v1340_v42, %v1341_v18  ;;  %16469 = vst [vmem:[#allocation139_spill] sm:$0xff] %v11034_v43 }
 0x11d   : > { %16466 = vst [vmem:[#allocation136_spill] sm:$0xff] %v11019_v30  ;;  %16467 = vst [vmem:[#allocation137_spill] sm:$0xff] %v11021_v44  ;;  %v626_v26 = vmul.f32 %v11019_v30, %v11005_v38  ;;  %v625_v39 = vmul.f32 %v11021_v44, %v11009_v3  ;;  %2013 = vperm.xlu1 %9835, %v8244_v63   ;;  %2008 = vperm.xlu0 %9834, %v8243_v7   ;;  %v8245_v44 = vld [vmem:[%s15733_s5 + $0x3b0] sm:$0xff]  ;;  %v1342_v7 = vrot.slane %v10434_v6, 1 }
 0x11e   : > { %9239 = vmatprep.mubr.msk.bf16.mxu1 %vm895_vm1, %v645_v50  ;;  %16468 = vst [vmem:[#allocation138_spill] sm:$0xff] %v11030_v60  ;;  %v1343_v63 = vrot.slane %v10290_v35, 1 }
 0x11f   : > { %v646_v50 = vpack.c.bf16 %v626_v26, %v625_v39  ;;  %v11059_v26 = vsel %vm1353_vm3, %v1341_v18, %v1342_v7  ;;  %v8293_v39 = vld [vmem:[%s15733_s5 + $0x4a8] sm:$0xff] }
 0x120   : > { %v11044_v30 = vpop.permute.xlu1 %1526  ;;  %v11046_v53 = vpop.permute.xlu0 %1521  ;;  %v11055_v6 = vsel %vm1353_vm3, %v1342_v7, %v1343_v63  ;;  %16473 = vst [vmem:[#allocation143_spill] sm:$0xff] %v11059_v26 }
 0x121   : > { %16470 = vst [vmem:[#allocation140_spill] sm:$0xff] %v11044_v30  ;;  %16471 = vst [vmem:[#allocation141_spill] sm:$0xff] %v11046_v53  ;;  %v1600_v32 = vmul.f32 %v11044_v30, %v11030_v60  ;;  %v1599_v42 = vmul.f32 %v11046_v53, %v11034_v43  ;;  %2023 = vperm.xlu1 %9835, %v8246_v58   ;;  %2018 = vperm.xlu0 %9834, %v8245_v44   ;;  %v8292_v53 = vld [vmem:[%s15733_s5 + $0x4a0] sm:$0xff]  ;;  %v366_v44 = vrot.slane %v10290_v35, 7 }
 0x122   : > { %9240 = vmatmul.mubr.msk.bf16.gmra.mxu1 %vm895_vm1, %v646_v50  ;;  %16472 = vst [vmem:[#allocation142_spill] sm:$0xff] %v11055_v6  ;;  %v367_v58 = vrot.slane %v10292_v36, 7 }
 0x123   : > { %v1621_v50 = vpack.c.bf16 %v1600_v32, %v1599_v42  ;;  %v11084_v32 = vsel %vm378_vm2, %v365_v11, %v366_v44  ;;  %v8295_v42 = vld [vmem:[%s15733_s5 + $0x4b8] sm:$0xff] }
 0x124   : > { %v11069_v30 = vpop.permute.xlu1 %1536  ;;  %v11071_v43 = vpop.permute.xlu0 %1531  ;;  %v11080_v60 = vsel %vm378_vm2, %v366_v44, %v367_v58 }
 0x125   : > { %16474 = vst [vmem:[#allocation144_spill] sm:$0xff] %v11069_v30  ;;  %16475 = vst [vmem:[#allocation145_spill] sm:$0xff] %v11071_v43  ;;  %v1602_v18 = vmul.f32 %v11069_v30, %v11055_v6  ;;  %v1601_v7 = vmul.f32 %v11071_v43, %v11059_v26  ;;  %2500 = vperm.xlu1 %9835, %v8293_v39   ;;  %2495 = vperm.xlu0 %9834, %v8292_v53   ;;  %v8294_v30 = vld [vmem:[%s15733_s5 + $0x4b0] sm:$0xff]  ;;  %v368_v53 = vrot.slane %v10308_v49, 7 }
 0x126   : > { %9273 = vmatprep.mubr.msk.bf16.mxu0 %vm895_vm1, %v1621_v50  ;;  %v369_v39 = vrot.slane %v10306_v48, 7 }
 0x127   : > { %v1622_v50 = vpack.c.bf16 %v1602_v18, %v1601_v7  ;;  %v11109_v18 = vsel %vm378_vm2, %v367_v58, %v368_v53  ;;  %v8248_v7 = vld [vmem:[%s15733_s5 + $0x3c8] sm:$0xff] }
 0x128   : > { %v11094_v43 = vpop.permute.xlu1 %570  ;;  %v11096_v26 = vpop.permute.xlu0 %565  ;;  %v11105_v6 = vsel %vm378_vm2, %v368_v53, %v369_v39 }
 0x129   : > { %16476 = vst [vmem:[#allocation146_spill] sm:$0xff] %v11094_v43  ;;  %16477 = vst [vmem:[#allocation147_spill] sm:$0xff] %v11096_v26  ;;  %v628_v11 = vmul.f32 %v11094_v43, %v11080_v60  ;;  %v627_v44 = vmul.f32 %v11096_v26, %v11084_v32  ;;  %2510 = vperm.xlu1 %9835, %v8295_v42   ;;  %2505 = vperm.xlu0 %9834, %v8294_v30   ;;  %v8247_v43 = vld [vmem:[%s15733_s5 + $0x3c0] sm:$0xff]  ;;  %v1344_v30 = vrot.slane %v10292_v36, 1 }
 0x12a   : > { %9274 = vmatmul.mubr.msk.bf16.gmra.mxu0 %vm895_vm1, %v1622_v50  ;;  %v1345_v42 = vrot.slane %v10308_v49, 1 }
 0x12b   : > { %v647_v50 = vpack.c.bf16 %v628_v11, %v627_v44  ;;  %v11134_v11 = vsel %vm1353_vm3, %v1343_v63, %v1344_v30  ;;  %v8250_v44 = vld [vmem:[%s15733_s5 + $0x3d8] sm:$0xff] }
 0x12c   : > { %v11119_v26 = vpop.permute.xlu1 %580  ;;  %v11121_v35 = vpop.permute.xlu0 %575  ;;  %v11130_v36 = vsel %vm1353_vm3, %v1344_v30, %v1345_v42  ;;  %16481 = vst [vmem:[#allocation151_spill] sm:$0xff] %v11134_v11 }
 0x12d   : > { %16478 = vst [vmem:[#allocation148_spill] sm:$0xff] %v11119_v26  ;;  %16479 = vst [vmem:[#allocation149_spill] sm:$0xff] %v11121_v35  ;;  %v630_v58 = vmul.f32 %v11119_v26, %v11105_v6  ;;  %v629_v53 = vmul.f32 %v11121_v35, %v11109_v18  ;;  %2033 = vperm.xlu1 %9835, %v8248_v7   ;;  %2028 = vperm.xlu0 %9834, %v8247_v43   ;;  %v8249_v35 = vld [vmem:[%s15733_s5 + $0x3d0] sm:$0xff]  ;;  %v1346_v43 = vrot.slane %v10306_v48, 1 }
 0x12e   : > { %9243 = vmatprep.mubr.msk.bf16.mxu1 %vm895_vm1, %v647_v50  ;;  %16480 = vst [vmem:[#allocation150_spill] sm:$0xff] %v11130_v36  ;;  %v1347_v7 = vrot.slane %v10374_v0, 1 }
 0x12f   : > { %v648_v50 = vpack.c.bf16 %v630_v58, %v629_v53  ;;  %v11159_v58 = vsel %vm1353_vm3, %v1345_v42, %v1346_v43  ;;  %v8297_v53 = vld [vmem:[%s15733_s5 + $0x4c8] sm:$0xff] }
 0x130   : > { %v11144_v26 = vpop.permute.xlu1 %1546  ;;  %v11146_v49 = vpop.permute.xlu0 %1541  ;;  %v11155_v48 = vsel %vm1353_vm3, %v1346_v43, %v1347_v7  ;;  %16485 = vst [vmem:[#allocation155_spill] sm:$0xff] %v11159_v58 }
 0x131   : > { %16482 = vst [vmem:[#allocation152_spill] sm:$0xff] %v11144_v26  ;;  %16483 = vst [vmem:[#allocation153_spill] sm:$0xff] %v11146_v49  ;;  %v1604_v63 = vmul.f32 %v11144_v26, %v11130_v36  ;;  %v1603_v30 = vmul.f32 %v11146_v49, %v11134_v11  ;;  %2043 = vperm.xlu1 %9835, %v8250_v44   ;;  %2038 = vperm.xlu0 %9834, %v8249_v35   ;;  %v8296_v49 = vld [vmem:[%s15733_s5 + $0x4c0] sm:$0xff]  ;;  %v370_v35 = vrot.slane %v10374_v0, 7 }
 0x132   : > { %9244 = vmatmul.mubr.msk.bf16.gmra.mxu1 %vm895_vm1, %v648_v50  ;;  %16484 = vst [vmem:[#allocation154_spill] sm:$0xff] %v11155_v48  ;;  %v371_v44 = vrot.slane %v10372_v59, 7 }
 0x133   : > { %v1623_v50 = vpack.c.bf16 %v1604_v63, %v1603_v30  ;;  %v11184_v63 = vsel %vm378_vm2, %v369_v39, %v370_v35  ;;  %v8299_v30 = vld [vmem:[%s15733_s5 + $0x4d8] sm:$0xff] }
 0x134   : > { %v11169_v26 = vpop.permute.xlu1 %1556  ;;  %v11171_v11 = vpop.permute.xlu0 %1551  ;;  %v11180_v36 = vsel %vm378_vm2, %v370_v35, %v371_v44  ;;  %v16490_v35 = vrot.slane %v10392_v40, 7 }
 0x135   : > { %16486 = vst [vmem:[#allocation156_spill] sm:$0xff] %v11169_v26  ;;  %16487 = vst [vmem:[#allocation157_spill] sm:$0xff] %v11171_v11  ;;  %v1606_v42 = vmul.f32 %v11169_v26, %v11155_v48  ;;  %v1605_v43 = vmul.f32 %v11171_v11, %v11159_v58  ;;  %2520 = vperm.xlu1 %9835, %v8297_v53   ;;  %2515 = vperm.xlu0 %9834, %v8296_v49   ;;  %v8298_v11 = vld [vmem:[%s15733_s5 + $0x4d0] sm:$0xff]  ;;  %v372_v49 = vrot.slane %v10394_v37, 7 }
 0x136   : > { %9277 = vmatprep.mubr.msk.bf16.mxu0 %vm895_vm1, %v1623_v50 }
 0x137   : > { %v1624_v53 = vpack.c.bf16 %v1606_v42, %v1605_v43  ;;  %v11206_v48 = vsel %vm378_vm2, %v372_v49, %v16490_v35  ;;  %v11210_v42 = vsel %vm378_vm2, %v371_v44, %v372_v49  ;;  %v8252_v43 = vld [vmem:[%s15733_s5 + $0x3e8] sm:$0xff] }
 0x138   : > { %v11193_v50 = vpop.permute.xlu1 %590  ;;  %v11195_v26 = vpop.permute.xlu0 %585  ;;  %16491 = vst [vmem:[#allocation160_spill] sm:$0xff] %v11210_v42 }
 0x139   : > { %16488 = vst [vmem:[#allocation158_spill] sm:$0xff] %v11193_v50  ;;  %16489 = vst [vmem:[#allocation159_spill] sm:$0xff] %v11195_v26  ;;  %v632_v58 = vmul.f32 %v11193_v50, %v11180_v36  ;;  %v631_v39 = vmul.f32 %v11195_v26, %v11184_v63  ;;  %2530 = vperm.xlu1 %9835, %v8299_v30   ;;  %2525 = vperm.xlu0 %9834, %v8298_v11   ;;  %v8251_v11 = vld [vmem:[%s15733_s5 + $0x3e0] sm:$0xff]  ;;  %v1348_v30 = vrot.slane %v10372_v59, 1 }
 0x13a   : > { %9278 = vmatmul.mubr.msk.bf16.gmra.mxu0 %vm895_vm1, %v1624_v53  ;;  %v1349_v53 = vrot.slane %v10394_v37, 1 }
 0x13b   : > { %v649_v50 = vpack.c.bf16 %v632_v58, %v631_v39  ;;  %v11235_v58 = vsel %vm1353_vm3, %v1347_v7, %v1348_v30  ;;  %v8254_v39 = vld [vmem:[%s15733_s5 + $0x3f8] sm:$0xff] }
 0x13c   : > { %v11220_v26 = vpop.permute.xlu1 %600  ;;  %v11222_v35 = vpop.permute.xlu0 %595  ;;  %v11231_v0 = vsel %vm1353_vm3, %v1348_v30, %v1349_v53  ;;  %16495 = vst [vmem:[#allocation164_spill] sm:$0xff] %v11235_v58  ;;  %v16498_v30 = vrot.slane %v10146_v12, 1 }
 0x13d   : > { %16492 = vst [vmem:[#allocation161_spill] sm:$0xff] %v11220_v26  ;;  %16493 = vst [vmem:[#allocation162_spill] sm:$0xff] %v11222_v35  ;;  %v634_v44 = vmul.f32 %v11220_v26, %v11206_v48  ;;  %v633_v49 = vmul.f32 %v11222_v35, %v11210_v42  ;;  %2053 = vperm.xlu1 %9835, %v8252_v43   ;;  %2048 = vperm.xlu0 %9834, %v8251_v11   ;;  %v8253_v26 = vld [vmem:[%s15733_s5 + $0x3f0] sm:$0xff]  ;;  %v1350_v43 = vrot.slane %v10392_v40, 1 }
 0x13e   : > { %9247 = vmatprep.mubr.msk.bf16.mxu1 %vm895_vm1, %v649_v50  ;;  %16494 = vst [vmem:[#allocation163_spill] sm:$0xff] %v11231_v0 }
 0x13f   : > { %v650_v11 = vpack.c.bf16 %v634_v44, %v633_v49  ;;  %v11257_v40 = vsel %vm1353_vm3, %v1350_v43, %v16498_v30  ;;  %v11261_v44 = vsel %vm1353_vm3, %v1349_v53, %v1350_v43  ;;  %v8301_v49 = vld [vmem:[%s15733_s5 + $0x4e8] sm:$0xff]  ;;  %v8303_v43 = vld [vmem:[%s15733_s5 + $0x4f8] sm:$0xff] }
 0x140   : > { %v11244_v50 = vpop.permute.xlu1 %1566  ;;  %v11246_v35 = vpop.permute.xlu0 %1561  ;;  %16499 = vst [vmem:[#allocation167_spill] sm:$0xff] %v11257_v40  ;;  %16500 = vst [vmem:[#allocation168_spill] sm:$0xff] %v11261_v44 }
 0x141   : > { %16496 = vst [vmem:[#allocation165_spill] sm:$0xff] %v11244_v50  ;;  %16497 = vst [vmem:[#allocation166_spill] sm:$0xff] %v11246_v35  ;;  %v1608_v37 = vmul.f32 %v11244_v50, %v11231_v0  ;;  %v1607_v7 = vmul.f32 %v11246_v35, %v11235_v58  ;;  %2063 = vperm.xlu1 %9835, %v8254_v39   ;;  %2058 = vperm.xlu0 %9834, %v8253_v26   ;;  %v8300_v26 = vld [vmem:[%s15733_s5 + $0x4e0] sm:$0xff] }
 0x142   : > { %9248 = vmatmul.mubr.msk.bf16.gmra.mxu1 %vm895_vm1, %v650_v11 }
 0x143   : > { %v1625_v39 = vpack.c.bf16 %v1608_v37, %v1607_v7  ;;  %v8302_v37 = vld [vmem:[%s15733_s5 + $0x4f0] sm:$0xff] }
 0x144   : > { %v11269_v11 = vpop.permute.xlu1 %1576  ;;  %v11271_v50 = vpop.permute.xlu0 %1571 }
 0x145   : > { %16501 = vst [vmem:[#allocation169_spill] sm:$0xff] %v11269_v11  ;;  %16502 = vst [vmem:[#allocation170_spill] sm:$0xff] %v11271_v50  ;;  %v1610_v30 = vmul.f32 %v11269_v11, %v11257_v40  ;;  %v1609_v53 = vmul.f32 %v11271_v50, %v11261_v44  ;;  %2540 = vperm.xlu1 %9835, %v8301_v49   ;;  %2535 = vperm.xlu0 %9834, %v8300_v26   ;;  %v8322_v26 = vld [vmem:[%s15733_s5 + $0x508] sm:$0xff]  ;;  %v8340_v40 = vld [vmem:[%s15733_s5 + $0x598] sm:$0xff] }
 0x146   : > { %9281 = vmatprep.mubr.msk.bf16.mxu0 %vm895_vm1, %v1625_v39  ;;  %v8321_v39 = vld [vmem:[%s15733_s5 + $0x500] sm:$0xff] }
 0x147   : > { %v1626_v7 = vpack.c.bf16 %v1610_v30, %v1609_v53 }
 0x148   : > { %v11284_v35 = vpop.permute.xlu1 %1913  ;;  %v11286_v54 = vpop.permute.xlu0 %1908 }
 0x149   : > { %16503 = vst [vmem:[#allocation171_spill] sm:$0xff] %v11284_v35  ;;  %16504 = vst [vmem:[#allocation172_spill] sm:$0xff] %v11286_v54  ;;  %v2067_v11 = vmul.f32 %v11284_v35, %v10488_v9  ;;  %v2066_v49 = vmul.f32 %v11286_v54, %v10493_v27  ;;  %2550 = vperm.xlu1 %9835, %v8303_v43   ;;  %2545 = vperm.xlu0 %9834, %v8302_v37   ;;  %v8353_v37 = vld [vmem:[%s15729_s1 + $0xa] sm:$0x3] }
 0x14a   : > { %9282 = vmatmul.mubr.msk.bf16.gmra.mxu0 %vm895_vm1, %v1626_v7  ;;  %v8323_v7 = vld [vmem:[%s15733_s5 + $0x510] sm:$0xff]  ;;  %9821 = vmatprep.subr.msk.bf16.mxu1 %vm944_vm0, %v8353_v37 }
 0x14b   : > { %v2098_v30 = vpack.c.bf16 %v2067_v11, %v2066_v49  ;;  %v8324_v11 = vld [vmem:[%s15733_s5 + $0x518] sm:$0xff] }
 0x14c   : > { %v11299_v53 = vpop.permute.xlu1 %1923  ;;  %v11301_v50 = vpop.permute.xlu0 %1918 }
 0x14d   : > { %16505 = vst [vmem:[#allocation173_spill] sm:$0xff] %v11299_v53  ;;  %16506 = vst [vmem:[#allocation174_spill] sm:$0xff] %v11301_v50  ;;  %v2069_v35 = vmul.f32 %v11299_v53, %v10576_v62  ;;  %v2068_v43 = vmul.f32 %v11301_v50, %v10582_v33  ;;  %2887 = vperm.xlu1 %9835, %v8322_v26   ;;  %2882 = vperm.xlu0 %9834, %v8321_v39   ;;  %v3139_v39 = vsel %vm944_vm0, %v8353_v37, 0 }
 0x14e   : > { %9287 = vmatprep.mubr.msk.bf16.mxu1 %vm895_vm1, %v2098_v30 }
 0x14f   : > { %v2099_v49 = vpack.c.bf16 %v2069_v35, %v2068_v43  ;;  %v8371_v35 = vld [vmem:[%s15733_s5 + $0x608] sm:$0xff]  ;;  %v8370_v43 = vld [vmem:[%s15733_s5 + $0x600] sm:$0xff] }
 0x150   : > { %v11318_v53 = vpop.permute.xlu1 %2400  ;;  %v11320_v26 = vpop.permute.xlu0 %2395 }
 0x151   : > { %16507 = vst [vmem:[#allocation175_spill] sm:$0xff] %v11318_v53  ;;  %16508 = vst [vmem:[#allocation176_spill] sm:$0xff] %v11320_v26  ;;  %v2554_v30 = vmul.f32 %v10143_v10, %v11318_v53  ;;  %v2553_v50 = vmul.f32 %v10139_v8, %v11320_v26  ;;  %2897 = vperm.xlu1 %9835, %v8324_v11   ;;  %2892 = vperm.xlu0 %9834, %v8323_v7  }
 0x152   : > { %9288 = vmatmul.mubr.msk.bf16.vlgmr.msra.gmra.mxu1 %vm895_vm1, %v2099_v49 }
 0x153   : > { %v2585_v54 = vpack.c.bf16 %v2554_v30, %v2553_v50  ;;  %v11334_v37 = vpop.f32.mrf.mxu0  ;;  %9354 = vmatpush3.bf16.msra.mxu1 %v3139_v39  ;;  %v8402_v50 = vld [vmem:[%s15729_s1 + $0xc] sm:$0x3]  ;;  %v8373_v39 = vld [vmem:[%s15733_s5 + $0x618] sm:$0xff]  ;;  %v8372_v30 = vld [vmem:[%s15733_s5 + $0x610] sm:$0xff] }
 0x154   : > { %v11336_v53 = vpop.permute.xlu1 %2410  ;;  %v11338_v10 = vpop.permute.xlu0 %2405  ;;  %9822 = vmatprep.subr.msk.bf16.mxu0 %vm944_vm0, %v8402_v50 }
 0x155   : > { %16509 = vst [vmem:[#allocation177_spill] sm:$0xff] %v11336_v53  ;;  %16510 = vst [vmem:[#allocation178_spill] sm:$0xff] %v11338_v10  ;;  %v2556_v11 = vmul.f32 %v10162_v19, %v11336_v53  ;;  %v2555_v7 = vmul.f32 %v10166_v21, %v11338_v10  ;;  %v11344_v49 = vpop.f32.mrf.mxu0  ;;  %3374 = vperm.xlu1 %9835, %v8371_v35   ;;  %3369 = vperm.xlu0 %9834, %v8370_v43   ;;  %v3626_v10 = vsel %vm944_vm0, %v8402_v50, 0 }
 0x156   : > { %9321 = vmatprep.mubr.msk.bf16.mxu0 %vm895_vm1, %v2585_v54 }
 0x157   : > { %v2586_v26 = vpack.c.bf16 %v2556_v11, %v2555_v7  ;;  %v11357_v53 = vpop.f32.mrf.mxu0  ;;  %v8326_v11 = vld [vmem:[%s15733_s5 + $0x528] sm:$0xff]  ;;  %v8325_v7 = vld [vmem:[%s15733_s5 + $0x520] sm:$0xff] }
 0x158   : > { %v11359_v35 = vpop.permute.xlu1 %1933  ;;  %v11361_v43 = vpop.permute.xlu0 %1928 }
 0x159   : > { %16511 = vst [vmem:[#allocation179_spill] sm:$0xff] %v11359_v35  ;;  %16512 = vst [vmem:[#allocation180_spill] sm:$0xff] %v11361_v43  ;;  %v2071_v54 = vmul.f32 %v11359_v35, %v10605_v41  ;;  %v2070_v8 = vmul.f32 %v11361_v43, %v10609_v15  ;;  %v11368_v21 = vpop.f32.mrf.mxu0  ;;  %3384 = vperm.xlu1 %9835, %v8373_v39   ;;  %3379 = vperm.xlu0 %9834, %v8372_v30  }
 0x15a   : > { %16513 = vst [vmem:[#allocation181_spill] sm:$0xff] %v11368_v21  ;;  %9322 = vmatmul.mubr.msk.bf16.vlgmr.msra.gmra.mxu0 %vm895_vm1, %v2586_v26 }
 0x15b   : > { %v2100_v50 = vpack.c.bf16 %v2071_v54, %v2070_v8  ;;  %v11377_v19 = vpop.f32.mrf.mxu0  ;;  %9388 = vmatpush3.bf16.msra.mxu0 %v3626_v10  ;;  %v8328_v8 = vld [vmem:[%s15733_s5 + $0x538] sm:$0xff]  ;;  %v8327_v10 = vld [vmem:[%s15733_s5 + $0x530] sm:$0xff] }
 0x15c   : > { %v11379_v35 = vpop.permute.xlu1 %1943  ;;  %v11381_v43 = vpop.permute.xlu0 %1938 }
 0x15d   : > { %16514 = vst [vmem:[#allocation182_spill] sm:$0xff] %v11379_v35  ;;  %16515 = vst [vmem:[#allocation183_spill] sm:$0xff] %v11381_v43  ;;  %v2073_v39 = vmul.f32 %v11379_v35, %v10680_v29  ;;  %v2072_v26 = vmul.f32 %v11381_v43, %v10684_v24  ;;  %v11387_v30 = vpop.f32.mrf.mxu0  ;;  %2907 = vperm.xlu1 %9835, %v8326_v11   ;;  %2902 = vperm.xlu0 %9834, %v8325_v7  }
 0x15e   : > { %9291 = vmatprep.mubr.msk.bf16.mxu1 %vm895_vm1, %v2100_v50 }
 0x15f   : > { %v2101_v54 = vpack.c.bf16 %v2073_v39, %v2072_v26  ;;  %v11396_v21 = vpop.f32.mrf.mxu0  ;;  %v8375_v39 = vld [vmem:[%s15733_s5 + $0x628] sm:$0xff]  ;;  %v8374_v26 = vld [vmem:[%s15733_s5 + $0x620] sm:$0xff] }
 0x160   : > { %v11398_v35 = vpop.permute.xlu1 %2420  ;;  %v11400_v43 = vpop.permute.xlu0 %2415 }
 0x161   : > { %16516 = vst [vmem:[#allocation184_spill] sm:$0xff] %v11398_v35  ;;  %16517 = vst [vmem:[#allocation185_spill] sm:$0xff] %v11400_v43  ;;  %v2558_v11 = vmul.f32 %v10183_v31, %v11398_v35  ;;  %v2557_v7 = vmul.f32 %v10189_v34, %v11400_v43  ;;  %v11406_v50 = vpop.f32.mrf.mxu0  ;;  %2917 = vperm.xlu1 %9835, %v8328_v8   ;;  %2912 = vperm.xlu0 %9834, %v8327_v10  }
 0x162   : > { %16518 = vst [vmem:[#allocation186_spill] sm:$0xff] %v11406_v50  ;;  %9292 = vmatmul.mubr.msk.bf16.gmra.mxu1 %vm895_vm1, %v2101_v54 }
 0x163   : > { %v2587_v27 = vpack.c.bf16 %v2558_v11, %v2557_v7  ;;  %v11415_v9 = vpop.f32.mrf.mxu0  ;;  %v8377_v11 = vld [vmem:[%s15733_s5 + $0x638] sm:$0xff]  ;;  %v8376_v7 = vld [vmem:[%s15733_s5 + $0x630] sm:$0xff] }
 0x164   : > { %v11417_v35 = vpop.permute.xlu1 %2430  ;;  %v11419_v43 = vpop.permute.xlu0 %2425 }
 0x165   : > { %16519 = vst [vmem:[#allocation187_spill] sm:$0xff] %v11417_v35  ;;  %16520 = vst [vmem:[#allocation188_spill] sm:$0xff] %v11419_v43  ;;  %v2560_v8 = vmul.f32 %v10210_v45, %v11417_v35  ;;  %v2559_v10 = vmul.f32 %v10212_v46, %v11419_v43  ;;  %v11425_v54 = vpop.f32.mrf.mxu0  ;;  %3394 = vperm.xlu1 %9835, %v8375_v39   ;;  %3389 = vperm.xlu0 %9834, %v8374_v26   ;;  %v8330_v26 = vld [vmem:[%s15733_s5 + $0x548] sm:$0xff] }
 0x166   : > { %9325 = vmatprep.mubr.msk.bf16.mxu0 %vm895_vm1, %v2587_v27 }
 0x167   : > { %v2588_v50 = vpack.c.bf16 %v2560_v8, %v2559_v10  ;;  %v11434_v34 = vpop.f32.mrf.mxu0  ;;  %v8329_v8 = vld [vmem:[%s15733_s5 + $0x540] sm:$0xff] }
 0x168   : > { %v11436_v35 = vpop.permute.xlu1 %1953  ;;  %v11438_v43 = vpop.permute.xlu0 %1948 }
 0x169   : > { %16521 = vst [vmem:[#allocation189_spill] sm:$0xff] %v11436_v35  ;;  %16522 = vst [vmem:[#allocation190_spill] sm:$0xff] %v11438_v43  ;;  %v2075_v39 = vmul.f32 %v11436_v35, %v10705_v16  ;;  %v2074_v27 = vmul.f32 %v11438_v43, %v10709_v61  ;;  %3404 = vperm.xlu1 %9835, %v8377_v11   ;;  %3399 = vperm.xlu0 %9834, %v8376_v7   ;;  %v11451_v46 = vpop.f32.mrf.mxu0  ;;  %v8332_v7 = vld [vmem:[%s15733_s5 + $0x558] sm:$0xff] }
 0x16a   : > { %9326 = vmatmul.mubr.msk.bf16.gmra.mxu0 %vm895_vm1, %v2588_v50  ;;  %16523 = vst [vmem:[#allocation191_spill] sm:$0xff] %v11451_v46 }
 0x16b   : > { %v2102_v10 = vpack.c.bf16 %v2075_v39, %v2074_v27  ;;  %v8331_v39 = vld [vmem:[%s15733_s5 + $0x550] sm:$0xff]  ;;  %v11468_v27 = vpop.f32.mrf.mxu0 }
 0x16c   : > { %v11453_v45 = vpop.permute.xlu1 %1963  ;;  %v11455_v35 = vpop.permute.xlu0 %1958 }
 0x16d   : > { %16524 = vst [vmem:[#allocation192_spill] sm:$0xff] %v11453_v45  ;;  %16525 = vst [vmem:[#allocation193_spill] sm:$0xff] %v11455_v35  ;;  %v2077_v11 = vmul.f32 %v11453_v45, %v10780_v23  ;;  %v2076_v50 = vmul.f32 %v11455_v35, %v10784_v47  ;;  %2927 = vperm.xlu1 %9835, %v8330_v26   ;;  %2922 = vperm.xlu0 %9834, %v8329_v8  }
 0x16e   : > { %9295 = vmatprep.mubr.msk.bf16.mxu1 %vm895_vm1, %v2102_v10  ;;  %v8379_v10 = vld [vmem:[%s15733_s5 + $0x648] sm:$0xff] }
 0x16f   : > { %v2103_v43 = vpack.c.bf16 %v2077_v11, %v2076_v50  ;;  %v8378_v11 = vld [vmem:[%s15733_s5 + $0x640] sm:$0xff]  ;;  %v11485_v50 = vpop.f32.mrf.mxu0 }
 0x170   : > { %v11470_v46 = vpop.permute.xlu1 %2440  ;;  %v11472_v45 = vpop.permute.xlu0 %2435 }
 0x171   : > { %16526 = vst [vmem:[#allocation194_spill] sm:$0xff] %v11470_v46  ;;  %16527 = vst [vmem:[#allocation195_spill] sm:$0xff] %v11472_v45  ;;  %v2562_v26 = vmul.f32 %v10230_v55, %v11470_v46  ;;  %v2561_v8 = vmul.f32 %v10232_v56, %v11472_v45  ;;  %2937 = vperm.xlu1 %9835, %v8332_v7   ;;  %2932 = vperm.xlu0 %9834, %v8331_v39  }
 0x172   : > { %9296 = vmatmul.mubr.msk.bf16.gmra.mxu1 %vm895_vm1, %v2103_v43  ;;  %v11493_v43 = vpop.f32.mrf.mxu1 }
 0x173   : > { %v2589_v35 = vpack.c.bf16 %v2562_v26, %v2561_v8  ;;  %v8381_v26 = vld [vmem:[%s15733_s5 + $0x658] sm:$0xff]  ;;  %v8380_v8 = vld [vmem:[%s15733_s5 + $0x650] sm:$0xff] }
 0x174   : > { %v11487_v31 = vpop.permute.xlu1 %2450  ;;  %v11491_v7 = vpop.permute.xlu0 %2445 }
 0x175   : > { %16528 = vst [vmem:[#allocation196_spill] sm:$0xff] %v11487_v31  ;;  %v2564_v45 = vmul.f32 %v10250_v1, %v11487_v31  ;;  %16529 = vst [vmem:[#allocation197_spill] sm:$0xff] %v11491_v7  ;;  %3414 = vperm.xlu1 %9835, %v8379_v10   ;;  %3409 = vperm.xlu0 %9834, %v8378_v11   ;;  %v2563_v39 = vmul.f32 %v10252_v2, %v11491_v7  ;;  %v11504_v31 = vpop.f32.mrf.mxu0 }
 0x176   : > { %9329 = vmatprep.mubr.msk.bf16.mxu0 %vm895_vm1, %v2589_v35  ;;  %v11512_v35 = vpop.f32.mrf.mxu1 }
 0x177   : > { %v2590_v46 = vpack.c.bf16 %v2564_v45, %v2563_v39  ;;  %v8334_v45 = vld [vmem:[%s15733_s5 + $0x568] sm:$0xff]  ;;  %v8333_v39 = vld [vmem:[%s15733_s5 + $0x560] sm:$0xff] }
 0x178   : > { %v11506_v10 = vpop.permute.xlu1 %1973  ;;  %v11510_v1 = vpop.permute.xlu0 %1968 }
 0x179   : > { %16530 = vst [vmem:[#allocation198_spill] sm:$0xff] %v11506_v10  ;;  %v2079_v11 = vmul.f32 %v11506_v10, %v10805_v52  ;;  %16531 = vst [vmem:[#allocation199_spill] sm:$0xff] %v11510_v1  ;;  %3424 = vperm.xlu1 %9835, %v8381_v26   ;;  %3419 = vperm.xlu0 %9834, %v8380_v8   ;;  %v2078_v7 = vmul.f32 %v11510_v1, %v10809_v25  ;;  %v11523_v10 = vpop.f32.mrf.mxu0 }
 0x17a   : > { %9330 = vmatmul.mubr.msk.bf16.gmra.mxu0 %vm895_vm1, %v2590_v46  ;;  %16532 = vst [vmem:[#allocation200_spill] sm:$0xff] %v11523_v10  ;;  %v11533_v46 = vpop.f32.mrf.mxu1 }
 0x17b   : > { %v2104_v2 = vpack.c.bf16 %v2079_v11, %v2078_v7  ;;  %v11527_v8 = vpop.f32.mrf.mxu0  ;;  %v8336_v7 = vld [vmem:[%s15733_s5 + $0x578] sm:$0xff]  ;;  %v8335_v11 = vld [vmem:[%s15733_s5 + $0x570] sm:$0xff] }
 0x17c   : > { %v11525_v26 = vpop.permute.xlu1 %1983  ;;  %v11531_v56 = vpop.permute.xlu0 %1978 }
 0x17d   : > { %16533 = vst [vmem:[#allocation201_spill] sm:$0xff] %v11525_v26  ;;  %v2081_v1 = vmul.f32 %v11525_v26, %v10880_v28  ;;  %16534 = vst [vmem:[#allocation202_spill] sm:$0xff] %v11531_v56  ;;  %2947 = vperm.xlu1 %9835, %v8334_v45   ;;  %2942 = vperm.xlu0 %9834, %v8333_v39   ;;  %v2080_v55 = vmul.f32 %v11531_v56, %v10884_v14  ;;  %v11546_v45 = vpop.f32.mrf.mxu0 }
 0x17e   : > { %9299 = vmatprep.mubr.msk.bf16.mxu1 %vm895_vm1, %v2104_v2  ;;  %v11552_v2 = vpop.f32.mrf.mxu1 }
 0x17f   : > { %v2105_v26 = vpack.c.bf16 %v2081_v1, %v2080_v55  ;;  %16537 = vst [vmem:[#allocation205_spill] sm:$0xff] %v11552_v2  ;;  %v8383_v55 = vld [vmem:[%s15733_s5 + $0x668] sm:$0xff]  ;;  %v8382_v1 = vld [vmem:[%s15733_s5 + $0x660] sm:$0xff] }
 0x180   : > { %v11544_v10 = vpop.permute.xlu1 %2460  ;;  %v11550_v44 = vpop.permute.xlu0 %2455 }
 0x181   : > { %16535 = vst [vmem:[#allocation203_spill] sm:$0xff] %v11544_v10  ;;  %v2566_v39 = vmul.f32 %v10270_v20, %v11544_v10  ;;  %16536 = vst [vmem:[#allocation204_spill] sm:$0xff] %v11550_v44  ;;  %2957 = vperm.xlu1 %9835, %v8336_v7   ;;  %2952 = vperm.xlu0 %9834, %v8335_v11   ;;  %v2565_v56 = vmul.f32 %v10272_v22, %v11550_v44  ;;  %v11567_v11 = vpop.f32.mrf.mxu0 }
 0x182   : > { %9300 = vmatmul.mubr.msk.bf16.gmra.mxu1 %vm895_vm1, %v2105_v26  ;;  %v11563_v20 = vpop.f32.mrf.mxu1 }
 0x183   : > { %v2591_v10 = vpack.c.bf16 %v2566_v39, %v2565_v56  ;;  %16538 = vst [vmem:[#allocation206_spill] sm:$0xff] %v11563_v20  ;;  %v8385_v56 = vld [vmem:[%s15733_s5 + $0x678] sm:$0xff]  ;;  %v8384_v39 = vld [vmem:[%s15733_s5 + $0x670] sm:$0xff] }
 0x184   : > { %v11565_v7 = vpop.permute.xlu1 %2470  ;;  %v11571_v2 = vpop.permute.xlu0 %2465 }
 0x185   : > { %16539 = vst [vmem:[#allocation207_spill] sm:$0xff] %v11565_v7  ;;  %v2568_v44 = vmul.f32 %v10330_v4, %v11565_v7  ;;  %16540 = vst [vmem:[#allocation208_spill] sm:$0xff] %v11571_v2  ;;  %3434 = vperm.xlu1 %9835, %v8383_v55   ;;  %3429 = vperm.xlu0 %9834, %v8382_v1   ;;  %v2567_v26 = vmul.f32 %v10332_v5, %v11571_v2  ;;  %v11582_v22 = vpop.f32.mrf.mxu1  ;;  %v11586_v55 = vpop.f32.mrf.mxu0 }
 0x186   : > { %9333 = vmatprep.mubr.msk.bf16.mxu0 %vm895_vm1, %v2591_v10  ;;  %16541 = vst [vmem:[#allocation209_spill] sm:$0xff] %v11582_v22  ;;  %16543 = vst [vmem:[#allocation211_spill] sm:$0xff] %v11586_v55  ;;  %v16556_v22 = vld [vmem:[#allocation59_spill] sm:$0xff] }
 0x187   : > { %v2592_v7 = vpack.c.bf16 %v2568_v44, %v2567_v26  ;;  %v8338_v44 = vld [vmem:[%s15733_s5 + $0x588] sm:$0xff]  ;;  %v8337_v26 = vld [vmem:[%s15733_s5 + $0x580] sm:$0xff] }
 0x188   : > { %v11584_v4 = vpop.permute.xlu1 %1993  ;;  %v11590_v2 = vpop.permute.xlu0 %1988 }
 0x189   : > { %16542 = vst [vmem:[#allocation210_spill] sm:$0xff] %v11584_v4  ;;  %v2083_v1 = vmul.f32 %v11584_v4, %v10905_v13  ;;  %16544 = vst [vmem:[#allocation212_spill] sm:$0xff] %v11590_v2  ;;  %3444 = vperm.xlu1 %9835, %v8385_v56   ;;  %3439 = vperm.xlu0 %9834, %v8384_v39   ;;  %v2082_v10 = vmul.f32 %v11590_v2, %v10909_v17  ;;  %v11603_v4 = vpop.f32.mrf.mxu1 }
 0x18a   : > { %9334 = vmatmul.mubr.msk.bf16.gmra.mxu0 %vm895_vm1, %v2592_v7  ;;  %v11601_v55 = vpop.f32.mrf.mxu0  ;;  %16545 = vst [vmem:[#allocation213_spill] sm:$0xff] %v11603_v4 }
 0x18b   : > { %v2106_v5 = vpack.c.bf16 %v2083_v1, %v2082_v10  ;;  %v8339_v1 = vld [vmem:[%s15733_s5 + $0x590] sm:$0xff] }
 0x18c   : > { %v11605_v56 = vpop.permute.xlu1 %2003  ;;  %v11609_v2 = vpop.permute.xlu0 %1998 }
 0x18d   : > { %16546 = vst [vmem:[#allocation214_spill] sm:$0xff] %v11605_v56  ;;  %v2085_v39 = vmul.f32 %v11605_v56, %v10980_v57  ;;  %16547 = vst [vmem:[#allocation215_spill] sm:$0xff] %v11609_v2  ;;  %2967 = vperm.xlu1 %9835, %v8338_v44   ;;  %2962 = vperm.xlu0 %9834, %v8337_v26   ;;  %v2084_v7 = vmul.f32 %v11609_v2, %v10984_v51  ;;  %v11620_v10 = vpop.f32.mrf.mxu0  ;;  %v11622_v56 = vpop.f32.mrf.mxu1  ;;  %v16550_v26 = vld [vmem:[#allocation46_spill] sm:$0xff] }
 0x18e   : > { %9303 = vmatprep.mubr.msk.bf16.mxu1 %vm895_vm1, %v2106_v5  ;;  %16548 = vst [vmem:[#allocation216_spill] sm:$0xff] %v11622_v56  ;;  %v16552_v5 = vld [vmem:[#allocation47_spill] sm:$0xff] }
 0x18f   : > { %v2107_v58 = vpack.c.bf16 %v2085_v39, %v2084_v7  ;;  %v8387_v56 = vld [vmem:[%s15733_s5 + $0x688] sm:$0xff]  ;;  %v8386_v39 = vld [vmem:[%s15733_s5 + $0x680] sm:$0xff]  ;;  %v11639_v7 = vpop.f32.mrf.mxu0 }
 0x190   : > { %v11624_v44 = vpop.permute.xlu1 %2480  ;;  %v11628_v0 = vpop.permute.xlu0 %2475 }
 0x191   : > { %16549 = vst [vmem:[#allocation217_spill] sm:$0xff] %v11624_v44  ;;  %v2570_v2 = vmul.f32 %v16550_v26, %v11624_v44  ;;  %16551 = vst [vmem:[#allocation218_spill] sm:$0xff] %v11628_v0  ;;  %2977 = vperm.xlu1 %9835, %v8340_v40   ;;  %2972 = vperm.xlu0 %9834, %v8339_v1   ;;  %v2569_v51 = vmul.f32 %v16552_v5, %v11628_v0 }
 0x192   : > { %v9221_v57 = vpop.f32.mrf.mxu1  ;;  %9304 = vmatmul.mubr.msk.bf16.gmra.mxu1 %vm895_vm1, %v2107_v58  ;;  %v16554_v58 = vld [vmem:[#allocation58_spill] sm:$0xff] }
 0x193   : > { %v1203_v44 = vadd.f32 %v9221_v57, %v11334_v37  ;;  %v2593_v40 = vpack.c.bf16 %v2570_v2, %v2569_v51  ;;  %v8389_v57 = vld [vmem:[%s15733_s5 + $0x698] sm:$0xff]  ;;  %v8388_v51 = vld [vmem:[%s15733_s5 + $0x690] sm:$0xff] }
 0x194   : > { %v1194_v1 = vpop.f32.mrf.mxu1  ;;  %v11642_v26 = vpop.permute.xlu1 %2490 }
 0x195   : > { %16553 = vst [vmem:[#allocation219_spill] sm:$0xff] %v11642_v26  ;;  %v1195_v0 = vadd.f32 %v1194_v1, %v11344_v49  ;;  %v2572_v5 = vmul.f32 %v16554_v58, %v11642_v26  ;;  %v11647_v4 = vpop.permute.xlu0 %2485  ;;  %3454 = vperm.xlu1 %9835, %v8387_v56   ;;  %3449 = vperm.xlu0 %9834, %v8386_v39   ;;  %v11659_v49 = vpop.f32.mrf.mxu0 }
 0x196   : > { %16555 = vst [vmem:[#allocation220_spill] sm:$0xff] %v11647_v4  ;;  %v2571_v20 = vmul.f32 %v16556_v22, %v11647_v4  ;;  %v9222_v17 = vpop.f32.mrf.mxu1  ;;  %9337 = vmatprep.mubr.msk.bf16.mxu0 %vm895_vm1, %v2593_v40  ;;  %16557 = vst [vmem:[#allocation221_spill] sm:$0xff] %v11659_v49 }
 0x197   : > { %v1206_v37 = vadd.f32 %v9222_v17, %v11357_v53  ;;  %v8342_v17 = vld [vmem:[%s15733_s5 + $0x5a8] sm:$0xff] }
 0x198   : > { %v2594_v2 = vpack.c.bf16 %v2572_v5, %v2571_v20  ;;  %v11661_v56 = vpop.permute.xlu1 %2013  ;;  %v8341_v20 = vld [vmem:[%s15733_s5 + $0x5a0] sm:$0xff] }
 0x199   : > { %16558 = vst [vmem:[#allocation222_spill] sm:$0xff] %v11661_v56  ;;  %v2087_v39 = vmul.f32 %v11661_v56, %v11005_v38  ;;  %v11665_v1 = vpop.permute.xlu0 %2008  ;;  %3464 = vperm.xlu1 %9835, %v8389_v57   ;;  %3459 = vperm.xlu0 %9834, %v8388_v51  }
 0x19a   : > { %16559 = vst [vmem:[#allocation223_spill] sm:$0xff] %v11665_v1  ;;  %v2086_v40 = vmul.f32 %v11665_v1, %v11009_v3  ;;  %v9255_v4 = vpop.f32.mrf.mxu0  ;;  %9338 = vmatmul.mubr.msk.bf16.gmra.mxu0 %vm895_vm1, %v2594_v2 }
 0x19b   : > { %v11676_v53 = vadd.f32 %v9255_v4, %v1203_v44  ;;  %v8344_v4 = vld [vmem:[%s15733_s5 + $0x5b8] sm:$0xff] }
 0x19c   : > { %v2108_v5 = vpack.c.bf16 %v2087_v39, %v2086_v40  ;;  %v1714_v26 = vpop.f32.mrf.mxu0  ;;  %v11678_v57 = vpop.permute.xlu1 %2023 }
 0x19d   : > { %16560 = vst [vmem:[#allocation224_spill] sm:$0xff] %v11678_v57  ;;  %v11680_v51 = vadd.f32 %v1714_v26, %v1195_v0  ;;  %v2089_v1 = vmul.f32 %v11678_v57, %v11080_v60  ;;  %v11684_v2 = vpop.permute.xlu0 %2018  ;;  %2987 = vperm.xlu1 %9835, %v8342_v17   ;;  %2982 = vperm.xlu0 %9834, %v8341_v20   ;;  %v8343_v0 = vld [vmem:[%s15733_s5 + $0x5b0] sm:$0xff]  ;;  %v11697_v26 = vpop.f32.mrf.mxu1  ;;  %v16564_v17 = vld [vmem:[#allocation63_spill] sm:$0xff] }
 0x19e   : > { %16561 = vst [vmem:[#allocation225_spill] sm:$0xff] %v11684_v2  ;;  %v2088_v56 = vmul.f32 %v11684_v2, %v11084_v32  ;;  %v9256_v49 = vpop.f32.mrf.mxu0  ;;  %9307 = vmatprep.mubr.msk.bf16.mxu1 %vm895_vm1, %v2108_v5  ;;  %16562 = vst [vmem:[#allocation226_spill] sm:$0xff] %v11697_v26  ;;  %v16566_v5 = vld [vmem:[#allocation64_spill] sm:$0xff] }
 0x19f   : > { %v11695_v44 = vadd.f32 %v9256_v49, %v1206_v37  ;;  %v8391_v37 = vld [vmem:[%s15733_s5 + $0x6a8] sm:$0xff]  ;;  %v8390_v49 = vld [vmem:[%s15733_s5 + $0x6a0] sm:$0xff] }
 0x1a0   : > { %v2109_v39 = vpack.c.bf16 %v2089_v1, %v2088_v56  ;;  %v11699_v40 = vpop.permute.xlu1 %2500 }
 0x1a1   : > { %16563 = vst [vmem:[#allocation227_spill] sm:$0xff] %v11699_v40  ;;  %v2574_v20 = vmul.f32 %v16564_v17, %v11699_v40  ;;  %v11703_v57 = vpop.permute.xlu0 %2495  ;;  %2997 = vperm.xlu1 %9835, %v8344_v4   ;;  %2992 = vperm.xlu0 %9834, %v8343_v0   ;;  %v16568_v4 = vld [vmem:[#allocation35_spill] sm:$0xff] }
 0x1a2   : > { %16565 = vst [vmem:[#allocation228_spill] sm:$0xff] %v11703_v57  ;;  %v2573_v2 = vmul.f32 %v16566_v5, %v11703_v57  ;;  %v9225_v22 = vpop.f32.mrf.mxu1  ;;  %9308 = vmatmul.mubr.msk.bf16.gmra.mxu1 %vm895_vm1, %v2109_v39  ;;  %v16570_v39 = vld [vmem:[#allocation34_spill] sm:$0xff]  ;;  %v8393_v5 = vld [vmem:[%s15733_s5 + $0x6b8] sm:$0xff] }
 0x1a4   : > { %v2595_v56 = vpack.c.bf16 %v2574_v20, %v2573_v2  ;;  %v11714_v1 = vpop.permute.xlu1 %2510  ;;  %v1210_v57 = vpop.f32.mrf.mxu1  ;;  %v8392_v2 = vld [vmem:[%s15733_s5 + $0x6b0] sm:$0xff] }
 0x1a5   : > { %16567 = vst [vmem:[#allocation229_spill] sm:$0xff] %v11714_v1  ;;  %v2576_v0 = vmul.f32 %v16568_v4, %v11714_v1  ;;  %v11718_v40 = vpop.permute.xlu0 %2505  ;;  %3474 = vperm.xlu1 %9835, %v8391_v37   ;;  %3469 = vperm.xlu0 %9834, %v8390_v49   ;;  %v11729_v20 = vpop.f32.mrf.mxu0  ;;  %v1219_v37 = vadd.f32 %v9225_v22, %v11377_v19  ;;  %v8345_v19 = vld [vmem:[%s15733_s5 + $0x5c0] sm:$0xff] }
 0x1a6   : > { %16569 = vst [vmem:[#allocation230_spill] sm:$0xff] %v11718_v40  ;;  %v2575_v26 = vmul.f32 %v16570_v39, %v11718_v40  ;;  %9341 = vmatprep.mubr.msk.bf16.mxu0 %vm895_vm1, %v2595_v56  ;;  %16571 = vst [vmem:[#allocation231_spill] sm:$0xff] %v11729_v20  ;;  %v9226_v56 = vpop.f32.mrf.mxu1  ;;  %v1211_v22 = vadd.f32 %v1210_v57, %v11387_v30 }
 0x1a8   : > { %v2596_v1 = vpack.c.bf16 %v2576_v0, %v2575_v26  ;;  %v11731_v4 = vpop.permute.xlu1 %2033  ;;  %v8346_v26 = vld [vmem:[%s15733_s5 + $0x5c8] sm:$0xff] }
 0x1a9   : > { %16572 = vst [vmem:[#allocation232_spill] sm:$0xff] %v11731_v4  ;;  %v2091_v49 = vmul.f32 %v11731_v4, %v11105_v6  ;;  %v11736_v40 = vpop.permute.xlu0 %2028  ;;  %3484 = vperm.xlu1 %9835, %v8393_v5   ;;  %3479 = vperm.xlu0 %9834, %v8392_v2  }
 0x1aa   : > { %16573 = vst [vmem:[#allocation233_spill] sm:$0xff] %v11736_v40  ;;  %v2090_v39 = vmul.f32 %v11736_v40, %v11109_v18  ;;  %v9259_v17 = vpop.f32.mrf.mxu0  ;;  %9342 = vmatmul.mubr.msk.bf16.gmra.mxu0 %vm895_vm1, %v2596_v1  ;;  %v1222_v40 = vadd.f32 %v9226_v56, %v11396_v21  ;;  %v8347_v21 = vld [vmem:[%s15733_s5 + $0x5d0] sm:$0xff] }
 0x1ab   : > { %v11748_v0 = vadd.f32 %v9259_v17, %v1219_v37  ;;  %v8348_v17 = vld [vmem:[%s15733_s5 + $0x5d8] sm:$0xff]  ;;  %v11770_v37 = vpop.f32.mrf.mxu1 }
 0x1ac   : > { %v2110_v5 = vpack.c.bf16 %v2091_v49, %v2090_v39  ;;  %v1730_v2 = vpop.f32.mrf.mxu0  ;;  %v11750_v4 = vpop.permute.xlu1 %2043  ;;  %16576 = vst [vmem:[#allocation236_spill] sm:$0xff] %v11770_v37 }
 0x1ad   : > { %16574 = vst [vmem:[#allocation234_spill] sm:$0xff] %v11750_v4  ;;  %v11753_v20 = vadd.f32 %v1730_v2, %v1211_v22  ;;  %v2093_v1 = vmul.f32 %v11750_v4, %v11180_v36  ;;  %v11757_v58 = vpop.permute.xlu0 %2038  ;;  %3007 = vperm.xlu1 %9835, %v8346_v26   ;;  %3002 = vperm.xlu0 %9834, %v8345_v19   ;;  %v16578_v26 = vld [vmem:[#allocation38_spill] sm:$0xff] }
 0x1ae   : > { %16575 = vst [vmem:[#allocation235_spill] sm:$0xff] %v11757_v58  ;;  %v2092_v30 = vmul.f32 %v11757_v58, %v11184_v63  ;;  %v9260_v57 = vpop.f32.mrf.mxu0  ;;  %9311 = vmatprep.mubr.msk.bf16.mxu1 %vm895_vm1, %v2110_v5  ;;  %v16580_v5 = vld [vmem:[#allocation39_spill] sm:$0xff]  ;;  %v8397_v58 = vld [vmem:[%s15733_s5 + $0x6d8] sm:$0xff] }
 0x1af   : > { %v11768_v39 = vadd.f32 %v9260_v57, %v1222_v40  ;;  %v8395_v40 = vld [vmem:[%s15733_s5 + $0x6c8] sm:$0xff] }
 0x1b0   : > { %v2111_v49 = vpack.c.bf16 %v2093_v1, %v2092_v30  ;;  %v11772_v56 = vpop.permute.xlu1 %2520  ;;  %v8394_v1 = vld [vmem:[%s15733_s5 + $0x6c0] sm:$0xff] }
 0x1b1   : > { %16577 = vst [vmem:[#allocation237_spill] sm:$0xff] %v11772_v56  ;;  %v2578_v19 = vmul.f32 %v16578_v26, %v11772_v56  ;;  %v11776_v22 = vpop.permute.xlu0 %2515  ;;  %3017 = vperm.xlu1 %9835, %v8348_v17   ;;  %3012 = vperm.xlu0 %9834, %v8347_v21  }
 0x1b2   : > { %16579 = vst [vmem:[#allocation238_spill] sm:$0xff] %v11776_v22  ;;  %v2577_v2 = vmul.f32 %v16580_v5, %v11776_v22  ;;  %v9229_v4 = vpop.f32.mrf.mxu1  ;;  %9312 = vmatmul.mubr.msk.bf16.gmra.mxu1 %vm895_vm1, %v2111_v49  ;;  %v16583_v49 = vld [vmem:[#allocation51_spill] sm:$0xff] }
 0x1b4   : > { %v2597_v30 = vpack.c.bf16 %v2578_v19, %v2577_v2  ;;  %v11787_v57 = vpop.permute.xlu1 %2530  ;;  %v1226_v56 = vpop.f32.mrf.mxu1  ;;  %v8396_v19 = vld [vmem:[%s15733_s5 + $0x6d0] sm:$0xff] }
 0x1b5   : > { %16581 = vst [vmem:[#allocation239_spill] sm:$0xff] %v11787_v57  ;;  %v2580_v17 = vmul.f32 %v10372_v59, %v11787_v57  ;;  %v11791_v21 = vpop.permute.xlu0 %2525  ;;  %3494 = vperm.xlu1 %9835, %v8395_v40   ;;  %3489 = vperm.xlu0 %9834, %v8394_v1   ;;  %v11802_v2 = vpop.f32.mrf.mxu0  ;;  %v1235_v40 = vadd.f32 %v9229_v4, %v11415_v9  ;;  %v8349_v9 = vld [vmem:[%s15733_s5 + $0x5e0] sm:$0xff] }
 0x1b6   : > { %16582 = vst [vmem:[#allocation240_spill] sm:$0xff] %v11791_v21  ;;  %v2579_v22 = vmul.f32 %v16583_v49, %v11791_v21  ;;  %9345 = vmatprep.mubr.msk.bf16.mxu0 %vm895_vm1, %v2597_v30  ;;  %16584 = vst [vmem:[#allocation241_spill] sm:$0xff] %v11802_v2  ;;  %v9230_v30 = vpop.f32.mrf.mxu1  ;;  %v1227_v4 = vadd.f32 %v1226_v56, %v11425_v54  ;;  %v8352_v56 = vld [vmem:[%s15733_s5 + $0x5f8] sm:$0xff] }
 0x1b8   : > { %v2598_v57 = vpack.c.bf16 %v2580_v17, %v2579_v22  ;;  %v11804_v37 = vpop.permute.xlu1 %2053  ;;  %v8350_v22 = vld [vmem:[%s15733_s5 + $0x5e8] sm:$0xff] }
 0x1b9   : > { %16585 = vst [vmem:[#allocation242_spill] sm:$0xff] %v11804_v37  ;;  %v2095_v1 = vmul.f32 %v11804_v37, %v11206_v48  ;;  %v11809_v21 = vpop.permute.xlu0 %2048  ;;  %3504 = vperm.xlu1 %9835, %v8397_v58   ;;  %3499 = vperm.xlu0 %9834, %v8396_v19  }
 0x1ba   : > { %16586 = vst [vmem:[#allocation243_spill] sm:$0xff] %v11809_v21  ;;  %v2094_v49 = vmul.f32 %v11809_v21, %v11210_v42  ;;  %v9263_v59 = vpop.f32.mrf.mxu0  ;;  %9346 = vmatmul.mubr.msk.bf16.gmra.mxu0 %vm895_vm1, %v2598_v57  ;;  %v1238_v21 = vadd.f32 %v9230_v30, %v11434_v34  ;;  %v16588_v57 = vld [vmem:[#allocation67_spill] sm:$0xff]  ;;  %v16590_v42 = vld [vmem:[#allocation68_spill] sm:$0xff] }
 0x1bb   : > { %v11821_v17 = vadd.f32 %v9263_v59, %v1235_v40  ;;  %v8351_v34 = vld [vmem:[%s15733_s5 + $0x5f0] sm:$0xff]  ;;  %v11843_v40 = vpop.f32.mrf.mxu1 }
 0x1bc   : > { %v2112_v58 = vpack.c.bf16 %v2095_v1, %v2094_v49  ;;  %v1746_v19 = vpop.f32.mrf.mxu0  ;;  %v11823_v37 = vpop.permute.xlu1 %2063  ;;  %16591 = vst [vmem:[#allocation68_spill] sm:$0xff] %v11843_v40 }
 0x1bd   : > { %16587 = vst [vmem:[#allocation244_spill] sm:$0xff] %v11823_v37  ;;  %v11826_v2 = vadd.f32 %v1746_v19, %v1227_v4  ;;  %v2097_v5 = vmul.f32 %v11823_v37, %v16588_v57  ;;  %v11830_v26 = vpop.permute.xlu0 %2058  ;;  %3027 = vperm.xlu1 %9835, %v8350_v22   ;;  %3022 = vperm.xlu0 %9834, %v8349_v9   ;;  %v16593_v22 = vld [vmem:[#allocation54_spill] sm:$0xff] }
 0x1be   : > { %16589 = vst [vmem:[#allocation67_spill] sm:$0xff] %v11830_v26  ;;  %v2096_v54 = vmul.f32 %v11830_v26, %v16590_v42  ;;  %v9264_v59 = vpop.f32.mrf.mxu0  ;;  %9315 = vmatprep.mubr.msk.bf16.mxu1 %vm895_vm1, %v2112_v58  ;;  %v16595_v58 = vld [vmem:[#allocation55_spill] sm:$0xff]  ;;  %v8401_v26 = vld [vmem:[%s15733_s5 + $0x6f8] sm:$0xff] }
 0x1bf   : > { %v11841_v49 = vadd.f32 %v9264_v59, %v1238_v21  ;;  %v8399_v21 = vld [vmem:[%s15733_s5 + $0x6e8] sm:$0xff] }
 0x1c0   : > { %v2113_v1 = vpack.c.bf16 %v2097_v5, %v2096_v54  ;;  %v11845_v30 = vpop.permute.xlu1 %2540  ;;  %v8398_v5 = vld [vmem:[%s15733_s5 + $0x6e0] sm:$0xff] }
 0x1c1   : > { %16592 = vst [vmem:[#allocation245_spill] sm:$0xff] %v11845_v30  ;;  %v2582_v9 = vmul.f32 %v16593_v22, %v11845_v30  ;;  %v11849_v4 = vpop.permute.xlu0 %2535  ;;  %3037 = vperm.xlu1 %9835, %v8352_v56   ;;  %3032 = vperm.xlu0 %9834, %v8351_v34   ;;  %v16597_v56 = vld [vmem:[#allocation7_spill] sm:$0xff] }
 0x1c2   : > { %16594 = vst [vmem:[#allocation246_spill] sm:$0xff] %v11849_v4  ;;  %v2581_v19 = vmul.f32 %v16595_v58, %v11849_v4  ;;  %v9233_v37 = vpop.f32.mrf.mxu1  ;;  %9316 = vmatmul.mubr.msk.bf16.gmra.mxu1 %vm895_vm1, %v2113_v1 }
 0x1c4   : > { %v2599_v54 = vpack.c.bf16 %v2582_v9, %v2581_v19  ;;  %v11860_v59 = vpop.permute.xlu1 %2550  ;;  %v1242_v4 = vpop.f32.mrf.mxu1  ;;  %v8400_v9 = vld [vmem:[%s15733_s5 + $0x6f0] sm:$0xff] }
 0x1c5   : > { %16596 = vst [vmem:[#allocation247_spill] sm:$0xff] %v11860_v59  ;;  %v2584_v34 = vmul.f32 %v16597_v56, %v11860_v59  ;;  %v11864_v30 = vpop.permute.xlu0 %2545  ;;  %3514 = vperm.xlu1 %9835, %v8399_v21   ;;  %3509 = vperm.xlu0 %9834, %v8398_v5   ;;  %v11875_v19 = vpop.f32.mrf.mxu0  ;;  %v1251_v21 = vadd.f32 %v9233_v37, %v11468_v27  ;;  %v16601_v5 = vld [vmem:[#allocation79_spill] sm:$0xff]  ;;  %v16603_v56 = vld [vmem:[#allocation80_spill] sm:$0xff]  ;;  %v8419_v27 = vld [vmem:[%s15733_s5 + $0x700] sm:$0xff] }
 0x1c6   : > { %16598 = vst [vmem:[#allocation248_spill] sm:$0xff] %v11864_v30  ;;  %v2583_v1 = vmul.f32 %v10146_v12, %v11864_v30  ;;  %9349 = vmatprep.mubr.msk.bf16.mxu0 %vm895_vm1, %v2599_v54  ;;  %16599 = vst [vmem:[#allocation249_spill] sm:$0xff] %v11875_v19  ;;  %v9234_v54 = vpop.f32.mrf.mxu1  ;;  %v1243_v37 = vadd.f32 %v1242_v4, %v11485_v50  ;;  %v8451_v50 = vld [vmem:[%s15729_s1 + $0xe] sm:$0x3] }
 0x1c7   : > { %9823 = vmatprep.subr.msk.bf16.mxu1 %vm944_vm0, %v8451_v50 }
 0x1c8   : > { %v2600_v59 = vpack.c.bf16 %v2584_v34, %v2583_v1  ;;  %v11877_v40 = vpop.permute.xlu1 %2887  ;;  %v8420_v34 = vld [vmem:[%s15733_s5 + $0x708] sm:$0xff] }
 0x1c9   : > { %16600 = vst [vmem:[#allocation250_spill] sm:$0xff] %v11877_v40  ;;  %v3041_v30 = vmul.f32 %v11877_v40, %v16601_v5  ;;  %v11882_v12 = vpop.permute.xlu0 %2882  ;;  %3524 = vperm.xlu1 %9835, %v8401_v26   ;;  %3519 = vperm.xlu0 %9834, %v8400_v9  }
 0x1ca   : > { %16602 = vst [vmem:[#allocation251_spill] sm:$0xff] %v11882_v12  ;;  %v3040_v58 = vmul.f32 %v11882_v12, %v16603_v56  ;;  %v9267_v22 = vpop.f32.mrf.mxu0  ;;  %9350 = vmatmul.mubr.msk.bf16.gmra.mxu0 %vm895_vm1, %v2600_v59  ;;  %v1254_v12 = vadd.f32 %v9234_v54, %v11504_v31  ;;  %v16605_v59 = vld [vmem:[#allocation87_spill] sm:$0xff]  ;;  %v8422_v31 = vld [vmem:[%s15733_s5 + $0x718] sm:$0xff]  ;;  %v11920_v54 = vpop.f32.mrf.mxu1 }
 0x1cb   : > { %v11894_v1 = vadd.f32 %v9267_v22, %v1251_v21  ;;  %v16607_v22 = vld [vmem:[#allocation88_spill] sm:$0xff] }
 0x1cc   : > { %v3072_v26 = vpack.c.bf16 %v3041_v30, %v3040_v58  ;;  %v1762_v9 = vpop.f32.mrf.mxu0  ;;  %v11896_v40 = vpop.permute.xlu1 %2897  ;;  %v8421_v58 = vld [vmem:[%s15733_s5 + $0x710] sm:$0xff]  ;;  %16608 = vst [vmem:[#allocation88_spill] sm:$0xff] %v11920_v54 }
 0x1cd   : > { %16604 = vst [vmem:[#allocation252_spill] sm:$0xff] %v11896_v40  ;;  %v11899_v19 = vadd.f32 %v1762_v9, %v1243_v37  ;;  %v3043_v56 = vmul.f32 %v11896_v40, %v16605_v59  ;;  %v11903_v5 = vpop.permute.xlu0 %2892  ;;  %3861 = vperm.xlu1 %9835, %v8420_v34   ;;  %3856 = vperm.xlu0 %9834, %v8419_v27   ;;  %v4113_v37 = vsel %vm944_vm0, %v8451_v50, 0  ;;  %v16617_v54 = vld [vmem:[#allocation92_spill] sm:$0xff] }
 0x1ce   : > { %16606 = vst [vmem:[#allocation87_spill] sm:$0xff] %v11903_v5  ;;  %v3042_v30 = vmul.f32 %v11903_v5, %v16607_v22  ;;  %v9268_v4 = vpop.f32.mrf.mxu0  ;;  %9355 = vmatprep.mubr.msk.bf16.mxu1 %vm895_vm1, %v3072_v26 }
 0x1cf   : > { %v11918_v21 = vadd.f32 %v9268_v4, %v1254_v12  ;;  %v8469_v12 = vld [vmem:[%s15733_s5 + $0x808] sm:$0xff] }
 0x1d0   : > { %v3073_v34 = vpack.c.bf16 %v3043_v56, %v3042_v30  ;;  %v11922_v27 = vpop.permute.xlu1 %3374  ;;  %v8468_v56 = vld [vmem:[%s15733_s5 + $0x800] sm:$0xff] }
 0x1d1   : > { %16609 = vst [vmem:[#allocation253_spill] sm:$0xff] %v11922_v27  ;;  %v3528_v26 = vmul.f32 %v11922_v27, %v10576_v62  ;;  %v11927_v9 = vpop.permute.xlu0 %3369  ;;  %3871 = vperm.xlu1 %9835, %v8422_v31   ;;  %3866 = vperm.xlu0 %9834, %v8421_v58  }
 0x1d2   : > { %16610 = vst [vmem:[#allocation254_spill] sm:$0xff] %v11927_v9  ;;  %v3527_v5 = vmul.f32 %v11927_v9, %v10582_v33  ;;  %v9237_v40 = vpop.f32.mrf.mxu1  ;;  %9356 = vmatmul.mubr.msk.bf16.vlgmr.msra.gmra.mxu1 %vm895_vm1, %v3073_v34  ;;  %v8500_v33 = vld [vmem:[%s15729_s1 + $0x10] sm:$0x3]  ;;  %v11957_v34 = vpop.f32.mrf.mxu0 }
 0x1d3   : > { %9422 = vmatpush3.bf16.msra.mxu1 %v4113_v37  ;;  %9824 = vmatprep.subr.msk.bf16.mxu0 %vm944_vm0, %v8500_v33  ;;  %16613 = vst [vmem:[#allocation257_spill] sm:$0xff] %v11957_v34 }
 0x1d4   : > { %v3559_v62 = vpack.c.bf16 %v3528_v26, %v3527_v5  ;;  %v11938_v50 = vpop.permute.xlu1 %3384  ;;  %v1258_v31 = vpop.f32.mrf.mxu1  ;;  %v8471_v5 = vld [vmem:[%s15733_s5 + $0x818] sm:$0xff] }
 0x1d5   : > { %16611 = vst [vmem:[#allocation255_spill] sm:$0xff] %v11938_v50  ;;  %v3530_v30 = vmul.f32 %v11938_v50, %v10605_v41  ;;  %v11942_v4 = vpop.permute.xlu0 %3379  ;;  %4348 = vperm.xlu1 %9835, %v8469_v12   ;;  %4343 = vperm.xlu0 %9834, %v8468_v56   ;;  %v8470_v41 = vld [vmem:[%s15733_s5 + $0x810] sm:$0xff]  ;;  %v4600_v12 = vsel %vm944_vm0, %v8500_v33, 0  ;;  %v16615_v56 = vld [vmem:[#allocation91_spill] sm:$0xff] }
 0x1d6   : > { %16612 = vst [vmem:[#allocation256_spill] sm:$0xff] %v11942_v4  ;;  %v3529_v58 = vmul.f32 %v11942_v4, %v10609_v15  ;;  %9389 = vmatprep.mubr.msk.bf16.mxu0 %vm895_vm1, %v3559_v62  ;;  %v1267_v15 = vadd.f32 %v9237_v40, %v11527_v8  ;;  %v9238_v9 = vpop.f32.mrf.mxu1  ;;  %v8423_v8 = vld [vmem:[%s15733_s5 + $0x720] sm:$0xff]  ;;  %v1259_v40 = vadd.f32 %v1258_v31, %v11546_v45 }
 0x1d8   : > { %v3560_v37 = vpack.c.bf16 %v3530_v30, %v3529_v58  ;;  %v11959_v26 = vpop.permute.xlu1 %2907  ;;  %v8424_v30 = vld [vmem:[%s15733_s5 + $0x728] sm:$0xff]  ;;  %v11999_v31 = vpop.f32.mrf.mxu1 }
 0x1d9   : > { %16614 = vst [vmem:[#allocation258_spill] sm:$0xff] %v11959_v26  ;;  %v3045_v62 = vmul.f32 %v11959_v26, %v16615_v56  ;;  %v11965_v27 = vpop.permute.xlu0 %2902  ;;  %4358 = vperm.xlu1 %9835, %v8471_v5   ;;  %4353 = vperm.xlu0 %9834, %v8470_v41   ;;  %v1270_v26 = vadd.f32 %v9238_v9, %v11567_v11  ;;  %v16621_v56 = vld [vmem:[#allocation100_spill] sm:$0xff] }
 0x1da   : > { %16616 = vst [vmem:[#allocation259_spill] sm:$0xff] %v11965_v27  ;;  %v3044_v50 = vmul.f32 %v11965_v27, %v16617_v54  ;;  %v9271_v4 = vpop.f32.mrf.mxu0  ;;  %9390 = vmatmul.mubr.msk.bf16.vlgmr.msra.gmra.mxu0 %vm895_vm1, %v3560_v37  ;;  %v16619_v27 = vld [vmem:[#allocation99_spill] sm:$0xff]  ;;  %v8425_v11 = vld [vmem:[%s15733_s5 + $0x730] sm:$0xff]  ;;  %16622 = vst [vmem:[#allocation100_spill] sm:$0xff] %v11999_v31 }
 0x1db   : > { %v11977_v33 = vadd.f32 %v9271_v4, %v1267_v15  ;;  %9456 = vmatpush3.bf16.msra.mxu0 %v4600_v12 }
 0x1dc   : > { %v3074_v58 = vpack.c.bf16 %v3045_v62, %v3044_v50  ;;  %v1778_v5 = vpop.f32.mrf.mxu0  ;;  %v11979_v41 = vpop.permute.xlu1 %2917  ;;  %v8426_v50 = vld [vmem:[%s15733_s5 + $0x738] sm:$0xff] }
 0x1dd   : > { %16618 = vst [vmem:[#allocation260_spill] sm:$0xff] %v11979_v41  ;;  %v11982_v37 = vadd.f32 %v1778_v5, %v1259_v40  ;;  %v3047_v34 = vmul.f32 %v11979_v41, %v16619_v27  ;;  %v11986_v54 = vpop.permute.xlu0 %2912  ;;  %3881 = vperm.xlu1 %9835, %v8424_v30   ;;  %3876 = vperm.xlu0 %9834, %v8423_v8  }
 0x1de   : > { %16620 = vst [vmem:[#allocation99_spill] sm:$0xff] %v11986_v54  ;;  %v3046_v45 = vmul.f32 %v11986_v54, %v16621_v56  ;;  %v9272_v4 = vpop.f32.mrf.mxu0  ;;  %9359 = vmatprep.mubr.msk.bf16.mxu1 %vm895_vm1, %v3074_v58 }
 0x1df   : > { %v11997_v9 = vadd.f32 %v9272_v4, %v1270_v26  ;;  %v8473_v26 = vld [vmem:[%s15733_s5 + $0x828] sm:$0xff] }
 0x1e0   : > { %v3075_v12 = vpack.c.bf16 %v3047_v34, %v3046_v45  ;;  %v12001_v15 = vpop.permute.xlu1 %3394  ;;  %v8472_v34 = vld [vmem:[%s15733_s5 + $0x820] sm:$0xff] }
 0x1e1   : > { %16623 = vst [vmem:[#allocation261_spill] sm:$0xff] %v12001_v15  ;;  %v3532_v62 = vmul.f32 %v12001_v15, %v10680_v29  ;;  %v12005_v30 = vpop.permute.xlu0 %3389  ;;  %3891 = vperm.xlu1 %9835, %v8426_v50   ;;  %3886 = vperm.xlu0 %9834, %v8425_v11   ;;  %v8475_v50 = vld [vmem:[%s15733_s5 + $0x838] sm:$0xff]  ;;  %v8474_v11 = vld [vmem:[%s15733_s5 + $0x830] sm:$0xff] }
 0x1e2   : > { %16624 = vst [vmem:[#allocation262_spill] sm:$0xff] %v12005_v30  ;;  %v3531_v8 = vmul.f32 %v12005_v30, %v10684_v24  ;;  %v9241_v40 = vpop.f32.mrf.mxu1  ;;  %9360 = vmatmul.mubr.msk.bf16.gmra.mxu1 %vm895_vm1, %v3075_v12  ;;  %v12031_v12 = vpop.f32.mrf.mxu0 }
 0x1e3   : > { %16627 = vst [vmem:[#allocation265_spill] sm:$0xff] %v12031_v12  ;;  %v16635_v12 = vld [vmem:[#allocation112_spill] sm:$0xff] }
 0x1e4   : > { %v3561_v58 = vpack.c.bf16 %v3532_v62, %v3531_v8  ;;  %v12016_v29 = vpop.permute.xlu1 %3404  ;;  %v1274_v24 = vpop.f32.mrf.mxu1  ;;  %v1283_v8 = vadd.f32 %v9241_v40, %v11601_v55  ;;  %v8427_v55 = vld [vmem:[%s15733_s5 + $0x740] sm:$0xff] }
 0x1e5   : > { %16625 = vst [vmem:[#allocation263_spill] sm:$0xff] %v12016_v29  ;;  %v3534_v5 = vmul.f32 %v12016_v29, %v10705_v16  ;;  %v12020_v45 = vpop.permute.xlu0 %3399  ;;  %4368 = vperm.xlu1 %9835, %v8473_v26   ;;  %4363 = vperm.xlu0 %9834, %v8472_v34   ;;  %v16629_v26 = vld [vmem:[#allocation103_spill] sm:$0xff]  ;;  %v1275_v40 = vadd.f32 %v1274_v24, %v11620_v10 }
 0x1e6   : > { %16626 = vst [vmem:[#allocation264_spill] sm:$0xff] %v12020_v45  ;;  %v3533_v4 = vmul.f32 %v12020_v45, %v10709_v61  ;;  %9393 = vmatprep.mubr.msk.bf16.mxu0 %vm895_vm1, %v3561_v58  ;;  %v9242_v58 = vpop.f32.mrf.mxu1  ;;  %v16631_v45 = vld [vmem:[#allocation104_spill] sm:$0xff] }
 0x1e7   : > { %v1286_v54 = vadd.f32 %v9242_v58, %v11639_v7  ;;  %v8429_v7 = vld [vmem:[%s15733_s5 + $0x750] sm:$0xff] }
 0x1e8   : > { %v3562_v16 = vpack.c.bf16 %v3534_v5, %v3533_v4  ;;  %v12033_v62 = vpop.permute.xlu1 %2927  ;;  %v8428_v5 = vld [vmem:[%s15733_s5 + $0x748] sm:$0xff] }
 0x1e9   : > { %16628 = vst [vmem:[#allocation266_spill] sm:$0xff] %v12033_v62  ;;  %v3049_v61 = vmul.f32 %v12033_v62, %v16629_v26  ;;  %v12038_v34 = vpop.permute.xlu0 %2922  ;;  %4378 = vperm.xlu1 %9835, %v8475_v50   ;;  %4373 = vperm.xlu0 %9834, %v8474_v11  }
 0x1ea   : > { %16630 = vst [vmem:[#allocation103_spill] sm:$0xff] %v12038_v34  ;;  %v3048_v29 = vmul.f32 %v12038_v34, %v16631_v45  ;;  %v9275_v15 = vpop.f32.mrf.mxu0  ;;  %9394 = vmatmul.mubr.msk.bf16.gmra.mxu0 %vm895_vm1, %v3562_v16  ;;  %v16633_v16 = vld [vmem:[#allocation111_spill] sm:$0xff] }
 0x1eb   : > { %v12050_v4 = vadd.f32 %v9275_v15, %v1283_v8  ;;  %v12072_v8 = vpop.f32.mrf.mxu1 }
 0x1ec   : > { %v3076_v50 = vpack.c.bf16 %v3049_v61, %v3048_v29  ;;  %v1794_v11 = vpop.f32.mrf.mxu0  ;;  %v12052_v30 = vpop.permute.xlu1 %2937  ;;  %v8430_v29 = vld [vmem:[%s15733_s5 + $0x758] sm:$0xff]  ;;  %16636 = vst [vmem:[#allocation112_spill] sm:$0xff] %v12072_v8 }
 0x1ed   : > { %16632 = vst [vmem:[#allocation104_spill] sm:$0xff] %v12052_v30  ;;  %v12055_v62 = vadd.f32 %v1794_v11, %v1275_v40  ;;  %v3051_v34 = vmul.f32 %v12052_v30, %v16633_v16  ;;  %v12059_v41 = vpop.permute.xlu0 %2932  ;;  %3901 = vperm.xlu1 %9835, %v8428_v5   ;;  %3896 = vperm.xlu0 %9834, %v8427_v55   ;;  %v16649_v8 = vld [vmem:[#allocation125_spill] sm:$0xff] }
 0x1ee   : > { %16634 = vst [vmem:[#allocation111_spill] sm:$0xff] %v12059_v41  ;;  %v3050_v10 = vmul.f32 %v12059_v41, %v16635_v12  ;;  %v9276_v15 = vpop.f32.mrf.mxu0  ;;  %9363 = vmatprep.mubr.msk.bf16.mxu1 %vm895_vm1, %v3076_v50 }
 0x1ef   : > { %v12070_v24 = vadd.f32 %v9276_v15, %v1286_v54  ;;  %v8477_v54 = vld [vmem:[%s15733_s5 + $0x848] sm:$0xff] }
 0x1f0   : > { %v3077_v61 = vpack.c.bf16 %v3051_v34, %v3050_v10  ;;  %v12074_v58 = vpop.permute.xlu1 %3414  ;;  %v8476_v34 = vld [vmem:[%s15733_s5 + $0x840] sm:$0xff] }
 0x1f1   : > { %16637 = vst [vmem:[#allocation267_spill] sm:$0xff] %v12074_v58  ;;  %v3536_v5 = vmul.f32 %v12074_v58, %v10780_v23  ;;  %v12078_v55 = vpop.permute.xlu0 %3409  ;;  %3911 = vperm.xlu1 %9835, %v8430_v29   ;;  %3906 = vperm.xlu0 %9834, %v8429_v7   ;;  %v8479_v7 = vld [vmem:[%s15733_s5 + $0x858] sm:$0xff] }
 0x1f2   : > { %16638 = vst [vmem:[#allocation268_spill] sm:$0xff] %v12078_v55  ;;  %v3535_v40 = vmul.f32 %v12078_v55, %v10784_v47  ;;  %v9245_v50 = vpop.f32.mrf.mxu1  ;;  %9364 = vmatmul.mubr.msk.bf16.gmra.mxu1 %vm895_vm1, %v3077_v61  ;;  %v8478_v61 = vld [vmem:[%s15733_s5 + $0x850] sm:$0xff] }
 0x1f4   : > { %v3563_v11 = vpack.c.bf16 %v3536_v5, %v3535_v40  ;;  %v12089_v23 = vpop.permute.xlu1 %3424  ;;  %v1290_v47 = vpop.f32.mrf.mxu1 }
 0x1f5   : > { %16639 = vst [vmem:[#allocation269_spill] sm:$0xff] %v12089_v23  ;;  %v3538_v10 = vmul.f32 %v12089_v23, %v10805_v52  ;;  %v12093_v15 = vpop.permute.xlu0 %3419  ;;  %4388 = vperm.xlu1 %9835, %v8477_v54   ;;  %4383 = vperm.xlu0 %9834, %v8476_v34   ;;  %v12104_v5 = vpop.f32.mrf.mxu0  ;;  %v1299_v54 = vadd.f32 %v9245_v50, %v11493_v43  ;;  %v16643_v34 = vld [vmem:[#allocation115_spill] sm:$0xff]  ;;  %v16645_v23 = vld [vmem:[#allocation116_spill] sm:$0xff]  ;;  %v8431_v43 = vld [vmem:[%s15733_s5 + $0x760] sm:$0xff] }
 0x1f6   : > { %16640 = vst [vmem:[#allocation270_spill] sm:$0xff] %v12093_v15  ;;  %v3537_v29 = vmul.f32 %v12093_v15, %v10809_v25  ;;  %9397 = vmatprep.mubr.msk.bf16.mxu0 %vm895_vm1, %v3563_v11  ;;  %16641 = vst [vmem:[#allocation271_spill] sm:$0xff] %v12104_v5  ;;  %v9246_v11 = vpop.f32.mrf.mxu1  ;;  %v1291_v50 = vadd.f32 %v1290_v47, %v11512_v35 }
 0x1f8   : > { %v3564_v52 = vpack.c.bf16 %v3538_v10, %v3537_v29  ;;  %v12106_v40 = vpop.permute.xlu1 %2947  ;;  %v8432_v10 = vld [vmem:[%s15733_s5 + $0x768] sm:$0xff] }
 0x1f9   : > { %16642 = vst [vmem:[#allocation272_spill] sm:$0xff] %v12106_v40  ;;  %v3053_v25 = vmul.f32 %v12106_v40, %v16643_v34  ;;  %v12111_v15 = vpop.permute.xlu0 %2942  ;;  %4398 = vperm.xlu1 %9835, %v8479_v7   ;;  %4393 = vperm.xlu0 %9834, %v8478_v61   ;;  %v1302_v40 = vadd.f32 %v9246_v11, %v11533_v46  ;;  %v8433_v46 = vld [vmem:[%s15733_s5 + $0x770] sm:$0xff] }
 0x1fa   : > { %16644 = vst [vmem:[#allocation115_spill] sm:$0xff] %v12111_v15  ;;  %v3052_v58 = vmul.f32 %v12111_v15, %v16645_v23  ;;  %v9279_v55 = vpop.f32.mrf.mxu0  ;;  %9398 = vmatmul.mubr.msk.bf16.gmra.mxu0 %vm895_vm1, %v3564_v52  ;;  %v16647_v52 = vld [vmem:[#allocation124_spill] sm:$0xff] }
 0x1fb   : > { %v12123_v29 = vadd.f32 %v9279_v55, %v1299_v54  ;;  %v12145_v54 = vpop.f32.mrf.mxu1 }
 0x1fc   : > { %v3078_v7 = vpack.c.bf16 %v3053_v25, %v3052_v58  ;;  %v1810_v61 = vpop.f32.mrf.mxu0  ;;  %v12125_v41 = vpop.permute.xlu1 %2957  ;;  %v8434_v58 = vld [vmem:[%s15733_s5 + $0x778] sm:$0xff]  ;;  %16650 = vst [vmem:[#allocation273_spill] sm:$0xff] %v12145_v54 }
 0x1fd   : > { %16646 = vst [vmem:[#allocation116_spill] sm:$0xff] %v12125_v41  ;;  %v12128_v15 = vadd.f32 %v1810_v61, %v1291_v50  ;;  %v3055_v30 = vmul.f32 %v12125_v41, %v16647_v52  ;;  %v12132_v5 = vpop.permute.xlu0 %2952  ;;  %3921 = vperm.xlu1 %9835, %v8432_v10   ;;  %3916 = vperm.xlu0 %9834, %v8431_v43  }
 0x1fe   : > { %16648 = vst [vmem:[#allocation124_spill] sm:$0xff] %v12132_v5  ;;  %v3054_v35 = vmul.f32 %v12132_v5, %v16649_v8  ;;  %v9280_v55 = vpop.f32.mrf.mxu0  ;;  %9367 = vmatprep.mubr.msk.bf16.mxu1 %vm895_vm1, %v3078_v7  ;;  %v16667_v8 = vld [vmem:[#allocation139_spill] sm:$0xff] }
 0x1ff   : > { %v12143_v47 = vadd.f32 %v9280_v55, %v1302_v40  ;;  %v8481_v40 = vld [vmem:[%s15733_s5 + $0x868] sm:$0xff] }
 0x200   : > { %v3079_v25 = vpack.c.bf16 %v3055_v30, %v3054_v35  ;;  %v12147_v11 = vpop.permute.xlu1 %3434  ;;  %v8480_v30 = vld [vmem:[%s15733_s5 + $0x860] sm:$0xff] }
 0x201   : > { %16651 = vst [vmem:[#allocation274_spill] sm:$0xff] %v12147_v11  ;;  %v3540_v10 = vmul.f32 %v12147_v11, %v10880_v28  ;;  %v12151_v43 = vpop.permute.xlu0 %3429  ;;  %3931 = vperm.xlu1 %9835, %v8434_v58   ;;  %3926 = vperm.xlu0 %9834, %v8433_v46   ;;  %v16655_v58 = vld [vmem:[#allocation121_spill] sm:$0xff]  ;;  %v16659_v11 = vld [vmem:[#allocation128_spill] sm:$0xff] }
 0x202   : > { %16652 = vst [vmem:[#allocation275_spill] sm:$0xff] %v12151_v43  ;;  %v3539_v50 = vmul.f32 %v12151_v43, %v10884_v14  ;;  %v9249_v7 = vpop.f32.mrf.mxu1  ;;  %9368 = vmatmul.mubr.msk.bf16.gmra.mxu1 %vm895_vm1, %v3079_v25  ;;  %v8483_v25 = vld [vmem:[%s15733_s5 + $0x878] sm:$0xff] }
 0x203   : > { %v16661_v43 = vld [vmem:[#allocation129_spill] sm:$0xff] }
 0x204   : > { %v3565_v61 = vpack.c.bf16 %v3540_v10, %v3539_v50  ;;  %v12162_v28 = vpop.permute.xlu1 %3444  ;;  %v1306_v14 = vpop.f32.mrf.mxu1  ;;  %v8482_v10 = vld [vmem:[%s15733_s5 + $0x870] sm:$0xff] }
 0x205   : > { %16653 = vst [vmem:[#allocation276_spill] sm:$0xff] %v12162_v28  ;;  %v3542_v35 = vmul.f32 %v12162_v28, %v10905_v13  ;;  %v12166_v55 = vpop.permute.xlu0 %3439  ;;  %4408 = vperm.xlu1 %9835, %v8481_v40   ;;  %4403 = vperm.xlu0 %9834, %v8480_v30   ;;  %v12177_v50 = vpop.f32.mrf.mxu0  ;;  %v16658_v40 = vld [vmem:[#allocation206_spill] sm:$0xff] }
 0x206   : > { %16654 = vst [vmem:[#allocation277_spill] sm:$0xff] %v12166_v55  ;;  %v3541_v46 = vmul.f32 %v12166_v55, %v16655_v58  ;;  %9401 = vmatprep.mubr.msk.bf16.mxu0 %vm895_vm1, %v3565_v61  ;;  %16656 = vst [vmem:[#allocation121_spill] sm:$0xff] %v12177_v50  ;;  %v1315_v30 = vadd.f32 %v9249_v7, %v16658_v40  ;;  %v9250_v61 = vpop.f32.mrf.mxu1  ;;  %v8435_v7 = vld [vmem:[%s15733_s5 + $0x780] sm:$0xff] }
 0x208   : > { %v3566_v13 = vpack.c.bf16 %v3542_v35, %v3541_v46  ;;  %v12179_v28 = vpop.permute.xlu1 %2967  ;;  %v8436_v35 = vld [vmem:[%s15733_s5 + $0x788] sm:$0xff]  ;;  %v16662_v46 = vld [vmem:[#allocation209_spill] sm:$0xff] }
 0x209   : > { %16657 = vst [vmem:[#allocation278_spill] sm:$0xff] %v12179_v28  ;;  %v3057_v58 = vmul.f32 %v12179_v28, %v16659_v11  ;;  %v12184_v55 = vpop.permute.xlu0 %2962  ;;  %4418 = vperm.xlu1 %9835, %v8483_v25   ;;  %4413 = vperm.xlu0 %9834, %v8482_v10   ;;  %v1307_v40 = vadd.f32 %v1306_v14, %v16662_v46 }
 0x20a   : > { %16660 = vst [vmem:[#allocation206_spill] sm:$0xff] %v12184_v55  ;;  %v3056_v5 = vmul.f32 %v12184_v55, %v16661_v43  ;;  %v9283_v41 = vpop.f32.mrf.mxu0  ;;  %9402 = vmatmul.mubr.msk.bf16.gmra.mxu0 %vm895_vm1, %v3566_v13  ;;  %v16664_v55 = vld [vmem:[#allocation213_spill] sm:$0xff]  ;;  %v16665_v13 = vld [vmem:[#allocation138_spill] sm:$0xff] }
 0x20b   : > { %v12196_v28 = vadd.f32 %v9283_v41, %v1315_v30  ;;  %v1318_v54 = vadd.f32 %v9250_v61, %v16664_v55  ;;  %v8437_v55 = vld [vmem:[%s15733_s5 + $0x790] sm:$0xff] }
 0x20c   : > { %v3080_v25 = vpack.c.bf16 %v3057_v58, %v3056_v5  ;;  %v1826_v10 = vpop.f32.mrf.mxu0  ;;  %v12198_v50 = vpop.permute.xlu1 %2977  ;;  %v8438_v5 = vld [vmem:[%s15733_s5 + $0x798] sm:$0xff] }
 0x20d   : > { %16663 = vst [vmem:[#allocation209_spill] sm:$0xff] %v12198_v50  ;;  %v12201_v31 = vadd.f32 %v1826_v10, %v1307_v40  ;;  %v3059_v43 = vmul.f32 %v12198_v50, %v16665_v13  ;;  %v12205_v11 = vpop.permute.xlu0 %2972  ;;  %3941 = vperm.xlu1 %9835, %v8436_v35   ;;  %3936 = vperm.xlu0 %9834, %v8435_v7   ;;  %v12218_v58 = vpop.f32.mrf.mxu1  ;;  %v16670_v7 = vld [vmem:[#allocation132_spill] sm:$0xff] }
 0x20e   : > { %16666 = vst [vmem:[#allocation213_spill] sm:$0xff] %v12205_v11  ;;  %v3058_v14 = vmul.f32 %v12205_v11, %v16667_v8  ;;  %v9284_v41 = vpop.f32.mrf.mxu0  ;;  %9371 = vmatprep.mubr.msk.bf16.mxu1 %vm895_vm1, %v3080_v25  ;;  %16668 = vst [vmem:[#allocation138_spill] sm:$0xff] %v12218_v58  ;;  %v16672_v25 = vld [vmem:[#allocation133_spill] sm:$0xff] }
 0x20f   : > { %v12216_v30 = vadd.f32 %v9284_v41, %v1318_v54  ;;  %v8485_v54 = vld [vmem:[%s15733_s5 + $0x888] sm:$0xff] }
 0x210   : > { %v3081_v61 = vpack.c.bf16 %v3059_v43, %v3058_v14  ;;  %v12220_v35 = vpop.permute.xlu1 %3454  ;;  %v8484_v43 = vld [vmem:[%s15733_s5 + $0x880] sm:$0xff] }
 0x211   : > { %16669 = vst [vmem:[#allocation139_spill] sm:$0xff] %v12220_v35  ;;  %v3544_v46 = vmul.f32 %v12220_v35, %v16670_v7  ;;  %v12224_v40 = vpop.permute.xlu0 %3449  ;;  %3951 = vperm.xlu1 %9835, %v8438_v5   ;;  %3946 = vperm.xlu0 %9834, %v8437_v55  }
 0x212   : > { %16671 = vst [vmem:[#allocation132_spill] sm:$0xff] %v12224_v40  ;;  %v3543_v10 = vmul.f32 %v12224_v40, %v16672_v25  ;;  %v9289_v11 = vpop.f32.mrf.mxu1  ;;  %9372 = vmatmul.mubr.msk.bf16.gmra.mxu1 %vm895_vm1, %v3081_v61 }
 0x213   : > { %v2330_v14 = vadd.f32 %v9289_v11, %v11676_v53  ;;  %v8487_v53 = vld [vmem:[%s15733_s5 + $0x898] sm:$0xff]  ;;  %v12253_v11 = vpop.f32.mrf.mxu0 }
 0x214   : > { %v3567_v41 = vpack.c.bf16 %v3544_v46, %v3543_v10  ;;  %v2201_v7 = vpop.f32.mrf.mxu1  ;;  %v12236_v5 = vpop.permute.xlu1 %3464  ;;  %16675 = vst [vmem:[#allocation280_spill] sm:$0xff] %v12253_v11 }
 0x215   : > { %16673 = vst [vmem:[#allocation133_spill] sm:$0xff] %v12236_v5  ;;  %v2328_v55 = vadd.f32 %v2201_v7, %v11680_v51  ;;  %v3546_v25 = vmul.f32 %v12236_v5, %v11005_v38  ;;  %v12241_v61 = vpop.permute.xlu0 %3459  ;;  %4428 = vperm.xlu1 %9835, %v8485_v54   ;;  %4423 = vperm.xlu0 %9834, %v8484_v43   ;;  %v8486_v51 = vld [vmem:[%s15733_s5 + $0x890] sm:$0xff]  ;;  %v16677_v54 = vld [vmem:[#allocation142_spill] sm:$0xff] }
 0x216   : > { %16674 = vst [vmem:[#allocation279_spill] sm:$0xff] %v12241_v61  ;;  %v3545_v35 = vmul.f32 %v12241_v61, %v11009_v3  ;;  %v9290_v40 = vpop.f32.mrf.mxu1  ;;  %9405 = vmatprep.mubr.msk.bf16.mxu0 %vm895_vm1, %v3567_v41  ;;  %v16679_v41 = vld [vmem:[#allocation143_spill] sm:$0xff] }
 0x217   : > { %v2331_v38 = vadd.f32 %v9290_v40, %v11695_v44  ;;  %v8440_v44 = vld [vmem:[%s15733_s5 + $0x7a8] sm:$0xff] }
 0x218   : > { %v3568_v46 = vpack.c.bf16 %v3546_v25, %v3545_v35  ;;  %v12255_v10 = vpop.permute.xlu1 %2987  ;;  %v8439_v35 = vld [vmem:[%s15733_s5 + $0x7a0] sm:$0xff]  ;;  %v16683_v61 = vld [vmem:[#allocation151_spill] sm:$0xff] }
 0x219   : > { %16676 = vst [vmem:[#allocation281_spill] sm:$0xff] %v12255_v10  ;;  %v3061_v3 = vmul.f32 %v12255_v10, %v16677_v54  ;;  %v12259_v43 = vpop.permute.xlu0 %2982  ;;  %4438 = vperm.xlu1 %9835, %v8487_v53   ;;  %4433 = vperm.xlu0 %9834, %v8486_v51  }
 0x21a   : > { %16678 = vst [vmem:[#allocation142_spill] sm:$0xff] %v12259_v43  ;;  %v3060_v7 = vmul.f32 %v12259_v43, %v16679_v41  ;;  %v9323_v50 = vpop.f32.mrf.mxu0  ;;  %9406 = vmatmul.mubr.msk.bf16.gmra.mxu0 %vm895_vm1, %v3568_v46  ;;  %v16681_v43 = vld [vmem:[#allocation150_spill] sm:$0xff] }
 0x21b   : > { %v12270_v40 = vadd.f32 %v9323_v50, %v2330_v14  ;;  %v8442_v50 = vld [vmem:[%s15733_s5 + $0x7b8] sm:$0xff]  ;;  %v8441_v14 = vld [vmem:[%s15733_s5 + $0x7b0] sm:$0xff] }
 0x21c   : > { %v3082_v25 = vpack.c.bf16 %v3061_v3, %v3060_v7  ;;  %v2688_v10 = vpop.f32.mrf.mxu0  ;;  %v12272_v53 = vpop.permute.xlu1 %2997 }
 0x21d   : > { %16680 = vst [vmem:[#allocation143_spill] sm:$0xff] %v12272_v53  ;;  %v12274_v51 = vadd.f32 %v2688_v10, %v2328_v55  ;;  %v3063_v5 = vmul.f32 %v12272_v53, %v16681_v43  ;;  %v12278_v46 = vpop.permute.xlu0 %2992  ;;  %3961 = vperm.xlu1 %9835, %v8440_v44   ;;  %3956 = vperm.xlu0 %9834, %v8439_v35   ;;  %v12291_v10 = vpop.f32.mrf.mxu1 }
 0x21e   : > { %16682 = vst [vmem:[#allocation150_spill] sm:$0xff] %v12278_v46  ;;  %v3062_v11 = vmul.f32 %v12278_v46, %v16683_v61  ;;  %v9324_v58 = vpop.f32.mrf.mxu0  ;;  %9375 = vmatprep.mubr.msk.bf16.mxu1 %vm895_vm1, %v3082_v25  ;;  %16684 = vst [vmem:[#allocation151_spill] sm:$0xff] %v12291_v10 }
 0x21f   : > { %v12289_v55 = vadd.f32 %v9324_v58, %v2331_v38  ;;  %v8489_v58 = vld [vmem:[%s15733_s5 + $0x8a8] sm:$0xff] }
 0x220   : > { %v3083_v3 = vpack.c.bf16 %v3063_v5, %v3062_v11  ;;  %v12293_v7 = vpop.permute.xlu1 %3474  ;;  %v8488_v5 = vld [vmem:[%s15733_s5 + $0x8a0] sm:$0xff] }
 0x221   : > { %16685 = vst [vmem:[#allocation282_spill] sm:$0xff] %v12293_v7  ;;  %v3548_v44 = vmul.f32 %v12293_v7, %v11080_v60  ;;  %v12297_v35 = vpop.permute.xlu0 %3469  ;;  %3971 = vperm.xlu1 %9835, %v8442_v50   ;;  %3966 = vperm.xlu0 %9834, %v8441_v14  }
 0x222   : > { %16686 = vst [vmem:[#allocation283_spill] sm:$0xff] %v12297_v35  ;;  %v3547_v25 = vmul.f32 %v12297_v35, %v11084_v32  ;;  %v9293_v46 = vpop.f32.mrf.mxu1  ;;  %9376 = vmatmul.mubr.msk.bf16.gmra.mxu1 %vm895_vm1, %v3083_v3  ;;  %v16695_v35 = vld [vmem:[#allocation163_spill] sm:$0xff] }
 0x223   : > { %v2334_v60 = vadd.f32 %v9293_v46, %v11748_v0  ;;  %v8491_v0 = vld [vmem:[%s15733_s5 + $0x8b8] sm:$0xff]  ;;  %v12326_v46 = vpop.f32.mrf.mxu0 }
 0x224   : > { %v3569_v38 = vpack.c.bf16 %v3548_v44, %v3547_v25  ;;  %v2217_v11 = vpop.f32.mrf.mxu1  ;;  %v12309_v50 = vpop.permute.xlu1 %3484  ;;  %16689 = vst [vmem:[#allocation286_spill] sm:$0xff] %v12326_v46 }
 0x225   : > { %16687 = vst [vmem:[#allocation284_spill] sm:$0xff] %v12309_v50  ;;  %v2332_v14 = vadd.f32 %v2217_v11, %v11753_v20  ;;  %v3550_v32 = vmul.f32 %v12309_v50, %v11105_v6  ;;  %v12314_v3 = vpop.permute.xlu0 %3479  ;;  %4448 = vperm.xlu1 %9835, %v8489_v58   ;;  %4443 = vperm.xlu0 %9834, %v8488_v5   ;;  %v8490_v20 = vld [vmem:[%s15733_s5 + $0x8b0] sm:$0xff]  ;;  %v16691_v58 = vld [vmem:[#allocation154_spill] sm:$0xff] }
 0x226   : > { %16688 = vst [vmem:[#allocation285_spill] sm:$0xff] %v12314_v3  ;;  %v3549_v53 = vmul.f32 %v12314_v3, %v11109_v18  ;;  %v9294_v7 = vpop.f32.mrf.mxu1  ;;  %9409 = vmatprep.mubr.msk.bf16.mxu0 %vm895_vm1, %v3569_v38  ;;  %v16693_v38 = vld [vmem:[#allocation155_spill] sm:$0xff] }
 0x227   : > { %v2335_v6 = vadd.f32 %v9294_v7, %v11768_v39  ;;  %v8444_v39 = vld [vmem:[%s15733_s5 + $0x7c8] sm:$0xff] }
 0x228   : > { %v3570_v44 = vpack.c.bf16 %v3550_v32, %v3549_v53  ;;  %v12328_v25 = vpop.permute.xlu1 %3007  ;;  %v8443_v53 = vld [vmem:[%s15733_s5 + $0x7c0] sm:$0xff] }
 0x229   : > { %16690 = vst [vmem:[#allocation287_spill] sm:$0xff] %v12328_v25  ;;  %v3065_v18 = vmul.f32 %v12328_v25, %v16691_v58  ;;  %v12332_v5 = vpop.permute.xlu0 %3002  ;;  %4458 = vperm.xlu1 %9835, %v8491_v0   ;;  %4453 = vperm.xlu0 %9834, %v8490_v20  }
 0x22a   : > { %16692 = vst [vmem:[#allocation154_spill] sm:$0xff] %v12332_v5  ;;  %v3064_v11 = vmul.f32 %v12332_v5, %v16693_v38  ;;  %v9327_v50 = vpop.f32.mrf.mxu0  ;;  %9410 = vmatmul.mubr.msk.bf16.gmra.mxu0 %vm895_vm1, %v3570_v44  ;;  %v16697_v5 = vld [vmem:[#allocation164_spill] sm:$0xff] }
 0x22b   : > { %v12343_v7 = vadd.f32 %v9327_v50, %v2334_v60  ;;  %v8446_v60 = vld [vmem:[%s15733_s5 + $0x7d8] sm:$0xff]  ;;  %v8445_v50 = vld [vmem:[%s15733_s5 + $0x7d0] sm:$0xff] }
 0x22c   : > { %v3084_v32 = vpack.c.bf16 %v3065_v18, %v3064_v11  ;;  %v2704_v3 = vpop.f32.mrf.mxu0  ;;  %v12345_v0 = vpop.permute.xlu1 %3017 }
 0x22d   : > { %16694 = vst [vmem:[#allocation155_spill] sm:$0xff] %v12345_v0  ;;  %v12347_v20 = vadd.f32 %v2704_v3, %v2332_v14  ;;  %v3067_v25 = vmul.f32 %v12345_v0, %v16695_v35  ;;  %v12351_v44 = vpop.permute.xlu0 %3012  ;;  %3981 = vperm.xlu1 %9835, %v8444_v39   ;;  %3976 = vperm.xlu0 %9834, %v8443_v53   ;;  %v12364_v3 = vpop.f32.mrf.mxu1 }
 0x22e   : > { %16696 = vst [vmem:[#allocation163_spill] sm:$0xff] %v12351_v44  ;;  %v3066_v46 = vmul.f32 %v12351_v44, %v16697_v5  ;;  %v9328_v10 = vpop.f32.mrf.mxu0  ;;  %9379 = vmatprep.mubr.msk.bf16.mxu1 %vm895_vm1, %v3084_v32  ;;  %16698 = vst [vmem:[#allocation164_spill] sm:$0xff] %v12364_v3 }
 0x22f   : > { %v12362_v14 = vadd.f32 %v9328_v10, %v2335_v6  ;;  %v8493_v10 = vld [vmem:[%s15733_s5 + $0x8c8] sm:$0xff]  ;;  %v8492_v6 = vld [vmem:[%s15733_s5 + $0x8c0] sm:$0xff] }
 0x230   : > { %v3085_v18 = vpack.c.bf16 %v3067_v25, %v3066_v46  ;;  %v12366_v11 = vpop.permute.xlu1 %3494 }
 0x231   : > { %16699 = vst [vmem:[#allocation288_spill] sm:$0xff] %v12366_v11  ;;  %v3552_v39 = vmul.f32 %v12366_v11, %v11180_v36  ;;  %v12370_v53 = vpop.permute.xlu0 %3489  ;;  %3991 = vperm.xlu1 %9835, %v8446_v60   ;;  %3986 = vperm.xlu0 %9834, %v8445_v50   ;;  %v16703_v11 = vld [vmem:[#allocation160_spill] sm:$0xff] }
 0x232   : > { %16700 = vst [vmem:[#allocation289_spill] sm:$0xff] %v12370_v53  ;;  %v3551_v32 = vmul.f32 %v12370_v53, %v11184_v63  ;;  %v9297_v0 = vpop.f32.mrf.mxu1  ;;  %9380 = vmatmul.mubr.msk.bf16.gmra.mxu1 %vm895_vm1, %v3085_v18 }
 0x233   : > { %v2338_v36 = vadd.f32 %v9297_v0, %v11821_v17  ;;  %v8495_v17 = vld [vmem:[%s15733_s5 + $0x8d8] sm:$0xff]  ;;  %v12399_v0 = vpop.f32.mrf.mxu0 }
 0x234   : > { %v3571_v46 = vpack.c.bf16 %v3552_v39, %v3551_v32  ;;  %v2233_v25 = vpop.f32.mrf.mxu1  ;;  %v12382_v60 = vpop.permute.xlu1 %3504  ;;  %16704 = vst [vmem:[#allocation160_spill] sm:$0xff] %v12399_v0  ;;  %v16712_v0 = vld [vmem:[#allocation76_spill] sm:$0xff] }
 0x235   : > { %16701 = vst [vmem:[#allocation290_spill] sm:$0xff] %v12382_v60  ;;  %v2336_v50 = vadd.f32 %v2233_v25, %v11826_v2  ;;  %v3554_v63 = vmul.f32 %v12382_v60, %v11206_v48  ;;  %v12387_v18 = vpop.permute.xlu0 %3499  ;;  %4468 = vperm.xlu1 %9835, %v8493_v10   ;;  %4463 = vperm.xlu0 %9834, %v8492_v6   ;;  %v8494_v2 = vld [vmem:[%s15733_s5 + $0x8d0] sm:$0xff]  ;;  %v16706_v10 = vld [vmem:[#allocation167_spill] sm:$0xff] }
 0x236   : > { %16702 = vst [vmem:[#allocation291_spill] sm:$0xff] %v12387_v18  ;;  %v3553_v53 = vmul.f32 %v12387_v18, %v16703_v11  ;;  %v9298_v44 = vpop.f32.mrf.mxu1  ;;  %9413 = vmatprep.mubr.msk.bf16.mxu0 %vm895_vm1, %v3571_v46  ;;  %v16708_v46 = vld [vmem:[#allocation168_spill] sm:$0xff] }
 0x237   : > { %v2339_v48 = vadd.f32 %v9298_v44, %v11841_v49  ;;  %v8448_v49 = vld [vmem:[%s15733_s5 + $0x7e8] sm:$0xff]  ;;  %v8447_v44 = vld [vmem:[%s15733_s5 + $0x7e0] sm:$0xff] }
 0x238   : > { %v3572_v39 = vpack.c.bf16 %v3554_v63, %v3553_v53  ;;  %v12401_v32 = vpop.permute.xlu1 %3027 }
 0x239   : > { %16705 = vst [vmem:[#allocation292_spill] sm:$0xff] %v12401_v32  ;;  %v3069_v11 = vmul.f32 %v12401_v32, %v16706_v10  ;;  %v12405_v6 = vpop.permute.xlu0 %3022  ;;  %4478 = vperm.xlu1 %9835, %v8495_v17   ;;  %4473 = vperm.xlu0 %9834, %v8494_v2   ;;  %v16710_v32 = vld [vmem:[#allocation75_spill] sm:$0xff] }
 0x23a   : > { %16707 = vst [vmem:[#allocation167_spill] sm:$0xff] %v12405_v6  ;;  %v3068_v25 = vmul.f32 %v12405_v6, %v16708_v46  ;;  %v9331_v60 = vpop.f32.mrf.mxu0  ;;  %9414 = vmatmul.mubr.msk.bf16.gmra.mxu0 %vm895_vm1, %v3572_v39 }
 0x23b   : > { %v12416_v53 = vadd.f32 %v9331_v60, %v2338_v36  ;;  %v8450_v36 = vld [vmem:[%s15733_s5 + $0x7f8] sm:$0xff]  ;;  %v8449_v60 = vld [vmem:[%s15733_s5 + $0x7f0] sm:$0xff] }
 0x23c   : > { %v3086_v63 = vpack.c.bf16 %v3069_v11, %v3068_v25  ;;  %v2720_v18 = vpop.f32.mrf.mxu0  ;;  %v12418_v17 = vpop.permute.xlu1 %3037 }
 0x23d   : > { %16709 = vst [vmem:[#allocation293_spill] sm:$0xff] %v12418_v17  ;;  %v12420_v2 = vadd.f32 %v2720_v18, %v2336_v50  ;;  %v3071_v6 = vmul.f32 %v12418_v17, %v16710_v32  ;;  %v12424_v39 = vpop.permute.xlu0 %3032  ;;  %4001 = vperm.xlu1 %9835, %v8448_v49   ;;  %3996 = vperm.xlu0 %9834, %v8447_v44   ;;  %v12437_v18 = vpop.f32.mrf.mxu1 }
 0x23e   : > { %16711 = vst [vmem:[#allocation75_spill] sm:$0xff] %v12424_v39  ;;  %v3070_v3 = vmul.f32 %v12424_v39, %v16712_v0  ;;  %v9332_v46 = vpop.f32.mrf.mxu0  ;;  %9383 = vmatprep.mubr.msk.bf16.mxu1 %vm895_vm1, %v3086_v63  ;;  %16713 = vst [vmem:[#allocation76_spill] sm:$0xff] %v12437_v18 }
 0x23f   : > { %v12435_v50 = vadd.f32 %v9332_v46, %v2339_v48  ;;  %v8497_v48 = vld [vmem:[%s15733_s5 + $0x8e8] sm:$0xff] }
 0x240   : > { %v3087_v11 = vpack.c.bf16 %v3071_v6, %v3070_v3  ;;  %v12439_v25 = vpop.permute.xlu1 %3514  ;;  %v8496_v3 = vld [vmem:[%s15733_s5 + $0x8e0] sm:$0xff] }
 0x241   : > { %16714 = vst [vmem:[#allocation294_spill] sm:$0xff] %v12439_v25  ;;  %v3556_v49 = vmul.f32 %v12439_v25, %v16588_v57  ;;  %v12443_v44 = vpop.permute.xlu0 %3509  ;;  %4011 = vperm.xlu1 %9835, %v8450_v36   ;;  %4006 = vperm.xlu0 %9834, %v8449_v60  }
 0x242   : > { %16715 = vst [vmem:[#allocation295_spill] sm:$0xff] %v12443_v44  ;;  %v3555_v63 = vmul.f32 %v12443_v44, %v16590_v42  ;;  %v9301_v17 = vpop.f32.mrf.mxu1  ;;  %9384 = vmatmul.mubr.msk.bf16.gmra.mxu1 %vm895_vm1, %v3087_v11  ;;  %v16717_v42 = vld [vmem:[#allocation71_spill] sm:$0xff]  ;;  %v16719_v44 = vld [vmem:[#allocation72_spill] sm:$0xff] }
 0x243   : > { %v2342_v57 = vadd.f32 %v9301_v17, %v11894_v1  ;;  %v8499_v1 = vld [vmem:[%s15733_s5 + $0x8f8] sm:$0xff] }
 0x244   : > { %v3573_v6 = vpack.c.bf16 %v3556_v49, %v3555_v63  ;;  %v2249_v46 = vpop.f32.mrf.mxu1  ;;  %v12455_v36 = vpop.permute.xlu1 %3524 }
 0x245   : > { %16716 = vst [vmem:[#allocation296_spill] sm:$0xff] %v12455_v36  ;;  %v2340_v60 = vadd.f32 %v2249_v46, %v11899_v19  ;;  %v3558_v25 = vmul.f32 %v12455_v36, %v16717_v42  ;;  %v12460_v11 = vpop.permute.xlu0 %3519  ;;  %4488 = vperm.xlu1 %9835, %v8497_v48   ;;  %4483 = vperm.xlu0 %9834, %v8496_v3   ;;  %v8498_v19 = vld [vmem:[%s15733_s5 + $0x8f0] sm:$0xff]  ;;  %v12472_v49 = vpop.f32.mrf.mxu0 }
 0x246   : > { %16718 = vst [vmem:[#allocation71_spill] sm:$0xff] %v12460_v11  ;;  %v3557_v39 = vmul.f32 %v12460_v11, %v16719_v44  ;;  %v9302_v18 = vpop.f32.mrf.mxu1  ;;  %9417 = vmatprep.mubr.msk.bf16.mxu0 %vm895_vm1, %v3573_v6  ;;  %16720 = vst [vmem:[#allocation72_spill] sm:$0xff] %v12472_v49  ;;  %v16722_v44 = vld [vmem:[#allocation10_spill] sm:$0xff]  ;;  %v16724_v6 = vld [vmem:[#allocation11_spill] sm:$0xff] }
 0x247   : > { %v2343_v17 = vadd.f32 %v9302_v18, %v11918_v21 }
 0x248   : > { %v3574_v63 = vpack.c.bf16 %v3558_v25, %v3557_v39  ;;  %v12474_v48 = vpop.permute.xlu1 %3861 }
 0x249   : > { %16721 = vst [vmem:[#allocation297_spill] sm:$0xff] %v12474_v48  ;;  %v4015_v3 = vmul.f32 %v16722_v44, %v12474_v48  ;;  %v12478_v46 = vpop.permute.xlu0 %3856  ;;  %4498 = vperm.xlu1 %9835, %v8499_v1   ;;  %4493 = vperm.xlu0 %9834, %v8498_v19   ;;  %v16725_v44 = vld [vmem:[#allocation14_spill] sm:$0xff]  ;;  %v16726_v1 = vld [vmem:[#allocation15_spill] sm:$0xff] }
 0x24a   : > { %16723 = vst [vmem:[#allocation10_spill] sm:$0xff] %v12478_v46  ;;  %v4014_v42 = vmul.f32 %v16724_v6, %v12478_v46  ;;  %v9335_v36 = vpop.f32.mrf.mxu0  ;;  %9418 = vmatmul.mubr.msk.bf16.gmra.mxu0 %vm895_vm1, %v3574_v63 }
 0x24b   : > { %v12483_v11 = vadd.f32 %v9335_v36, %v2342_v57  ;;  %v12498_v57 = vpop.f32.mrf.mxu1 }
 0x24c   : > { %v4046_v21 = vpack.c.bf16 %v4015_v3, %v4014_v42  ;;  %v2736_v18 = vpop.f32.mrf.mxu0  ;;  %v12485_v39 = vpop.permute.xlu1 %3871  ;;  %16727 = vst [vmem:[#allocation11_spill] sm:$0xff] %v12498_v57 }
 0x24d   : > { %v12487_v25 = vadd.f32 %v2736_v18, %v2340_v60  ;;  %v4017_v48 = vmul.f32 %v16725_v44, %v12485_v39  ;;  %v12491_v49 = vpop.permute.xlu0 %3866 }
 0x24e   : > { %v4016_v19 = vmul.f32 %v16726_v1, %v12491_v49  ;;  %v9336_v6 = vpop.f32.mrf.mxu0  ;;  %9423 = vmatprep.mubr.msk.bf16.mxu1 %vm895_vm1, %v4046_v21 }
 0x24f   : > { %v12496_v63 = vadd.f32 %v9336_v6, %v2343_v17 }
 0x250   : > { %v4047_v36 = vpack.c.bf16 %v4017_v48, %v4016_v19  ;;  %v12500_v3 = vpop.permute.xlu1 %4348  ;;  %v16731_v19 = vld [vmem:[#allocation91_spill] sm:$0xff] }
 0x251   : > { %16728 = vst [vmem:[#allocation14_spill] sm:$0xff] %v12500_v3  ;;  %v4502_v60 = vmul.f32 %v12500_v3, %v16605_v59  ;;  %v12504_v42 = vpop.permute.xlu0 %4343  ;;  %v16733_v3 = vld [vmem:[#allocation92_spill] sm:$0xff] }
 0x252   : > { %16729 = vst [vmem:[#allocation15_spill] sm:$0xff] %v12504_v42  ;;  %v4501_v18 = vmul.f32 %v12504_v42, %v16607_v22  ;;  %v9305_v44 = vpop.f32.mrf.mxu1  ;;  %9424 = vmatmul.mubr.msk.bf16.vlgmr.msra.gmra.mxu1 %vm895_vm1, %v4047_v36 }
 0x253   : > { %v2346_v21 = vadd.f32 %v9305_v44, %v11977_v33  ;;  %v12521_v33 = vpop.f32.mrf.mxu0 }
 0x254   : > { %v4533_v17 = vpack.c.bf16 %v4502_v60, %v4501_v18  ;;  %v2265_v1 = vpop.f32.mrf.mxu1  ;;  %v12510_v6 = vpop.permute.xlu1 %4358  ;;  %16734 = vst [vmem:[#allocation92_spill] sm:$0xff] %v12521_v33 }
 0x255   : > { %16730 = vst [vmem:[#allocation298_spill] sm:$0xff] %v12510_v6  ;;  %v2344_v48 = vadd.f32 %v2265_v1, %v11982_v37  ;;  %v4504_v46 = vmul.f32 %v12510_v6, %v16731_v19  ;;  %v12515_v59 = vpop.permute.xlu0 %4353  ;;  %v16736_v37 = vld [vmem:[#allocation18_spill] sm:$0xff]  ;;  %v16738_v19 = vld [vmem:[#allocation19_spill] sm:$0xff] }
 0x256   : > { %16732 = vst [vmem:[#allocation91_spill] sm:$0xff] %v12515_v59  ;;  %v4503_v57 = vmul.f32 %v12515_v59, %v16733_v3  ;;  %v9306_v22 = vpop.f32.mrf.mxu1  ;;  %9457 = vmatprep.mubr.msk.bf16.mxu0 %vm895_vm1, %v4533_v17 }
 0x257   : > { %v2347_v36 = vadd.f32 %v9306_v22, %v11997_v9 }
 0x258   : > { %v4534_v60 = vpack.c.bf16 %v4504_v46, %v4503_v57  ;;  %v12523_v18 = vpop.permute.xlu1 %3881  ;;  %v16740_v57 = vld [vmem:[#allocation22_spill] sm:$0xff] }
 0x259   : > { %16735 = vst [vmem:[#allocation299_spill] sm:$0xff] %v12523_v18  ;;  %v4019_v44 = vmul.f32 %v16736_v37, %v12523_v18  ;;  %v12527_v1 = vpop.permute.xlu0 %3876  ;;  %v16742_v18 = vld [vmem:[#allocation23_spill] sm:$0xff] }
 0x25a   : > { %16737 = vst [vmem:[#allocation18_spill] sm:$0xff] %v12527_v1  ;;  %v4018_v42 = vmul.f32 %v16738_v19, %v12527_v1  ;;  %v9339_v6 = vpop.f32.mrf.mxu0  ;;  %9458 = vmatmul.mubr.msk.bf16.vlgmr.msra.gmra.mxu0 %vm895_vm1, %v4534_v60 }
 0x25b   : > { %v12532_v3 = vadd.f32 %v9339_v6, %v2346_v21  ;;  %v12547_v21 = vpop.f32.mrf.mxu1 }
 0x25c   : > { %v4048_v17 = vpack.c.bf16 %v4019_v44, %v4018_v42  ;;  %v2752_v9 = vpop.f32.mrf.mxu0  ;;  %v12534_v22 = vpop.permute.xlu1 %3891 }
 0x25d   : > { %16739 = vst [vmem:[#allocation19_spill] sm:$0xff] %v12534_v22  ;;  %v12536_v46 = vadd.f32 %v2752_v9, %v2344_v48  ;;  %v4021_v33 = vmul.f32 %v16740_v57, %v12534_v22  ;;  %v12540_v37 = vpop.permute.xlu0 %3886  ;;  %v16810_v22 = vld [vmem:[#allocation168_spill] sm:$0xff] }
 0x25e   : > { %16741 = vst [vmem:[#allocation22_spill] sm:$0xff] %v12540_v37  ;;  %v4020_v59 = vmul.f32 %v16742_v18, %v12540_v37  ;;  %v9340_v19 = vpop.f32.mrf.mxu0  ;;  %9427 = vmatprep.mubr.msk.bf16.mxu1 %vm895_vm1, %v4048_v17  ;;  %v16754_v37 = vld [vmem:[#allocation31_spill] sm:$0xff] }
 0x25f   : > { %v12545_v60 = vadd.f32 %v9340_v19, %v2347_v36 }
 0x260   : > { %v4049_v42 = vpack.c.bf16 %v4021_v33, %v4020_v59  ;;  %v12549_v6 = vpop.permute.xlu1 %4368 }
 0x261   : > { %16743 = vst [vmem:[#allocation23_spill] sm:$0xff] %v12549_v6  ;;  %v4506_v48 = vmul.f32 %v12549_v6, %v16619_v27  ;;  %v12553_v44 = vpop.permute.xlu0 %4363 }
 0x262   : > { %16744 = vst [vmem:[#allocation300_spill] sm:$0xff] %v12553_v44  ;;  %v4505_v9 = vmul.f32 %v12553_v44, %v16621_v56  ;;  %v9309_v57 = vpop.f32.mrf.mxu1  ;;  %9428 = vmatmul.mubr.msk.bf16.gmra.mxu1 %vm895_vm1, %v4049_v42 }
 0x263   : > { %v2350_v18 = vadd.f32 %v9309_v57, %v12050_v4  ;;  %v12570_v4 = vpop.f32.mrf.mxu0 }
 0x264   : > { %v4535_v36 = vpack.c.bf16 %v4506_v48, %v4505_v9  ;;  %v2281_v17 = vpop.f32.mrf.mxu1  ;;  %v12559_v19 = vpop.permute.xlu1 %4378 }
 0x265   : > { %16745 = vst [vmem:[#allocation301_spill] sm:$0xff] %v12559_v19  ;;  %v2348_v59 = vadd.f32 %v2281_v17, %v12055_v62  ;;  %v4508_v33 = vmul.f32 %v12559_v19, %v16629_v26  ;;  %v12564_v27 = vpop.permute.xlu0 %4373  ;;  %v16748_v62 = vld [vmem:[#allocation26_spill] sm:$0xff]  ;;  %v16750_v26 = vld [vmem:[#allocation27_spill] sm:$0xff] }
 0x266   : > { %16746 = vst [vmem:[#allocation302_spill] sm:$0xff] %v12564_v27  ;;  %v4507_v6 = vmul.f32 %v12564_v27, %v16631_v45  ;;  %v9310_v56 = vpop.f32.mrf.mxu1  ;;  %9461 = vmatprep.mubr.msk.bf16.mxu0 %vm895_vm1, %v4535_v36 }
 0x267   : > { %v2351_v42 = vadd.f32 %v9310_v56, %v12070_v24 }
 0x268   : > { %v4536_v48 = vpack.c.bf16 %v4508_v33, %v4507_v6  ;;  %v12572_v9 = vpop.permute.xlu1 %3901  ;;  %v16752_v33 = vld [vmem:[#allocation30_spill] sm:$0xff] }
 0x269   : > { %16747 = vst [vmem:[#allocation303_spill] sm:$0xff] %v12572_v9  ;;  %v4023_v57 = vmul.f32 %v16748_v62, %v12572_v9  ;;  %v12576_v17 = vpop.permute.xlu0 %3896 }
 0x26a   : > { %16749 = vst [vmem:[#allocation26_spill] sm:$0xff] %v12576_v17  ;;  %v4022_v19 = vmul.f32 %v16750_v26, %v12576_v17  ;;  %v9343_v44 = vpop.f32.mrf.mxu0  ;;  %9462 = vmatmul.mubr.msk.bf16.gmra.mxu0 %vm895_vm1, %v4536_v48 }
 0x26b   : > { %v12581_v45 = vadd.f32 %v9343_v44, %v2350_v18  ;;  %v12596_v44 = vpop.f32.mrf.mxu1 }
 0x26c   : > { %v4050_v36 = vpack.c.bf16 %v4023_v57, %v4022_v19  ;;  %v2768_v24 = vpop.f32.mrf.mxu0  ;;  %v12583_v56 = vpop.permute.xlu1 %3911 }
 0x26d   : > { %16751 = vst [vmem:[#allocation27_spill] sm:$0xff] %v12583_v56  ;;  %v12585_v6 = vadd.f32 %v2768_v24, %v2348_v59  ;;  %v4025_v27 = vmul.f32 %v16752_v33, %v12583_v56  ;;  %v12589_v62 = vpop.permute.xlu0 %3906 }
 0x26e   : > { %16753 = vst [vmem:[#allocation30_spill] sm:$0xff] %v12589_v62  ;;  %v4024_v9 = vmul.f32 %v16754_v37, %v12589_v62  ;;  %v9344_v26 = vpop.f32.mrf.mxu0  ;;  %9431 = vmatprep.mubr.msk.bf16.mxu1 %vm895_vm1, %v4050_v36  ;;  %v16766_v62 = vld [vmem:[#allocation47_spill] sm:$0xff] }
 0x26f   : > { %v12594_v48 = vadd.f32 %v9344_v26, %v2351_v42 }
 0x270   : > { %v4051_v18 = vpack.c.bf16 %v4025_v27, %v4024_v9  ;;  %v12598_v19 = vpop.permute.xlu1 %4388 }
 0x271   : > { %16755 = vst [vmem:[#allocation31_spill] sm:$0xff] %v12598_v19  ;;  %v4510_v59 = vmul.f32 %v12598_v19, %v16633_v16  ;;  %v12602_v57 = vpop.permute.xlu0 %4383 }
 0x272   : > { %16756 = vst [vmem:[#allocation304_spill] sm:$0xff] %v12602_v57  ;;  %v4509_v24 = vmul.f32 %v12602_v57, %v16635_v12  ;;  %v9313_v33 = vpop.f32.mrf.mxu1  ;;  %9432 = vmatmul.mubr.msk.bf16.gmra.mxu1 %vm895_vm1, %v4051_v18 }
 0x273   : > { %v2354_v37 = vadd.f32 %v9313_v33, %v12123_v29  ;;  %v12619_v29 = vpop.f32.mrf.mxu0 }
 0x274   : > { %v4537_v42 = vpack.c.bf16 %v4510_v59, %v4509_v24  ;;  %v2297_v36 = vpop.f32.mrf.mxu1  ;;  %v12608_v26 = vpop.permute.xlu1 %4398 }
 0x275   : > { %16757 = vst [vmem:[#allocation305_spill] sm:$0xff] %v12608_v26  ;;  %v2352_v27 = vadd.f32 %v2297_v36, %v12128_v15  ;;  %v4512_v9 = vmul.f32 %v12608_v26, %v16643_v34  ;;  %v12613_v16 = vpop.permute.xlu0 %4393  ;;  %v16760_v15 = vld [vmem:[#allocation42_spill] sm:$0xff]  ;;  %v16762_v34 = vld [vmem:[#allocation43_spill] sm:$0xff] }
 0x276   : > { %16758 = vst [vmem:[#allocation306_spill] sm:$0xff] %v12613_v16  ;;  %v4511_v19 = vmul.f32 %v12613_v16, %v16645_v23  ;;  %v9314_v12 = vpop.f32.mrf.mxu1  ;;  %9465 = vmatprep.mubr.msk.bf16.mxu0 %vm895_vm1, %v4537_v42 }
 0x277   : > { %v2355_v18 = vadd.f32 %v9314_v12, %v12143_v47 }
 0x278   : > { %v4538_v59 = vpack.c.bf16 %v4512_v9, %v4511_v19  ;;  %v12621_v24 = vpop.permute.xlu1 %3921  ;;  %v16764_v9 = vld [vmem:[#allocation46_spill] sm:$0xff] }
 0x279   : > { %16759 = vst [vmem:[#allocation307_spill] sm:$0xff] %v12621_v24  ;;  %v4027_v33 = vmul.f32 %v16760_v15, %v12621_v24  ;;  %v12625_v36 = vpop.permute.xlu0 %3916 }
 0x27a   : > { %16761 = vst [vmem:[#allocation42_spill] sm:$0xff] %v12625_v36  ;;  %v4026_v26 = vmul.f32 %v16762_v34, %v12625_v36  ;;  %v9347_v57 = vpop.f32.mrf.mxu0  ;;  %9466 = vmatmul.mubr.msk.bf16.gmra.mxu0 %vm895_vm1, %v4538_v59 }
 0x27b   : > { %v12630_v23 = vadd.f32 %v9347_v57, %v2354_v37  ;;  %v12645_v57 = vpop.f32.mrf.mxu1 }
 0x27c   : > { %v4052_v42 = vpack.c.bf16 %v4027_v33, %v4026_v26  ;;  %v2784_v47 = vpop.f32.mrf.mxu0  ;;  %v12632_v12 = vpop.permute.xlu1 %3931 }
 0x27d   : > { %16763 = vst [vmem:[#allocation43_spill] sm:$0xff] %v12632_v12  ;;  %v12634_v19 = vadd.f32 %v2784_v47, %v2352_v27  ;;  %v4029_v16 = vmul.f32 %v16764_v9, %v12632_v12  ;;  %v12638_v15 = vpop.permute.xlu0 %3926  ;;  %v16769_v47 = vld [vmem:[#allocation125_spill] sm:$0xff] }
 0x27e   : > { %16765 = vst [vmem:[#allocation46_spill] sm:$0xff] %v12638_v15  ;;  %v4028_v24 = vmul.f32 %v16766_v62, %v12638_v15  ;;  %v9348_v34 = vpop.f32.mrf.mxu0  ;;  %9435 = vmatprep.mubr.msk.bf16.mxu1 %vm895_vm1, %v4052_v42 }
 0x27f   : > { %v12643_v59 = vadd.f32 %v9348_v34, %v2355_v18 }
 0x280   : > { %v4053_v37 = vpack.c.bf16 %v4029_v16, %v4028_v24  ;;  %v12647_v26 = vpop.permute.xlu1 %4408  ;;  %v16771_v24 = vld [vmem:[#allocation128_spill] sm:$0xff] }
 0x281   : > { %16767 = vst [vmem:[#allocation47_spill] sm:$0xff] %v12647_v26  ;;  %v4514_v27 = vmul.f32 %v12647_v26, %v16647_v52  ;;  %v12651_v33 = vpop.permute.xlu0 %4403  ;;  %v16773_v26 = vld [vmem:[#allocation129_spill] sm:$0xff] }
 0x282   : > { %16768 = vst [vmem:[#allocation308_spill] sm:$0xff] %v12651_v33  ;;  %v4513_v9 = vmul.f32 %v12651_v33, %v16769_v47  ;;  %v9317_v12 = vpop.f32.mrf.mxu1  ;;  %9436 = vmatmul.mubr.msk.bf16.gmra.mxu1 %vm895_vm1, %v4053_v37 }
 0x283   : > { %v2358_v62 = vadd.f32 %v9317_v12, %v12196_v28  ;;  %v12668_v28 = vpop.f32.mrf.mxu0 }
 0x284   : > { %v4539_v18 = vpack.c.bf16 %v4514_v27, %v4513_v9  ;;  %v2313_v42 = vpop.f32.mrf.mxu1  ;;  %v12657_v34 = vpop.permute.xlu1 %4418 }
 0x285   : > { %16770 = vst [vmem:[#allocation125_spill] sm:$0xff] %v12657_v34  ;;  %v2356_v16 = vadd.f32 %v2313_v42, %v12201_v31  ;;  %v4516_v15 = vmul.f32 %v12657_v34, %v16771_v24  ;;  %v12662_v52 = vpop.permute.xlu0 %4413  ;;  %v16775_v31 = vld [vmem:[#allocation58_spill] sm:$0xff]  ;;  %v16777_v24 = vld [vmem:[#allocation59_spill] sm:$0xff] }
 0x286   : > { %16772 = vst [vmem:[#allocation128_spill] sm:$0xff] %v12662_v52  ;;  %v4515_v36 = vmul.f32 %v12662_v52, %v16773_v26  ;;  %v9318_v47 = vpop.f32.mrf.mxu1  ;;  %9469 = vmatprep.mubr.msk.bf16.mxu0 %vm895_vm1, %v4539_v18 }
 0x287   : > { %v2359_v37 = vadd.f32 %v9318_v47, %v12216_v30 }
 0x288   : > { %v4540_v12 = vpack.c.bf16 %v4516_v15, %v4515_v36  ;;  %v12670_v27 = vpop.permute.xlu1 %3941  ;;  %v16779_v15 = vld [vmem:[#allocation63_spill] sm:$0xff] }
 0x289   : > { %16774 = vst [vmem:[#allocation129_spill] sm:$0xff] %v12670_v27  ;;  %v4031_v9 = vmul.f32 %v16775_v31, %v12670_v27  ;;  %v12674_v42 = vpop.permute.xlu0 %3936  ;;  %v16781_v27 = vld [vmem:[#allocation64_spill] sm:$0xff] }
 0x28a   : > { %16776 = vst [vmem:[#allocation58_spill] sm:$0xff] %v12674_v42  ;;  %v4030_v34 = vmul.f32 %v16777_v24, %v12674_v42  ;;  %v9351_v33 = vpop.f32.mrf.mxu0  ;;  %9470 = vmatmul.mubr.msk.bf16.gmra.mxu0 %vm895_vm1, %v4540_v12  ;;  %v16805_v42 = vld [vmem:[#allocation55_spill] sm:$0xff] }
 0x28b   : > { %v12679_v26 = vadd.f32 %v9351_v33, %v2358_v62  ;;  %v12694_v33 = vpop.f32.mrf.mxu1 }
 0x28c   : > { %v4054_v18 = vpack.c.bf16 %v4031_v9, %v4030_v34  ;;  %v2800_v30 = vpop.f32.mrf.mxu0  ;;  %v12681_v47 = vpop.permute.xlu1 %3951 }
 0x28d   : > { %16778 = vst [vmem:[#allocation59_spill] sm:$0xff] %v12681_v47  ;;  %v12683_v36 = vadd.f32 %v2800_v30, %v2356_v16  ;;  %v4033_v52 = vmul.f32 %v16779_v15, %v12681_v47  ;;  %v12687_v31 = vpop.permute.xlu0 %3946 }
 0x28e   : > { %16780 = vst [vmem:[#allocation63_spill] sm:$0xff] %v12687_v31  ;;  %v4032_v56 = vmul.f32 %v16781_v27, %v12687_v31  ;;  %v9352_v24 = vpop.f32.mrf.mxu0  ;;  %9439 = vmatprep.mubr.msk.bf16.mxu1 %vm895_vm1, %v4054_v18  ;;  %v16793_v31 = vld [vmem:[#allocation39_spill] sm:$0xff] }
 0x28f   : > { %v12692_v12 = vadd.f32 %v9352_v24, %v2359_v37 }
 0x290   : > { %v4055_v62 = vpack.c.bf16 %v4033_v52, %v4032_v56  ;;  %v12696_v34 = vpop.permute.xlu1 %4428 }
 0x291   : > { %16782 = vst [vmem:[#allocation64_spill] sm:$0xff] %v12696_v34  ;;  %v4518_v16 = vmul.f32 %v12696_v34, %v16665_v13  ;;  %v12700_v9 = vpop.permute.xlu0 %4423 }
 0x292   : > { %16783 = vst [vmem:[#allocation309_spill] sm:$0xff] %v12700_v9  ;;  %v4517_v30 = vmul.f32 %v12700_v9, %v16667_v8  ;;  %v9357_v15 = vpop.f32.mrf.mxu1  ;;  %9440 = vmatmul.mubr.msk.bf16.gmra.mxu1 %vm895_vm1, %v4055_v62 }
 0x293   : > { %v3304_v27 = vadd.f32 %v9357_v15, %v12270_v40  ;;  %v12717_v40 = vpop.f32.mrf.mxu0 }
 0x294   : > { %v4541_v37 = vpack.c.bf16 %v4518_v16, %v4517_v30  ;;  %v3175_v18 = vpop.f32.mrf.mxu1  ;;  %v12706_v24 = vpop.permute.xlu1 %4438 }
 0x295   : > { %16784 = vst [vmem:[#allocation310_spill] sm:$0xff] %v12706_v24  ;;  %v3302_v56 = vadd.f32 %v3175_v18, %v12274_v51  ;;  %v4520_v52 = vmul.f32 %v12706_v24, %v16677_v54  ;;  %v12711_v13 = vpop.permute.xlu0 %4433  ;;  %v16787_v51 = vld [vmem:[#allocation35_spill] sm:$0xff]  ;;  %v16789_v54 = vld [vmem:[#allocation34_spill] sm:$0xff] }
 0x296   : > { %16785 = vst [vmem:[#allocation311_spill] sm:$0xff] %v12711_v13  ;;  %v4519_v34 = vmul.f32 %v12711_v13, %v16679_v41  ;;  %v9358_v8 = vpop.f32.mrf.mxu1  ;;  %9473 = vmatprep.mubr.msk.bf16.mxu0 %vm895_vm1, %v4541_v37 }
 0x297   : > { %v3305_v62 = vadd.f32 %v9358_v8, %v12289_v55 }
 0x298   : > { %v4542_v16 = vpack.c.bf16 %v4520_v52, %v4519_v34  ;;  %v12719_v30 = vpop.permute.xlu1 %3961  ;;  %v16791_v52 = vld [vmem:[#allocation38_spill] sm:$0xff] }
 0x299   : > { %16786 = vst [vmem:[#allocation312_spill] sm:$0xff] %v12719_v30  ;;  %v4035_v15 = vmul.f32 %v16787_v51, %v12719_v30  ;;  %v12723_v18 = vpop.permute.xlu0 %3956 }
 0x29a   : > { %16788 = vst [vmem:[#allocation35_spill] sm:$0xff] %v12723_v18  ;;  %v4034_v24 = vmul.f32 %v16789_v54, %v12723_v18  ;;  %v9391_v9 = vpop.f32.mrf.mxu0  ;;  %9474 = vmatmul.mubr.msk.bf16.gmra.mxu0 %vm895_vm1, %v4542_v16 }
 0x29b   : > { %v12728_v41 = vadd.f32 %v9391_v9, %v3304_v27  ;;  %v12743_v9 = vpop.f32.mrf.mxu1 }
 0x29c   : > { %v4056_v37 = vpack.c.bf16 %v4035_v15, %v4034_v24  ;;  %v3662_v55 = vpop.f32.mrf.mxu0  ;;  %v12730_v8 = vpop.permute.xlu1 %3971 }
 0x29d   : > { %16790 = vst [vmem:[#allocation34_spill] sm:$0xff] %v12730_v8  ;;  %v12732_v34 = vadd.f32 %v3662_v55, %v3302_v56  ;;  %v4037_v13 = vmul.f32 %v16791_v52, %v12730_v8  ;;  %v12736_v51 = vpop.permute.xlu0 %3966 }
 0x29e   : > { %16792 = vst [vmem:[#allocation38_spill] sm:$0xff] %v12736_v51  ;;  %v4036_v30 = vmul.f32 %v16793_v31, %v12736_v51  ;;  %v9392_v54 = vpop.f32.mrf.mxu0  ;;  %9443 = vmatprep.mubr.msk.bf16.mxu1 %vm895_vm1, %v4056_v37 }
 0x29f   : > { %v12741_v16 = vadd.f32 %v9392_v54, %v3305_v62 }
 0x2a0   : > { %v4057_v27 = vpack.c.bf16 %v4037_v13, %v4036_v30  ;;  %v12745_v24 = vpop.permute.xlu1 %4448 }
 0x2a1   : > { %16794 = vst [vmem:[#allocation39_spill] sm:$0xff] %v12745_v24  ;;  %v4522_v56 = vmul.f32 %v12745_v24, %v16681_v43  ;;  %v12749_v15 = vpop.permute.xlu0 %4443 }
 0x2a2   : > { %16795 = vst [vmem:[#allocation313_spill] sm:$0xff] %v12749_v15  ;;  %v4521_v55 = vmul.f32 %v12749_v15, %v16683_v61  ;;  %v9361_v52 = vpop.f32.mrf.mxu1  ;;  %9444 = vmatmul.mubr.msk.bf16.gmra.mxu1 %vm895_vm1, %v4057_v27 }
 0x2a3   : > { %v3308_v31 = vadd.f32 %v9361_v52, %v12343_v7  ;;  %v12766_v7 = vpop.f32.mrf.mxu0 }
 0x2a4   : > { %v4543_v62 = vpack.c.bf16 %v4522_v56, %v4521_v55  ;;  %v3191_v37 = vpop.f32.mrf.mxu1  ;;  %v12755_v54 = vpop.permute.xlu1 %4458 }
 0x2a5   : > { %16796 = vst [vmem:[#allocation314_spill] sm:$0xff] %v12755_v54  ;;  %v3306_v13 = vadd.f32 %v3191_v37, %v12347_v20  ;;  %v4524_v30 = vmul.f32 %v12755_v54, %v16691_v58  ;;  %v12760_v43 = vpop.permute.xlu0 %4453  ;;  %v16799_v20 = vld [vmem:[#allocation50_spill] sm:$0xff]  ;;  %v16801_v58 = vld [vmem:[#allocation51_spill] sm:$0xff] }
 0x2a6   : > { %16797 = vst [vmem:[#allocation315_spill] sm:$0xff] %v12760_v43  ;;  %v4523_v24 = vmul.f32 %v12760_v43, %v16693_v38  ;;  %v9362_v61 = vpop.f32.mrf.mxu1  ;;  %9477 = vmatprep.mubr.msk.bf16.mxu0 %vm895_vm1, %v4543_v62 }
 0x2a7   : > { %v3309_v27 = vadd.f32 %v9362_v61, %v12362_v14 }
 0x2a8   : > { %v4544_v56 = vpack.c.bf16 %v4524_v30, %v4523_v24  ;;  %v12768_v55 = vpop.permute.xlu1 %3981  ;;  %v16803_v30 = vld [vmem:[#allocation54_spill] sm:$0xff] }
 0x2a9   : > { %16798 = vst [vmem:[#allocation316_spill] sm:$0xff] %v12768_v55  ;;  %v4039_v52 = vmul.f32 %v16799_v20, %v12768_v55  ;;  %v12772_v37 = vpop.permute.xlu0 %3976 }
 0x2aa   : > { %16800 = vst [vmem:[#allocation50_spill] sm:$0xff] %v12772_v37  ;;  %v4038_v15 = vmul.f32 %v16801_v58, %v12772_v37  ;;  %v9395_v18 = vpop.f32.mrf.mxu0  ;;  %9478 = vmatmul.mubr.msk.bf16.gmra.mxu0 %vm895_vm1, %v4544_v56  ;;  %v9839_v37 = vld [vmem:[%s15731_s3] sm:$0xff]  }
 0x2ab   : > { %v12777_v38 = vadd.f32 %v9395_v18, %v3308_v31  ;;  %v12792_v18 = vpop.f32.mrf.mxu1 }
 0x2ac   : > { %v4058_v62 = vpack.c.bf16 %v4039_v52, %v4038_v15  ;;  %v3678_v14 = vpop.f32.mrf.mxu0  ;;  %v12779_v61 = vpop.permute.xlu1 %3991 }
 0x2ad   : > { %16802 = vst [vmem:[#allocation51_spill] sm:$0xff] %v12779_v61  ;;  %v12781_v24 = vadd.f32 %v3678_v14, %v3306_v13  ;;  %v4041_v47 = vmul.f32 %v16803_v30, %v12779_v61  ;;  %v12785_v20 = vpop.permute.xlu0 %3986 }
 0x2ae   : > { %16804 = vst [vmem:[#allocation54_spill] sm:$0xff] %v12785_v20  ;;  %v4040_v17 = vmul.f32 %v16805_v42, %v12785_v20  ;;  %v9396_v58 = vpop.f32.mrf.mxu0  ;;  %9447 = vmatprep.mubr.msk.bf16.mxu1 %vm895_vm1, %v4058_v62 }
 0x2af   : > { %v12790_v56 = vadd.f32 %v9396_v58, %v3309_v27 }
 0x2b0   : > { %v4059_v15 = vpack.c.bf16 %v4041_v47, %v4040_v17  ;;  %v12794_v31 = vpop.permute.xlu1 %4468 }
 0x2b1   : > { %16806 = vst [vmem:[#allocation55_spill] sm:$0xff] %v12794_v31  ;;  %v4526_v13 = vmul.f32 %v12794_v31, %v16695_v35  ;;  %v12798_v52 = vpop.permute.xlu0 %4463 }
 0x2b2   : > { %16807 = vst [vmem:[#allocation317_spill] sm:$0xff] %v12798_v52  ;;  %v4525_v14 = vmul.f32 %v12798_v52, %v16697_v5  ;;  %v9365_v30 = vpop.f32.mrf.mxu1  ;;  %9448 = vmatmul.mubr.msk.bf16.gmra.mxu1 %vm895_vm1, %v4059_v15  ;;  %v16818_v52 = vld [vmem:[#allocation3_spill] sm:$0xff] }
 0x2b3   : > { %v3312_v42 = vadd.f32 %v9365_v30, %v12416_v53  ;;  %v12815_v53 = vpop.f32.mrf.mxu0 }
 0x2b4   : > { %v4545_v27 = vpack.c.bf16 %v4526_v13, %v4525_v14  ;;  %v3207_v62 = vpop.f32.mrf.mxu1  ;;  %v12804_v58 = vpop.permute.xlu1 %4478 }
 0x2b5   : > { %16808 = vst [vmem:[#allocation318_spill] sm:$0xff] %v12804_v58  ;;  %v3310_v17 = vadd.f32 %v3207_v62, %v12420_v2  ;;  %v4528_v47 = vmul.f32 %v12804_v58, %v16706_v10  ;;  %v12809_v35 = vpop.permute.xlu0 %4473  ;;  %v16812_v2 = vld [vmem:[#allocation7_spill] sm:$0xff]  ;;  %v16814_v10 = vld [vmem:[#allocation6_spill] sm:$0xff] }
 0x2b6   : > { %16809 = vst [vmem:[#allocation319_spill] sm:$0xff] %v12809_v35  ;;  %v4527_v1 = vmul.f32 %v12809_v35, %v16810_v22  ;;  %v9366_v5 = vpop.f32.mrf.mxu1  ;;  %9481 = vmatprep.mubr.msk.bf16.mxu0 %vm895_vm1, %v4545_v27 }
 0x2b7   : > { %v3313_v15 = vadd.f32 %v9366_v5, %v12435_v50 }
 0x2b8   : > { %v4546_v13 = vpack.c.bf16 %v4528_v47, %v4527_v1  ;;  %v12817_v14 = vpop.permute.xlu1 %4001  ;;  %v16816_v47 = vld [vmem:[#allocation5_spill] sm:$0xff] }
 0x2b9   : > { %16811 = vst [vmem:[#allocation168_spill] sm:$0xff] %v12817_v14  ;;  %v4043_v30 = vmul.f32 %v16812_v2, %v12817_v14  ;;  %v12821_v62 = vpop.permute.xlu0 %3996 }
 0x2ba   : > { %16813 = vst [vmem:[#allocation7_spill] sm:$0xff] %v12821_v62  ;;  %v4042_v58 = vmul.f32 %v16814_v10, %v12821_v62  ;;  %v9399_v31 = vpop.f32.mrf.mxu0  ;;  %9482 = vmatmul.mubr.msk.bf16.gmra.mxu0 %vm895_vm1, %v4546_v13 }
 0x2bb   : > { %v12826_v22 = vadd.f32 %v9399_v31, %v3312_v42  ;;  %v12841_v31 = vpop.f32.mrf.mxu1 }
 0x2bc   : > { %v4060_v27 = vpack.c.bf16 %v4043_v30, %v4042_v58  ;;  %v3694_v50 = vpop.f32.mrf.mxu0  ;;  %v12828_v5 = vpop.permute.xlu1 %4011 }
 0x2bd   : > { %16815 = vst [vmem:[#allocation6_spill] sm:$0xff] %v12828_v5  ;;  %v12830_v1 = vadd.f32 %v3694_v50, %v3310_v17  ;;  %v4045_v35 = vmul.f32 %v16816_v47, %v12828_v5  ;;  %v12834_v2 = vpop.permute.xlu0 %4006  ;;  %v16824_v5 = vld [vmem:[#allocation80_spill] sm:$0xff] }
 0x2be   : > { %16817 = vst [vmem:[#allocation5_spill] sm:$0xff] %v12834_v2  ;;  %v4044_v54 = vmul.f32 %v16818_v52, %v12834_v2  ;;  %v9400_v10 = vpop.f32.mrf.mxu0  ;;  %9451 = vmatprep.mubr.msk.bf16.mxu1 %vm895_vm1, %v4060_v27 }
 0x2bf   : > { %v12839_v13 = vadd.f32 %v9400_v10, %v3313_v15 }
 0x2c0   : > { %v4061_v42 = vpack.c.bf16 %v4045_v35, %v4044_v54  ;;  %v12843_v58 = vpop.permute.xlu1 %4488  ;;  %v16822_v35 = vld [vmem:[#allocation79_spill] sm:$0xff] }
 0x2c1   : > { %16819 = vst [vmem:[#allocation3_spill] sm:$0xff] %v12843_v58  ;;  %v4530_v17 = vmul.f32 %v12843_v58, %v16710_v32  ;;  %v12847_v30 = vpop.permute.xlu0 %4483 }
 0x2c2   : > { %16820 = vst [vmem:[#allocation320_spill] sm:$0xff] %v12847_v30  ;;  %v4529_v50 = vmul.f32 %v12847_v30, %v16712_v0  ;;  %v9369_v47 = vpop.f32.mrf.mxu1  ;;  %9452 = vmatmul.mubr.msk.bf16.gmra.mxu1 %vm895_vm1, %v4061_v42 }
 0x2c3   : > { %v3316_v52 = vadd.f32 %v9369_v47, %v12483_v11  ;;  %v12864_v11 = vpop.f32.mrf.mxu0 }
 0x2c4   : > { %v4547_v15 = vpack.c.bf16 %v4530_v17, %v4529_v50  ;;  %v3223_v27 = vpop.f32.mrf.mxu1  ;;  %v12853_v10 = vpop.permute.xlu1 %4498 }
 0x2c5   : > { %16821 = vst [vmem:[#allocation321_spill] sm:$0xff] %v12853_v10  ;;  %v3314_v54 = vadd.f32 %v3223_v27, %v12487_v25  ;;  %v4532_v2 = vmul.f32 %v12853_v10, %v16822_v35  ;;  %v12858_v32 = vpop.permute.xlu0 %4493 }
 0x2c6   : > { %16823 = vst [vmem:[#allocation79_spill] sm:$0xff] %v12858_v32  ;;  %v4531_v58 = vmul.f32 %v12858_v32, %v16824_v5  ;;  %v9370_v0 = vpop.f32.mrf.mxu1  ;;  %9485 = vmatprep.mubr.msk.bf16.mxu0 %vm895_vm1, %v4547_v15 }
 0x2c7   : > { %v3317_v42 = vadd.f32 %v9370_v0, %v12496_v63 }
 0x2c8   : > { %v4548_v17 = vpack.c.bf16 %v4532_v2, %v4531_v58  ;;  %v12873_v5 = vpop.f32.mrf.mxu1 }
 0x2ca   : > { %v9403_v50 = vpop.f32.mrf.mxu0  ;;  %9486 = vmatmul.mubr.msk.bf16.gmra.mxu0 %vm895_vm1, %v4548_v17 }
 0x2cb   : > { %v12867_v25 = vadd.f32 %v9403_v50, %v3316_v52 }
 0x2cc   : > { %v3710_v47 = vpop.f32.mrf.mxu0 }
 0x2cd   : > { %16825 = vst [vmem:[#allocation80_spill] sm:$0xff] %v12867_v25  ;;  %v12869_v27 = vadd.f32 %v3710_v47, %v3314_v54 }
 0x2ce   : > { %v9404_v35 = vpop.f32.mrf.mxu0 }
 0x2cf   : > { %16826 = vst [vmem:[#allocation322_spill] sm:$0xff] %v12869_v27  ;;  %v12871_v10 = vadd.f32 %v9404_v35, %v3317_v42 }
 0x2d0   : > { %v12878_v17 = vpop.f32.mrf.mxu0 }
 0x2d1   : > { %16827 = vst [vmem:[#allocation323_spill] sm:$0xff] %v12871_v10 }
 0x2d2   : > { %v9373_v32 = vpop.f32.mrf.mxu1 }
 0x2d3   : > { %v3320_v15 = vadd.f32 %v9373_v32, %v12532_v3 }
 0x2d4   : > { %v3239_v63 = vpop.f32.mrf.mxu1 }
 0x2d5   : > { %v3318_v0 = vadd.f32 %v3239_v63, %v12536_v46 }
 0x2d6   : > { %v9374_v2 = vpop.f32.mrf.mxu1 }
 0x2d7   : > { %v3321_v58 = vadd.f32 %v9374_v2, %v12545_v60 }
 0x2d8   : > { %v12886_v30 = vpop.f32.mrf.mxu1 }
 0x2da   : > { %v9407_v52 = vpop.f32.mrf.mxu0 }
 0x2db   : > { %v12880_v50 = vadd.f32 %v9407_v52, %v3320_v15 }
 0x2dc   : > { %v3726_v54 = vpop.f32.mrf.mxu0 }
 0x2dd   : > { %16828 = vst [vmem:[#allocation324_spill] sm:$0xff] %v12880_v50  ;;  %v12882_v47 = vadd.f32 %v3726_v54, %v3318_v0  ;;  %v16843_v50 = vld [vmem:[#allocation241_spill] sm:$0xff] }
 0x2de   : > { %v9408_v42 = vpop.f32.mrf.mxu0 }
 0x2df   : > { %16829 = vst [vmem:[#allocation325_spill] sm:$0xff] %v12882_v47  ;;  %v12884_v35 = vadd.f32 %v9408_v42, %v3321_v58 }
 0x2e0   : > { %v12891_v43 = vpop.f32.mrf.mxu0 }
 0x2e1   : > { %16830 = vst [vmem:[#allocation326_spill] sm:$0xff] %v12884_v35 }
 0x2e2   : > { %v9377_v3 = vpop.f32.mrf.mxu1 }
 0x2e3   : > { %v3324_v32 = vadd.f32 %v9377_v3, %v12581_v45 }
 0x2e4   : > { %v3255_v46 = vpop.f32.mrf.mxu1 }
 0x2e5   : > { %v3322_v63 = vadd.f32 %v3255_v46, %v12585_v6 }
 0x2e6   : > { %v9378_v60 = vpop.f32.mrf.mxu1 }
 0x2e7   : > { %v3325_v2 = vadd.f32 %v9378_v60, %v12594_v48 }
 0x2e8   : > { %v12899_v14 = vpop.f32.mrf.mxu1 }
 0x2ea   : > { %v9411_v15 = vpop.f32.mrf.mxu0 }
 0x2eb   : > { %v12893_v52 = vadd.f32 %v9411_v15, %v3324_v32 }
 0x2ec   : > { %v3742_v0 = vpop.f32.mrf.mxu0 }
 0x2ed   : > { %16831 = vst [vmem:[#allocation327_spill] sm:$0xff] %v12893_v52  ;;  %v12895_v54 = vadd.f32 %v3742_v0, %v3322_v63 }
 0x2ee   : > { %v9412_v58 = vpop.f32.mrf.mxu0 }
 0x2ef   : > { %16832 = vst [vmem:[#allocation328_spill] sm:$0xff] %v12895_v54  ;;  %v12897_v42 = vadd.f32 %v9412_v58, %v3325_v2  ;;  %v16841_v54 = vld [vmem:[#allocation236_spill] sm:$0xff] }
 0x2f0   : > { %v12904_v62 = vpop.f32.mrf.mxu0 }
 0x2f1   : > { %16833 = vst [vmem:[#allocation329_spill] sm:$0xff] %v12897_v42  ;;  %v16840_v42 = vld [vmem:[#allocation186_spill] sm:$0xff] }
 0x2f2   : > { %v9381_v45 = vpop.f32.mrf.mxu1  ;;  %v1214_v35 = vadd.f32 %v16841_v54, %v16840_v42  ;;  %v16848_v54 = vld [vmem:[#allocation13_spill] sm:$0xff] }
 0x2f3   : > { %v3328_v3 = vadd.f32 %v9381_v45, %v12630_v23  ;;  %v9836_v23 = vld [vmem:[%s15731_s3 + $0x18] sm:$0xff]  }
 0x2f4   : > { %v3271_v6 = vpop.f32.mrf.mxu1  ;;  %9489 = vmatprep.subr.bf16.mxu1 %v9836_v23 }
 0x2f5   : > { %v3326_v46 = vadd.f32 %v3271_v6, %v12634_v19  ;;  %9490 = vmatpush3.bf16.msra.mxu1 %v9836_v23  ;;  %v9838_v23 = vld [vmem:[%s15731_s3 + $0x8] sm:$0xff]  }
 0x2f6   : > { %v9382_v48 = vpop.f32.mrf.mxu1  ;;  %9525 = vmatprep.subr.bf16.mxu0 %v9838_v23 }
 0x2f7   : > { %v3329_v60 = vadd.f32 %v9382_v48, %v12643_v59  ;;  %9526 = vmatpush3.bf16.msra.mxu0 %v9838_v23 }
 0x2f8   : > { %v12912_v61 = vpop.f32.mrf.mxu1  ;;  %9527 = vmatprep.subr.bf16.mxu0 %v9839_v37 }
 0x2fa   : > { %v9415_v32 = vpop.f32.mrf.mxu0 }
 0x2fb   : > { %v12906_v15 = vadd.f32 %v9415_v32, %v3328_v3  ;;  %9528 = vmatpush3.bf16.msra.mxu0 %v9839_v37 }
 0x2fc   : > { %v3758_v63 = vpop.f32.mrf.mxu0 }
 0x2fd   : > { %16834 = vst [vmem:[#allocation330_spill] sm:$0xff] %v12906_v15  ;;  %v12908_v0 = vadd.f32 %v3758_v63, %v3326_v46 }
 0x2fe   : > { %v9416_v2 = vpop.f32.mrf.mxu0 }
 0x2ff   : > { %16835 = vst [vmem:[#allocation331_spill] sm:$0xff] %v12908_v0  ;;  %v12910_v58 = vadd.f32 %v9416_v2, %v3329_v60 }
 0x300   : > { %v12919_v6 = vpop.f32.mrf.mxu0 }
 0x301   : > { %16836 = vst [vmem:[#allocation332_spill] sm:$0xff] %v12910_v58 }
 0x302   : > { %v9385_v19 = vpop.f32.mrf.mxu1 }
 0x303   : > { %v3332_v59 = vadd.f32 %v9385_v19, %v12679_v26  ;;  %v9837_v26 = vld [vmem:[%s15731_s3 + $0x10] sm:$0xff]  }
 0x304   : > { %v3287_v45 = vpop.f32.mrf.mxu1  ;;  %9491 = vmatprep.subr.bf16.mxu1 %v9837_v26 }
 0x305   : > { %v3330_v3 = vadd.f32 %v3287_v45, %v12683_v36  ;;  %9492 = vmatpush3.bf16.msra.mxu1 %v9837_v26 }
 0x306   : > { %v12923_v60 = vpop.f32.mrf.mxu1 }
 0x308   : > { %v12927_v2 = vpop.f32.mrf.mxu1 }
 0x30a   : > { %v9419_v46 = vpop.f32.mrf.mxu0 }
 0x30b   : > { %v12921_v48 = vadd.f32 %v9419_v46, %v3332_v59 }
 0x30c   : > { %v3774_v32 = vpop.f32.mrf.mxu0 }
 0x30d   : > { %16837 = vst [vmem:[#allocation333_spill] sm:$0xff] %v12921_v48  ;;  %v12925_v63 = vadd.f32 %v3774_v32, %v3330_v3  ;;  %v12945_v32 = vld [vmem:[%s15730_s2] ss:$0 sm:$0xff] }
 0x30e   : > { %v12929_v55 = vpop.f32.mrf.mxu0 }
 0x30f   : > { %16838 = vst [vmem:[#allocation334_spill] sm:$0xff] %v12925_v63  ;;  %v16844_v63 = vld [vmem:[#allocation178_spill] sm:$0xff] }
 0x310   : > { %v12939_v19 = vpop.f32.mrf.mxu0 }
 0x312   : > { %v9425_v20 = vpop.f32.mrf.mxu1 }
 0x313   : > { %v4278_v59 = vadd.f32 %v9425_v20, %v12728_v41 }
 0x314   : > { %v12934_v36 = vpop.f32.mrf.mxu1 }
 0x316   : > { %v9426_v45 = vpop.f32.mrf.mxu1 }
 0x317   : > { %v4279_v26 = vadd.f32 %v9426_v45, %v12741_v16  ;;  %v1846_v16 = vadd.f32 %v16843_v50, %v1214_v35  ;;  %v16850_v35 = vld [vmem:[#allocation12_spill] sm:$0xff] }
 0x31a   : > { %v9459_v3 = vpop.f32.mrf.mxu0 }
 0x31b   : > { %v4765_v46 = vadd.f32 %v9459_v3, %v4278_v59  ;;  %v12954_v59 = vpop.f32.mrf.mxu1 }
 0x31c   : > { %v12950_v8 = vpop.f32.mrf.mxu0 }
 0x31d   : > { %v4804_v41 = vadd.f32 %v12945_v32, %v4765_v46 }
 0x31e   : > { %v9460_v20 = vpop.f32.mrf.mxu0 }
 0x31f   : > { %v4766_v23 = vadd.f32 %v9460_v20, %v4279_v26  ;;  %v12956_v3 = vmax.f32 %v4804_v41, 0.0  ;;  %v16846_v41 = vld [vmem:[#allocation177_spill] sm:$0xff] }
 0x320   : > { %v12987_v27 = vpop.f32.mrf.mxu0 }
 0x321   : > { %16839 = vst [vmem:[#allocation335_spill] sm:$0xff] %v12956_v3  ;;  %v4805_v51 = vadd.f32 %v12945_v32, %v4766_v23  ;;  %v12966_v46 = vmul.f32 %v12956_v3, %v16844_v63  ;;  %v16150_v23 = vrot.slane %v12956_v3, 7  ;;  %v12978_v50 = vmul.f32 %v12956_v3, %v16848_v54  ;;  %v16852_v63 = vld [vmem:[#allocation164_spill] sm:$0xff] }
 0x322   : > { %v9429_v52 = vpop.f32.mrf.mxu1  ;;  %v2333_v48 = vadd.f32 %v16852_v63, %v1846_v16  ;;  %v16857_v63 = vld [vmem:[#allocation160_spill] sm:$0xff] }
 0x323   : > { %v12961_v47 = vmax.f32 %v4805_v51, 0.0  ;;  %16845 = vst [vmem:[#allocation236_spill] sm:$0xff] %v12966_v46  ;;  %16849 = vst [vmem:[#allocation178_spill] sm:$0xff] %v12978_v50 }
 0x324   : > { %v4165_v45 = vpop.f32.mrf.mxu1  ;;  %v2820_v10 = vadd.f32 %v16857_v63, %v2333_v48 }
 0x325   : > { %16842 = vst [vmem:[#allocation186_spill] sm:$0xff] %v12961_v47  ;;  %v4869_v37 = vrot.slane %v12961_v47, 7  ;;  %v5481_v26 = vrot.slane %v12961_v47, 1  ;;  %v12972_v20 = vmul.f32 %v12961_v47, %v16846_v41  ;;  %v12982_v42 = vmul.f32 %v12961_v47, %v16850_v35 }
 0x326   : > { %v12989_v41 = vpop.f32.mrf.mxu1  ;;  %v16855_v35 = vrot.slane %v12956_v3, 1  ;;  %v3307_v25 = vadd.f32 %v12792_v18, %v2820_v10 }
 0x327   : > { %16847 = vst [vmem:[#allocation241_spill] sm:$0xff] %v12972_v20  ;;  %16851 = vst [vmem:[#allocation177_spill] sm:$0xff] %v12982_v42  ;;  %v12997_v58 = vsel %vm378_vm2, %v16150_v23, %v4869_v37  ;;  %v4280_v20 = vadd.f32 %v4165_v45, %v12781_v24  ;;  %v4282_v23 = vadd.f32 %v9429_v52, %v12777_v38 }
 0x328   : > { %16854 = vst [vmem:[#allocation13_spill] sm:$0xff] %v12997_v58  ;;  %v13003_v16 = vsel %vm1353_vm3, %v16855_v35, %v5481_v26  ;;  %v4168_v50 = vpop.f32.mrf.mxu1  ;;  %v3794_v0 = vadd.f32 %v12815_v53, %v3307_v25 }
 0x329   : > { %16856 = vst [vmem:[#allocation12_spill] sm:$0xff] %v13003_v16 }
 0x32a   : > { %v9463_v46 = vpop.f32.mrf.mxu0  ;;  %v4281_v35 = vadd.f32 %v4168_v50, %v3794_v0 }
 0x32b   : > { %v4769_v16 = vadd.f32 %v9463_v46, %v4282_v23  ;;  %v16865_v23 = vld [vmem:[#allocation86_spill] sm:$0xff] }
 0x32c   : > { %v4652_v51 = vpop.f32.mrf.mxu0 }
 0x32d   : > { %v4767_v42 = vadd.f32 %v4652_v51, %v4280_v20  ;;  %v4808_v10 = vadd.f32 %v12945_v32, %v4769_v16  ;;  %v16867_v51 = vld [vmem:[#allocation85_spill] sm:$0xff] }
 0x32e   : > { %v13010_v15 = vpop.f32.mrf.mxu0 }
 0x32f   : > { %v4806_v58 = vadd.f32 %v12945_v32, %v4767_v42  ;;  %v13027_v0 = vmax.f32 %v4808_v10, 0.0  ;;  %v16869_v42 = vld [vmem:[#allocation256_spill] sm:$0xff] }
 0x330   : > { %v4655_v47 = vpop.f32.mrf.mxu0 }
 0x331   : > { %v13013_v48 = vmax.f32 %v4806_v58, 0.0  ;;  %v4768_v63 = vadd.f32 %v4655_v47, %v4281_v35  ;;  %16861 = vst [vmem:[#allocation337_spill] sm:$0xff] %v13027_v0  ;;  %v16871_v35 = vld [vmem:[#allocation255_spill] sm:$0xff]  ;;  %v16157_v10 = vrot.slane %v13027_v0, 1  ;;  %v16918_v0 = vld [vmem:[#allocation76_spill] sm:$0xff] }
 0x332   : > { %v13041_v20 = vpop.f32.mrf.mxu1 }
 0x333   : > { %16858 = vst [vmem:[#allocation164_spill] sm:$0xff] %v13013_v48  ;;  %v4870_v24 = vrot.slane %v13013_v48, 7  ;;  %v5482_v18 = vrot.slane %v13013_v48, 1  ;;  %v4807_v53 = vadd.f32 %v12945_v32, %v4768_v63  ;;  %v13031_v47 = vmul.f32 %v13013_v48, %v12491_v49  ;;  %v13050_v49 = vld [vmem:[%s15731_s3 + $0x28] sm:$0xff]  }
 0x334   : > { %16864 = vst [vmem:[#allocation340_spill] sm:$0xff] %v13050_v49  ;;  %9561 = vmatprep.subr.bf16.mxu1 %v13050_v49 }
 0x335   : > { %v13019_v25 = vmax.f32 %v4807_v53, 0.0  ;;  %v4925_v38 = vsel %vm378_vm2, %v4869_v37, %v4870_v24  ;;  %v13025_v52 = vsel %vm1353_vm3, %v5481_v26, %v5482_v18  ;;  %16862 = vst [vmem:[#allocation338_spill] sm:$0xff] %v13031_v47  ;;  %v16879_v47 = vld [vmem:[#allocation91_spill] sm:$0xff] }
 0x336   : > { %16860 = vst [vmem:[#allocation336_spill] sm:$0xff] %v13025_v52  ;;  %v13059_v16 = vmul.f32 %v4925_v38, %v16869_v42  ;;  %v16875_v42 = vld [vmem:[#allocation179_spill] sm:$0xff]  ;;  %v16892_v52 = vld [vmem:[#allocation226_spill] sm:$0xff] }
 0x337   : > { %16859 = vst [vmem:[#allocation160_spill] sm:$0xff] %v13019_v25  ;;  %v16154_v58 = vrot.slane %v13019_v25, 7  ;;  %v13036_v45 = vmul.f32 %v13019_v25, %v12485_v39  ;;  %v5483_v46 = vrot.slane %v13019_v25, 1  ;;  %v13053_v39 = vmul.f32 %v4925_v38, %v16865_v23  ;;  %v13070_v23 = vpop.f32.mrf.mxu1 }
 0x338   : > { %16870 = vst [vmem:[#allocation256_spill] sm:$0xff] %v13059_v16 }
 0x339   : > { %16863 = vst [vmem:[#allocation339_spill] sm:$0xff] %v13036_v45  ;;  %v4924_v26 = vsel %vm378_vm2, %v4870_v24, %v16154_v58  ;;  %16866 = vst [vmem:[#allocation86_spill] sm:$0xff] %v13053_v39  ;;  %v13086_v24 = vsel %vm1353_vm3, %v5482_v18, %v5483_v46 }
 0x33a   : > { %v13056_v50 = vmul.f32 %v4924_v26, %v16867_v51  ;;  %v13062_v63 = vmul.f32 %v4924_v26, %v16871_v35  ;;  %v16873_v51 = vld [vmem:[#allocation180_spill] sm:$0xff]  ;;  %v13076_v58 = vmul.f32 %v4924_v26, %v16875_v42  ;;  %v13082_v35 = vsel %vm1353_vm3, %v5483_v46, %v16157_v10  ;;  %16878 = vst [vmem:[#allocation342_spill] sm:$0xff] %v13086_v24  ;;  %v13098_v42 = vpop.f32.mrf.mxu1  ;;  %v13100_v45 = vpop.f32.mrf.mxu0 }
 0x33b   : > { %v13073_v37 = vmul.f32 %v4925_v38, %v16873_v51  ;;  %16877 = vst [vmem:[#allocation341_spill] sm:$0xff] %v13082_v35  ;;  %v13092_v38 = vmul.f32 %v13086_v24, %v16879_v47  ;;  %v16881_v51 = vld [vmem:[#allocation298_spill] sm:$0xff]  ;;  %v16889_v10 = vld [vmem:[#allocation184_spill] sm:$0xff]  ;;  %v16891_v24 = vld [vmem:[#allocation181_spill] sm:$0xff] }
 0x33c   : > { %16868 = vst [vmem:[#allocation85_spill] sm:$0xff] %v13056_v50  ;;  %16872 = vst [vmem:[#allocation255_spill] sm:$0xff] %v13062_v63  ;;  %v13096_v26 = vmul.f32 %v13082_v35, %v16881_v51  ;;  %v13104_v18 = vpop.f32.mrf.mxu1  ;;  %v13106_v46 = vpop.f32.mrf.mxu0  ;;  %v1198_v39 = vadd.f32 %v16892_v52, %v16891_v24 }
 0x33d   : > { %16874 = vst [vmem:[#allocation180_spill] sm:$0xff] %v13073_v37  ;;  %16876 = vst [vmem:[#allocation179_spill] sm:$0xff] %v13076_v58  ;;  %v16887_v58 = vld [vmem:[#allocation185_spill] sm:$0xff] }
 0x33e   : > { %16880 = vst [vmem:[#allocation91_spill] sm:$0xff] %v13092_v38  ;;  %16882 = vst [vmem:[#allocation298_spill] sm:$0xff] %v13096_v26  ;;  %v13110_v16 = vpop.f32.mrf.mxu0  ;;  %v13122_v35 = vmul.f32 %v13013_v48, %v16887_v58  ;;  %v13126_v38 = vmul.f32 %v13019_v25, %v16889_v10  ;;  %v16897_v58 = vld [vmem:[#allocation151_spill] sm:$0xff]  ;;  %v13145_v10 = vld [vmem:[%s15731_s3 + $0x38] sm:$0xff]  }
 0x33f   : > { %16899 = vst [vmem:[#allocation347_spill] sm:$0xff] %v13145_v10  ;;  %v16900_v26 = vld [vmem:[#allocation286_spill] sm:$0xff]  ;;  %9597 = vmatprep.subr.bf16.mxu0 %v13145_v10  ;;  %v16916_v25 = vld [vmem:[#allocation221_spill] sm:$0xff] }
 0x340   : > { %v13114_v63 = vpop.f32.mrf.mxu0  ;;  %16888 = vst [vmem:[#allocation185_spill] sm:$0xff] %v13122_v35  ;;  %16890 = vst [vmem:[#allocation184_spill] sm:$0xff] %v13126_v38 }
 0x342   : > { %v13108_v53 = vpop.f32.mrf.mxu1 }
 0x343   : > { %16883 = vst [vmem:[#allocation343_spill] sm:$0xff] %v13108_v53 }
 0x344   : > { %v13112_v47 = vpop.f32.mrf.mxu1 }
 0x345   : > { %16884 = vst [vmem:[#allocation344_spill] sm:$0xff] %v13112_v47 }
 0x346   : > { %v13116_v51 = vpop.f32.mrf.mxu1 }
 0x347   : > { %16885 = vst [vmem:[#allocation345_spill] sm:$0xff] %v13116_v51  ;;  %v16895_v51 = vld [vmem:[#allocation231_spill] sm:$0xff] }
 0x348   : > { %v13132_v50 = vpop.f32.mrf.mxu1 }
 0x349   : > { %16893 = vst [vmem:[#allocation181_spill] sm:$0xff] %v13132_v50  ;;  %v16906_v50 = vld [vmem:[#allocation68_spill] sm:$0xff] }
 0x34a   : > { %v13118_v37 = vpop.f32.mrf.mxu0 }
 0x34b   : > { %16886 = vst [vmem:[#allocation346_spill] sm:$0xff] %v13118_v37  ;;  %v1842_v37 = vadd.f32 %v16895_v51, %v1198_v39 }
 0x34c   : > { %v13134_v49 = vpop.f32.mrf.mxu0 }
 0x34d   : > { %16894 = vst [vmem:[#allocation226_spill] sm:$0xff] %v13134_v49  ;;  %v2329_v53 = vadd.f32 %v16897_v58, %v1842_v37 }
 0x34e   : > { %v13140_v48 = vpop.f32.mrf.mxu0 }
 0x34f   : > { %16898 = vst [vmem:[#allocation151_spill] sm:$0xff] %v13140_v48  ;;  %v2816_v35 = vadd.f32 %v16900_v26, %v2329_v53  ;;  %v16907_v53 = vld [vmem:[#allocation200_spill] sm:$0xff] }
 0x350   : > { %v13152_v39 = vpop.f32.mrf.mxu0  ;;  %v16908_v26 = vld [vmem:[#allocation88_spill] sm:$0xff] }
 0x351   : > { %v3303_v24 = vadd.f32 %v12743_v9, %v2816_v35  ;;  %16902 = vst [vmem:[#allocation348_spill] sm:$0xff] %v13152_v39  ;;  %v16911_v35 = vld [vmem:[#allocation249_spill] sm:$0xff] }
 0x352   : > { %v13137_v47 = vpop.f32.mrf.mxu1 }
 0x353   : > { %16896 = vst [vmem:[#allocation231_spill] sm:$0xff] %v13137_v47  ;;  %v3790_v51 = vadd.f32 %v12766_v7, %v3303_v24  ;;  %v16905_v47 = vld [vmem:[#allocation191_spill] sm:$0xff]  ;;  %v16912_v24 = vld [vmem:[#allocation257_spill] sm:$0xff] }
 0x354   : > { %v13148_v52 = vpop.f32.mrf.mxu1  ;;  %v1230_v48 = vadd.f32 %v16906_v50, %v16905_v47  ;;  %v16917_v50 = vld [vmem:[#allocation112_spill] sm:$0xff] }
 0x355   : > { %16901 = vst [vmem:[#allocation286_spill] sm:$0xff] %v13148_v52  ;;  %v4277_v38 = vadd.f32 %v12954_v59, %v3790_v51  ;;  %v1246_v52 = vadd.f32 %v16908_v26, %v16907_v53  ;;  %v16915_v59 = vld [vmem:[#allocation100_spill] sm:$0xff]  ;;  %v1278_v47 = vadd.f32 %v16917_v50, %v16916_v25  ;;  %v16920_v26 = vld [vmem:[#allocation273_spill] sm:$0xff]  ;;  %v16924_v50 = vld [vmem:[#allocation271_spill] sm:$0xff] }
 0x356   : > { %v13155_v37 = vpop.f32.mrf.mxu1  ;;  %v1850_v7 = vadd.f32 %v16911_v35, %v1230_v48  ;;  %v16922_v48 = vld [vmem:[#allocation138_spill] sm:$0xff] }
 0x357   : > { %16903 = vst [vmem:[#allocation349_spill] sm:$0xff] %v13155_v37  ;;  %v4764_v10 = vadd.f32 %v12987_v27, %v4277_v38  ;;  %v1854_v37 = vadd.f32 %v16912_v24, %v1246_v52  ;;  %v4283_v27 = vadd.f32 %v12989_v41, %v12790_v56  ;;  %v16919_v38 = vld [vmem:[#allocation205_spill] sm:$0xff]  ;;  %v4276_v52 = vadd.f32 %v12934_v36, %v12732_v34 }
 0x358   : > { %v13165_v49 = vpop.f32.mrf.mxu1  ;;  %v2337_v53 = vadd.f32 %v16918_v0, %v1850_v7  ;;  %v1862_v0 = vadd.f32 %v16924_v50, %v1278_v47  ;;  %v16925_v7 = vld [vmem:[#allocation72_spill] sm:$0xff]  ;;  %v16926_v41 = vld [vmem:[#allocation121_spill] sm:$0xff] }
 0x359   : > { %16909 = vst [vmem:[#allocation191_spill] sm:$0xff] %v13165_v49  ;;  %v16921_v49 = vld [vmem:[#allocation216_spill] sm:$0xff]  ;;  %v4803_v24 = vadd.f32 %v12945_v32, %v4764_v10  ;;  %v4770_v56 = vadd.f32 %v13010_v15, %v4283_v27  ;;  %v4763_v34 = vadd.f32 %v12950_v8, %v4276_v52 }
 0x35a   : > { %v13157_v58 = vpop.f32.mrf.mxu0  ;;  %v1310_v35 = vadd.f32 %v16922_v48, %v16921_v49  ;;  %v16928_v49 = vld [vmem:[#allocation11_spill] sm:$0xff] }
 0x35b   : > { %16904 = vst [vmem:[#allocation350_spill] sm:$0xff] %v13157_v58  ;;  %v16914_v58 = vld [vmem:[#allocation211_spill] sm:$0xff]  ;;  %v2341_v48 = vadd.f32 %v16928_v49, %v1854_v37  ;;  %v13205_v27 = vmax.f32 %v4803_v24, 0.0 }
 0x35c   : > { %v13167_v9 = vpop.f32.mrf.mxu0  ;;  %v1262_v51 = vadd.f32 %v16915_v59, %v16914_v58  ;;  %v16923_v59 = vld [vmem:[#allocation265_spill] sm:$0xff] }
 0x35d   : > { %16910 = vst [vmem:[#allocation68_spill] sm:$0xff] %v13167_v9  ;;  %v1294_v9 = vadd.f32 %v16920_v26, %v16919_v38  ;;  %v16927_v26 = vld [vmem:[#allocation280_spill] sm:$0xff]  ;;  %16930 = vst [vmem:[#allocation88_spill] sm:$0xff] %v13205_v27  ;;  %v4867_v24 = vrot.slane %v13205_v27, 7 }
 0x35e   : > { %v13187_v58 = vpop.f32.mrf.mxu0  ;;  %v1858_v25 = vadd.f32 %v16923_v59, %v1262_v51  ;;  %v1870_v54 = vadd.f32 %v16927_v26, %v1310_v35  ;;  %v2349_v51 = vadd.f32 %v12596_v44, %v1862_v0  ;;  %v16929_v59 = vld [vmem:[#allocation92_spill] sm:$0xff]  ;;  %v4809_v44 = vadd.f32 %v12945_v32, %v4770_v56  ;;  %v16969_v26 = vld [vmem:[#allocation343_spill] sm:$0xff] }
 0x35f   : > { %v1866_v38 = vadd.f32 %v16926_v41, %v1294_v9  ;;  %v16937_v41 = vld [vmem:[#allocation2_spill] sm:$0xff]  ;;  %v17471_v0 = vld [vmem:[#allocation339_spill] sm:$0xff] }
 0x360   : > { %v2345_v10 = vadd.f32 %v12547_v21, %v1858_v25  ;;  %v2357_v9 = vadd.f32 %v12694_v33, %v1870_v54  ;;  %v13207_v35 = vpop.f32.mrf.mxu0  ;;  %v2836_v37 = vadd.f32 %v12619_v29, %v2349_v51  ;;  %v4284_v33 = vadd.f32 %v13070_v23, %v12830_v1 }
 0x361   : > { %v2353_v15 = vadd.f32 %v12645_v57, %v1866_v38  ;;  %v4802_v57 = vadd.f32 %v12945_v32, %v4763_v34  ;;  %v4286_v1 = vadd.f32 %v13041_v20, %v12826_v22  ;;  %v13233_v50 = vmax.f32 %v4809_v44, 0.0  ;;  %v16938_v34 = vld [vmem:[#allocation8_spill] sm:$0xff] }
 0x362   : > { %v13171_v39 = vpop.f32.mrf.mxu1  ;;  %v2832_v8 = vadd.f32 %v12570_v4, %v2345_v10  ;;  %v4771_v23 = vadd.f32 %v13106_v46, %v4284_v33  ;;  %v13287_v10 = vmul.f32 %v13205_v27, %v16938_v34  ;;  %v16950_v33 = vld [vmem:[#allocation20_spill] sm:$0xff]  ;;  %v16962_v34 = vld [vmem:[#allocation17_spill] sm:$0xff] }
 0x363   : > { %16913 = vst [vmem:[#allocation200_spill] sm:$0xff] %v13171_v39  ;;  %v2824_v39 = vadd.f32 %v16925_v7, %v2337_v53  ;;  %v2828_v53 = vadd.f32 %v16929_v59, %v2341_v48  ;;  %16931 = vst [vmem:[#allocation249_spill] sm:$0xff] %v13233_v50 }
 0x364   : > { %v13197_v36 = vpop.f32.mrf.mxu1  ;;  %v3319_v29 = vadd.f32 %v12886_v30, %v2832_v8  ;;  %v16944_v8 = vld [vmem:[#allocation297_spill] sm:$0xff] }
 0x365   : > { %v3311_v47 = vadd.f32 %v12841_v31, %v2824_v39  ;;  %v2840_v31 = vadd.f32 %v12668_v28, %v2353_v15  ;;  %v2844_v39 = vadd.f32 %v12717_v40, %v2357_v9  ;;  %v3315_v4 = vadd.f32 %v12873_v5, %v2828_v53  ;;  %v16942_v15 = vld [vmem:[#allocation10_spill] sm:$0xff] }
 0x366   : > { %v13218_v54 = vpop.f32.mrf.mxu1  ;;  %v3323_v40 = vadd.f32 %v12899_v14, %v2836_v37  ;;  %v13297_v9 = vmul.f32 %v12956_v3, %v16942_v15  ;;  %v16945_v37 = vld [vmem:[#allocation186_spill] sm:$0xff] }
 0x367   : > { %v3798_v21 = vadd.f32 %v12864_v11, %v3311_v47  ;;  %v4287_v11 = vadd.f32 %v13098_v42, %v12839_v13  ;;  %v3327_v25 = vadd.f32 %v12912_v61, %v2840_v31  ;;  %v3333_v13 = vadd.f32 %v12923_v60, %v12692_v12  ;;  %v16939_v47 = vld [vmem:[#allocation160_spill] sm:$0xff] }
 0x368   : > { %v3331_v14 = vadd.f32 %v12927_v2, %v2844_v39  ;;  %v13240_v42 = vmax.f32 %v4802_v57, 0.0  ;;  %v13243_v22 = vpop.f32.mrf.mxu1  ;;  %v13248_v61 = vadd.f32 %v12878_v17, %v3315_v4  ;;  %v16933_v17 = vrot.slane %v12956_v3, 7  ;;  %16943 = vst [vmem:[#allocation221_spill] sm:$0xff] %v13297_v9  ;;  %v16949_v39 = vld [vmem:[#allocation84_spill] sm:$0xff] }
 0x369   : > { %v4285_v28 = vadd.f32 %v13104_v18, %v3798_v21  ;;  %v4774_v30 = vadd.f32 %v13110_v16, %v4287_v11  ;;  %v4773_v18 = vadd.f32 %v13100_v45, %v4286_v1  ;;  %v13251_v16 = vadd.f32 %v12891_v43, %v3319_v29 }
 0x36a   : > { %v13220_v52 = vpop.f32.mrf.mxu0  ;;  %16932 = vst [vmem:[#allocation257_spill] sm:$0xff] %v13240_v42  ;;  %v13257_v12 = vadd.f32 %v12919_v6, %v3327_v25  ;;  %v13260_v60 = vadd.f32 %v12929_v55, %v3333_v13  ;;  %v13263_v2 = vadd.f32 %v12939_v19, %v3331_v14  ;;  %v4810_v45 = vadd.f32 %v12945_v32, %v4771_v23  ;;  %v16956_v25 = vld [vmem:[#allocation83_spill] sm:$0xff]  ;;  %v16958_v13 = vld [vmem:[#allocation21_spill] sm:$0xff] }
 0x36b   : > { %v4772_v5 = vadd.f32 %v13114_v63, %v4285_v28  ;;  %v13254_v63 = vadd.f32 %v12904_v62, %v3323_v40  ;;  %v13270_v43 = vsel %vm378_vm2, %v4867_v24, %v16933_v17  ;;  %v16936_v62 = vld [vmem:[#allocation337_spill] sm:$0xff]  ;;  %v4873_v6 = vrot.slane %v13233_v50, 7  ;;  %v16953_v28 = vld [vmem:[#allocation16_spill] sm:$0xff] }
 0x36c   : > { %v13245_v20 = vpop.f32.mrf.mxu0  ;;  %16935 = vst [vmem:[#allocation211_spill] sm:$0xff] %v13270_v43  ;;  %v4872_v7 = vrot.slane %v16936_v62, 7  ;;  %v4813_v56 = vadd.f32 %v12945_v32, %v4774_v30  ;;  %v16181_v19 = vrot.slane %v13240_v42, 7  ;;  %v13279_v38 = vmul.f32 %v13240_v42, %v16937_v41  ;;  %v16957_v30 = vld [vmem:[#allocation13_spill] sm:$0xff] }
 0x36d   : > { %v4811_v55 = vadd.f32 %v12945_v32, %v4772_v5  ;;  %v4812_v49 = vadd.f32 %v12945_v32, %v4773_v18  ;;  %v16940_v59 = vrot.slane %v16939_v47, 7  ;;  %v13301_v21 = vmul.f32 %v16945_v37, %v16944_v8  ;;  %v16959_v18 = vld [vmem:[#allocation96_spill] sm:$0xff]  ;;  %v16960_v17 = vld [vmem:[#allocation73_spill] sm:$0xff] }
 0x36e   : > { %v13283_v48 = vpop.f32.mrf.mxu0  ;;  %v13307_v44 = vsel %vm378_vm2, %v16181_v19, %v4867_v24  ;;  %v13309_v31 = vmax.f32 %v4810_v45, 0.0  ;;  %v13313_v57 = vmul.f32 %v13270_v43, %v16949_v39  ;;  %v13317_v4 = vmul.f32 %v13233_v50, %v16950_v33  ;;  %v16964_v33 = vld [vmem:[#allocation95_spill] sm:$0xff]  ;;  %v16966_v37 = vld [vmem:[#allocation29_spill] sm:$0xff] }
 0x36f   : > { %v13293_v53 = vsel %vm378_vm2, %v16940_v59, %v4872_v7  ;;  %16946 = vst [vmem:[#allocation112_spill] sm:$0xff] %v13301_v21  ;;  %16947 = vst [vmem:[#allocation76_spill] sm:$0xff] %v13307_v44  ;;  %v13319_v29 = vmax.f32 %v4813_v56, 0.0  ;;  %v13321_v11 = vmax.f32 %v4811_v55, 0.0  ;;  %v13325_v40 = vmul.f32 %v16939_v47, %v16953_v28  ;;  %v16961_v55 = vld [vmem:[#allocation330_spill] sm:$0xff]  ;;  %v16963_v47 = vld [vmem:[#allocation164_spill] sm:$0xff] }
 0x370   : > { %16941 = vst [vmem:[#allocation100_spill] sm:$0xff] %v13293_v53  ;;  %16948 = vst [vmem:[#allocation205_spill] sm:$0xff] %v13309_v31  ;;  %v13329_v24 = vsel %vm378_vm2, %v4872_v7, %v4873_v6  ;;  %v13331_v1 = vmax.f32 %v4812_v49, 0.0  ;;  %v13333_v23 = vpop.f32.mrf.mxu0  ;;  %v13337_v5 = vmul.f32 %v16957_v30, %v16956_v25  ;;  %v13341_v14 = vmul.f32 %v16936_v62, %v16958_v13  ;;  %v16968_v56 = vld [vmem:[#allocation80_spill] sm:$0xff]  ;;  %v16975_v43 = vld [vmem:[#allocation25_spill] sm:$0xff] }
 0x371   : > { %16951 = vst [vmem:[#allocation273_spill] sm:$0xff] %v13319_v29  ;;  %16952 = vst [vmem:[#allocation216_spill] sm:$0xff] %v13321_v11  ;;  %v13345_v45 = vmul.f32 %v13293_v53, %v16959_v18  ;;  %v13349_v7 = vmul.f32 %v13307_v44, %v16960_v17  ;;  %v13356_v59 = vmul.f32 %v16963_v47, %v16962_v34  ;;  %v4874_v15 = vrot.slane %v13309_v31, 7  ;;  %v16995_v50 = vld [vmem:[#allocation53_spill] sm:$0xff] }
 0x372   : > { %v9449_v46 = vpop.f32.mrf.mxu1  ;;  %16954 = vst [vmem:[#allocation138_spill] sm:$0xff] %v13329_v24  ;;  %16955 = vst [vmem:[#allocation265_spill] sm:$0xff] %v13331_v1  ;;  %v13365_v28 = vmul.f32 %v13329_v24, %v16964_v33  ;;  %v4875_v25 = vrot.slane %v13321_v11, 7  ;;  %v4876_v17 = vrot.slane %v13331_v1, 7  ;;  %v13377_v33 = vmul.f32 %v13331_v1, %v16966_v37  ;;  %v16971_v24 = vld [vmem:[#allocation28_spill] sm:$0xff]  ;;  %v16985_v1 = vld [vmem:[#allocation98_spill] sm:$0xff] }
 0x373   : > { %v4302_v41 = vadd.f32 %v9449_v46, %v16961_v55  ;;  %v16965_v55 = vld [vmem:[#allocation331_spill] sm:$0xff]  ;;  %v4290_v19 = vadd.f32 %v16969_v26, %v16968_v56  ;;  %v16970_v46 = vld [vmem:[#allocation332_spill] sm:$0xff]  ;;  %v13385_v53 = vmul.f32 %v13319_v29, %v16971_v24  ;;  %v13391_v37 = vmul.f32 %v13309_v31, %v16975_v43  ;;  %v16977_v56 = vld [vmem:[#allocation346_spill] sm:$0xff] }
 0x374   : > { %v4245_v51 = vpop.f32.mrf.mxu1  ;;  %16967 = vst [vmem:[#allocation271_spill] sm:$0xff] %v13377_v33  ;;  %v13395_v26 = vsel %vm378_vm2, %v4873_v6, %v4874_v15  ;;  %v13400_v24 = vsel %vm378_vm2, %v4874_v15, %v4875_v25  ;;  %v16984_v15 = vld [vmem:[#allocation345_spill] sm:$0xff] }
 0x375   : > { %v4300_v34 = vadd.f32 %v4245_v51, %v16965_v55  ;;  %16972 = vst [vmem:[#allocation72_spill] sm:$0xff] %v13385_v53  ;;  %v16973_v51 = vld [vmem:[#allocation322_spill] sm:$0xff]  ;;  %v16974_v55 = vld [vmem:[#allocation344_spill] sm:$0xff]  ;;  %16976 = vst [vmem:[#allocation121_spill] sm:$0xff] %v13395_v26 }
 0x376   : > { %v9450_v49 = vpop.f32.mrf.mxu1  ;;  %v4288_v62 = vadd.f32 %v16974_v55, %v16973_v51  ;;  %16978 = vst [vmem:[#allocation280_spill] sm:$0xff] %v13400_v24 }
 0x37a   : > { %v9483_v8 = vpop.f32.mrf.mxu0 }
 0x37b   : > { %v4789_v13 = vadd.f32 %v9483_v8, %v4302_v41  ;;  %v4303_v41 = vadd.f32 %v9450_v49, %v16970_v46  ;;  %v4248_v8 = vpop.f32.mrf.mxu1  ;;  %v4777_v49 = vadd.f32 %v16977_v56, %v4290_v19  ;;  %v13414_v19 = vsel %vm378_vm2, %v4875_v25, %v4876_v17 }
 0x37c   : > { %v4732_v47 = vpop.f32.mrf.mxu0  ;;  %v4301_v51 = vadd.f32 %v4248_v8, %v13257_v12  ;;  %16982 = vst [vmem:[#allocation92_spill] sm:$0xff] %v13414_v19 }
 0x37d   : > { %v4828_v18 = vadd.f32 %v12945_v32, %v4789_v13  ;;  %v4787_v39 = vadd.f32 %v4732_v47, %v4300_v34  ;;  %v16979_v13 = vrot.slane %v13319_v29, 7  ;;  %v16981_v47 = vld [vmem:[#allocation226_spill] sm:$0xff] }
 0x37e   : > { %v9484_v30 = vpop.f32.mrf.mxu0  ;;  %v4775_v43 = vadd.f32 %v16981_v47, %v4288_v62  ;;  %v13423_v62 = vmul.f32 %v13395_v26, %v16985_v1  ;;  %v16987_v47 = vld [vmem:[#allocation24_spill] sm:$0xff] }
 0x37f   : > { %v4790_v46 = vadd.f32 %v9484_v30, %v4303_v41  ;;  %v13406_v34 = vsel %vm378_vm2, %v4876_v17, %v16979_v13  ;;  %v13410_v55 = vmax.f32 %v4828_v18, 0.0  ;;  %v16983_v30 = vld [vmem:[#allocation323_spill] sm:$0xff]  ;;  %v4826_v12 = vadd.f32 %v12945_v32, %v4787_v39  ;;  %v16990_v13 = vld [vmem:[#allocation97_spill] sm:$0xff]  ;;  %v16992_v26 = vld [vmem:[#allocation108_spill] sm:$0xff] }
 0x380   : > { %16980 = vst [vmem:[#allocation11_spill] sm:$0xff] %v13406_v34  ;;  %v4735_v6 = vpop.f32.mrf.mxu0  ;;  %v4291_v41 = vadd.f32 %v16984_v15, %v16983_v30  ;;  %16986 = vst [vmem:[#allocation2_spill] sm:$0xff] %v13423_v62  ;;  %v13428_v25 = vmul.f32 %v13321_v11, %v16987_v47  ;;  %v16988_v17 = vld [vmem:[#allocation107_spill] sm:$0xff]  ;;  %v13439_v1 = vmul.f32 %v13400_v24, %v16990_v13  ;;  %v16997_v24 = vld [vmem:[#allocation52_spill] sm:$0xff] }
 0x381   : > { %v4829_v56 = vadd.f32 %v12945_v32, %v4790_v46  ;;  %v4788_v18 = vadd.f32 %v4735_v6, %v4301_v51  ;;  %v13432_v30 = vmul.f32 %v13406_v34, %v16988_v17  ;;  %v4816_v46 = vadd.f32 %v12945_v32, %v4777_v49  ;;  %v16994_v6 = vld [vmem:[#allocation151_spill] sm:$0xff]  ;;  %v17003_v49 = vld [vmem:[#allocation333_spill] sm:$0xff] }
 0x382   : > { %v9453_v8 = vpop.f32.mrf.mxu1  ;;  %16991 = vst [vmem:[#allocation160_spill] sm:$0xff] %v13439_v1  ;;  %v13443_v39 = vmul.f32 %v13414_v19, %v16992_v26  ;;  %v4814_v51 = vadd.f32 %v12945_v32, %v4775_v43  ;;  %v4778_v47 = vadd.f32 %v16994_v6, %v4291_v41  ;;  %v4892_v11 = vrot.slane %v13410_v55, 7  ;;  %v16999_v43 = vld [vmem:[#allocation181_spill] sm:$0xff]  ;;  %v17014_v62 = vld [vmem:[#allocation231_spill] sm:$0xff] }
 0x383   : > { %16989 = vst [vmem:[#allocation8_spill] sm:$0xff] %v13432_v30  ;;  %v13435_v15 = vmax.f32 %v4829_v56, 0.0  ;;  %v4827_v17 = vadd.f32 %v12945_v32, %v4788_v18  ;;  %v13453_v13 = vmul.f32 %v13410_v55, %v16995_v50  ;;  %v4289_v41 = vadd.f32 %v16999_v43, %v13248_v61 }
 0x384   : > { %16993 = vst [vmem:[#allocation10_spill] sm:$0xff] %v13443_v39  ;;  %v4261_v34 = vpop.f32.mrf.mxu1  ;;  %v13461_v6 = vmax.f32 %v4826_v12, 0.0  ;;  %v5504_v56 = vrot.slane %v13410_v55, 1  ;;  %v13478_v12 = vmax.f32 %v4816_v46, 0.0  ;;  %v13484_v31 = vmax.f32 %v4814_v51, 0.0 }
 0x385   : > { %16996 = vst [vmem:[#allocation297_spill] sm:$0xff] %v13453_v13  ;;  %v13457_v26 = vmul.f32 %v13435_v15, %v16997_v24  ;;  %v13463_v19 = vmax.f32 %v4827_v17, 0.0  ;;  %v17000_v24 = vrot.slane %v13435_v15, 7  ;;  %v13487_v50 = vadd.f32 %v12945_v32, %v4778_v47  ;;  %v17005_v17 = vld [vmem:[#allocation348_spill] sm:$0xff] }
 0x386   : > { %17002 = vst [vmem:[#allocation20_spill] sm:$0xff] %v13478_v12  ;;  %v4306_v44 = vadd.f32 %v9453_v8, %v17003_v49  ;;  %v9454_v3 = vpop.f32.mrf.mxu1  ;;  %v4776_v27 = vadd.f32 %v17005_v17, %v4289_v41  ;;  %v17008_v49 = vld [vmem:[#allocation334_spill] sm:$0xff]  ;;  %v17013_v13 = vld [vmem:[#allocation324_spill] sm:$0xff] }
 0x387   : > { %16998 = vst [vmem:[#allocation186_spill] sm:$0xff] %v13457_v26  ;;  %v13476_v61 = vsel %vm378_vm2, %v4892_v11, %v17000_v24  ;;  %v5503_v43 = vrot.slane %v13463_v19, 1  ;;  %v17004_v24 = vrot.slane %v13435_v15, 1  ;;  %v17006_v51 = vrot.slane %v13463_v19, 7  ;;  %v17011_v41 = vld [vmem:[#allocation158_spill] sm:$0xff] }
 0x388   : > { %17001 = vst [vmem:[#allocation84_spill] sm:$0xff] %v13476_v61  ;;  %v4304_v18 = vadd.f32 %v4261_v34, %v17008_v49  ;;  %v13515_v17 = vmul.f32 %v13476_v61, %v17011_v41  ;;  %v4294_v1 = vadd.f32 %v17014_v62, %v17013_v13  ;;  %v17018_v34 = vld [vmem:[#allocation156_spill] sm:$0xff]  ;;  %v4307_v49 = vadd.f32 %v9454_v3, %v13260_v60  ;;  %v17026_v3 = vld [vmem:[#allocation234_spill] sm:$0xff] }
 0x389   : > { %v13494_v46 = vsel %vm1353_vm3, %v5504_v56, %v17004_v24  ;;  %v13502_v47 = vsel %vm378_vm2, %v17006_v51, %v4892_v11  ;;  %v13506_v8 = vsel %vm1353_vm3, %v5503_v43, %v5504_v56  ;;  %v17009_v24 = vld [vmem:[#allocation159_spill] sm:$0xff]  ;;  %v17015_v51 = vld [vmem:[#allocation45_spill] sm:$0xff]  ;;  %v17017_v56 = vrot.slane %v13461_v6, 1  ;;  %v17030_v41 = vld [vmem:[#allocation350_spill] sm:$0xff] }
 0x38a   : > { %v9487_v26 = vpop.f32.mrf.mxu0  ;;  %17007 = vst [vmem:[#allocation16_spill] sm:$0xff] %v13502_v47  ;;  %v13511_v30 = vmul.f32 %v13502_v47, %v17009_v24  ;;  %17012 = vst [vmem:[#allocation21_spill] sm:$0xff] %v13515_v17  ;;  %v13521_v29 = vmul.f32 %v13478_v12, %v17015_v51  ;;  %v4264_v24 = vpop.f32.mrf.mxu1  ;;  %v17020_v51 = vld [vmem:[#allocation325_spill] sm:$0xff]  ;;  %v13549_v60 = vmul.f32 %v13476_v61, %v17026_v3 }
 0x38b   : > { %v4793_v39 = vadd.f32 %v9487_v26, %v4306_v44  ;;  %v13527_v44 = vsel %vm1353_vm3, %v17017_v56, %v5503_v43  ;;  %v13531_v26 = vmul.f32 %v13506_v8, %v17018_v34  ;;  %v17022_v43 = vld [vmem:[#allocation157_spill] sm:$0xff]  ;;  %v17024_v34 = vld [vmem:[#allocation235_spill] sm:$0xff]  ;;  %v4305_v17 = vadd.f32 %v4264_v24, %v13263_v2  ;;  %v17035_v24 = vld [vmem:[#allocation68_spill] sm:$0xff] }
 0x38c   : > { %17010 = vst [vmem:[#allocation83_spill] sm:$0xff] %v13511_v30  ;;  %v4748_v11 = vpop.f32.mrf.mxu0  ;;  %17016 = vst [vmem:[#allocation96_spill] sm:$0xff] %v13521_v29  ;;  %v17021_v29 = vld [vmem:[#allocation286_spill] sm:$0xff]  ;;  %v13541_v56 = vmul.f32 %v13527_v44, %v17022_v43  ;;  %v13545_v33 = vmul.f32 %v13502_v47, %v17024_v34  ;;  %v4781_v30 = vadd.f32 %v17030_v41, %v4294_v1  ;;  %v17034_v2 = vld [vmem:[#allocation191_spill] sm:$0xff] }
 0x38d   : > { %17019 = vst [vmem:[#allocation73_spill] sm:$0xff] %v13531_v26  ;;  %v4832_v62 = vadd.f32 %v12945_v32, %v4793_v39  ;;  %v4791_v13 = vadd.f32 %v4748_v11, %v4304_v18  ;;  %v4292_v21 = vadd.f32 %v17021_v29, %v17020_v51  ;;  %17027 = vst [vmem:[#allocation164_spill] sm:$0xff] %v13549_v60  ;;  %v17028_v39 = vld [vmem:[#allocation326_spill] sm:$0xff]  ;;  %v17029_v18 = vld [vmem:[#allocation349_spill] sm:$0xff] }
 0x38e   : > { %v9488_v9 = vpop.f32.mrf.mxu0  ;;  %17023 = vst [vmem:[#allocation330_spill] sm:$0xff] %v13541_v56  ;;  %17025 = vst [vmem:[#allocation17_spill] sm:$0xff] %v13545_v33  ;;  %v4295_v11 = vadd.f32 %v17029_v18, %v17028_v39  ;;  %v13563_v61 = vadd.f32 %v12945_v32, %v4776_v27  ;;  %v13577_v3 = vadd.f32 %v12945_v32, %v4781_v30  ;;  %v17038_v30 = vld [vmem:[#allocation9_spill] sm:$0xff]  ;;  %v17041_v33 = vrot.slane %v13435_v15, 1  ;;  %v17045_v26 = vld [vmem:[#allocation74_spill] sm:$0xff] }
 0x38f   : > { %v4830_v29 = vadd.f32 %v12945_v32, %v4791_v13  ;;  %v4794_v51 = vadd.f32 %v9488_v9, %v4307_v49  ;;  %v13556_v43 = vmax.f32 %v4832_v62, 0.0  ;;  %v17032_v13 = vld [vmem:[#allocation33_spill] sm:$0xff]  ;;  %v4293_v49 = vadd.f32 %v17034_v2, %v13251_v16  ;;  %v17037_v2 = vld [vmem:[#allocation4_spill] sm:$0xff] }
 0x390   : > { %v4751_v53 = vpop.f32.mrf.mxu0  ;;  %v13570_v9 = vmul.f32 %v13484_v31, %v17032_v13  ;;  %v4779_v62 = vadd.f32 %v17035_v24, %v4292_v21  ;;  %v4782_v41 = vadd.f32 %v13187_v58, %v4295_v11  ;;  %v17039_v11 = vrot.slane %v13435_v15, 7 }
 0x391   : > { %17031 = vst [vmem:[#allocation95_spill] sm:$0xff] %v13556_v43  ;;  %v13565_v39 = vmax.f32 %v4830_v29, 0.0  ;;  %v4833_v1 = vadd.f32 %v12945_v32, %v4794_v51  ;;  %v4792_v18 = vadd.f32 %v4751_v53, %v4305_v17  ;;  %v4896_v13 = vrot.slane %v13556_v43, 7 }
 0x392   : > { %17033 = vst [vmem:[#allocation331_spill] sm:$0xff] %v13570_v9  ;;  %v5508_v34 = vrot.slane %v13556_v43, 1  ;;  %v4982_v21 = vmul.f32 %v13556_v43, %v17037_v2  ;;  %v13599_v24 = vadd.f32 %v12945_v32, %v4779_v62  ;;  %v17048_v9 = vrot.slane %v13240_v42, 1 }
 0x393   : > { %v4894_v27 = vrot.slane %v13565_v39, 7  ;;  %v5506_v29 = vrot.slane %v13565_v39, 1  ;;  %v13581_v51 = vmax.f32 %v4833_v1, 0.0  ;;  %v4831_v16 = vadd.f32 %v12945_v32, %v4792_v18 }
 0x394   : > { %v13602_v18 = vadd.f32 %v12945_v32, %v4782_v41 }
 0x395   : > { %17036 = vst [vmem:[#allocation29_spill] sm:$0xff] %v13581_v51  ;;  %v4897_v58 = vrot.slane %v13581_v51, 7  ;;  %v5509_v53 = vrot.slane %v13581_v51, 1  ;;  %v4983_v17 = vmul.f32 %v13581_v51, %v17038_v30  ;;  %v13596_v1 = vsel %vm378_vm2, %v17039_v11, %v4894_v27 }
 0x396   : > { %17040 = vst [vmem:[#allocation80_spill] sm:$0xff] %v13596_v1  ;;  %v13604_v2 = vmax.f32 %v4831_v16, 0.0  ;;  %v13610_v60 = vsel %vm1353_vm3, %v17041_v33, %v5506_v29  ;;  %v17042_v30 = vrot.slane %v13240_v42, 7  ;;  %v4780_v16 = vadd.f32 %v13207_v35, %v4293_v49  ;;  %v17054_v42 = vld [vmem:[#allocation77_spill] sm:$0xff] }
 0x397   : > { %v5014_v56 = vpack.c.bf16 %v4983_v17, %v4982_v21  ;;  %v13620_v62 = vsel %vm378_vm2, %v4896_v13, %v4897_v58  ;;  %v13624_v41 = vsel %vm1353_vm3, %v5508_v34, %v5509_v53  ;;  %v17046_v21 = vld [vmem:[#allocation166_spill] sm:$0xff]  ;;  %v13643_v35 = vsel %vm1353_vm3, %v5509_v53, %v17048_v9 }
 0x398   : > { %v13616_v11 = vsel %vm378_vm2, %v4897_v58, %v17042_v30  ;;  %17044 = vst [vmem:[#allocation332_spill] sm:$0xff] %v13624_v41  ;;  %v4895_v47 = vrot.slane %v13604_v2, 7  ;;  %v9841_v30 = vld [vmem:[%s15731_s3 + $0x20] sm:$0xff]   ;;  %v13635_v17 = vmul.f32 %v13494_v46, %v17046_v21  ;;  %v5507_v58 = vrot.slane %v13604_v2, 1  ;;  %17049 = vst [vmem:[#allocation322_spill] sm:$0xff] %v13643_v35 }
 0x399   : > { %17043 = vst [vmem:[#allocation343_spill] sm:$0xff] %v13616_v11  ;;  %v4932_v33 = vmul.f32 %v13616_v11, %v17045_v26  ;;  %9493 = vmatprep.mubr.msk.bf16.mxu1 %vm5047_vm4, %v5014_v56  ;;  %v17050_v26 = vld [vmem:[#allocation78_spill] sm:$0xff]  ;;  %v17053_v21 = vpack.c.bf16 %v13287_v10, %v13279_v38  ;;  %v13663_v9 = vmul.f32 %v13643_v35, %v17054_v42  ;;  %v13674_v38 = vmax.f32 %v13487_v50, 0.0  ;;  %v17057_v10 = vld [vmem:[#allocation177_spill] sm:$0xff] }
 0x39a   : > { %17047 = vst [vmem:[#allocation28_spill] sm:$0xff] %v13635_v17  ;;  %v13647_v49 = vmul.f32 %v13624_v41, %v17050_v26  ;;  %v17051_v11 = vld [vmem:[#allocation162_spill] sm:$0xff]  ;;  %v13659_v56 = vsel %vm378_vm2, %v4895_v47, %v4896_v13  ;;  %v13667_v53 = vsel %vm378_vm2, %v4894_v27, %v4895_v47  ;;  %v17055_v26 = vld [vmem:[#allocation243_spill] sm:$0xff]  ;;  %v17061_v35 = vld [vmem:[#allocation69_spill] sm:$0xff]  ;;  %v4297_v17 = vadd.f32 %v13243_v22, %v13254_v63 }
 0x39b   : > { %v13651_v51 = vmul.f32 %v13596_v1, %v17051_v11  ;;  %9494 = vmatmul.mubr.msk.bf16.vlgmr.msra.gmra.mxu1 %vm5047_vm4, %v17053_v21  ;;  %v13671_v11 = vmul.f32 %v13596_v1, %v17055_v26  ;;  %v17058_v21 = vld [vmem:[#allocation178_spill] sm:$0xff]  ;;  %v4931_v43 = vmul.f32 %v13620_v62, %v17061_v35  ;;  %v17062_v47 = vld [vmem:[#allocation340_spill] sm:$0xff]  ;;  %v17063_v27 = vld [vmem:[#allocation161_spill] sm:$0xff]  ;;  %v4963_v50 = vpack.c.bf16 %v13349_v7, %v4932_v33 }
 0x39c   : > { %v17059_v41 = vpack.c.bf16 %v17057_v10, %v17058_v21  ;;  %v17060_v13 = vld [vmem:[#allocation70_spill] sm:$0xff]  ;;  %9562 = vmatpush3.bf16.msra.mxu1 %v17062_v47  ;;  %v13687_v26 = vmul.f32 %v13667_v53, %v17063_v27  ;;  %v17064_v10 = vld [vmem:[#allocation165_spill] sm:$0xff]  ;;  %v13709_v33 = vsel %vm1353_vm3, %v5507_v58, %v5508_v34  ;;  %v13713_v27 = vsel %vm1353_vm3, %v5506_v29, %v5507_v58  ;;  %v17072_v58 = vld [vmem:[#allocation328_spill] sm:$0xff] }
 0x39d   : > { %17052 = vst [vmem:[#allocation344_spill] sm:$0xff] %v13651_v51  ;;  %17056 = vst [vmem:[#allocation25_spill] sm:$0xff] %v13671_v11  ;;  %v4930_v42 = vmul.f32 %v13659_v56, %v17060_v13  ;;  %9563 = vmatprep.subr.bf16.mxu1 %v9841_v30  ;;  %v13699_v35 = vmul.f32 %v13610_v60, %v17064_v10  ;;  %v17066_v21 = vld [vmem:[#allocation242_spill] sm:$0xff]  ;;  %v9843_v10 = vld [vmem:[%s15731_s3 + $0x30] sm:$0xff]   ;;  %v13731_v29 = vmax.f32 %v13563_v61, 0.0 }
 0x39e   : > { %9497 = vmatprep.mubr.msk.bf16.mxu1 %vm5047_vm4, %v17059_v41  ;;  %v13695_v41 = vld [vmem:[%s15731_s3 + $0x48] sm:$0xff]   ;;  %v13703_v13 = vmul.f32 %v13667_v53, %v17066_v21  ;;  %v17070_v34 = vld [vmem:[#allocation169_spill] sm:$0xff]  ;;  %v4296_v51 = vadd.f32 %v13197_v36, %v17072_v58  ;;  %v17075_v11 = vld [vmem:[#allocation244_spill] sm:$0xff] }
 0x39f   : > { %17065 = vst [vmem:[#allocation346_spill] sm:$0xff] %v13699_v35  ;;  %v4962_v47 = vpack.c.bf16 %v4931_v43, %v4930_v42  ;;  %v17068_v42 = vld [vmem:[#allocation170_spill] sm:$0xff]  ;;  %v13728_v1 = vmul.f32 %v13709_v33, %v17070_v34  ;;  %v17073_v21 = vld [vmem:[#allocation67_spill] sm:$0xff]  ;;  %v17086_v58 = vld [vmem:[#allocation32_spill] sm:$0xff] }
 0x3a0   : > { %17067 = vst [vmem:[#allocation226_spill] sm:$0xff] %v13703_v13  ;;  %v13724_v7 = vmul.f32 %v13713_v27, %v17068_v42  ;;  %9564 = vmatpush3.bf16.msra.mxu1 %v9841_v30  ;;  %v13738_v43 = vmul.f32 %v13659_v56, %v17073_v21  ;;  %v13742_v42 = vmul.f32 %v13620_v62, %v17075_v11  ;;  %v17077_v13 = vld [vmem:[#allocation329_spill] sm:$0xff]  ;;  %v17107_v36 = vld [vmem:[#allocation86_spill] sm:$0xff]  ;;  %v17109_v34 = vld [vmem:[#allocation163_spill] sm:$0xff] }
 0x3a1   : > { %17071 = vst [vmem:[#allocation345_spill] sm:$0xff] %v13728_v1  ;;  %9529 = vmatprep.mubr.msk.bf16.mxu0 %vm5047_vm4, %v4962_v47  ;;  %v4299_v61 = vadd.f32 %v13218_v54, %v17077_v13  ;;  %9633 = vmatprep.subr.bf16.mxu1 %v13695_v41  ;;  %v4819_v11 = vadd.f32 %v12945_v32, %v4780_v16  ;;  %v17079_v54 = vld [vmem:[#allocation347_spill] sm:$0xff]  ;;  %v17160_v35 = vld [vmem:[#allocation120_spill] sm:$0xff] }
 0x3a2   : > { %17069 = vst [vmem:[#allocation323_spill] sm:$0xff] %v13724_v7  ;;  %17074 = vst [vmem:[#allocation98_spill] sm:$0xff] %v13738_v43  ;;  %9530 = vmatmul.mubr.msk.bf16.vlgmr.msra.gmra.mxu0 %vm5047_vm4, %v4963_v50  ;;  %v4783_v47 = vadd.f32 %v13245_v20, %v4296_v51  ;;  %v17078_v21 = vpack.c.bf16 %v13337_v5, %v13313_v57  ;;  %v4784_v13 = vadd.f32 %v13333_v23, %v4297_v17  ;;  %v17081_v20 = vld [vmem:[#allocation44_spill] sm:$0xff]  ;;  %v13777_v5 = vld [vmem:[%s15731_s3 + $0x58] sm:$0xff]  }
 0x3a3   : > { %17076 = vst [vmem:[#allocation24_spill] sm:$0xff] %v13742_v42  ;;  %9598 = vmatpush3.bf16.msra.mxu0 %v17079_v54  ;;  %v4786_v50 = vadd.f32 %v13283_v48, %v4299_v61  ;;  %v17080_v16 = vpack.c.bf16 %v13325_v40, %v13356_v59  ;;  %v13772_v57 = vmul.f32 %v13674_v38, %v17081_v20  ;;  %v4879_v51 = vrot.slane %v13731_v29, 7  ;;  %v17083_v23 = vld [vmem:[#allocation327_spill] sm:$0xff]  ;;  %v17084_v17 = vld [vmem:[#allocation200_spill] sm:$0xff]  ;;  %v17091_v20 = vld [vmem:[#allocation237_spill] sm:$0xff] }
 0x3a4   : > { %9533 = vmatprep.mubr.msk.bf16.mxu0 %vm5047_vm4, %v17078_v21  ;;  %9599 = vmatprep.subr.bf16.mxu0 %v9843_v10  ;;  %v13781_v48 = vmax.f32 %v13577_v3, 0.0  ;;  %v4298_v40 = vadd.f32 %v17084_v17, %v17083_v23  ;;  %v17085_v59 = vpack.c.bf16 %v13317_v4, %v13341_v14  ;;  %v13791_v61 = vmul.f32 %v13731_v29, %v17086_v58  ;;  %v17089_v3 = vld [vmem:[#allocation238_spill] sm:$0xff]  ;;  %v17111_v63 = vld [vmem:[#allocation155_spill] sm:$0xff]  ;;  %v17159_v7 = vld [vmem:[#allocation109_spill] sm:$0xff] }
 0x3a5   : > { %9498 = vmatmul.mubr.msk.bf16.gmra.mxu1 %vm5047_vm4, %v17080_v16  ;;  %v13794_v21 = vmax.f32 %v13599_v24, 0.0  ;;  %v13797_v54 = vmax.f32 %v13602_v18, 0.0  ;;  %v13801_v16 = vmul.f32 %v13461_v6, %v17089_v3  ;;  %v13805_v23 = vmul.f32 %v13463_v19, %v17091_v20  ;;  %v17094_v24 = vld [vmem:[#allocation154_spill] sm:$0xff]  ;;  %v17106_v3 = vld [vmem:[#allocation85_spill] sm:$0xff]  ;;  %v17113_v30 = vld [vmem:[#allocation167_spill] sm:$0xff] }
 0x3a6   : > { %17082 = vst [vmem:[#allocation107_spill] sm:$0xff] %v13781_v48  ;;  %9501 = vmatprep.mubr.msk.bf16.mxu1 %vm5047_vm4, %v17085_v59  ;;  %v13807_v4 = vmax.f32 %v4819_v11, 0.0  ;;  %v4785_v14 = vadd.f32 %v13220_v52, %v4298_v40  ;;  %v4822_v17 = vadd.f32 %v12945_v32, %v4783_v47  ;;  %v13813_v59 = vmul.f32 %v13527_v44, %v17094_v24  ;;  %v17096_v11 = vld [vmem:[#allocation287_spill] sm:$0xff]  ;;  %v17098_v52 = vld [vmem:[#allocation240_spill] sm:$0xff]  ;;  %v17104_v24 = vld [vmem:[#allocation245_spill] sm:$0xff] }
 0x3a7   : > { %17087 = vst [vmem:[#allocation97_spill] sm:$0xff] %v13794_v21  ;;  %17088 = vst [vmem:[#allocation108_spill] sm:$0xff] %v13797_v54  ;;  %9600 = vmatpush3.bf16.msra.mxu0 %v9843_v10  ;;  %v4825_v18 = vadd.f32 %v12945_v32, %v4786_v50  ;;  %v4823_v58 = vadd.f32 %v12945_v32, %v4784_v13  ;;  %v13822_v20 = vmul.f32 %v13506_v8, %v17096_v11  ;;  %v17100_v47 = vld [vmem:[#allocation239_spill] sm:$0xff]  ;;  %v17102_v50 = vld [vmem:[#allocation246_spill] sm:$0xff] }
 0x3a8   : > { %17090 = vst [vmem:[#allocation151_spill] sm:$0xff] %v13801_v16  ;;  %17092 = vst [vmem:[#allocation53_spill] sm:$0xff] %v13805_v23  ;;  %9669 = vmatprep.subr.bf16.mxu0 %v13777_v5  ;;  %v13826_v10 = vmul.f32 %v13410_v55, %v17098_v52  ;;  %v13830_v40 = vmul.f32 %v13435_v15, %v17100_v47  ;;  %v13834_v13 = vmul.f32 %v13565_v39, %v17102_v50  ;;  %v17158_v43 = vld [vmem:[#allocation110_spill] sm:$0xff] }
 0x3a9   : > { %17093 = vst [vmem:[#allocation52_spill] sm:$0xff] %v13807_v4  ;;  %17095 = vst [vmem:[#allocation181_spill] sm:$0xff] %v13813_v59  ;;  %v13838_v22 = vmul.f32 %v13604_v2, %v17104_v24  ;;  %v17108_v11 = vpack.c.bf16 %v17106_v3, %v17107_v36  ;;  %v13848_v47 = vmul.f32 %v13494_v46, %v17109_v34  ;;  %v4883_v16 = vrot.slane %v13807_v4, 7  ;;  %v17123_v34 = vld [vmem:[#allocation29_spill] sm:$0xff] }
 0x3aa   : > { %17097 = vst [vmem:[#allocation333_spill] sm:$0xff] %v13822_v20  ;;  %17099 = vst [vmem:[#allocation348_spill] sm:$0xff] %v13826_v10  ;;  %v13852_v50 = vmul.f32 %v13610_v60, %v17111_v63  ;;  %v13856_v24 = vmul.f32 %v13713_v27, %v17113_v30  ;;  %v17115_v36 = vpack.c.bf16 %v13365_v28, %v13345_v45  ;;  %v17119_v28 = vld [vmem:[#allocation248_spill] sm:$0xff]  ;;  %v17122_v10 = vld [vmem:[#allocation247_spill] sm:$0xff]  ;;  %v13902_v59 = vmax.f32 %v4822_v17, 0.0 }
 0x3ab   : > { %17101 = vst [vmem:[#allocation334_spill] sm:$0xff] %v13830_v40  ;;  %17103 = vst [vmem:[#allocation159_spill] sm:$0xff] %v13834_v13  ;;  %9534 = vmatmul.mubr.msk.bf16.gmra.mxu0 %vm5047_vm4, %v17108_v11  ;;  %v17116_v11 = vld [vmem:[#allocation292_spill] sm:$0xff]  ;;  %v4824_v30 = vadd.f32 %v12945_v32, %v4785_v14  ;;  %v17118_v52 = vpack.c.bf16 %v13428_v25, %v13391_v37  ;;  %v13884_v13 = vmul.f32 %v17123_v34, %v17122_v10  ;;  %v17128_v37 = vld [vmem:[#allocation75_spill] sm:$0xff] }
 0x3ac   : > { %17105 = vst [vmem:[#allocation158_spill] sm:$0xff] %v13838_v22  ;;  %17110 = vst [vmem:[#allocation324_spill] sm:$0xff] %v13848_v47  ;;  %9537 = vmatprep.mubr.msk.bf16.mxu0 %vm5047_vm4, %v17115_v36  ;;  %v13869_v63 = vmul.f32 %v13709_v33, %v17116_v11  ;;  %v17120_v36 = vld [vmem:[#allocation95_spill] sm:$0xff]  ;;  %v17125_v11 = vld [vmem:[#allocation72_spill] sm:$0xff]  ;;  %v13904_v20 = vmax.f32 %v4825_v18, 0.0  ;;  %v17141_v17 = vrot.slane %v13674_v38, 7 }
 0x3ad   : > { %17112 = vst [vmem:[#allocation231_spill] sm:$0xff] %v13852_v50  ;;  %17114 = vst [vmem:[#allocation45_spill] sm:$0xff] %v13856_v24  ;;  %9502 = vmatmul.mubr.msk.bf16.gmra.mxu1 %vm5047_vm4, %v17118_v52  ;;  %v13880_v3 = vmul.f32 %v17120_v36, %v17119_v28  ;;  %v17126_v22 = vld [vmem:[#allocation271_spill] sm:$0xff]  ;;  %v17129_v25 = vld [vmem:[#allocation332_spill] sm:$0xff]  ;;  %v17142_v18 = vrot.slane %v13478_v12, 7  ;;  %v13930_v47 = vmax.f32 %v4824_v30, 0.0 }
 0x3ae   : > { %17117 = vst [vmem:[#allocation156_spill] sm:$0xff] %v13869_v63  ;;  %17124 = vst [vmem:[#allocation286_spill] sm:$0xff] %v13884_v13  ;;  %v17127_v40 = vpack.c.bf16 %v17125_v11, %v17126_v22  ;;  %v13894_v14 = vmul.f32 %v17129_v25, %v17128_v37  ;;  %v17131_v52 = vld [vmem:[#allocation293_spill] sm:$0xff]  ;;  %v17132_v45 = vld [vmem:[#allocation322_spill] sm:$0xff]  ;;  %v13906_v22 = vmax.f32 %v4823_v58, 0.0  ;;  %v4882_v11 = vrot.slane %v13794_v21, 7 }
 0x3af   : > { %17121 = vst [vmem:[#allocation325_spill] sm:$0xff] %v13880_v3  ;;  %v13898_v28 = vmul.f32 %v17132_v45, %v17131_v52  ;;  %17136 = vst [vmem:[#allocation234_spill] sm:$0xff] %v13902_v59  ;;  %v17137_v37 = vrot.slane %v13484_v31, 7  ;;  %v17138_v32 = vld [vmem:[#allocation273_spill] sm:$0xff]  ;;  %v13925_v58 = vsel %vm378_vm2, %v17142_v18, %v17141_v17  ;;  %v4885_v17 = vrot.slane %v13797_v54, 7 }
 0x3b0   : > { %9505 = vmatprep.mubr.msk.bf16.mxu1 %vm5047_vm4, %v17127_v40  ;;  %17130 = vst [vmem:[#allocation157_spill] sm:$0xff] %v13894_v14  ;;  %v17139_v24 = vrot.slane %v17138_v32, 7  ;;  %17143 = vst [vmem:[#allocation349_spill] sm:$0xff] %v13925_v58  ;;  %v4884_v40 = vrot.slane %v13781_v48, 7  ;;  %v17149_v14 = vld [vmem:[#allocation96_spill] sm:$0xff]  ;;  %v4889_v13 = vrot.slane %v13904_v20, 7 }
 0x3b1   : > { %17133 = vst [vmem:[#allocation235_spill] sm:$0xff] %v13898_v28  ;;  %v17144_v50 = vmov %v17137_v37  ;;  %v5022_v30 = vpack.c.bf16 %v13772_v57, %v17149_v14  ;;  %v13951_v28 = vsel %vm378_vm2, %v4882_v11, %v4883_v16  ;;  %v4887_v63 = vrot.slane %v13906_v22, 7  ;;  %v17155_v57 = vld [vmem:[#allocation8_spill] sm:$0xff]  ;;  %v17156_v14 = vld [vmem:[#allocation10_spill] sm:$0xff] }
 0x3b2   : > { %v13917_v52 = vsel %vm378_vm2, %v17139_v24, %v17137_v37  ;;  %v13936_v24 = vsel %vm378_vm2, %v17144_v50, %v4879_v51  ;;  %v17146_v37 = vmov %v17142_v18  ;;  %v17148_v18 = vld [vmem:[#allocation331_spill] sm:$0xff]  ;;  %17150 = vst [vmem:[#allocation191_spill] sm:$0xff] %v13951_v28  ;;  %v4886_v50 = vrot.slane %v13902_v59, 7 }
 0x3b3   : > { %17140 = vst [vmem:[#allocation326_spill] sm:$0xff] %v13917_v52  ;;  %17145 = vst [vmem:[#allocation350_spill] sm:$0xff] %v13936_v24  ;;  %v13942_v3 = vsel %vm378_vm2, %v4879_v51, %v17146_v37  ;;  %v5021_v10 = vpack.c.bf16 %v13791_v61, %v17148_v18  ;;  %v17151_v51 = vld [vmem:[#allocation160_spill] sm:$0xff]  ;;  %v17152_v37 = vld [vmem:[#allocation2_spill] sm:$0xff]  ;;  %v13962_v61 = vsel %vm378_vm2, %v4883_v16, %v4884_v40  ;;  %v4888_v16 = vrot.slane %v13930_v47, 7 }
 0x3b4   : > { %17147 = vst [vmem:[#allocation33_spill] sm:$0xff] %v13942_v3  ;;  %v17153_v23 = vpack.c.bf16 %v17151_v51, %v17152_v37  ;;  %17154 = vst [vmem:[#allocation68_spill] sm:$0xff] %v13962_v61  ;;  %v17157_v18 = vpack.c.bf16 %v17155_v57, %v17156_v14  ;;  %v4944_v42 = vmul.f32 %v13917_v52, %v17158_v43  ;;  %v17161_v37 = vld [vmem:[#allocation119_spill] sm:$0xff]  ;;  %v4890_v12 = vrot.slane %v13461_v6, 7  ;;  %v17162_v57 = vld [vmem:[#allocation61_spill] sm:$0xff] }
 0x3b5   : > { %v4945_v1 = vmul.f32 %v13936_v24, %v17159_v7  ;;  %v4946_v51 = vmul.f32 %v13942_v3, %v17160_v35  ;;  %9506 = vmatmul.mubr.msk.bf16.gmra.mxu1 %vm5047_vm4, %v5021_v10  ;;  %v5003_v14 = vmul.f32 %v13797_v54, %v17162_v57  ;;  %v17163_v43 = vrot.slane %v13674_v38, 7  ;;  %v17165_v35 = vld [vmem:[#allocation48_spill] sm:$0xff]  ;;  %v17168_v3 = vld [vmem:[#allocation135_spill] sm:$0xff] }
 0x3b6   : > { %9538 = vmatmul.mubr.msk.bf16.gmra.mxu0 %vm5047_vm4, %v17153_v23  ;;  %v4947_v23 = vmul.f32 %v13925_v58, %v17161_v37  ;;  %9509 = vmatprep.mubr.msk.bf16.mxu1 %vm5047_vm4, %v5022_v30  ;;  %v17166_v37 = vld [vmem:[#allocation122_spill] sm:$0xff]  ;;  %v13994_v10 = vsel %vm378_vm2, %v4884_v40, %v4885_v17  ;;  %v4950_v57 = vmul.f32 %v13962_v61, %v17168_v3  ;;  %v17171_v52 = vld [vmem:[#allocation123_spill] sm:$0xff]  ;;  %v17173_v24 = vrot.slane %v13463_v19, 7 }
 0x3b7   : > { %9541 = vmatprep.mubr.msk.bf16.mxu0 %vm5047_vm4, %v17157_v18  ;;  %v13985_v7 = vsel %vm378_vm2, %v17163_v43, %v4882_v11  ;;  %v5001_v18 = vmul.f32 %v13807_v4, %v17165_v35  ;;  %v4949_v58 = vmul.f32 %v13951_v28, %v17166_v37  ;;  %17167 = vst [vmem:[#allocation9_spill] sm:$0xff] %v13994_v10  ;;  %v17169_v37 = vld [vmem:[#allocation49_spill] sm:$0xff]  ;;  %v17170_v61 = vld [vmem:[#allocation62_spill] sm:$0xff] }
 0x3b8   : > { %17164 = vst [vmem:[#allocation4_spill] sm:$0xff] %v13985_v7  ;;  %v14000_v54 = vsel %vm378_vm2, %v4886_v50, %v4887_v63  ;;  %v14004_v11 = vsel %vm378_vm2, %v4885_v17, %v4886_v50  ;;  %v14008_v30 = vsel %vm378_vm2, %v4888_v16, %v4889_v13  ;;  %v14012_v43 = vsel %vm378_vm2, %v4887_v63, %v4888_v16  ;;  %v17172_v50 = vld [vmem:[#allocation134_spill] sm:$0xff] }
 0x3b9   : > { %v4969_v40 = vpack.c.bf16 %v4945_v1, %v4944_v42  ;;  %v4970_v35 = vpack.c.bf16 %v4947_v23, %v4946_v51  ;;  %v5000_v3 = vmul.f32 %v13794_v21, %v17169_v37  ;;  %v5002_v28 = vmul.f32 %v13781_v48, %v17170_v61  ;;  %v17174_v42 = vld [vmem:[#allocation279_spill] sm:$0xff]  ;;  %v17176_v61 = vld [vmem:[#allocation133_spill] sm:$0xff]  ;;  %v17180_v37 = vld [vmem:[#allocation282_spill] sm:$0xff] }
 0x3ba   : > { %v4948_v17 = vmul.f32 %v13985_v7, %v17171_v52  ;;  %v4951_v4 = vmul.f32 %v13994_v10, %v17172_v50  ;;  %v14026_v63 = vsel %vm378_vm2, %v4890_v12, %v17173_v24  ;;  %v14030_v1 = vsel %vm378_vm2, %v4889_v13, %v4890_v12  ;;  %v17178_v23 = vld [vmem:[#allocation283_spill] sm:$0xff]  ;;  %v17183_v7 = vld [vmem:[#allocation36_spill] sm:$0xff] }
 0x3bb   : > { %v14034_v51 = vmul.f32 %v14004_v11, %v17174_v42  ;;  %v14038_v52 = vmul.f32 %v14000_v54, %v17176_v61  ;;  %v14042_v16 = vmul.f32 %v14012_v43, %v17178_v23  ;;  %v14046_v24 = vmul.f32 %v14008_v30, %v17180_v37  ;;  %v17182_v42 = vld [vmem:[#allocation37_spill] sm:$0xff]  ;;  %v17197_v37 = vld [vmem:[#allocation34_spill] sm:$0xff] }
 0x3bc   : > { %v5023_v12 = vpack.c.bf16 %v5001_v18, %v5000_v3  ;;  %v5024_v13 = vpack.c.bf16 %v5003_v14, %v5002_v28  ;;  %v4971_v50 = vpack.c.bf16 %v4949_v58, %v4948_v17  ;;  %v4972_v10 = vpack.c.bf16 %v4951_v4, %v4950_v57  ;;  %v17184_v18 = vld [vmem:[#allocation285_spill] sm:$0xff]  ;;  %v17186_v4 = vld [vmem:[#allocation284_spill] sm:$0xff]  ;;  %v17199_v23 = vld [vmem:[#allocation50_spill] sm:$0xff] }
 0x3bd   : > { %17175 = vst [vmem:[#allocation74_spill] sm:$0xff] %v14034_v51  ;;  %17177 = vst [vmem:[#allocation166_spill] sm:$0xff] %v14038_v52  ;;  %v5006_v61 = vmul.f32 %v13930_v47, %v17182_v42  ;;  %v5007_v48 = vmul.f32 %v13904_v20, %v17183_v7  ;;  %v14061_v28 = vmul.f32 %v14030_v1, %v17184_v18  ;;  %v17188_v14 = vld [vmem:[#allocation289_spill] sm:$0xff]  ;;  %v17189_v57 = vld [vmem:[#allocation16_spill] sm:$0xff] }
 0x3be   : > { %17179 = vst [vmem:[#allocation78_spill] sm:$0xff] %v14042_v16  ;;  %17181 = vst [vmem:[#allocation162_spill] sm:$0xff] %v14046_v24  ;;  %9542 = vmatmul.mubr.msk.bf16.gmra.mxu0 %vm5047_vm4, %v4969_v40  ;;  %9510 = vmatmul.mubr.msk.bf16.gmra.mxu1 %vm5047_vm4, %v5023_v12  ;;  %v14065_v58 = vmul.f32 %v14026_v63, %v17186_v4  ;;  %v14069_v40 = vmul.f32 %v17189_v57, %v17188_v14  ;;  %v17191_v7 = vld [vmem:[#allocation288_spill] sm:$0xff]  ;;  %v17194_v17 = vld [vmem:[#allocation65_spill] sm:$0xff] }
 0x3bf   : > { %9545 = vmatprep.mubr.msk.bf16.mxu0 %vm5047_vm4, %v4970_v35  ;;  %17185 = vst [vmem:[#allocation77_spill] sm:$0xff] %v14061_v28  ;;  %v17192_v35 = vld [vmem:[#allocation84_spill] sm:$0xff]  ;;  %9513 = vmatprep.mubr.msk.bf16.mxu1 %vm5047_vm4, %v5024_v13  ;;  %v5005_v12 = vmul.f32 %v13906_v22, %v17194_v17  ;;  %v17195_v42 = vld [vmem:[#allocation38_spill] sm:$0xff]  ;;  %v14084_v4 = vmul.f32 %v13463_v19, %v17197_v37  ;;  %v17203_v17 = vld [vmem:[#allocation291_spill] sm:$0xff] }
 0x3c0   : > { %17187 = vst [vmem:[#allocation243_spill] sm:$0xff] %v14065_v58  ;;  %17190 = vst [vmem:[#allocation177_spill] sm:$0xff] %v14069_v40  ;;  %v14073_v3 = vmul.f32 %v17192_v35, %v17191_v7  ;;  %v14080_v18 = vmul.f32 %v13461_v6, %v17195_v42  ;;  %v14088_v14 = vmul.f32 %v13410_v55, %v17199_v23  ;;  %v17201_v7 = vld [vmem:[#allocation316_spill] sm:$0xff]  ;;  %v17206_v24 = vld [vmem:[#allocation290_spill] sm:$0xff] }
 0x3c1   : > { %17198 = vst [vmem:[#allocation69_spill] sm:$0xff] %v14084_v4  ;;  %v14096_v35 = vmul.f32 %v13435_v15, %v17201_v7  ;;  %v17204_v42 = vld [vmem:[#allocation80_spill] sm:$0xff]  ;;  %v14106_v55 = vmul.f32 %v13667_v53, %v17206_v24  ;;  %v17208_v23 = vld [vmem:[#allocation295_spill] sm:$0xff]  ;;  %v17210_v13 = vld [vmem:[#allocation294_spill] sm:$0xff] }
 0x3c2   : > { %17193 = vst [vmem:[#allocation178_spill] sm:$0xff] %v14073_v3  ;;  %17196 = vst [vmem:[#allocation70_spill] sm:$0xff] %v14080_v18  ;;  %v14100_v16 = vmul.f32 %v17204_v42, %v17203_v17  ;;  %v14110_v57 = vmul.f32 %v13659_v56, %v17208_v23  ;;  %v14114_v40 = vmul.f32 %v13620_v62, %v17210_v13  ;;  %v17212_v15 = vld [vmem:[#allocation66_spill] sm:$0xff]  ;;  %v17215_v53 = vld [vmem:[#allocation51_spill] sm:$0xff]  ;;  %v5491_v18 = vrot.slane %v13731_v29, 1 }
 0x3c3   : > { %17200 = vst [vmem:[#allocation340_spill] sm:$0xff] %v14088_v14  ;;  %17202 = vst [vmem:[#allocation161_spill] sm:$0xff] %v14096_v35  ;;  %v5004_v7 = vmul.f32 %v13902_v59, %v17212_v15  ;;  %v17213_v42 = vld [vmem:[#allocation54_spill] sm:$0xff]  ;;  %v14126_v24 = vmul.f32 %v13604_v2, %v17215_v53  ;;  %v17217_v13 = vld [vmem:[#allocation7_spill] sm:$0xff]  ;;  %v5026_v56 = vpack.c.bf16 %v5007_v48, %v5006_v61 }
 0x3c4   : > { %17205 = vst [vmem:[#allocation165_spill] sm:$0xff] %v14100_v16  ;;  %17207 = vst [vmem:[#allocation242_spill] sm:$0xff] %v14106_v55  ;;  %v14122_v37 = vmul.f32 %v13565_v39, %v17213_v42  ;;  %v14134_v23 = vmul.f32 %v17120_v36, %v17217_v13  ;;  %v17219_v15 = vld [vmem:[#allocation168_spill] sm:$0xff]  ;;  %v17225_v48 = vld [vmem:[#allocation146_spill] sm:$0xff] }
 0x3c5   : > { %17209 = vst [vmem:[#allocation170_spill] sm:$0xff] %v14110_v57  ;;  %17211 = vst [vmem:[#allocation169_spill] sm:$0xff] %v14114_v40  ;;  %v14138_v17 = vmul.f32 %v17123_v34, %v17219_v15  ;;  %v5025_v42 = vpack.c.bf16 %v5005_v12, %v5004_v7  ;;  %v17221_v36 = vld [vmem:[#allocation136_spill] sm:$0xff]  ;;  %v17222_v34 = vld [vmem:[#allocation147_spill] sm:$0xff]  ;;  %v4955_v61 = vmul.f32 %v14008_v30, %v17225_v48  ;;  %v5489_v57 = vrot.slane %v17138_v32, 1 }
 0x3c6   : > { %17214 = vst [vmem:[#allocation328_spill] sm:$0xff] %v14122_v37  ;;  %17216 = vst [vmem:[#allocation67_spill] sm:$0xff] %v14126_v24  ;;  %9546 = vmatmul.mubr.msk.bf16.gmra.mxu0 %vm5047_vm4, %v4971_v50  ;;  %v4953_v13 = vmul.f32 %v14000_v54, %v17221_v36  ;;  %v4954_v50 = vmul.f32 %v14012_v43, %v17222_v34  ;;  %v17223_v12 = vld [vmem:[#allocation137_spill] sm:$0xff]  ;;  %v17224_v15 = vld [vmem:[#allocation40_spill] sm:$0xff]  ;;  %v5490_v37 = vrot.slane %v13484_v31, 1 }
 0x3c7   : > { %17218 = vst [vmem:[#allocation244_spill] sm:$0xff] %v14134_v23  ;;  %17220 = vst [vmem:[#allocation329_spill] sm:$0xff] %v14138_v17  ;;  %9549 = vmatprep.mubr.msk.bf16.mxu0 %vm5047_vm4, %v4972_v10  ;;  %9514 = vmatmul.mubr.msk.bf16.gmra.mxu1 %vm5047_vm4, %v5025_v42  ;;  %v4952_v7 = vmul.f32 %v14004_v11, %v17223_v12  ;;  %v5009_v10 = vmul.f32 %v13463_v19, %v17224_v15  ;;  %v17226_v53 = vld [vmem:[#allocation41_spill] sm:$0xff]  ;;  %v17227_v36 = vld [vmem:[#allocation315_spill] sm:$0xff] }
 0x3c8   : > { %9517 = vmatprep.mubr.msk.bf16.mxu1 %vm5047_vm4, %v5026_v56  ;;  %v5008_v42 = vmul.f32 %v13461_v6, %v17226_v53  ;;  %v4974_v23 = vpack.c.bf16 %v4955_v61, %v4954_v50  ;;  %v14163_v34 = vmul.f32 %v13527_v44, %v17227_v36  ;;  %v17229_v12 = vld [vmem:[#allocation314_spill] sm:$0xff]  ;;  %v17231_v15 = vld [vmem:[#allocation317_spill] sm:$0xff]  ;;  %v17236_v50 = vld [vmem:[#allocation319_spill] sm:$0xff] }
 0x3c9   : > { %v4973_v62 = vpack.c.bf16 %v4953_v13, %v4952_v7  ;;  %v14168_v19 = vmul.f32 %v13506_v8, %v17229_v12  ;;  %v14172_v13 = vmul.f32 %v13494_v46, %v17231_v15  ;;  %v17233_v7 = vld [vmem:[#allocation55_spill] sm:$0xff]  ;;  %v17240_v48 = vld [vmem:[#allocation320_spill] sm:$0xff]  ;;  %v17242_v61 = vld [vmem:[#allocation186_spill] sm:$0xff] }
 0x3ca   : > { %v5027_v56 = vpack.c.bf16 %v5009_v10, %v5008_v42  ;;  %17228 = vst [vmem:[#allocation347_spill] sm:$0xff] %v14163_v34  ;;  %v14176_v53 = vmul.f32 %v13610_v60, %v17233_v7  ;;  %v17238_v10 = vld [vmem:[#allocation318_spill] sm:$0xff]  ;;  %v14191_v46 = vmul.f32 %v17129_v25, %v17240_v48  ;;  %v17243_v60 = vld [vmem:[#allocation297_spill] sm:$0xff]  ;;  %v17245_v36 = vld [vmem:[#allocation3_spill] sm:$0xff] }
 0x3cb   : > { %17230 = vst [vmem:[#allocation44_spill] sm:$0xff] %v14168_v19  ;;  %17232 = vst [vmem:[#allocation327_spill] sm:$0xff] %v14172_v13  ;;  %v14187_v8 = vmul.f32 %v13709_v33, %v17238_v10  ;;  %v17244_v42 = vpack.c.bf16 %v17242_v61, %v17243_v60  ;;  %v14203_v12 = vmul.f32 %v17132_v45, %v17245_v36  ;;  %v17247_v33 = vld [vmem:[#allocation149_spill] sm:$0xff]  ;;  %v17248_v25 = vld [vmem:[#allocation56_spill] sm:$0xff] }
 0x3cc   : > { %17234 = vst [vmem:[#allocation200_spill] sm:$0xff] %v14176_v53  ;;  %17241 = vst [vmem:[#allocation237_spill] sm:$0xff] %v14191_v46  ;;  %v4956_v15 = vmul.f32 %v14030_v1, %v17247_v33  ;;  %v5013_v7 = vmul.f32 %v13604_v2, %v17248_v25  ;;  %v17250_v60 = vld [vmem:[#allocation57_spill] sm:$0xff]  ;;  %v17251_v36 = vld [vmem:[#allocation335_spill] sm:$0xff] }
 0x3cd   : > { %17239 = vst [vmem:[#allocation238_spill] sm:$0xff] %v14187_v8  ;;  %17246 = vst [vmem:[#allocation154_spill] sm:$0xff] %v14203_v12  ;;  %v17252_v33 = vrot.slane %v17251_v36, 1  ;;  %v17254_v25 = vld [vmem:[#allocation257_spill] sm:$0xff]  ;;  %v17273_v13 = vld [vmem:[#allocation344_spill] sm:$0xff] }
 0x3ce   : > { %9550 = vmatmul.mubr.msk.bf16.gmra.mxu0 %vm5047_vm4, %v4973_v62  ;;  %v17235_v62 = vld [vmem:[#allocation148_spill] sm:$0xff]  ;;  %v17257_v48 = vld [vmem:[#allocation21_spill] sm:$0xff]  ;;  %v17275_v53 = vld [vmem:[#allocation174_spill] sm:$0xff] }
 0x3cf   : > { %9553 = vmatprep.mubr.msk.bf16.mxu0 %vm5047_vm4, %v4974_v23  ;;  %9518 = vmatmul.mubr.msk.bf16.gmra.mxu1 %vm5047_vm4, %v5027_v56  ;;  %v4957_v44 = vmul.f32 %v14026_v63, %v17235_v62  ;;  %v14183_v23 = vmul.f32 %v13713_v27, %v17236_v50  ;;  %v17249_v50 = vld [vmem:[#allocation88_spill] sm:$0xff]  ;;  %v17255_v62 = vrot.slane %v17254_v25, 1  ;;  %v17269_v46 = vld [vmem:[#allocation205_spill] sm:$0xff]  ;;  %v17300_v4 = vld [vmem:[#allocation190_spill] sm:$0xff] }
 0x3d0   : > { %9521 = vmatprep.mubr.msk.bf16.mxu1 %vm5047_vm4, %v17244_v42  ;;  %v5479_v10 = vrot.slane %v17249_v50, 1  ;;  %v5012_v42 = vmul.f32 %v13565_v39, %v17250_v60  ;;  %v17260_v39 = vpack.c.bf16 %v13663_v9, %v13647_v49  ;;  %v17268_v56 = vld [vmem:[#allocation336_spill] sm:$0xff]  ;;  %v5486_v12 = vrot.slane %v17269_v46, 1  ;;  %v17270_v9 = vld [vmem:[#allocation90_spill] sm:$0xff]  ;;  %v17272_v8 = vld [vmem:[#allocation249_spill] sm:$0xff] }
 0x3d1   : > { %17237 = vst [vmem:[#allocation32_spill] sm:$0xff] %v14183_v23  ;;  %v4975_v61 = vpack.c.bf16 %v4957_v44, %v4956_v15  ;;  %v17258_v44 = vld [vmem:[#allocation83_spill] sm:$0xff]  ;;  %v17286_v17 = vld [vmem:[#allocation101_spill] sm:$0xff]  ;;  %v9847_v24 = vld [vmem:[%s15731_s3 + $0x50] sm:$0xff]  }
 0x3d2   : > { %v5029_v45 = vpack.c.bf16 %v5013_v7, %v5012_v42  ;;  %v14221_v2 = vsel %vm1353_vm3, %v5479_v10, %v17252_v33  ;;  %v14227_v27 = vsel %vm1353_vm3, %v17255_v62, %v5479_v10  ;;  %v17259_v15 = vpack.c.bf16 %v17257_v48, %v17258_v44  ;;  %v17261_v7 = vld [vmem:[#allocation172_spill] sm:$0xff]  ;;  %v17263_v42 = vld [vmem:[#allocation82_spill] sm:$0xff]  ;;  %v17264_v62 = vld [vmem:[#allocation81_spill] sm:$0xff] }
 0x3d3   : > { %17253 = vst [vmem:[#allocation287_spill] sm:$0xff] %v14221_v2  ;;  %17256 = vst [vmem:[#allocation240_spill] sm:$0xff] %v14227_v27  ;;  %v5544_v36 = vmul.f32 %v14227_v27, %v17263_v42  ;;  %v5545_v10 = vmul.f32 %v14221_v2, %v17264_v62  ;;  %v17265_v33 = vld [vmem:[#allocation171_spill] sm:$0xff]  ;;  %v17266_v48 = vld [vmem:[#allocation76_spill] sm:$0xff]  ;;  %v17274_v42 = vpack.c.bf16 %v13687_v26, %v17273_v13 }
 0x3d4   : > { %v5849_v44 = vmul.f32 %v17266_v48, %v17265_v33  ;;  %v9845_v33 = vld [vmem:[%s15731_s3 + $0x40] sm:$0xff]   ;;  %v17277_v26 = vld [vmem:[#allocation173_spill] sm:$0xff]  ;;  %v17290_v16 = vld [vmem:[#allocation180_spill] sm:$0xff] }
 0x3d5   : > { %v5575_v62 = vpack.c.bf16 %v5545_v10, %v5544_v36  ;;  %v17278_v13 = vld [vmem:[#allocation13_spill] sm:$0xff]  ;;  %v17279_v10 = vld [vmem:[#allocation94_spill] sm:$0xff] }
 0x3d6   : > { %9554 = vmatmul.mubr.msk.bf16.gmra.mxu0 %vm5047_vm4, %v4975_v61  ;;  %v17262_v61 = vld [vmem:[#allocation343_spill] sm:$0xff]  ;;  %v5851_v36 = vmul.f32 %v17278_v13, %v17277_v26  ;;  %v17288_v48 = vld [vmem:[#allocation102_spill] sm:$0xff]  ;;  %v17302_v28 = vld [vmem:[#allocation113_spill] sm:$0xff] }
 0x3d7   : > { %9557 = vmatprep.mubr.msk.bf16.mxu0 %vm5047_vm4, %v17259_v15  ;;  %9522 = vmatmul.mubr.msk.bf16.gmra.mxu1 %vm5047_vm4, %v5029_v45  ;;  %v5848_v60 = vmul.f32 %v17262_v61, %v17261_v7  ;;  %v17267_v15 = vld [vmem:[#allocation89_spill] sm:$0xff]  ;;  %v5485_v7 = vrot.slane %v17272_v8, 1  ;;  %v17304_v52 = vld [vmem:[#allocation114_spill] sm:$0xff] }
 0x3d8   : > { %9565 = vmatprep.mubr.msk.bf16.mxu1 %vm5047_vm4, %v17260_v39  ;;  %v5547_v45 = vmul.f32 %v17268_v56, %v17267_v15  ;;  %v17271_v39 = vld [vmem:[#allocation12_spill] sm:$0xff]  ;;  %v17317_v13 = vld [vmem:[#allocation126_spill] sm:$0xff] }
 0x3d9   : > { %v5880_v49 = vpack.c.bf16 %v5849_v44, %v5848_v60  ;;  %v5546_v23 = vmul.f32 %v17271_v39, %v17270_v9  ;;  %v17276_v60 = vld [vmem:[#allocation211_spill] sm:$0xff]  ;;  %v14265_v9 = vsel %vm1353_vm3, %v5485_v7, %v5486_v12 }
 0x3da   : > { %v5850_v44 = vmul.f32 %v17276_v60, %v17275_v53  ;;  %v17283_v53 = vld [vmem:[#allocation337_spill] sm:$0xff] }
 0x3db   : > { %v5576_v15 = vpack.c.bf16 %v5547_v45, %v5546_v23  ;;  %v17281_v23 = vld [vmem:[#allocation93_spill] sm:$0xff]  ;;  %v17284_v19 = vrot.slane %v17283_v53, 1 }
 0x3dc   : > { %v17282_v45 = vld [vmem:[#allocation341_spill] sm:$0xff] }
 0x3dd   : > { %v5549_v34 = vmul.f32 %v17282_v45, %v17281_v23  ;;  %v5881_v23 = vpack.c.bf16 %v5851_v36, %v5850_v44 }
 0x3de   : > { %9558 = vmatmul.mubr.msk.bf16.gmra.mxu0 %vm5047_vm4, %v17274_v42  ;;  %v17280_v42 = vld [vmem:[#allocation342_spill] sm:$0xff] }
 0x3df   : > { %9601 = vmatprep.mubr.msk.bf16.mxu0 %vm5047_vm4, %v5880_v49  ;;  %9566 = vmatmul.mubr.msk.bf16.vlgmr.msra.gmra.mxu1 %vm5047_vm4, %v5575_v62  ;;  %v5548_v49 = vmul.f32 %v17280_v42, %v17279_v10  ;;  %v14279_v62 = vsel %vm1353_vm3, %v17284_v19, %v5485_v7  ;;  %v5551_v10 = vmul.f32 %v14265_v9, %v17286_v17  ;;  %v17287_v19 = vld [vmem:[#allocation265_spill] sm:$0xff]  ;;  %v17289_v17 = vld [vmem:[#allocation179_spill] sm:$0xff] }
 0x3e0   : > { %9569 = vmatprep.mubr.msk.bf16.mxu1 %vm5047_vm4, %v5576_v15  ;;  %9634 = vmatpush3.bf16.msra.mxu1 %v13695_v41  ;;  %v14284_v41 = vld [vmem:[%s15731_s3 + $0x68] sm:$0xff]   ;;  %v17285_v15 = vld [vmem:[#allocation216_spill] sm:$0xff]  ;;  %v5488_v7 = vrot.slane %v17287_v19, 1  ;;  %v5550_v61 = vmul.f32 %v14279_v62, %v17288_v48  ;;  %v17291_v44 = vpack.c.bf16 %v17289_v17, %v17290_v16  ;;  %v14317_v16 = vsel %vm1353_vm3, %v5489_v57, %v5490_v37  ;;  %v17298_v17 = vld [vmem:[#allocation106_spill] sm:$0xff] }
 0x3e1   : > { %9635 = vmatprep.subr.bf16.mxu1 %v9845_v33  ;;  %v5487_v26 = vrot.slane %v17285_v15, 1  ;;  %v5577_v40 = vpack.c.bf16 %v5549_v34, %v5548_v49  ;;  %v17292_v34 = vld [vmem:[#allocation183_spill] sm:$0xff] }
 0x3e2   : > { %v5578_v36 = vpack.c.bf16 %v5551_v10, %v5550_v61  ;;  %v14322_v61 = vld [vmem:[%s15731_s3 + $0x78] sm:$0xff]   ;;  %v17296_v10 = vld [vmem:[#allocation182_spill] sm:$0xff]  ;;  %v14335_v35 = vsel %vm1353_vm3, %v5488_v7, %v5489_v57 }
 0x3e3   : > { %v14305_v55 = vsel %vm1353_vm3, %v5487_v26, %v5488_v7  ;;  %v14309_v48 = vsel %vm1353_vm3, %v5486_v12, %v5487_v26  ;;  %v17294_v12 = vld [vmem:[#allocation189_spill] sm:$0xff]  ;;  %v17295_v26 = vld [vmem:[#allocation280_spill] sm:$0xff]  ;;  %v5554_v57 = vmul.f32 %v14335_v35, %v17304_v52  ;;  %v5493_v7 = vrot.slane %v13674_v38, 1 }
 0x3e4   : > { %9636 = vmatpush3.bf16.msra.mxu1 %v9845_v33  ;;  %v17293_v33 = vld [vmem:[#allocation100_spill] sm:$0xff] }
 0x3e5   : > { %9705 = vmatprep.subr.bf16.mxu1 %v14284_v41  ;;  %v5854_v49 = vmul.f32 %v17293_v33, %v17292_v34  ;;  %v17299_v34 = vld [vmem:[#allocation105_spill] sm:$0xff]  ;;  %v17306_v52 = vld [vmem:[#allocation92_spill] sm:$0xff] }
 0x3e6   : > { %9602 = vmatmul.mubr.msk.bf16.vlgmr.msra.gmra.mxu0 %vm5047_vm4, %v5881_v23  ;;  %v5553_v14 = vmul.f32 %v14305_v55, %v17299_v34 }
 0x3e7   : > { %9605 = vmatprep.mubr.msk.bf16.mxu0 %vm5047_vm4, %v17291_v44  ;;  %9670 = vmatpush3.bf16.msra.mxu0 %v13777_v5  ;;  %v5857_v5 = vmul.f32 %v17295_v26, %v17294_v12  ;;  %v5552_v44 = vmul.f32 %v14309_v48, %v17298_v17  ;;  %v5555_v12 = vmul.f32 %v14317_v16, %v17302_v28  ;;  %v17303_v17 = vld [vmem:[#allocation20_spill] sm:$0xff] }
 0x3e8   : > { %9570 = vmatmul.mubr.msk.bf16.gmra.mxu1 %vm5047_vm4, %v5577_v40  ;;  %9671 = vmatprep.subr.bf16.mxu0 %v9847_v24  ;;  %v17297_v40 = vld [vmem:[#allocation138_spill] sm:$0xff]  ;;  %v5492_v34 = vrot.slane %v17303_v17, 1  ;;  %v17320_v17 = vld [vmem:[#allocation108_spill] sm:$0xff] }
 0x3e9   : > { %9573 = vmatprep.mubr.msk.bf16.mxu1 %vm5047_vm4, %v5578_v36  ;;  %v5855_v23 = vmul.f32 %v17297_v40, %v17296_v10  ;;  %v17301_v36 = vld [vmem:[#allocation121_spill] sm:$0xff]  ;;  %v5494_v10 = vrot.slane %v13794_v21, 1  ;;  %v5580_v28 = vpack.c.bf16 %v5555_v12, %v5554_v57  ;;  %v17310_v12 = vld [vmem:[#allocation11_spill] sm:$0xff] }
 0x3ea   : > { %v5856_v3 = vmul.f32 %v17301_v36, %v17300_v4  ;;  %v5579_v4 = vpack.c.bf16 %v5553_v14, %v5552_v44  ;;  %v17308_v14 = vld [vmem:[#allocation350_spill] sm:$0xff]  ;;  %v17309_v44 = vld [vmem:[#allocation192_spill] sm:$0xff]  ;;  %v17315_v40 = vld [vmem:[#allocation199_spill] sm:$0xff] }
 0x3eb   : > { %9672 = vmatpush3.bf16.msra.mxu0 %v9847_v24  ;;  %v5883_v58 = vpack.c.bf16 %v5855_v23, %v5854_v49  ;;  %v14352_v24 = vsel %vm1353_vm3, %v5491_v18, %v5492_v34  ;;  %v14356_v49 = vsel %vm1353_vm3, %v5490_v37, %v5491_v18  ;;  %v5859_v57 = vmul.f32 %v17310_v12, %v17309_v44  ;;  %v17311_v36 = vld [vmem:[#allocation118_spill] sm:$0xff]  ;;  %v17312_v37 = vld [vmem:[#allocation117_spill] sm:$0xff]  ;;  %v17318_v12 = vld [vmem:[#allocation107_spill] sm:$0xff] }
 0x3ec   : > { %9741 = vmatprep.subr.bf16.mxu0 %v14322_v61  ;;  %v5884_v51 = vpack.c.bf16 %v5857_v5, %v5856_v3  ;;  %v17305_v3 = vld [vmem:[#allocation193_spill] sm:$0xff]  ;;  %v5556_v18 = vmul.f32 %v14356_v49, %v17311_v36  ;;  %v5498_v44 = vrot.slane %v13902_v59, 1  ;;  %v5496_v36 = vrot.slane %v17318_v12, 1  ;;  %v17319_v21 = vld [vmem:[#allocation127_spill] sm:$0xff]  ;;  %v17329_v59 = vld [vmem:[#allocation212_spill] sm:$0xff] }
 0x3ed   : > { %v5858_v5 = vmul.f32 %v17306_v52, %v17305_v3  ;;  %v14376_v3 = vsel %vm1353_vm3, %v5492_v34, %v5493_v7  ;;  %v17314_v52 = vld [vmem:[#allocation52_spill] sm:$0xff]  ;;  %v5497_v34 = vrot.slane %v17320_v17, 1 }
 0x3ee   : > { %9606 = vmatmul.mubr.msk.bf16.gmra.mxu0 %vm5047_vm4, %v5883_v58  ;;  %v14363_v58 = vsel %vm1353_vm3, %v5493_v7, %v5494_v10  ;;  %17313 = vst [vmem:[#allocation239_spill] sm:$0xff] %v14376_v3  ;;  %v5495_v26 = vrot.slane %v17314_v52, 1  ;;  %v17331_v17 = vld [vmem:[#allocation140_spill] sm:$0xff] }
 0x3ef   : > { %9609 = vmatprep.mubr.msk.bf16.mxu0 %vm5047_vm4, %v5884_v51  ;;  %v17307_v51 = vld [vmem:[#allocation198_spill] sm:$0xff] }
 0x3f0   : > { %9574 = vmatmul.mubr.msk.bf16.gmra.mxu1 %vm5047_vm4, %v5579_v4  ;;  %v5861_v23 = vmul.f32 %v17308_v14, %v17307_v51  ;;  %v5557_v4 = vmul.f32 %v14352_v24, %v17312_v37  ;;  %v5559_v51 = vmul.f32 %v14363_v58, %v17317_v13  ;;  %v5885_v14 = vpack.c.bf16 %v5859_v57, %v5858_v5  ;;  %v17324_v57 = vld [vmem:[#allocation191_spill] sm:$0xff] }
 0x3f1   : > { %9577 = vmatprep.mubr.msk.bf16.mxu1 %vm5047_vm4, %v5580_v28  ;;  %v17316_v28 = vld [vmem:[#allocation326_spill] sm:$0xff]  ;;  %v5558_v37 = vmul.f32 %v14376_v3, %v17319_v21  ;;  %v14392_v13 = vsel %vm1353_vm3, %v5495_v26, %v5496_v36  ;;  %v14396_v5 = vsel %vm1353_vm3, %v5494_v10, %v5495_v26  ;;  %v17322_v21 = vld [vmem:[#allocation33_spill] sm:$0xff] }
 0x3f2   : > { %v5860_v33 = vmul.f32 %v17316_v28, %v17315_v40  ;;  %v5581_v7 = vpack.c.bf16 %v5557_v4, %v5556_v18  ;;  %v17325_v4 = vld [vmem:[#allocation201_spill] sm:$0xff]  ;;  %v17327_v28 = vld [vmem:[#allocation131_spill] sm:$0xff]  ;;  %v17328_v10 = vld [vmem:[#allocation130_spill] sm:$0xff] }
 0x3f3   : > { %v5582_v40 = vpack.c.bf16 %v5559_v51, %v5558_v37  ;;  %v17326_v51 = vld [vmem:[#allocation349_spill] sm:$0xff]  ;;  %v5560_v26 = vmul.f32 %v14396_v5, %v17327_v28 }
 0x3f4   : > { %v5886_v60 = vpack.c.bf16 %v5861_v23, %v5860_v33  ;;  %v17321_v33 = vld [vmem:[#allocation202_spill] sm:$0xff]  ;;  %v5863_v37 = vmul.f32 %v17326_v51, %v17325_v4  ;;  %v5500_v4 = vrot.slane %v13930_v47, 1  ;;  %v17332_v28 = vld [vmem:[#allocation141_spill] sm:$0xff] }
 0x3f5   : > { %v5862_v23 = vmul.f32 %v17322_v21, %v17321_v33  ;;  %v14416_v33 = vsel %vm1353_vm3, %v5496_v36, %v5497_v34  ;;  %v5499_v21 = vrot.slane %v13906_v22, 1 }
 0x3f6   : > { %9610 = vmatmul.mubr.msk.bf16.gmra.mxu0 %vm5047_vm4, %v5885_v14  ;;  %v14403_v14 = vsel %vm1353_vm3, %v5497_v34, %v5498_v44  ;;  %v5562_v3 = vmul.f32 %v14416_v33, %v17332_v28  ;;  %v17340_v28 = vld [vmem:[#allocation144_spill] sm:$0xff] }
 0x3f7   : > { %9613 = vmatprep.mubr.msk.bf16.mxu0 %vm5047_vm4, %v5886_v60  ;;  %v17323_v60 = vld [vmem:[#allocation210_spill] sm:$0xff] }
 0x3f8   : > { %9578 = vmatmul.mubr.msk.bf16.gmra.mxu1 %vm5047_vm4, %v5581_v7  ;;  %v5865_v18 = vmul.f32 %v17324_v57, %v17323_v60  ;;  %v5561_v7 = vmul.f32 %v14392_v13, %v17328_v10  ;;  %v5563_v60 = vmul.f32 %v14403_v14, %v17331_v17  ;;  %v5887_v57 = vpack.c.bf16 %v5863_v37, %v5862_v23  ;;  %v17334_v23 = vld [vmem:[#allocation68_spill] sm:$0xff] }
 0x3f9   : > { %9581 = vmatprep.mubr.msk.bf16.mxu1 %vm5047_vm4, %v5582_v40  ;;  %v17330_v40 = vld [vmem:[#allocation4_spill] sm:$0xff]  ;;  %v5501_v10 = vrot.slane %v13904_v20, 1  ;;  %v14435_v17 = vsel %vm1353_vm3, %v5498_v44, %v5499_v21  ;;  %v17335_v37 = vrot.slane %v13461_v6, 1 }
 0x3fa   : > { %v5864_v12 = vmul.f32 %v17330_v40, %v17329_v59  ;;  %v5583_v36 = vpack.c.bf16 %v5561_v7, %v5560_v26  ;;  %v5584_v34 = vpack.c.bf16 %v5563_v60, %v5562_v3  ;;  %v14431_v59 = vsel %vm1353_vm3, %v5499_v21, %v5500_v4  ;;  %v17336_v3 = vld [vmem:[#allocation222_spill] sm:$0xff]  ;;  %v17338_v7 = vld [vmem:[#allocation9_spill] sm:$0xff] }
 0x3fb   : > { %v17337_v26 = vld [vmem:[#allocation214_spill] sm:$0xff]  ;;  %v17339_v21 = vld [vmem:[#allocation145_spill] sm:$0xff]  ;;  %v14457_v6 = vsel %vm1353_vm3, %v5500_v4, %v5501_v10 }
 0x3fc   : > { %v5888_v51 = vpack.c.bf16 %v5865_v18, %v5864_v12  ;;  %v17333_v12 = vld [vmem:[#allocation215_spill] sm:$0xff]  ;;  %v5867_v44 = vmul.f32 %v17338_v7, %v17337_v26  ;;  %v5564_v60 = vmul.f32 %v14435_v17, %v17339_v21  ;;  %17341 = vst [vmem:[#allocation246_spill] sm:$0xff] %v14457_v6  ;;  %v17345_v4 = vld [vmem:[#allocation225_spill] sm:$0xff] }
 0x3fd   : > { %v5866_v18 = vmul.f32 %v17334_v23, %v17333_v12  ;;  %v17342_v12 = vld [vmem:[#allocation223_spill] sm:$0xff]  ;;  %v17344_v23 = vld [vmem:[#allocation153_spill] sm:$0xff] }
 0x3fe   : > { %9614 = vmatmul.mubr.msk.bf16.gmra.mxu0 %vm5047_vm4, %v5887_v57  ;;  %v14444_v57 = vsel %vm1353_vm3, %v5501_v10, %v17335_v37  ;;  %v5868_v37 = vmul.f32 %v14004_v11, %v17342_v12  ;;  %v5566_v26 = vmul.f32 %v14457_v6, %v17344_v23  ;;  %v5870_v10 = vmul.f32 %v14012_v43, %v17345_v4  ;;  %v17346_v11 = vld [vmem:[#allocation232_spill] sm:$0xff]  ;;  %v17348_v23 = vld [vmem:[#allocation233_spill] sm:$0xff] }
 0x3ff   : > { %9617 = vmatprep.mubr.msk.bf16.mxu0 %vm5047_vm4, %v5888_v51  ;;  %v5869_v51 = vmul.f32 %v14000_v54, %v17336_v3  ;;  %v5889_v54 = vpack.c.bf16 %v5867_v44, %v5866_v18  ;;  %v5873_v18 = vmul.f32 %v14026_v63, %v17346_v11  ;;  %v5872_v12 = vmul.f32 %v14030_v1, %v17348_v23  ;;  %v17356_v1 = vld [vmem:[#allocation176_spill] sm:$0xff]  ;;  %v17361_v11 = vld [vmem:[#allocation25_spill] sm:$0xff]  ;;  %v17364_v23 = vld [vmem:[#allocation323_spill] sm:$0xff] }
 0x400   : > { %9582 = vmatmul.mubr.msk.bf16.gmra.mxu1 %vm5047_vm4, %v5583_v36  ;;  %v5565_v36 = vmul.f32 %v14431_v59, %v17340_v28 }
 0x401   : > { %9585 = vmatprep.mubr.msk.bf16.mxu1 %vm5047_vm4, %v5584_v34  ;;  %v17343_v34 = vld [vmem:[#allocation152_spill] sm:$0xff]  ;;  %v5890_v3 = vpack.c.bf16 %v5869_v51, %v5868_v37  ;;  %v17350_v37 = vld [vmem:[#allocation330_spill] sm:$0xff] }
 0x402   : > { %v5567_v40 = vmul.f32 %v14444_v57, %v17343_v34  ;;  %v5585_v21 = vpack.c.bf16 %v5565_v36, %v5564_v60  ;;  %v17347_v51 = vld [vmem:[#allocation224_spill] sm:$0xff]  ;;  %v5892_v36 = vpack.c.bf16 %v5873_v18, %v5872_v12  ;;  %v17352_v34 = vld [vmem:[#allocation346_spill] sm:$0xff] }
 0x403   : > { %v5871_v44 = vmul.f32 %v14008_v30, %v17347_v51  ;;  %v17355_v30 = vld [vmem:[#allocation175_spill] sm:$0xff] }
 0x404   : > { %v5586_v28 = vpack.c.bf16 %v5567_v40, %v5566_v26  ;;  %v17349_v40 = vld [vmem:[#allocation73_spill] sm:$0xff]  ;;  %v6154_v26 = vmul.f32 %v17254_v25, %v17356_v1 }
 0x405   : > { %v5891_v60 = vpack.c.bf16 %v5871_v44, %v5870_v10  ;;  %v17351_v43 = vpack.c.bf16 %v17349_v40, %v17350_v37  ;;  %v17360_v10 = vld [vmem:[#allocation226_spill] sm:$0xff]  ;;  %v17363_v44 = vld [vmem:[#allocation345_spill] sm:$0xff] }
 0x406   : > { %9618 = vmatmul.mubr.msk.bf16.gmra.mxu0 %vm5047_vm4, %v5889_v54  ;;  %v17353_v54 = vld [vmem:[#allocation28_spill] sm:$0xff]  ;;  %v17362_v18 = vpack.c.bf16 %v17360_v10, %v17361_v11  ;;  %v17365_v12 = vpack.c.bf16 %v17363_v44, %v17364_v23  ;;  %v17367_v40 = vld [vmem:[#allocation250_spill] sm:$0xff]  ;;  %v17376_v10 = vld [vmem:[#allocation185_spill] sm:$0xff] }
 0x407   : > { %9621 = vmatprep.mubr.msk.bf16.mxu0 %vm5047_vm4, %v5890_v3  ;;  %v17354_v63 = vpack.c.bf16 %v17352_v34, %v17353_v54  ;;  %v6155_v3 = vmul.f32 %v17249_v50, %v17355_v30  ;;  %v6461_v37 = vmul.f32 %v14221_v2, %v17367_v40  ;;  %v17368_v34 = vld [vmem:[#allocation24_spill] sm:$0xff]  ;;  %v17369_v54 = vld [vmem:[#allocation98_spill] sm:$0xff] }
 0x408   : > { %9586 = vmatmul.mubr.msk.bf16.gmra.mxu1 %vm5047_vm4, %v5585_v21  ;;  %v17357_v21 = vld [vmem:[#allocation164_spill] sm:$0xff]  ;;  %v9849_v30 = vld [vmem:[%s15731_s3 + $0x60] sm:$0xff]  }
 0x409   : > { %9589 = vmatprep.mubr.msk.bf16.mxu1 %vm5047_vm4, %v5586_v28  ;;  %v17358_v28 = vld [vmem:[#allocation17_spill] sm:$0xff]  ;;  %v6186_v51 = vpack.c.bf16 %v6155_v3, %v6154_v26  ;;  %v17371_v3 = vld [vmem:[#allocation252_spill] sm:$0xff]  ;;  %v17379_v44 = vld [vmem:[#allocation258_spill] sm:$0xff] }
 0x40a   : > { %v17359_v4 = vpack.c.bf16 %v17357_v21, %v17358_v28  ;;  %v6463_v1 = vmul.f32 %v17268_v56, %v17371_v3  ;;  %v17372_v26 = vld [vmem:[#allocation241_spill] sm:$0xff]  ;;  %v17373_v21 = vld [vmem:[#allocation236_spill] sm:$0xff]  ;;  %v6465_v23 = vmul.f32 %v17282_v45, %v17379_v44  ;;  %v17384_v3 = vld [vmem:[#allocation195_spill] sm:$0xff] }
 0x40b   : > { %v17374_v28 = vpack.c.bf16 %v17372_v26, %v17373_v21  ;;  %v6162_v26 = vmul.f32 %v17269_v46, %v17384_v3  ;;  %v17393_v3 = vld [vmem:[#allocation104_spill] sm:$0xff]  ;;  %v17472_v2 = vld [vmem:[#allocation338_spill] sm:$0xff] }
 0x40e   : > { %9622 = vmatmul.mubr.msk.bf16.gmra.mxu0 %vm5047_vm4, %v5891_v60  ;;  %v17366_v60 = vld [vmem:[#allocation251_spill] sm:$0xff] }
 0x40f   : > { %9625 = vmatprep.mubr.msk.bf16.mxu0 %vm5047_vm4, %v5892_v36  ;;  %v6460_v36 = vmul.f32 %v14227_v27, %v17366_v60 }
 0x410   : > { %9590 = vmatmul.mubr.msk.bf16.gmra.mxu1 %vm5047_vm4, %v17351_v43 }
 0x411   : > { %9593 = vmatprep.mubr.msk.bf16.mxu1 %vm5047_vm4, %v17354_v63  ;;  %v6492_v43 = vpack.c.bf16 %v6461_v37, %v6460_v36  ;;  %v17370_v63 = vpack.c.bf16 %v17368_v34, %v17369_v54  ;;  %v17381_v36 = vld [vmem:[#allocation187_spill] sm:$0xff]  ;;  %v17383_v54 = vld [vmem:[#allocation188_spill] sm:$0xff] }
 0x412   : > { %v6161_v40 = vmul.f32 %v17272_v8, %v17381_v36  ;;  %v14538_v37 = vld [vmem:[%s15731_s3 + $0x88] sm:$0xff]   ;;  %v6160_v45 = vmul.f32 %v17283_v53, %v17383_v54 }
 0x414   : > { %v6189_v21 = vpack.c.bf16 %v6161_v40, %v6160_v45  ;;  %v17391_v40 = vld [vmem:[#allocation197_spill] sm:$0xff] }
 0x416   : > { %9626 = vmatmul.mubr.msk.bf16.gmra.mxu0 %vm5047_vm4, %v17359_v4  ;;  %v17375_v4 = vld [vmem:[#allocation184_spill] sm:$0xff] }
 0x417   : > { %9629 = vmatprep.mubr.msk.bf16.mxu0 %vm5047_vm4, %v17362_v18  ;;  %v17377_v11 = vpack.c.bf16 %v17375_v4, %v17376_v10  ;;  %v17378_v18 = vld [vmem:[#allocation259_spill] sm:$0xff] }
 0x418   : > { %9594 = vmatmul.mubr.msk.bf16.gmra.mxu1 %vm5047_vm4, %v17365_v12  ;;  %v17380_v12 = vld [vmem:[#allocation87_spill] sm:$0xff] }
 0x419   : > { %9637 = vmatprep.mubr.msk.bf16.mxu1 %vm5047_vm4, %v6186_v51  ;;  %v6464_v51 = vmul.f32 %v17280_v42, %v17378_v18  ;;  %v6462_v60 = vmul.f32 %v17271_v39, %v17380_v12  ;;  %v17386_v10 = vld [vmem:[#allocation103_spill] sm:$0xff] }
 0x41a   : > { %v17390_v12 = vld [vmem:[#allocation203_spill] sm:$0xff] }
 0x41b   : > { %v6493_v34 = vpack.c.bf16 %v6463_v1, %v6462_v60  ;;  %v6167_v60 = vmul.f32 %v13731_v29, %v17390_v12 }
 0x41e   : > { %9630 = vmatmul.mubr.msk.bf16.gmra.mxu0 %vm5047_vm4, %v17370_v63  ;;  %v6494_v63 = vpack.c.bf16 %v6465_v23, %v6464_v51  ;;  %v17388_v51 = vld [vmem:[#allocation99_spill] sm:$0xff]  ;;  %v17389_v23 = vld [vmem:[#allocation196_spill] sm:$0xff] }
 0x41f   : > { %9673 = vmatprep.mubr.msk.bf16.mxu0 %vm5047_vm4, %v6492_v43  ;;  %v17382_v43 = vld [vmem:[#allocation194_spill] sm:$0xff]  ;;  %v6466_v44 = vmul.f32 %v14279_v62, %v17388_v51 }
 0x420   : > { %9638 = vmatmul.mubr.msk.bf16.vlgmr.msra.gmra.mxu1 %vm5047_vm4, %v17374_v28  ;;  %v6163_v42 = vmul.f32 %v17285_v15, %v17382_v43  ;;  %v17385_v28 = vld [vmem:[#allocation260_spill] sm:$0xff]  ;;  %v6164_v43 = vmul.f32 %v17287_v19, %v17391_v40  ;;  %v17402_v40 = vld [vmem:[#allocation97_spill] sm:$0xff] }
 0x421   : > { %9641 = vmatprep.mubr.msk.bf16.mxu1 %vm5047_vm4, %v17377_v11  ;;  %9706 = vmatpush3.bf16.msra.mxu1 %v14284_v41  ;;  %v9851_v41 = vld [vmem:[%s15731_s3 + $0x70] sm:$0xff]   ;;  %v6467_v4 = vmul.f32 %v14265_v9, %v17385_v28  ;;  %v17387_v11 = vld [vmem:[#allocation266_spill] sm:$0xff] }
 0x422   : > { %9707 = vmatprep.subr.bf16.mxu1 %v9849_v30  ;;  %v6190_v1 = vpack.c.bf16 %v6163_v42, %v6162_v26  ;;  %v6469_v18 = vmul.f32 %v14305_v55, %v17387_v11  ;;  %v6471_v26 = vmul.f32 %v14317_v16, %v17393_v3 }
 0x423   : > { %v6495_v36 = vpack.c.bf16 %v6467_v4, %v6466_v44  ;;  %v17396_v4 = vld [vmem:[#allocation111_spill] sm:$0xff] }
 0x425   : > { %9708 = vmatpush3.bf16.msra.mxu1 %v9849_v30  ;;  %v6468_v30 = vmul.f32 %v14309_v48, %v17386_v10  ;;  %v6470_v10 = vmul.f32 %v14335_v35, %v17396_v4  ;;  %v17408_v4 = vld [vmem:[#allocation219_spill] sm:$0xff] }
 0x426   : > { %9674 = vmatmul.mubr.msk.bf16.vlgmr.msra.gmra.mxu0 %vm5047_vm4, %v6493_v34  ;;  %9777 = vmatprep.subr.bf16.mxu1 %v14538_v37  ;;  %v17392_v34 = vld [vmem:[#allocation204_spill] sm:$0xff] }
 0x427   : > { %9677 = vmatprep.mubr.msk.bf16.mxu0 %vm5047_vm4, %v6494_v63  ;;  %9742 = vmatpush3.bf16.msra.mxu0 %v14322_v61  ;;  %v6165_v61 = vmul.f32 %v17138_v32, %v17389_v23  ;;  %v6496_v42 = vpack.c.bf16 %v6469_v18, %v6468_v30  ;;  %v6166_v54 = vmul.f32 %v13484_v31, %v17392_v34  ;;  %v17397_v30 = vld [vmem:[#allocation207_spill] sm:$0xff]  ;;  %v17398_v18 = vld [vmem:[#allocation217_spill] sm:$0xff]  ;;  %v17399_v23 = vld [vmem:[#allocation208_spill] sm:$0xff] }
 0x428   : > { %9642 = vmatmul.mubr.msk.bf16.gmra.mxu1 %vm5047_vm4, %v6189_v21  ;;  %9743 = vmatprep.subr.bf16.mxu0 %v9851_v41  ;;  %v6169_v11 = vmul.f32 %v13674_v38, %v17397_v30  ;;  %v6171_v51 = vmul.f32 %v17314_v52, %v17398_v18  ;;  %v6497_v44 = vpack.c.bf16 %v6471_v26, %v6470_v10  ;;  %v17405_v26 = vld [vmem:[#allocation278_spill] sm:$0xff]  ;;  %v17409_v10 = vld [vmem:[#allocation108_spill] sm:$0xff] }
 0x429   : > { %9645 = vmatprep.mubr.msk.bf16.mxu1 %vm5047_vm4, %v6190_v1  ;;  %v6191_v45 = vpack.c.bf16 %v6165_v61, %v6164_v43  ;;  %v6192_v63 = vpack.c.bf16 %v6167_v60, %v6166_v54  ;;  %v17395_v1 = vld [vmem:[#allocation272_spill] sm:$0xff]  ;;  %v6173_v30 = vmul.f32 %v17409_v10, %v17408_v4 }
 0x42a   : > { %v6473_v28 = vmul.f32 %v14352_v24, %v17395_v1  ;;  %v17400_v61 = vld [vmem:[#allocation20_spill] sm:$0xff]  ;;  %v17407_v1 = vld [vmem:[#allocation239_spill] sm:$0xff] }
 0x42b   : > { %9744 = vmatpush3.bf16.msra.mxu0 %v9851_v41  ;;  %v17394_v41 = vld [vmem:[#allocation115_spill] sm:$0xff]  ;;  %v6168_v12 = vmul.f32 %v17400_v61, %v17399_v23  ;;  %v17403_v54 = vld [vmem:[#allocation116_spill] sm:$0xff] }
 0x42c   : > { %v6472_v21 = vmul.f32 %v14356_v49, %v17394_v41  ;;  %v6477_v41 = vmul.f32 %v14392_v13, %v17405_v26  ;;  %v17412_v23 = vld [vmem:[#allocation107_spill] sm:$0xff] }
 0x42e   : > { %9678 = vmatmul.mubr.msk.bf16.gmra.mxu0 %vm5047_vm4, %v6495_v36  ;;  %v6498_v60 = vpack.c.bf16 %v6473_v28, %v6472_v21  ;;  %v17401_v36 = vld [vmem:[#allocation218_spill] sm:$0xff]  ;;  %v17406_v21 = vld [vmem:[#allocation124_spill] sm:$0xff] }
 0x42f   : > { %9681 = vmatprep.mubr.msk.bf16.mxu0 %vm5047_vm4, %v6496_v42  ;;  %v6170_v43 = vmul.f32 %v17402_v40, %v17401_v36  ;;  %v6193_v42 = vpack.c.bf16 %v6169_v11, %v6168_v12  ;;  %v6474_v28 = vmul.f32 %v17407_v1, %v17406_v21  ;;  %v17410_v11 = vld [vmem:[#allocation227_spill] sm:$0xff]  ;;  %v17413_v36 = vld [vmem:[#allocation228_spill] sm:$0xff] }
 0x430   : > { %9646 = vmatmul.mubr.msk.bf16.gmra.mxu1 %vm5047_vm4, %v6191_v45  ;;  %v6475_v45 = vmul.f32 %v14363_v58, %v17403_v54  ;;  %v6175_v18 = vmul.f32 %v13906_v22, %v17410_v11 }
 0x431   : > { %9649 = vmatprep.mubr.msk.bf16.mxu1 %vm5047_vm4, %v6192_v63  ;;  %v6194_v34 = vpack.c.bf16 %v6171_v51, %v6170_v43  ;;  %v17404_v63 = vld [vmem:[#allocation206_spill] sm:$0xff] }
 0x432   : > { %v6476_v3 = vmul.f32 %v14396_v5, %v17404_v63  ;;  %v6499_v51 = vpack.c.bf16 %v6475_v45, %v6474_v28  ;;  %v17414_v43 = vld [vmem:[#allocation234_spill] sm:$0xff]  ;;  %v17415_v63 = vld [vmem:[#allocation209_spill] sm:$0xff] }
 0x433   : > { %v6479_v26 = vmul.f32 %v14403_v14, %v17415_v63  ;;  %v17416_v45 = vld [vmem:[#allocation142_spill] sm:$0xff]  ;;  %v17418_v28 = vld [vmem:[#allocation213_spill] sm:$0xff] }
 0x434   : > { %v6480_v21 = vmul.f32 %v14435_v17, %v17416_v45  ;;  %v6478_v4 = vmul.f32 %v14416_v33, %v17418_v28 }
 0x436   : > { %9682 = vmatmul.mubr.msk.bf16.gmra.mxu0 %vm5047_vm4, %v6497_v44  ;;  %v17411_v44 = vld [vmem:[#allocation220_spill] sm:$0xff] }
 0x437   : > { %9685 = vmatprep.mubr.msk.bf16.mxu0 %vm5047_vm4, %v6498_v60  ;;  %v6172_v12 = vmul.f32 %v17412_v23, %v17411_v44  ;;  %v6500_v60 = vpack.c.bf16 %v6477_v41, %v6476_v3  ;;  %v17417_v3 = vld [vmem:[#allocation281_spill] sm:$0xff] }
 0x438   : > { %9650 = vmatmul.mubr.msk.bf16.gmra.mxu1 %vm5047_vm4, %v6193_v42  ;;  %v6174_v42 = vmul.f32 %v17414_v43, %v17413_v36  ;;  %v6481_v41 = vmul.f32 %v14431_v59, %v17417_v3  ;;  %v17421_v36 = vld [vmem:[#allocation143_spill] sm:$0xff] }
 0x439   : > { %9653 = vmatprep.mubr.msk.bf16.mxu1 %vm5047_vm4, %v6194_v34  ;;  %v6195_v34 = vpack.c.bf16 %v6173_v30, %v6172_v12  ;;  %v17419_v30 = vld [vmem:[#allocation229_spill] sm:$0xff] }
 0x43a   : > { %v6196_v54 = vpack.c.bf16 %v6175_v18, %v6174_v42  ;;  %v6177_v11 = vmul.f32 %v13904_v20, %v17419_v30  ;;  %v6501_v18 = vpack.c.bf16 %v6479_v26, %v6478_v4  ;;  %v6502_v12 = vpack.c.bf16 %v6481_v41, %v6480_v21  ;;  %v17425_v26 = vld [vmem:[#allocation150_spill] sm:$0xff]  ;;  %v17426_v21 = vld [vmem:[#allocation333_spill] sm:$0xff]  ;;  %v17430_v30 = vld [vmem:[#allocation348_spill] sm:$0xff] }
 0x43b   : > { %v6483_v42 = vmul.f32 %v14444_v57, %v17421_v36  ;;  %v6482_v45 = vmul.f32 %v14457_v6, %v17425_v26  ;;  %v17427_v41 = vld [vmem:[#allocation181_spill] sm:$0xff]  ;;  %v17429_v4 = vld [vmem:[#allocation334_spill] sm:$0xff]  ;;  %v17440_v26 = vld [vmem:[#allocation324_spill] sm:$0xff] }
 0x43c   : > { %v17428_v28 = vpack.c.bf16 %v17426_v21, %v17427_v41  ;;  %v17443_v21 = vld [vmem:[#allocation45_spill] sm:$0xff] }
 0x43d   : > { %v6503_v3 = vpack.c.bf16 %v6483_v42, %v6482_v45  ;;  %v17437_v42 = vld [vmem:[#allocation253_spill] sm:$0xff] }
 0x43e   : > { %9686 = vmatmul.mubr.msk.bf16.gmra.mxu0 %vm5047_vm4, %v6499_v51  ;;  %v17420_v51 = vld [vmem:[#allocation230_spill] sm:$0xff]  ;;  %v17485_v6 = vld [vmem:[#allocation349_spill] sm:$0xff] }
 0x43f   : > { %9689 = vmatprep.mubr.msk.bf16.mxu0 %vm5047_vm4, %v6500_v60  ;;  %v6176_v44 = vmul.f32 %v13930_v47, %v17420_v51  ;;  %v17433_v51 = vld [vmem:[#allocation159_spill] sm:$0xff] }
 0x440   : > { %9654 = vmatmul.mubr.msk.bf16.gmra.mxu1 %vm5047_vm4, %v6195_v34  ;;  %v17422_v34 = vld [vmem:[#allocation53_spill] sm:$0xff] }
 0x441   : > { %9657 = vmatprep.mubr.msk.bf16.mxu1 %vm5047_vm4, %v6196_v54  ;;  %v6197_v60 = vpack.c.bf16 %v6177_v11, %v6176_v44  ;;  %v17423_v54 = vld [vmem:[#allocation151_spill] sm:$0xff]  ;;  %v17431_v11 = vpack.c.bf16 %v17429_v4, %v17430_v30  ;;  %v17445_v4 = vld [vmem:[#allocation286_spill] sm:$0xff]  ;;  %v17446_v30 = vld [vmem:[#allocation325_spill] sm:$0xff] }
 0x442   : > { %v17424_v63 = vpack.c.bf16 %v17422_v34, %v17423_v54  ;;  %v17438_v34 = vld [vmem:[#allocation13_spill] sm:$0xff] }
 0x443   : > { %v6767_v54 = vmul.f32 %v17438_v34, %v17437_v42  ;;  %v17452_v34 = vld [vmem:[#allocation235_spill] sm:$0xff] }
 0x446   : > { %9690 = vmatmul.mubr.msk.bf16.gmra.mxu0 %vm5047_vm4, %v6501_v18  ;;  %v17432_v18 = vld [vmem:[#allocation158_spill] sm:$0xff] }
 0x447   : > { %9693 = vmatprep.mubr.msk.bf16.mxu0 %vm5047_vm4, %v6502_v12  ;;  %v17434_v44 = vpack.c.bf16 %v17432_v18, %v17433_v51  ;;  %v17435_v12 = vld [vmem:[#allocation254_spill] sm:$0xff]  ;;  %v17449_v51 = vld [vmem:[#allocation100_spill] sm:$0xff] }
 0x448   : > { %9658 = vmatmul.mubr.msk.bf16.gmra.mxu1 %vm5047_vm4, %v6197_v60  ;;  %v17436_v60 = vld [vmem:[#allocation211_spill] sm:$0xff]  ;;  %v17448_v18 = vld [vmem:[#allocation262_spill] sm:$0xff] }
 0x449   : > { %9661 = vmatprep.mubr.msk.bf16.mxu1 %vm5047_vm4, %v17424_v63  ;;  %v6766_v36 = vmul.f32 %v17436_v60, %v17435_v12  ;;  %v17439_v63 = vld [vmem:[#allocation231_spill] sm:$0xff]  ;;  %v17450_v12 = vld [vmem:[#allocation261_spill] sm:$0xff]  ;;  %v17451_v60 = vld [vmem:[#allocation138_spill] sm:$0xff] }
 0x44a   : > { %v17441_v45 = vpack.c.bf16 %v17439_v63, %v17440_v26  ;;  %v6771_v42 = vmul.f32 %v17451_v60, %v17450_v12  ;;  %v17453_v63 = vld [vmem:[#allocation157_spill] sm:$0xff]  ;;  %v17462_v12 = vld [vmem:[#allocation263_spill] sm:$0xff]  ;;  %v17463_v60 = vld [vmem:[#allocation280_spill] sm:$0xff] }
 0x44b   : > { %v17454_v26 = vpack.c.bf16 %v17452_v34, %v17453_v63  ;;  %v6773_v34 = vmul.f32 %v17463_v60, %v17462_v12  ;;  %v17464_v63 = vld [vmem:[#allocation18_spill] sm:$0xff]  ;;  %v17473_v12 = vpack.c.bf16 %v17471_v0, %v17472_v2  ;;  %v17475_v0 = vld [vmem:[#allocation303_spill] sm:$0xff] }
 0x44c   : > { %v7081_v2 = vmul.f32 %v17138_v32, %v17475_v0  ;;  %v17482_v32 = vld [vmem:[#allocation270_spill] sm:$0xff] }
 0x44e   : > { %9694 = vmatmul.mubr.msk.bf16.gmra.mxu0 %vm5047_vm4, %v6503_v3  ;;  %v17442_v3 = vld [vmem:[#allocation156_spill] sm:$0xff] }
 0x44f   : > { %9697 = vmatprep.mubr.msk.bf16.mxu0 %vm5047_vm4, %v17428_v28  ;;  %v17444_v41 = vpack.c.bf16 %v17442_v3, %v17443_v21  ;;  %v6798_v28 = vpack.c.bf16 %v6767_v54, %v6766_v36  ;;  %v9853_v36 = vld [vmem:[%s15731_s3 + $0x80] sm:$0xff]   ;;  %v17455_v54 = vld [vmem:[#allocation112_spill] sm:$0xff] }
 0x450   : > { %9662 = vmatmul.mubr.msk.bf16.gmra.mxu1 %vm5047_vm4, %v17431_v11  ;;  %v17447_v11 = vpack.c.bf16 %v17445_v4, %v17446_v30  ;;  %v17459_v4 = vld [vmem:[#allocation256_spill] sm:$0xff] }
 0x451   : > { %9665 = vmatprep.mubr.msk.bf16.mxu1 %vm5047_vm4, %v17434_v44  ;;  %v6770_v44 = vmul.f32 %v17449_v51, %v17448_v18 }
 0x453   : > { %v6800_v21 = vpack.c.bf16 %v6771_v42, %v6770_v44  ;;  %v7076_v44 = vmul.f32 %v17283_v53, %v17464_v63  ;;  %v17465_v42 = vld [vmem:[#allocation268_spill] sm:$0xff] }
 0x456   : > { %9698 = vmatmul.mubr.msk.bf16.gmra.mxu0 %vm5047_vm4, %v17441_v45  ;;  %v17456_v45 = vld [vmem:[#allocation221_spill] sm:$0xff] }
 0x457   : > { %9701 = vmatprep.mubr.msk.bf16.mxu0 %vm5047_vm4, %v17444_v41  ;;  %v17457_v3 = vpack.c.bf16 %v17455_v54, %v17456_v45 }
 0x458   : > { %9666 = vmatmul.mubr.msk.bf16.gmra.mxu1 %vm5047_vm4, %v17447_v11  ;;  %v17461_v11 = vld [vmem:[#allocation299_spill] sm:$0xff] }
 0x459   : > { %9709 = vmatprep.mubr.msk.bf16.mxu1 %vm5047_vm4, %v6798_v28  ;;  %v17458_v28 = vld [vmem:[#allocation255_spill] sm:$0xff]  ;;  %v7077_v18 = vmul.f32 %v17272_v8, %v17461_v11 }
 0x45a   : > { %v17460_v30 = vpack.c.bf16 %v17458_v28, %v17459_v4  ;;  %v17468_v28 = vld [vmem:[#allocation121_spill] sm:$0xff]  ;;  %v17470_v8 = vld [vmem:[#allocation11_spill] sm:$0xff] }
 0x45b   : > { %v9495_v41 = vpop.f32.mrf.mxu1  ;;  %v7106_v4 = vpack.c.bf16 %v7077_v18, %v7076_v44  ;;  %v17474_v18 = vld [vmem:[#allocation19_spill] sm:$0xff] }
 0x45d   : > { %v5130_v51 = vpop.f32.mrf.mxu1 }
 0x45e   : > { %9702 = vmatmul.mubr.msk.bf16.gmra.mxu0 %vm5047_vm4, %v17454_v26  ;;  %v17466_v26 = vld [vmem:[#allocation92_spill] sm:$0xff] }
 0x45f   : > { %9745 = vmatprep.mubr.msk.bf16.mxu0 %vm5047_vm4, %v17457_v3  ;;  %v6774_v54 = vmul.f32 %v17466_v26, %v17465_v42  ;;  %v9496_v45 = vpop.f32.mrf.mxu1  ;;  %v17467_v3 = vld [vmem:[#allocation264_spill] sm:$0xff] }
 0x460   : > { %9710 = vmatmul.mubr.msk.bf16.vlgmr.msra.gmra.mxu1 %vm5047_vm4, %v17460_v30  ;;  %v17469_v30 = vld [vmem:[#allocation267_spill] sm:$0xff] }
 0x461   : > { %9713 = vmatprep.mubr.msk.bf16.mxu1 %vm5047_vm4, %v6800_v21  ;;  %9778 = vmatpush3.bf16.msra.mxu1 %v14538_v37  ;;  %v6772_v21 = vmul.f32 %v17468_v28, %v17467_v3  ;;  %v6775_v11 = vmul.f32 %v17470_v8, %v17469_v30  ;;  %v5133_v60 = vpop.f32.mrf.mxu1  ;;  %v17476_v28 = vld [vmem:[#allocation22_spill] sm:$0xff] }
 0x462   : > { %9779 = vmatprep.subr.bf16.mxu1 %v9853_v36  ;;  %v9531_v37 = vpop.f32.mrf.mxu0 }
 0x463   : > { %v6801_v53 = vpack.c.bf16 %v6773_v34, %v6772_v21  ;;  %v14705_v63 = vadd.f32 %v9531_v37, %v9495_v41  ;;  %v6802_v42 = vpack.c.bf16 %v6775_v11, %v6774_v54  ;;  %v7078_v21 = vmul.f32 %v17269_v46, %v17476_v28  ;;  %v17477_v54 = vld [vmem:[#allocation269_spill] sm:$0xff]  ;;  %v17479_v11 = vld [vmem:[#allocation26_spill] sm:$0xff] }
 0x464   : > { %v5351_v26 = vpop.f32.mrf.mxu0  ;;  %v17481_v37 = vld [vmem:[#allocation33_spill] sm:$0xff]  ;;  %v17484_v28 = vld [vmem:[#allocation274_spill] sm:$0xff] }
 0x465   : > { %9780 = vmatpush3.bf16.msra.mxu1 %v9853_v36  ;;  %v9499_v3 = vpop.f32.mrf.mxu1  ;;  %v7079_v36 = vmul.f32 %v17285_v15, %v17474_v18  ;;  %v14711_v44 = vadd.f32 %v5351_v26, %v5130_v51  ;;  %v7080_v15 = vmul.f32 %v17287_v19, %v17479_v11  ;;  %v17480_v51 = vld [vmem:[#allocation275_spill] sm:$0xff]  ;;  %v17483_v18 = vld [vmem:[#allocation326_spill] sm:$0xff] }
 0x466   : > { %9746 = vmatmul.mubr.msk.bf16.vlgmr.msra.gmra.mxu0 %vm5047_vm4, %v17473_v12  ;;  %v9532_v34 = vpop.f32.mrf.mxu0  ;;  %v6778_v12 = vmul.f32 %v17481_v37, %v17480_v51  ;;  %v6776_v0 = vmul.f32 %v17483_v18, %v17482_v32  ;;  %v17488_v37 = vld [vmem:[#allocation30_spill] sm:$0xff] }
 0x467   : > { %9749 = vmatprep.mubr.msk.bf16.mxu0 %vm5047_vm4, %v7106_v4  ;;  %v5146_v41 = vpop.f32.mrf.mxu1  ;;  %v17478_v4 = vld [vmem:[#allocation350_spill] sm:$0xff]  ;;  %v14720_v8 = vadd.f32 %v9532_v34, %v9496_v45  ;;  %v7107_v26 = vpack.c.bf16 %v7079_v36, %v7078_v21  ;;  %v7108_v46 = vpack.c.bf16 %v7081_v2, %v7080_v15 }
 0x468   : > { %9714 = vmatmul.mubr.msk.bf16.gmra.mxu1 %vm5047_vm4, %v6801_v53  ;;  %v6777_v30 = vmul.f32 %v17478_v4, %v17477_v54  ;;  %v5354_v53 = vpop.f32.mrf.mxu0  ;;  %v6779_v54 = vmul.f32 %v17485_v6, %v17484_v28  ;;  %v17487_v6 = vld [vmem:[#allocation307_spill] sm:$0xff] }
 0x469   : > { %9717 = vmatprep.mubr.msk.bf16.mxu1 %vm5047_vm4, %v6802_v42  ;;  %v9500_v42 = vpop.f32.mrf.mxu1  ;;  %v14728_v27 = vadd.f32 %v5354_v53, %v5133_v60  ;;  %v17486_v60 = vld [vmem:[#allocation27_spill] sm:$0xff]  ;;  %v7085_v51 = vmul.f32 %v13674_v38, %v17487_v6  ;;  %v7082_v53 = vmul.f32 %v13484_v31, %v17488_v37  ;;  %v17494_v38 = vld [vmem:[#allocation277_spill] sm:$0xff] }
 0x46a   : > { %v6803_v19 = vpack.c.bf16 %v6777_v30, %v6776_v0  ;;  %v6804_v11 = vpack.c.bf16 %v6779_v54, %v6778_v12  ;;  %v7083_v2 = vmul.f32 %v13731_v29, %v17486_v60  ;;  %v17489_v12 = vld [vmem:[#allocation276_spill] sm:$0xff]  ;;  %v17491_v0 = vld [vmem:[#allocation42_spill] sm:$0xff]  ;;  %v17496_v6 = vld [vmem:[#allocation139_spill] sm:$0xff] }
 0x46b   : > { %v9535_v45 = vpop.f32.mrf.mxu0  ;;  %v5149_v34 = vpop.f32.mrf.mxu1  ;;  %v7084_v29 = vmul.f32 %v17400_v61, %v17491_v0  ;;  %v6783_v37 = vmul.f32 %v17338_v7, %v17496_v6  ;;  %v17498_v7 = vld [vmem:[#allocation129_spill] sm:$0xff] }
 0x46c   : > { %v14733_v4 = vadd.f32 %v9535_v45, %v9499_v3 }
 0x46d   : > { %v5367_v36 = vpop.f32.mrf.mxu0  ;;  %v9503_v21 = vpop.f32.mrf.mxu1  ;;  %v7110_v31 = vpack.c.bf16 %v7085_v51, %v7084_v29  ;;  %v7089_v29 = vmul.f32 %v17409_v10, %v17498_v7 }
 0x46e   : > { %9750 = vmatmul.mubr.msk.bf16.gmra.mxu0 %vm5047_vm4, %v7107_v26  ;;  %v14739_v15 = vadd.f32 %v5367_v36, %v5146_v41  ;;  %v17490_v26 = vld [vmem:[#allocation191_spill] sm:$0xff]  ;;  %v17492_v41 = vld [vmem:[#allocation132_spill] sm:$0xff] }
 0x46f   : > { %9753 = vmatprep.mubr.msk.bf16.mxu0 %vm5047_vm4, %v7108_v46  ;;  %v9536_v30 = vpop.f32.mrf.mxu0  ;;  %v5162_v3 = vpop.f32.mrf.mxu1  ;;  %v6781_v32 = vmul.f32 %v17490_v26, %v17489_v12  ;;  %v17493_v46 = vld [vmem:[#allocation68_spill] sm:$0xff] }
 0x470   : > { %9718 = vmatmul.mubr.msk.bf16.gmra.mxu1 %vm5047_vm4, %v6803_v19  ;;  %v14748_v18 = vadd.f32 %v9536_v30, %v9500_v42  ;;  %v6782_v28 = vmul.f32 %v17493_v46, %v17492_v41  ;;  %v7109_v19 = vpack.c.bf16 %v7083_v2, %v7082_v53  ;;  %v17499_v41 = vld [vmem:[#allocation46_spill] sm:$0xff] }
 0x471   : > { %9721 = vmatprep.mubr.msk.bf16.mxu1 %vm5047_vm4, %v6804_v11  ;;  %v5370_v54 = vpop.f32.mrf.mxu0  ;;  %v9504_v45 = vpop.f32.mrf.mxu1  ;;  %v17495_v11 = vld [vmem:[#allocation4_spill] sm:$0xff]  ;;  %v7086_v46 = vmul.f32 %v17402_v40, %v17499_v41  ;;  %v17509_v41 = vld [vmem:[#allocation63_spill] sm:$0xff] }
 0x472   : > { %v6780_v36 = vmul.f32 %v17495_v11, %v17494_v38  ;;  %v14756_v60 = vadd.f32 %v5370_v54, %v5149_v34  ;;  %v6806_v26 = vpack.c.bf16 %v6783_v37, %v6782_v28  ;;  %v17497_v34 = vld [vmem:[#allocation43_spill] sm:$0xff]  ;;  %v17500_v54 = vld [vmem:[#allocation58_spill] sm:$0xff] }
 0x473   : > { %v5165_v30 = vpop.f32.mrf.mxu1  ;;  %v7087_v51 = vmul.f32 %v17314_v52, %v17497_v34  ;;  %v17501_v37 = vld [vmem:[#allocation166_spill] sm:$0xff] }
 0x474   : > { %v6805_v61 = vpack.c.bf16 %v6781_v32, %v6780_v36  ;;  %v17506_v34 = vld [vmem:[#allocation78_spill] sm:$0xff] }
 0x475   : > { %v9507_v53 = vpop.f32.mrf.mxu1  ;;  %v7111_v52 = vpack.c.bf16 %v7087_v51, %v7086_v46  ;;  %v7090_v46 = vmul.f32 %v17414_v43, %v17509_v41  ;;  %v17518_v41 = vld [vmem:[#allocation70_spill] sm:$0xff] }
 0x476   : > { %v9539_v42 = vpop.f32.mrf.mxu0  ;;  %9754 = vmatmul.mubr.msk.bf16.gmra.mxu0 %vm5047_vm4, %v7109_v19  ;;  %v7088_v19 = vmul.f32 %v17412_v23, %v17500_v54  ;;  %v17504_v23 = vld [vmem:[#allocation59_spill] sm:$0xff] }
 0x477   : > { %v14761_v12 = vadd.f32 %v9539_v42, %v9503_v21  ;;  %9757 = vmatprep.mubr.msk.bf16.mxu0 %vm5047_vm4, %v7110_v31  ;;  %v5178_v21 = vpop.f32.mrf.mxu1  ;;  %v17502_v42 = vld [vmem:[#allocation74_spill] sm:$0xff] }
 0x478   : > { %v5383_v2 = vpop.f32.mrf.mxu0  ;;  %9722 = vmatmul.mubr.msk.bf16.gmra.mxu1 %vm5047_vm4, %v6805_v61  ;;  %v7112_v36 = vpack.c.bf16 %v7089_v29, %v7088_v19  ;;  %v17503_v61 = vpack.c.bf16 %v17501_v37, %v17502_v42  ;;  %v17510_v19 = vld [vmem:[#allocation35_spill] sm:$0xff] }
 0x479   : > { %v14767_v0 = vadd.f32 %v5383_v2, %v5162_v3  ;;  %9725 = vmatprep.mubr.msk.bf16.mxu1 %vm5047_vm4, %v6806_v26  ;;  %v9508_v11 = vpop.f32.mrf.mxu1  ;;  %v17505_v2 = vld [vmem:[#allocation162_spill] sm:$0xff]  ;;  %v17511_v42 = vld [vmem:[#allocation243_spill] sm:$0xff] }
 0x47a   : > { %v9540_v32 = vpop.f32.mrf.mxu0  ;;  %v17507_v51 = vpack.c.bf16 %v17505_v2, %v17506_v34 }
 0x47b   : > { %v14774_v28 = vadd.f32 %v9540_v32, %v9504_v45  ;;  %v5181_v10 = vpop.f32.mrf.mxu1 }
 0x47c   : > { %v5386_v38 = vpop.f32.mrf.mxu0 }
 0x47d   : > { %v14778_v3 = vadd.f32 %v5386_v38, %v5165_v30  ;;  %v7091_v30 = vmul.f32 %v13906_v22, %v17504_v23  ;;  %v7092_v22 = vmul.f32 %v13930_v47, %v17510_v19  ;;  %v17512_v47 = vld [vmem:[#allocation77_spill] sm:$0xff] }
 0x47e   : > { %v9543_v31 = vpop.f32.mrf.mxu0  ;;  %9758 = vmatmul.mubr.msk.bf16.gmra.mxu0 %vm5047_vm4, %v7111_v52  ;;  %v9511_v45 = vpop.f32.mrf.mxu1  ;;  %v17515_v23 = vld [vmem:[#allocation177_spill] sm:$0xff] }
 0x47f   : > { %v14781_v6 = vadd.f32 %v9543_v31, %v9507_v53  ;;  %9761 = vmatprep.mubr.msk.bf16.mxu0 %vm5047_vm4, %v7112_v36  ;;  %v17508_v53 = vld [vmem:[#allocation312_spill] sm:$0xff]  ;;  %v7113_v52 = vpack.c.bf16 %v7091_v30, %v7090_v46 }
 0x480   : > { %v5399_v40 = vpop.f32.mrf.mxu0  ;;  %9726 = vmatmul.mubr.msk.bf16.gmra.mxu1 %vm5047_vm4, %v17503_v61  ;;  %v7093_v7 = vmul.f32 %v13904_v20, %v17508_v53  ;;  %v14798_v32 = vpop.f32.mrf.mxu1  ;;  %v17513_v61 = vpack.c.bf16 %v17511_v42, %v17512_v47  ;;  %v17526_v42 = vld [vmem:[#allocation242_spill] sm:$0xff]  ;;  %v17527_v47 = vld [vmem:[#allocation165_spill] sm:$0xff] }
 0x481   : > { %v14790_v26 = vadd.f32 %v5399_v40, %v5178_v21  ;;  %9729 = vmatprep.mubr.msk.bf16.mxu1 %vm5047_vm4, %v17507_v51 }
 0x482   : > { %v9544_v29 = vpop.f32.mrf.mxu0  ;;  %v9512_v38 = vpop.f32.mrf.mxu1  ;;  %v7114_v31 = vpack.c.bf16 %v7093_v7, %v7092_v22 }
 0x483   : > { %v14802_v54 = vadd.f32 %v9544_v29, %v9508_v11  ;;  %v17517_v29 = vld [vmem:[#allocation69_spill] sm:$0xff] }
 0x484   : > { %v5402_v21 = vpop.f32.mrf.mxu0  ;;  %v14809_v20 = vpop.f32.mrf.mxu1  ;;  %v17519_v46 = vpack.c.bf16 %v17517_v29, %v17518_v41  ;;  %v17534_v29 = vld [vmem:[#allocation343_spill] sm:$0xff] }
 0x485   : > { %v14806_v36 = vadd.f32 %v5402_v21, %v5181_v10  ;;  %v17514_v10 = vld [vmem:[#allocation178_spill] sm:$0xff]  ;;  %v17522_v21 = vld [vmem:[#allocation161_spill] sm:$0xff] }
 0x486   : > { %v9547_v40 = vpop.f32.mrf.mxu0  ;;  %9762 = vmatmul.mubr.msk.bf16.gmra.mxu0 %vm5047_vm4, %v7113_v52  ;;  %v17516_v30 = vpack.c.bf16 %v17514_v10, %v17515_v23  ;;  %v17523_v52 = vld [vmem:[#allocation340_spill] sm:$0xff]  ;;  %v17529_v10 = vld [vmem:[#allocation169_spill] sm:$0xff]  ;;  %v17530_v23 = vld [vmem:[#allocation170_spill] sm:$0xff] }
 0x487   : > { %v14811_v37 = vadd.f32 %v9547_v40, %v9511_v45  ;;  %9765 = vmatprep.mubr.msk.bf16.mxu0 %vm5047_vm4, %v7114_v31  ;;  %v9515_v11 = vpop.f32.mrf.mxu1  ;;  %v17524_v31 = vpack.c.bf16 %v17522_v21, %v17523_v52  ;;  %v17535_v21 = vld [vmem:[#allocation14_spill] sm:$0xff] }
 0x488   : > { %v14814_v43 = vpop.f32.mrf.mxu0  ;;  %9730 = vmatmul.mubr.msk.bf16.gmra.mxu1 %vm5047_vm4, %v17513_v61  ;;  %v17528_v61 = vpack.c.bf16 %v17526_v42, %v17527_v47  ;;  %v7379_v52 = vmul.f32 %v17268_v56, %v17535_v21  ;;  %v17536_v47 = vld [vmem:[#allocation296_spill] sm:$0xff]  ;;  %v17542_v56 = vld [vmem:[#allocation329_spill] sm:$0xff] }
 0x489   : > { %9733 = vmatprep.mubr.msk.bf16.mxu1 %vm5047_vm4, %v17516_v30  ;;  %v14824_v34 = vpop.f32.mrf.mxu1  ;;  %v17531_v30 = vpack.c.bf16 %v17529_v10, %v17530_v23  ;;  %v17538_v10 = vld [vmem:[#allocation15_spill] sm:$0xff] }
 0x48a   : > { %v9548_v2 = vpop.f32.mrf.mxu0  ;;  %v7378_v23 = vmul.f32 %v17271_v39, %v17538_v10  ;;  %v17545_v10 = vld [vmem:[#allocation6_spill] sm:$0xff] }
 0x48b   : > { %v14826_v45 = vadd.f32 %v9548_v2, %v9512_v38  ;;  %v9516_v53 = vpop.f32.mrf.mxu1 }
 0x48c   : > { %v14828_v51 = vpop.f32.mrf.mxu0 }
 0x48d   : > { %v14834_v19 = vpop.f32.mrf.mxu1 }
 0x48e   : > { %v9551_v7 = vpop.f32.mrf.mxu0  ;;  %9766 = vmatmul.mubr.msk.bf16.gmra.mxu0 %vm5047_vm4, %v17519_v46  ;;  %17520 = vst [vmem:[#allocation245_spill] sm:$0xff] %v14834_v19 }
 0x48f   : > { %v14836_v22 = vadd.f32 %v9551_v7, %v9515_v11  ;;  %9769 = vmatprep.mubr.msk.bf16.mxu0 %vm5047_vm4, %v17524_v31  ;;  %v9519_v40 = vpop.f32.mrf.mxu1  ;;  %v17533_v7 = vld [vmem:[#allocation71_spill] sm:$0xff] }
 0x490   : > { %v14842_v38 = vpop.f32.mrf.mxu0  ;;  %9734 = vmatmul.mubr.msk.bf16.gmra.mxu1 %vm5047_vm4, %v17528_v61  ;;  %v6796_v41 = vmul.f32 %v17534_v29, %v17533_v7  ;;  %v17537_v61 = vld [vmem:[#allocation76_spill] sm:$0xff] }
 0x491   : > { %17521 = vst [vmem:[#allocation85_spill] sm:$0xff] %v14836_v22  ;;  %17525 = vst [vmem:[#allocation86_spill] sm:$0xff] %v14842_v38  ;;  %9737 = vmatprep.mubr.msk.bf16.mxu1 %vm5047_vm4, %v17531_v30  ;;  %v14852_v2 = vpop.f32.mrf.mxu1  ;;  %v6797_v19 = vmul.f32 %v17537_v61, %v17536_v47  ;;  %v17539_v22 = vld [vmem:[#allocation67_spill] sm:$0xff]  ;;  %v17543_v29 = vld [vmem:[#allocation244_spill] sm:$0xff]  ;;  %v7410_v47 = vpack.c.bf16 %v7379_v52, %v7378_v23 }
 0x492   : > { %v9552_v11 = vpop.f32.mrf.mxu0  ;;  %17532 = vst [vmem:[#allocation163_spill] sm:$0xff] %v14852_v2  ;;  %v17540_v2 = vld [vmem:[#allocation328_spill] sm:$0xff]  ;;  %v17544_v21 = vpack.c.bf16 %v17542_v56, %v17543_v29 }
 0x493   : > { %v14856_v46 = vadd.f32 %v9552_v11, %v9516_v53  ;;  %v9520_v42 = vpop.f32.mrf.mxu1  ;;  %v17541_v38 = vpack.c.bf16 %v17539_v22, %v17540_v2  ;;  %v6813_v11 = vpack.c.bf16 %v6797_v19, %v6796_v41  ;;  %v7103_v22 = vmul.f32 %v17249_v50, %v17545_v10  ;;  %v17548_v29 = vld [vmem:[#allocation300_spill] sm:$0xff] }
 0x494   : > { %v14860_v31 = vpop.f32.mrf.mxu0  ;;  %v7382_v50 = vmul.f32 %v14279_v62, %v17548_v29 }
 0x495   : > { %v14870_v53 = vpop.f32.mrf.mxu1 }
 0x496   : > { %v9555_v30 = vpop.f32.mrf.mxu0  ;;  %9770 = vmatmul.mubr.msk.bf16.gmra.mxu0 %vm5047_vm4, %v17541_v38 }
 0x497   : > { %v14872_v7 = vadd.f32 %v9555_v30, %v9519_v40  ;;  %9773 = vmatprep.mubr.msk.bf16.mxu0 %vm5047_vm4, %v17544_v21  ;;  %v9523_v39 = vpop.f32.mrf.mxu1  ;;  %v17546_v40 = vld [vmem:[#allocation5_spill] sm:$0xff]  ;;  %v17547_v30 = vld [vmem:[#allocation23_spill] sm:$0xff] }
 0x498   : > { %v14878_v61 = vpop.f32.mrf.mxu0  ;;  %9738 = vmatmul.mubr.msk.bf16.gmra.mxu1 %vm5047_vm4, %v6813_v11  ;;  %v7102_v2 = vmul.f32 %v17254_v25, %v17546_v40  ;;  %v7383_v52 = vmul.f32 %v14265_v9, %v17547_v30  ;;  %v17552_v40 = vld [vmem:[#allocation298_spill] sm:$0xff]  ;;  %v17553_v9 = vld [vmem:[#allocation91_spill] sm:$0xff] }
 0x499   : > { %9781 = vmatprep.mubr.msk.bf16.mxu1 %vm5047_vm4, %v7410_v47  ;;  %v14884_v19 = vpop.f32.mrf.mxu1  ;;  %v17554_v30 = vpack.c.bf16 %v17552_v40, %v17553_v9 }
 0x49a   : > { %v9556_v38 = vpop.f32.mrf.mxu0  ;;  %v7119_v11 = vpack.c.bf16 %v7103_v22, %v7102_v2  ;;  %v7412_v25 = vpack.c.bf16 %v7383_v52, %v7382_v50 }
 0x49b   : > { %v14888_v41 = vadd.f32 %v9556_v38, %v9520_v42  ;;  %v9524_v56 = vpop.f32.mrf.mxu1 }
 0x49c   : > { %v14892_v23 = vpop.f32.mrf.mxu0 }
 0x49d   : > { %v14897_v47 = vpop.f32.mrf.mxu1 }
 0x49e   : > { %v9559_v21 = vpop.f32.mrf.mxu0  ;;  %9774 = vmatmul.mubr.msk.bf16.gmra.mxu0 %vm5047_vm4, %v7119_v11  ;;  %17549 = vst [vmem:[#allocation155_spill] sm:$0xff] %v14897_v47  ;;  %v17555_v11 = vld [vmem:[#allocation302_spill] sm:$0xff]  ;;  %v17557_v47 = vld [vmem:[#allocation31_spill] sm:$0xff] }
 0x49f   : > { %v14899_v10 = vadd.f32 %v9559_v21, %v9523_v39  ;;  %v9567_v38 = vpop.f32.mrf.mxu1  ;;  %v7384_v29 = vmul.f32 %v14309_v48, %v17555_v11  ;;  %v17556_v39 = vld [vmem:[#allocation301_spill] sm:$0xff]  ;;  %v7387_v40 = vmul.f32 %v14317_v16, %v17557_v47 }
 0x4a0   : > { %v14901_v42 = vpop.f32.mrf.mxu0  ;;  %9782 = vmatmul.mubr.msk.bf16.vlgmr.msra.gmra.mxu1 %vm5047_vm4, %v17554_v30  ;;  %v5818_v22 = vadd.f32 %v9567_v38, %v14705_v63  ;;  %v7385_v52 = vmul.f32 %v14305_v55, %v17556_v39  ;;  %v17558_v38 = vld [vmem:[#allocation304_spill] sm:$0xff] }
 0x4a1   : > { %17550 = vst [vmem:[#allocation167_spill] sm:$0xff] %v14899_v10  ;;  %17551 = vst [vmem:[#allocation292_spill] sm:$0xff] %v14901_v42  ;;  %9785 = vmatprep.mubr.msk.bf16.mxu1 %vm5047_vm4, %v7412_v25  ;;  %v5689_v2 = vpop.f32.mrf.mxu1  ;;  %v7386_v30 = vmul.f32 %v14335_v35, %v17558_v38 }
 0x4a2   : > { %v9560_v62 = vpop.f32.mrf.mxu0  ;;  %v5816_v21 = vadd.f32 %v5689_v2, %v14711_v44  ;;  %v7413_v11 = vpack.c.bf16 %v7385_v52, %v7384_v29  ;;  %v17559_v2 = vld [vmem:[#allocation306_spill] sm:$0xff]  ;;  %v17561_v52 = vld [vmem:[#allocation47_spill] sm:$0xff] }
 0x4a3   : > { %v14913_v50 = vadd.f32 %v9560_v62, %v9524_v56  ;;  %v9568_v63 = vpop.f32.mrf.mxu1  ;;  %v7414_v56 = vpack.c.bf16 %v7387_v40, %v7386_v30  ;;  %v7388_v29 = vmul.f32 %v14356_v49, %v17559_v2  ;;  %v17562_v30 = vld [vmem:[#allocation308_spill] sm:$0xff] }
 0x4a4   : > { %v14918_v9 = vpop.f32.mrf.mxu0  ;;  %v5819_v25 = vadd.f32 %v9568_v63, %v14720_v8 }
 0x4a5   : > { %v5692_v48 = vpop.f32.mrf.mxu1 }
 0x4a6   : > { %v9603_v10 = vpop.f32.mrf.mxu0  ;;  %v5817_v55 = vadd.f32 %v5692_v48, %v14728_v27  ;;  %v7390_v48 = vmul.f32 %v17407_v1, %v17562_v30 }
 0x4a7   : > { %v14923_v42 = vadd.f32 %v9603_v10, %v5818_v22  ;;  %v17560_v10 = vld [vmem:[#allocation305_spill] sm:$0xff] }
 0x4a8   : > { %v5995_v44 = vpop.f32.mrf.mxu0  ;;  %v9571_v62 = vpop.f32.mrf.mxu1  ;;  %9786 = vmatmul.mubr.msk.bf16.gmra.mxu1 %vm5047_vm4, %v7413_v11  ;;  %v7389_v22 = vmul.f32 %v14352_v24, %v17560_v10  ;;  %v17565_v10 = vld [vmem:[#allocation64_spill] sm:$0xff] }
 0x4a9   : > { %v14927_v16 = vadd.f32 %v5995_v44, %v5816_v21  ;;  %v5822_v47 = vadd.f32 %v9571_v62, %v14733_v4  ;;  %9789 = vmatprep.mubr.msk.bf16.mxu1 %vm5047_vm4, %v7414_v56  ;;  %v7391_v21 = vmul.f32 %v14363_v58, %v17561_v52 }
 0x4aa   : > { %v9604_v8 = vpop.f32.mrf.mxu0  ;;  %v5705_v35 = vpop.f32.mrf.mxu1  ;;  %v7415_v56 = vpack.c.bf16 %v7389_v22, %v7388_v29  ;;  %v7395_v22 = vmul.f32 %v14403_v14, %v17565_v10 }
 0x4ab   : > { %v14935_v27 = vadd.f32 %v9604_v8, %v5819_v25  ;;  %v5820_v39 = vadd.f32 %v5705_v35, %v14739_v15  ;;  %v7416_v15 = vpack.c.bf16 %v7391_v21, %v7390_v48  ;;  %v17563_v8 = vld [vmem:[#allocation128_spill] sm:$0xff] }
 0x4ac   : > { %v5998_v40 = vpop.f32.mrf.mxu0  ;;  %v9572_v63 = vpop.f32.mrf.mxu1  ;;  %v7392_v35 = vmul.f32 %v14396_v5, %v17563_v8 }
 0x4ad   : > { %v14940_v4 = vadd.f32 %v5998_v40, %v5817_v55  ;;  %v5823_v38 = vadd.f32 %v9572_v63, %v14748_v18  ;;  %v17566_v40 = vld [vmem:[#allocation309_spill] sm:$0xff] }
 0x4ae   : > { %v9607_v49 = vpop.f32.mrf.mxu0  ;;  %v5708_v11 = vpop.f32.mrf.mxu1  ;;  %v7394_v63 = vmul.f32 %v14416_v33, %v17566_v40 }
 0x4af   : > { %v14945_v24 = vadd.f32 %v9607_v49, %v5822_v47  ;;  %v5821_v25 = vadd.f32 %v5708_v11, %v14756_v60  ;;  %v17564_v47 = vld [vmem:[#allocation125_spill] sm:$0xff] }
 0x4b0   : > { %v6011_v44 = vpop.f32.mrf.mxu0  ;;  %v9575_v62 = vpop.f32.mrf.mxu1  ;;  %9790 = vmatmul.mubr.msk.bf16.gmra.mxu1 %vm5047_vm4, %v7415_v56  ;;  %v7393_v2 = vmul.f32 %v14392_v13, %v17564_v47 }
 0x4b1   : > { %v14949_v58 = vadd.f32 %v6011_v44, %v5820_v39  ;;  %v5826_v55 = vadd.f32 %v9575_v62, %v14761_v12  ;;  %9793 = vmatprep.mubr.msk.bf16.mxu1 %vm5047_vm4, %v7416_v15  ;;  %v17568_v44 = vld [vmem:[#allocation310_spill] sm:$0xff] }
 0x4b2   : > { %v9608_v18 = vpop.f32.mrf.mxu0  ;;  %v5721_v1 = vpop.f32.mrf.mxu1  ;;  %v7417_v48 = vpack.c.bf16 %v7393_v2, %v7392_v35  ;;  %v7397_v62 = vmul.f32 %v14431_v59, %v17568_v44  ;;  %v17570_v2 = vld [vmem:[#allocation313_spill] sm:$0xff]  ;;  %v17573_v44 = vld [vmem:[#allocation347_spill] sm:$0xff] }
 0x4b3   : > { %v14957_v60 = vadd.f32 %v9608_v18, %v5823_v38  ;;  %v5824_v29 = vadd.f32 %v5721_v1, %v14767_v0  ;;  %v7418_v0 = vpack.c.bf16 %v7395_v22, %v7394_v63  ;;  %v17569_v18 = vld [vmem:[#allocation39_spill] sm:$0xff] }
 0x4b4   : > { %v6014_v39 = vpop.f32.mrf.mxu0  ;;  %v9576_v52 = vpop.f32.mrf.mxu1  ;;  %v7399_v1 = vmul.f32 %v14444_v57, %v17569_v18  ;;  %v5416_v57 = vadd.f32 %v14814_v43, %v14798_v32 }
 0x4b5   : > { %v14962_v12 = vadd.f32 %v6014_v39, %v5821_v25  ;;  %v5827_v21 = vadd.f32 %v9576_v52, %v14774_v28  ;;  %v17567_v25 = vld [vmem:[#allocation311_spill] sm:$0xff] }
 0x4b6   : > { %v9611_v5 = vpop.f32.mrf.mxu0  ;;  %v5724_v30 = vpop.f32.mrf.mxu1  ;;  %v7396_v15 = vmul.f32 %v14435_v17, %v17567_v25 }
 0x4b7   : > { %v14967_v13 = vadd.f32 %v9611_v5, %v5826_v55  ;;  %v5825_v38 = vadd.f32 %v5724_v30, %v14778_v3 }
 0x4b8   : > { %v6027_v49 = vpop.f32.mrf.mxu0  ;;  %v9579_v11 = vpop.f32.mrf.mxu1  ;;  %9794 = vmatmul.mubr.msk.bf16.gmra.mxu1 %vm5047_vm4, %v7417_v48  ;;  %v7419_v39 = vpack.c.bf16 %v7397_v62, %v7396_v15  ;;  %v17572_v15 = vld [vmem:[#allocation44_spill] sm:$0xff] }
 0x4b9   : > { %v14971_v14 = vadd.f32 %v6027_v49, %v5824_v29  ;;  %v5830_v56 = vadd.f32 %v9579_v11, %v14781_v6  ;;  %9797 = vmatprep.mubr.msk.bf16.mxu1 %vm5047_vm4, %v7418_v0  ;;  %v17571_v29 = vld [vmem:[#allocation246_spill] sm:$0xff]  ;;  %v5419_v49 = vadd.f32 %v14828_v51, %v14809_v20  ;;  %v17574_v62 = vpack.c.bf16 %v17572_v15, %v17573_v44  ;;  %v17576_v51 = vld [vmem:[#allocation85_spill] sm:$0xff]  ;;  %v17588_v15 = vld [vmem:[#allocation79_spill] sm:$0xff] }
 0x4ba   : > { %v9612_v28 = vpop.f32.mrf.mxu0  ;;  %v5737_v33 = vpop.f32.mrf.mxu1  ;;  %v7398_v10 = vmul.f32 %v17571_v29, %v17570_v2  ;;  %v17589_v44 = vld [vmem:[#allocation240_spill] sm:$0xff] }
 0x4bb   : > { %v14979_v3 = vadd.f32 %v9612_v28, %v5827_v21  ;;  %v5828_v55 = vadd.f32 %v5737_v33, %v14790_v26 }
 0x4bc   : > { %v6030_v8 = vpop.f32.mrf.mxu0  ;;  %v9580_v35 = vpop.f32.mrf.mxu1  ;;  %v7420_v26 = vpack.c.bf16 %v7399_v1, %v7398_v10 }
 0x4bd   : > { %v14984_v6 = vadd.f32 %v6030_v8, %v5825_v38  ;;  %v5831_v47 = vadd.f32 %v9580_v35, %v14802_v54  ;;  %v17578_v8 = vld [vmem:[#allocation327_spill] sm:$0xff] }
 0x4be   : > { %v9615_v17 = vpop.f32.mrf.mxu0  ;;  %v5740_v22 = vpop.f32.mrf.mxu1 }
 0x4bf   : > { %v14989_v59 = vadd.f32 %v9615_v17, %v5830_v56  ;;  %v5829_v52 = vadd.f32 %v5740_v22, %v14806_v36 }
 0x4c0   : > { %v6043_v21 = vpop.f32.mrf.mxu0  ;;  %v9583_v40 = vpop.f32.mrf.mxu1  ;;  %9798 = vmatmul.mubr.msk.bf16.gmra.mxu1 %vm5047_vm4, %v7419_v39  ;;  %v17580_v39 = vld [vmem:[#allocation245_spill] sm:$0xff] }
 0x4c1   : > { %v14995_v63 = vadd.f32 %v6043_v21, %v5828_v55  ;;  %v5834_v54 = vadd.f32 %v9583_v40, %v14811_v37  ;;  %9801 = vmatprep.mubr.msk.bf16.mxu1 %vm5047_vm4, %v7420_v26  ;;  %v17575_v55 = vld [vmem:[#allocation86_spill] sm:$0xff] }
 0x4c2   : > { %v9616_v5 = vpop.f32.mrf.mxu0  ;;  %v5753_v30 = vpop.f32.mrf.mxu1  ;;  %v5432_v18 = vadd.f32 %v17575_v55, %v14824_v34  ;;  %v17590_v55 = vld [vmem:[#allocation321_spill] sm:$0xff] }
 0x4c3   : > { %v14999_v48 = vadd.f32 %v9616_v5, %v5831_v47  ;;  %v5832_v38 = vadd.f32 %v5753_v30, %v5416_v57 }
 0x4c4   : > { %v6046_v36 = vpop.f32.mrf.mxu0  ;;  %v9584_v0 = vpop.f32.mrf.mxu1 }
 0x4c5   : > { %v15003_v11 = vadd.f32 %v6046_v36, %v5829_v52  ;;  %v5835_v32 = vadd.f32 %v9584_v0, %v14826_v45  ;;  %v17577_v45 = vld [vmem:[#allocation200_spill] sm:$0xff]  ;;  %v5435_v52 = vadd.f32 %v14860_v31, %v17580_v39 }
 0x4c6   : > { %v9619_v43 = vpop.f32.mrf.mxu0  ;;  %v5756_v56 = vpop.f32.mrf.mxu1  ;;  %v17579_v35 = vpack.c.bf16 %v17577_v45, %v17578_v8  ;;  %v17582_v36 = vld [vmem:[#allocation32_spill] sm:$0xff] }
 0x4c7   : > { %v15006_v28 = vadd.f32 %v9619_v43, %v5834_v54  ;;  %v5833_v37 = vadd.f32 %v5756_v56, %v5419_v49  ;;  %v17584_v49 = vld [vmem:[#allocation163_spill] sm:$0xff]  ;;  %v17586_v56 = vld [vmem:[#allocation237_spill] sm:$0xff] }
 0x4c8   : > { %v6059_v33 = vpop.f32.mrf.mxu0  ;;  %v9587_v25 = vpop.f32.mrf.mxu1  ;;  %9802 = vmatmul.mubr.msk.bf16.gmra.mxu1 %vm5047_vm4, %v17574_v62  ;;  %v7408_v62 = vmul.f32 %v17589_v44, %v17588_v15 }
 0x4c9   : > { %v15014_v20 = vadd.f32 %v6059_v33, %v5832_v38  ;;  %v5838_v1 = vadd.f32 %v9587_v25, %v17576_v51  ;;  %9805 = vmatprep.mubr.msk.bf16.mxu1 %vm5047_vm4, %v17579_v35  ;;  %v17581_v38 = vld [vmem:[#allocation238_spill] sm:$0xff] }
 0x4ca   : > { %v9620_v47 = vpop.f32.mrf.mxu0  ;;  %v5769_v2 = vpop.f32.mrf.mxu1  ;;  %v17583_v0 = vpack.c.bf16 %v17581_v38, %v17582_v36 }
 0x4cb   : > { %v15021_v29 = vadd.f32 %v9620_v47, %v5835_v32  ;;  %v5836_v10 = vadd.f32 %v5769_v2, %v5432_v18  ;;  %v5448_v32 = vadd.f32 %v14878_v61, %v17584_v49  ;;  %v17591_v18 = vld [vmem:[#allocation287_spill] sm:$0xff] }
 0x4cc   : > { %v6062_v17 = vpop.f32.mrf.mxu0  ;;  %v9588_v22 = vpop.f32.mrf.mxu1  ;;  %v7409_v51 = vmul.f32 %v17591_v18, %v17590_v55  ;;  %v17594_v49 = vld [vmem:[#allocation155_spill] sm:$0xff] }
 0x4cd   : > { %v15025_v34 = vadd.f32 %v6062_v17, %v5833_v37  ;;  %v5839_v26 = vadd.f32 %v9588_v22, %v14856_v46  ;;  %v17585_v46 = vld [vmem:[#allocation154_spill] sm:$0xff] }
 0x4ce   : > { %v9623_v21 = vpop.f32.mrf.mxu0  ;;  %v5772_v40 = vpop.f32.mrf.mxu1  ;;  %v17587_v37 = vpack.c.bf16 %v17585_v46, %v17586_v56  ;;  %v7425_v17 = vpack.c.bf16 %v7409_v51, %v7408_v62 }
 0x4cf   : > { %v15028_v57 = vadd.f32 %v9623_v21, %v5838_v1  ;;  %v5837_v54 = vadd.f32 %v5772_v40, %v5435_v52 }
 0x4d0   : > { %v6075_v5 = vpop.f32.mrf.mxu0  ;;  %v9591_v30 = vpop.f32.mrf.mxu1  ;;  %9806 = vmatmul.mubr.msk.bf16.gmra.mxu1 %vm5047_vm4, %v17583_v0 }
 0x4d1   : > { %v15036_v31 = vadd.f32 %v6075_v5, %v5836_v10  ;;  %v5842_v43 = vadd.f32 %v9591_v30, %v14872_v7  ;;  %9809 = vmatprep.mubr.msk.bf16.mxu1 %vm5047_vm4, %v17587_v37  ;;  %v5451_v7 = vadd.f32 %v14892_v23, %v14870_v53  ;;  %v17593_v53 = vld [vmem:[#allocation167_spill] sm:$0xff] }
 0x4d2   : > { %v9624_v33 = vpop.f32.mrf.mxu0  ;;  %v5785_v25 = vpop.f32.mrf.mxu1 }
 0x4d3   : > { %v15047_v1 = vadd.f32 %v9624_v33, %v5839_v26  ;;  %v5840_v61 = vadd.f32 %v5785_v25, %v5448_v32  ;;  %v17592_v26 = vld [vmem:[#allocation292_spill] sm:$0xff]  ;;  %v5467_v32 = vadd.f32 %v14918_v9, %v17594_v49 }
 0x4d4   : > { %v6078_v45 = vpop.f32.mrf.mxu0  ;;  %v9592_v8 = vpop.f32.mrf.mxu1  ;;  %v5464_v40 = vadd.f32 %v17592_v26, %v14884_v19 }
 0x4d5   : > { %v15051_v35 = vadd.f32 %v6078_v45, %v5837_v54  ;;  %v5843_v47 = vadd.f32 %v9592_v8, %v14888_v41 }
 0x4d6   : > { %v9627_v2 = vpop.f32.mrf.mxu0  ;;  %v5788_v10 = vpop.f32.mrf.mxu1 }
 0x4d7   : > { %v15054_v22 = vadd.f32 %v9627_v2, %v5842_v43  ;;  %v5841_v39 = vadd.f32 %v5788_v10, %v5451_v7 }
 0x4d8   : > { %v6091_v52 = vpop.f32.mrf.mxu0  ;;  %v9595_v21 = vpop.f32.mrf.mxu1  ;;  %9810 = vmatmul.mubr.msk.bf16.gmra.mxu1 %vm5047_vm4, %v7425_v17 }
 0x4d9   : > { %v15059_v5 = vadd.f32 %v6091_v52, %v5840_v61  ;;  %v5846_v23 = vadd.f32 %v9595_v21, %v17593_v53 }
 0x4da   : > { %v9628_v54 = vpop.f32.mrf.mxu0  ;;  %v5801_v30 = vpop.f32.mrf.mxu1 }
 0x4db   : > { %v15062_v41 = vadd.f32 %v9628_v54, %v5843_v47  ;;  %v5844_v38 = vadd.f32 %v5801_v30, %v5464_v40 }
 0x4dc   : > { %v6094_v36 = vpop.f32.mrf.mxu0  ;;  %v9596_v0 = vpop.f32.mrf.mxu1 }
 0x4dd   : > { %v15066_v43 = vadd.f32 %v6094_v36, %v5841_v39  ;;  %v5847_v46 = vadd.f32 %v9596_v0, %v14913_v50 }
 0x4de   : > { %v9631_v56 = vpop.f32.mrf.mxu0  ;;  %v5804_v19 = vpop.f32.mrf.mxu1 }
 0x4df   : > { %v15069_v37 = vadd.f32 %v9631_v56, %v5846_v23  ;;  %v5845_v33 = vadd.f32 %v5804_v19, %v5467_v32 }
 0x4e0   : > { %v6107_v25 = vpop.f32.mrf.mxu0  ;;  %v9639_v15 = vpop.f32.mrf.mxu1 }
 0x4e1   : > { %v15071_v44 = vadd.f32 %v6107_v25, %v5844_v38  ;;  %v6430_v62 = vadd.f32 %v9639_v15, %v14923_v42 }
 0x4e2   : > { %v9632_v55 = vpop.f32.mrf.mxu0  ;;  %v6301_v18 = vpop.f32.mrf.mxu1 }
 0x4e3   : > { %v15074_v51 = vadd.f32 %v9632_v55, %v5847_v46  ;;  %v6428_v9 = vadd.f32 %v6301_v18, %v14927_v16 }
 0x4e4   : > { %v6110_v61 = vpop.f32.mrf.mxu0  ;;  %v9640_v45 = vpop.f32.mrf.mxu1 }
 0x4e5   : > { %v15077_v50 = vadd.f32 %v6110_v61, %v5845_v33  ;;  %v6431_v8 = vadd.f32 %v9640_v45, %v14935_v27 }
 0x4e6   : > { %v9675_v7 = vpop.f32.mrf.mxu0  ;;  %v6304_v47 = vpop.f32.mrf.mxu1 }
 0x4e7   : > { %v15080_v2 = vadd.f32 %v9675_v7, %v6430_v62  ;;  %v6429_v10 = vadd.f32 %v6304_v47, %v14940_v4 }
 0x4e8   : > { %v6607_v17 = vpop.f32.mrf.mxu0  ;;  %v9643_v42 = vpop.f32.mrf.mxu1 }
 0x4e9   : > { %v15083_v39 = vadd.f32 %v6607_v17, %v6428_v9  ;;  %v6434_v52 = vadd.f32 %v9643_v42, %v14945_v24 }
 0x4ea   : > { %v9676_v21 = vpop.f32.mrf.mxu0  ;;  %v6317_v16 = vpop.f32.mrf.mxu1 }
 0x4eb   : > { %v15086_v26 = vadd.f32 %v9676_v21, %v6431_v8  ;;  %v6432_v40 = vadd.f32 %v6317_v16, %v14949_v58 }
 0x4ec   : > { %v6610_v53 = vpop.f32.mrf.mxu0  ;;  %v9644_v27 = vpop.f32.mrf.mxu1 }
 0x4ed   : > { %v15089_v23 = vadd.f32 %v6610_v53, %v6429_v10  ;;  %v6435_v54 = vadd.f32 %v9644_v27, %v14957_v60 }
 0x4ee   : > { %v9679_v30 = vpop.f32.mrf.mxu0  ;;  %v6320_v4 = vpop.f32.mrf.mxu1 }
 0x4ef   : > { %v15092_v38 = vadd.f32 %v9679_v30, %v6434_v52  ;;  %v6433_v36 = vadd.f32 %v6320_v4, %v14962_v12 }
 0x4f0   : > { %v6623_v0 = vpop.f32.mrf.mxu0  ;;  %v9647_v24 = vpop.f32.mrf.mxu1 }
 0x4f1   : > { %v15095_v49 = vadd.f32 %v6623_v0, %v6432_v40  ;;  %v6438_v32 = vadd.f32 %v9647_v24, %v14967_v13 }
 0x4f2   : > { %v9680_v46 = vpop.f32.mrf.mxu0  ;;  %v6333_v58 = vpop.f32.mrf.mxu1 }
 0x4f3   : > { %v15098_v56 = vadd.f32 %v9680_v46, %v6435_v54  ;;  %v6436_v19 = vadd.f32 %v6333_v58, %v14971_v14 }
 0x4f4   : > { %v6626_v33 = vpop.f32.mrf.mxu0  ;;  %v9648_v60 = vpop.f32.mrf.mxu1 }
 0x4f5   : > { %v15101_v25 = vadd.f32 %v6626_v33, %v6433_v36  ;;  %v6439_v15 = vadd.f32 %v9648_v60, %v14979_v3 }
 0x4f6   : > { %v9683_v62 = vpop.f32.mrf.mxu0  ;;  %v6336_v12 = vpop.f32.mrf.mxu1 }
 0x4f7   : > { %v15104_v55 = vadd.f32 %v9683_v62, %v6438_v32  ;;  %v6437_v18 = vadd.f32 %v6336_v12, %v14984_v6 }
 0x4f8   : > { %v6639_v9 = vpop.f32.mrf.mxu0  ;;  %v9651_v13 = vpop.f32.mrf.mxu1 }
 0x4f9   : > { %v15107_v61 = vadd.f32 %v6639_v9, %v6436_v19  ;;  %v6442_v45 = vadd.f32 %v9651_v13, %v14989_v59 }
 0x4fa   : > { %v9684_v8 = vpop.f32.mrf.mxu0  ;;  %v6349_v14 = vpop.f32.mrf.mxu1 }
 0x4fb   : > { %v15110_v7 = vadd.f32 %v9684_v8, %v6439_v15  ;;  %v6440_v47 = vadd.f32 %v6349_v14, %v14995_v63 }
 0x4fc   : > { %v6642_v10 = vpop.f32.mrf.mxu0  ;;  %v9652_v3 = vpop.f32.mrf.mxu1 }
 0x4fd   : > { %v15113_v17 = vadd.f32 %v6642_v10, %v6437_v18  ;;  %v6443_v42 = vadd.f32 %v9652_v3, %v14999_v48 }
 0x4fe   : > { %v9687_v52 = vpop.f32.mrf.mxu0  ;;  %v6352_v6 = vpop.f32.mrf.mxu1 }
 0x4ff   : > { %v15116_v21 = vadd.f32 %v9687_v52, %v6442_v45  ;;  %v6441_v16 = vadd.f32 %v6352_v6, %v15003_v11 }
 0x500   : > { %v6655_v40 = vpop.f32.mrf.mxu0  ;;  %v9655_v59 = vpop.f32.mrf.mxu1 }
 0x501   : > { %v15119_v53 = vadd.f32 %v6655_v40, %v6440_v47  ;;  %v6446_v27 = vadd.f32 %v9655_v59, %v15006_v28 }
 0x502   : > { %v9688_v54 = vpop.f32.mrf.mxu0  ;;  %v6365_v63 = vpop.f32.mrf.mxu1 }
 0x503   : > { %v15122_v30 = vadd.f32 %v9688_v54, %v6443_v42  ;;  %v6444_v4 = vadd.f32 %v6365_v63, %v15014_v20 }
 0x504   : > { %v6658_v36 = vpop.f32.mrf.mxu0  ;;  %v9656_v48 = vpop.f32.mrf.mxu1 }
 0x505   : > { %v15125_v0 = vadd.f32 %v6658_v36, %v6441_v16  ;;  %v6447_v24 = vadd.f32 %v9656_v48, %v15021_v29 }
 0x506   : > { %v9691_v32 = vpop.f32.mrf.mxu0  ;;  %v6368_v11 = vpop.f32.mrf.mxu1 }
 0x507   : > { %v15128_v46 = vadd.f32 %v9691_v32, %v6446_v27  ;;  %v6445_v58 = vadd.f32 %v6368_v11, %v15025_v34 }
 0x508   : > { %v6671_v19 = vpop.f32.mrf.mxu0  ;;  %v9659_v28 = vpop.f32.mrf.mxu1 }
 0x509   : > { %v15131_v33 = vadd.f32 %v6671_v19, %v6444_v4  ;;  %v6450_v60 = vadd.f32 %v9659_v28, %v15028_v57 }
 0x50a   : > { %v9692_v15 = vpop.f32.mrf.mxu0  ;;  %v6381_v20 = vpop.f32.mrf.mxu1 }
 0x50b   : > { %v15134_v62 = vadd.f32 %v9692_v15, %v6447_v24  ;;  %v6448_v12 = vadd.f32 %v6381_v20, %v15036_v31 }
 0x50c   : > { %v6674_v18 = vpop.f32.mrf.mxu0  ;;  %v9660_v29 = vpop.f32.mrf.mxu1 }
 0x50d   : > { %v15137_v9 = vadd.f32 %v6674_v18, %v6445_v58  ;;  %v6451_v13 = vadd.f32 %v9660_v29, %v15047_v1 }
 0x50e   : > { %v9695_v45 = vpop.f32.mrf.mxu0  ;;  %v6384_v34 = vpop.f32.mrf.mxu1 }
 0x50f   : > { %v15140_v8 = vadd.f32 %v9695_v45, %v6450_v60  ;;  %v6449_v14 = vadd.f32 %v6384_v34, %v15051_v35 }
 0x510   : > { %v6687_v47 = vpop.f32.mrf.mxu0  ;;  %v9663_v57 = vpop.f32.mrf.mxu1 }
 0x511   : > { %v15143_v10 = vadd.f32 %v6687_v47, %v6448_v12  ;;  %v6454_v3 = vadd.f32 %v9663_v57, %v15054_v22 }
 0x512   : > { %v9696_v42 = vpop.f32.mrf.mxu0  ;;  %v6397_v31 = vpop.f32.mrf.mxu1 }
 0x513   : > { %v15146_v52 = vadd.f32 %v9696_v42, %v6451_v13  ;;  %v6452_v6 = vadd.f32 %v6397_v31, %v15059_v5 }
 0x514   : > { %v6690_v16 = vpop.f32.mrf.mxu0  ;;  %v9664_v1 = vpop.f32.mrf.mxu1 }
 0x515   : > { %v15149_v40 = vadd.f32 %v6690_v16, %v6449_v14  ;;  %v6455_v59 = vadd.f32 %v9664_v1, %v15062_v41 }
 0x516   : > { %v9699_v27 = vpop.f32.mrf.mxu0  ;;  %v6400_v35 = vpop.f32.mrf.mxu1 }
 0x517   : > { %v15152_v54 = vadd.f32 %v9699_v27, %v6454_v3  ;;  %v6453_v63 = vadd.f32 %v6400_v35, %v15066_v43 }
 0x518   : > { %v6703_v4 = vpop.f32.mrf.mxu0  ;;  %v9667_v22 = vpop.f32.mrf.mxu1 }
 0x519   : > { %v15155_v36 = vadd.f32 %v6703_v4, %v6452_v6  ;;  %v6458_v48 = vadd.f32 %v9667_v22, %v15069_v37 }
 0x51a   : > { %v9700_v24 = vpop.f32.mrf.mxu0  ;;  %v6413_v5 = vpop.f32.mrf.mxu1 }
 0x51b   : > { %v15158_v32 = vadd.f32 %v9700_v24, %v6455_v59  ;;  %v6456_v11 = vadd.f32 %v6413_v5, %v15071_v44 }
 0x51c   : > { %v6706_v58 = vpop.f32.mrf.mxu0  ;;  %v9668_v41 = vpop.f32.mrf.mxu1 }
 0x51d   : > { %v15161_v19 = vadd.f32 %v6706_v58, %v6453_v63  ;;  %v15164_v28 = vadd.f32 %v9668_v41, %v15074_v51 }
 0x51e   : > { %v9703_v43 = vpop.f32.mrf.mxu0  ;;  %v6416_v60 = vpop.f32.mrf.mxu1 }
 0x51f   : > { %v15166_v15 = vadd.f32 %v9703_v43, %v6458_v48  ;;  %v15169_v20 = vadd.f32 %v6416_v60, %v15077_v50 }
 0x520   : > { %v6719_v37 = vpop.f32.mrf.mxu0  ;;  %v9711_v12 = vpop.f32.mrf.mxu1 }
 0x521   : > { %v15171_v18 = vadd.f32 %v6719_v37, %v6456_v11  ;;  %v15174_v44 = vadd.f32 %v9711_v12, %v15080_v2 }
 0x522   : > { %v15176_v29 = vpop.f32.mrf.mxu0  ;;  %v6913_v13 = vpop.f32.mrf.mxu1 }
 0x523   : > { %v15179_v51 = vadd.f32 %v6913_v13, %v15083_v39 }
 0x524   : > { %v15181_v45 = vpop.f32.mrf.mxu0  ;;  %v9712_v34 = vpop.f32.mrf.mxu1 }
 0x525   : > { %v7043_v14 = vadd.f32 %v9712_v34, %v15086_v26 }
 0x526   : > { %v15184_v50 = vpop.f32.mrf.mxu0  ;;  %v6916_v47 = vpop.f32.mrf.mxu1 }
 0x527   : > { %v15187_v57 = vadd.f32 %v6916_v47, %v15089_v23 }
 0x528   : > { %v15189_v3 = vpop.f32.mrf.mxu0  ;;  %v9715_v2 = vpop.f32.mrf.mxu1 }
 0x529   : > { %v7046_v42 = vadd.f32 %v9715_v2, %v15092_v38 }
 0x52a   : > { %v9748_v31 = vpop.f32.mrf.mxu0  ;;  %v6929_v6 = vpop.f32.mrf.mxu1 }
 0x52b   : > { %v15192_v39 = vadd.f32 %v9748_v31, %v7043_v14  ;;  %v7044_v16 = vadd.f32 %v6929_v6, %v15095_v49 }
 0x52c   : > { %v15195_v1 = vpop.f32.mrf.mxu0  ;;  %v9716_v26 = vpop.f32.mrf.mxu1 }
 0x52d   : > { %v7047_v59 = vadd.f32 %v9716_v26, %v15098_v56 }
 0x52e   : > { %v9751_v27 = vpop.f32.mrf.mxu0  ;;  %v6932_v35 = vpop.f32.mrf.mxu1 }
 0x52f   : > { %v15198_v23 = vadd.f32 %v9751_v27, %v7046_v42  ;;  %v7045_v63 = vadd.f32 %v6932_v35, %v15101_v25  ;;  %v7884_v27 = vld [vmem:[%s15734_s6 + $0x8] sm:$0xff] }
 0x530   : > { %v7235_v4 = vpop.f32.mrf.mxu0  ;;  %v9719_v22 = vpop.f32.mrf.mxu1  ;;  %7963 = vmatprep.mubr.f32.mxu0 %v7884_v27 }
 0x531   : > { %v15201_v38 = vadd.f32 %v7235_v4, %v7044_v16  ;;  %v15204_v48 = vadd.f32 %v9719_v22, %v15104_v55 }
 0x532   : > { %v9752_v24 = vpop.f32.mrf.mxu0  ;;  %v6945_v49 = vpop.f32.mrf.mxu1 }
 0x533   : > { %v15206_v5 = vadd.f32 %v9752_v24, %v7047_v59  ;;  %v15209_v11 = vadd.f32 %v6945_v49, %v15107_v61 }
 0x534   : > { %v7238_v56 = vpop.f32.mrf.mxu0  ;;  %v9720_v58 = vpop.f32.mrf.mxu1 }
 0x535   : > { %v15211_v41 = vadd.f32 %v7238_v56, %v7045_v63  ;;  %v15214_v25 = vadd.f32 %v9720_v58, %v15110_v7 }
 0x536   : > { %v6948_v43 = vpop.f32.mrf.mxu1  ;;  %v15222_v13 = vpop.f32.mrf.mxu0 }
 0x537   : > { %v15217_v60 = vadd.f32 %v6948_v43, %v15113_v17 }
 0x538   : > { %v9723_v55 = vpop.f32.mrf.mxu1  ;;  %v15230_v47 = vpop.f32.mrf.mxu0 }
 0x539   : > { %v15220_v37 = vadd.f32 %v9723_v55, %v15116_v21 }
 0x53a   : > { %v6961_v12 = vpop.f32.mrf.mxu1  ;;  %v15238_v31 = vpop.f32.mrf.mxu0 }
 0x53b   : > { %v15225_v61 = vadd.f32 %v6961_v12, %v15119_v53 }
 0x53c   : > { %v9724_v34 = vpop.f32.mrf.mxu1  ;;  %v15246_v26 = vpop.f32.mrf.mxu0 }
 0x53d   : > { %v15228_v14 = vadd.f32 %v9724_v34, %v15122_v30 }
 0x53e   : > { %v6964_v7 = vpop.f32.mrf.mxu1  ;;  %v15257_v35 = vpop.f32.mrf.mxu0 }
 0x53f   : > { %v15233_v17 = vadd.f32 %v6964_v7, %v15125_v0 }
 0x540   : > { %v9727_v2 = vpop.f32.mrf.mxu1  ;;  %v15265_v22 = vpop.f32.mrf.mxu0 }
 0x541   : > { %v15236_v21 = vadd.f32 %v9727_v2, %v15128_v46 }
 0x542   : > { %v6977_v42 = vpop.f32.mrf.mxu1  ;;  %v15273_v58 = vpop.f32.mrf.mxu0 }
 0x543   : > { %v15241_v53 = vadd.f32 %v6977_v42, %v15131_v33 }
 0x544   : > { %v9728_v6 = vpop.f32.mrf.mxu1  ;;  %v15281_v12 = vpop.f32.mrf.mxu0 }
 0x545   : > { %v15244_v30 = vadd.f32 %v9728_v6, %v15134_v62  ;;  %v7348_v6 = vadd.f32 %v15184_v50, %v15174_v44  ;;  %v7347_v44 = vadd.f32 %v15195_v1, %v15187_v57 }
 0x546   : > { %v6980_v16 = vpop.f32.mrf.mxu1  ;;  %v15289_v2 = vpop.f32.mrf.mxu0 }
 0x547   : > { %v15249_v0 = vadd.f32 %v6980_v16, %v15137_v9 }
 0x548   : > { %v9731_v59 = vpop.f32.mrf.mxu1  ;;  %v15300_v16 = vpop.f32.mrf.mxu0 }
 0x549   : > { %v15252_v46 = vadd.f32 %v9731_v59, %v15140_v8  ;;  %v7346_v59 = vadd.f32 %v15189_v3, %v15179_v51 }
 0x54a   : > { %v6993_v33 = vpop.f32.mrf.mxu1 }
 0x54b   : > { %v15260_v62 = vadd.f32 %v6993_v33, %v15143_v10  ;;  %v15309_v33 = vpop.f32.mrf.mxu0 }
 0x54c   : > { %v9732_v63 = vpop.f32.mrf.mxu1 }
 0x54d   : > { %v15263_v4 = vadd.f32 %v9732_v63, %v15146_v52 }
 0x54e   : > { %v6996_v9 = vpop.f32.mrf.mxu1 }
 0x54f   : > { %v15268_v8 = vadd.f32 %v6996_v9, %v15149_v40 }
 0x550   : > { %v9735_v24 = vpop.f32.mrf.mxu1 }
 0x551   : > { %v15271_v49 = vadd.f32 %v9735_v24, %v15152_v54 }
 0x552   : > { %v7009_v56 = vpop.f32.mrf.mxu1 }
 0x553   : > { %v15276_v10 = vadd.f32 %v7009_v56, %v15155_v36 }
 0x554   : > { %v9736_v43 = vpop.f32.mrf.mxu1 }
 0x555   : > { %v15279_v52 = vadd.f32 %v9736_v43, %v15158_v32 }
 0x556   : > { %v7012_v55 = vpop.f32.mrf.mxu1 }
 0x557   : > { %v15284_v40 = vadd.f32 %v7012_v55, %v15161_v19  ;;  %v15316_v55 = vpop.f32.mrf.mxu0 }
 0x558   : > { %v9739_v34 = vpop.f32.mrf.mxu1 }
 0x559   : > { %v15287_v54 = vadd.f32 %v9739_v34, %v15166_v15  ;;  %v15305_v15 = vld [vmem:[%s15732_s4] ss:$0 sm:$0xff]  ;;  %v15321_v57 = vpop.f32.mrf.mxu0 }
 0x55a   : > { %v7025_v7 = vpop.f32.mrf.mxu1 }
 0x55b   : > { %v15292_v36 = vadd.f32 %v7025_v7, %v15171_v18 }
 0x55c   : > { %v15294_v42 = vpop.f32.mrf.mxu1 }
 0x55d   : > { %17595 = vst [vmem:[#allocation248_spill] sm:$0xff] %v15292_v36 }
 0x55e   : > { %v15296_v32 = vpop.f32.mrf.mxu1 }
 0x560   : > { %v9783_v19 = vpop.f32.mrf.mxu1 }
 0x561   : > { %v7654_v18 = vadd.f32 %v9783_v19, %v7348_v6 }
 0x562   : > { %v7525_v27 = vpop.f32.mrf.mxu1 }
 0x563   : > { %v7693_v63 = vadd.f32 %v15305_v15, %v7654_v18  ;;  %v7652_v9 = vadd.f32 %v7525_v27, %v7346_v59 }
 0x564   : > { %v9784_v24 = vpop.f32.mrf.mxu1 }
 0x565   : > { %v7655_v50 = vadd.f32 %v9784_v24, %v15192_v39  ;;  %v7691_v56 = vadd.f32 %v15305_v15, %v7652_v9  ;;  %v7725_v34 = vmax.f32 %v7693_v63, 0.0  ;;  %v15326_v63 = vadd.f32 %v15176_v29, %v15164_v28 }
 0x566   : > { %v7528_v43 = vpop.f32.mrf.mxu1 }
 0x567   : > { %v7694_v51 = vadd.f32 %v15305_v15, %v7655_v50  ;;  %v7653_v3 = vadd.f32 %v7528_v43, %v7347_v44  ;;  %v7723_v18 = vmax.f32 %v7691_v56, 0.0  ;;  %v7757_v39 = vrot.slane %v7725_v34, 1 }
 0x568   : > { %v9787_v7 = vpop.f32.mrf.mxu1  ;;  %v15331_v43 = vadd.f32 %v15181_v45, %v15169_v20  ;;  %v7354_v20 = vadd.f32 %v15230_v47, %v15209_v11  ;;  %v15345_v45 = vpop.f32.mrf.mxu0 }
 0x569   : > { %v7726_v6 = vmax.f32 %v7694_v51, 0.0  ;;  %v7692_v19 = vadd.f32 %v15305_v15, %v7653_v3  ;;  %v7658_v59 = vadd.f32 %v9787_v7, %v15198_v23  ;;  %v15338_v7 = vrot.slane %v7723_v18, 1 }
 0x56a   : > { %v7541_v27 = vpop.f32.mrf.mxu1 }
 0x56b   : > { %v7758_v1 = vrot.slane %v7726_v6, 1  ;;  %v7724_v9 = vmax.f32 %v7692_v19, 0.0  ;;  %v7656_v24 = vadd.f32 %v7541_v27, %v15201_v38  ;;  %v7697_v44 = vadd.f32 %v15305_v15, %v7658_v59 }
 0x56c   : > { %v9788_v50 = vpop.f32.mrf.mxu1  ;;  %v7356_v38 = vadd.f32 %v15222_v13, %v15204_v48 }
 0x56d   : > { %v7815_v56 = vsel %vm1353_vm3, %v7757_v39, %v7758_v1  ;;  %v7756_v51 = vrot.slane %v7724_v9, 1  ;;  %v7695_v3 = vadd.f32 %v15305_v15, %v7656_v24  ;;  %v7659_v28 = vadd.f32 %v9788_v50, %v15206_v5 }
 0x56e   : > { %v7544_v29 = vpop.f32.mrf.mxu1  ;;  %v15341_v19 = vmax.f32 %v7725_v34, %v7815_v56  ;;  %v7729_v48 = vmax.f32 %v7697_v44, 0.0 }
 0x56f   : > { %v7816_v59 = vsel %vm1353_vm3, %v7756_v51, %v7757_v39  ;;  %v7727_v27 = vmax.f32 %v7695_v3, 0.0  ;;  %v7657_v24 = vadd.f32 %v7544_v29, %v15211_v41  ;;  %v7698_v13 = vadd.f32 %v15305_v15, %v7659_v28  ;;  %v15365_v28 = vpop.f32.mrf.mxu0 }
 0x570   : > { %v15350_v36 = vmax.f32 %v7724_v9, %v7816_v59  ;;  %v9791_v5 = vpop.f32.mrf.mxu1  ;;  %v7817_v34 = vsel %vm1353_vm3, %v15338_v7, %v7756_v51  ;;  %v7357_v39 = vadd.f32 %v15238_v31, %v15214_v25  ;;  %v7355_v41 = vadd.f32 %v15246_v26, %v15217_v60 }
 0x571   : > { %v7759_v50 = vrot.slane %v7727_v27, 1  ;;  %v7696_v11 = vadd.f32 %v15305_v15, %v7657_v24  ;;  %v7662_v47 = vadd.f32 %v9791_v5, %v7356_v38  ;;  %v15357_v56 = vmax.f32 %v7723_v18, %v7817_v34 }
 0x572   : > { %v7360_v9 = vadd.f32 %v15257_v35, %v15220_v37  ;;  %v7730_v44 = vmax.f32 %v7698_v13, 0.0  ;;  %v7557_v3 = vpop.f32.mrf.mxu1  ;;  %v7761_v59 = vrot.slane %v7729_v48, 1  ;;  %v7358_v26 = vadd.f32 %v15265_v22, %v15225_v61  ;;  %v15390_v22 = vpop.f32.mrf.mxu0 }
 0x573   : > { %v7814_v51 = vsel %vm1353_vm3, %v7758_v1, %v7759_v50  ;;  %v7728_v29 = vmax.f32 %v7696_v11, 0.0  ;;  %v15370_v18 = vadd.f32 %v15305_v15, %v7662_v47  ;;  %v7660_v38 = vadd.f32 %v7557_v3, %v7354_v20 }
 0x574   : > { %v7762_v25 = vrot.slane %v7730_v44, 1  ;;  %v15372_v31 = vmax.f32 %v7726_v6, %v7814_v51  ;;  %v9792_v60 = vpop.f32.mrf.mxu1  ;;  %v7361_v13 = vadd.f32 %v15273_v58, %v15228_v14  ;;  %v7359_v61 = vadd.f32 %v15281_v12, %v15233_v17 }
 0x575   : > { %v7760_v35 = vrot.slane %v7728_v29, 1  ;;  %v15379_v24 = vadd.f32 %v15305_v15, %v7660_v38  ;;  %v7663_v1 = vadd.f32 %v9792_v60, %v7357_v39  ;;  %v7733_v6 = vmax.f32 %v15370_v18, 0.0 }
 0x576   : > { %v7811_v20 = vsel %vm1353_vm3, %v7761_v59, %v7762_v25  ;;  %v7560_v5 = vpop.f32.mrf.mxu1  ;;  %v7364_v17 = vadd.f32 %v15289_v2, %v15236_v21  ;;  %v7367_v34 = vadd.f32 %v15390_v22, %v15268_v8 }
 0x577   : > { %v7812_v11 = vsel %vm1353_vm3, %v7760_v35, %v7761_v59  ;;  %v7813_v14 = vsel %vm1353_vm3, %v7759_v50, %v7760_v35  ;;  %v7731_v58 = vmax.f32 %v15379_v24, 0.0  ;;  %v7702_v39 = vadd.f32 %v15305_v15, %v7663_v1  ;;  %v15409_v1 = vpop.f32.mrf.mxu0 }
 0x578   : > { %v15397_v47 = vmax.f32 %v7728_v29, %v7812_v11  ;;  %v7661_v3 = vadd.f32 %v7560_v5, %v7355_v41  ;;  %v9795_v51 = vpop.f32.mrf.mxu1  ;;  %v15400_v18 = vmax.f32 %v7729_v48, %v7811_v20  ;;  %v15404_v60 = vmax.f32 %v7727_v27, %v7813_v14 }
 0x579   : > { %v7763_v12 = vrot.slane %v7731_v58, 1  ;;  %v7666_v38 = vadd.f32 %v9795_v51, %v7360_v9  ;;  %v7765_v59 = vrot.slane %v7733_v6, 1  ;;  %v7734_v35 = vmax.f32 %v7702_v39, 0.0 }
 0x57a   : > { %v7700_v29 = vadd.f32 %v15305_v15, %v7661_v3  ;;  %v7573_v24 = vpop.f32.mrf.mxu1  ;;  %v7362_v14 = vadd.f32 %v15300_v16, %v15241_v53 }
 0x57b   : > { %v7810_v48 = vsel %vm1353_vm3, %v7762_v25, %v7763_v12  ;;  %v7705_v41 = vadd.f32 %v15305_v15, %v7666_v38  ;;  %v7664_v21 = vadd.f32 %v7573_v24, %v7358_v26  ;;  %v7766_v27 = vrot.slane %v7734_v35, 1 }
 0x57c   : > { %v7732_v9 = vmax.f32 %v7700_v29, 0.0  ;;  %v15416_v20 = vmax.f32 %v7730_v44, %v7810_v48  ;;  %v9796_v5 = vpop.f32.mrf.mxu1  ;;  %v7365_v25 = vadd.f32 %v15309_v33, %v15244_v30  ;;  %v7363_v24 = vadd.f32 %v15316_v55, %v15249_v0  ;;  %v7315_v48 = vpop.f32.mrf.mxu0  ;;  %v17597_v29 = vld [vmem:[#allocation248_spill] sm:$0xff] }
 0x57d   : > { %v7703_v39 = vadd.f32 %v15305_v15, %v7664_v21  ;;  %v7667_v26 = vadd.f32 %v9796_v5, %v7361_v13  ;;  %v7807_v3 = vsel %vm1353_vm3, %v7765_v59, %v7766_v27  ;;  %v7737_v38 = vmax.f32 %v7705_v41, 0.0 }
 0x57e   : > { %v7764_v51 = vrot.slane %v7732_v9, 1  ;;  %v7576_v44 = vpop.f32.mrf.mxu1  ;;  %v7368_v33 = vadd.f32 %v15321_v57, %v15252_v46  ;;  %v15440_v5 = vmax.f32 %v7733_v6, %v7807_v3 }
 0x57f   : > { %v7735_v53 = vmax.f32 %v7703_v39, 0.0  ;;  %v15432_v16 = vadd.f32 %v15305_v15, %v7667_v26  ;;  %v7665_v30 = vadd.f32 %v7576_v44, %v7359_v61  ;;  %v7366_v61 = vadd.f32 %v15345_v45, %v15260_v62  ;;  %v9772_v44 = vpop.f32.mrf.mxu0 }
 0x580   : > { %v7808_v13 = vsel %vm1353_vm3, %v7764_v51, %v7765_v59  ;;  %v7809_v41 = vsel %vm1353_vm3, %v7763_v12, %v7764_v51  ;;  %v9799_v21 = vpop.f32.mrf.mxu1  ;;  %v7769_v46 = vrot.slane %v7737_v38, 1 }
 0x581   : > { %v15442_v37 = vmax.f32 %v7732_v9, %v7808_v13  ;;  %v7767_v0 = vrot.slane %v7735_v53, 1  ;;  %v7738_v55 = vmax.f32 %v15432_v16, 0.0  ;;  %v7704_v39 = vadd.f32 %v15305_v15, %v7665_v30 }
 0x582   : > { %v7670_v57 = vadd.f32 %v9799_v21, %v7364_v17  ;;  %v7589_v26 = vpop.f32.mrf.mxu1  ;;  %v15448_v59 = vmax.f32 %v7731_v58, %v7809_v41 }
 0x583   : > { %v7806_v12 = vsel %vm1353_vm3, %v7766_v27, %v7767_v0  ;;  %v7770_v9 = vrot.slane %v7738_v55, 1  ;;  %v7736_v3 = vmax.f32 %v7704_v39, 0.0  ;;  %v7668_v62 = vadd.f32 %v7589_v26, %v7362_v14 }
 0x584   : > { %v15454_v51 = vmax.f32 %v7734_v35, %v7806_v12  ;;  %v15457_v16 = vadd.f32 %v15305_v15, %v7670_v57  ;;  %v9800_v45 = vpop.f32.mrf.mxu1  ;;  %v7859_v58 = vmax.f32 %v15448_v59, %v15440_v5  ;;  %v7369_v35 = vadd.f32 %v15365_v28, %v15263_v4  ;;  %v7318_v57 = vpop.f32.mrf.mxu0 }
 0x585   : > { %v7803_v17 = vsel %vm1353_vm3, %v7769_v46, %v7770_v9  ;;  %v7768_v30 = vrot.slane %v7736_v3, 1  ;;  %v7671_v13 = vadd.f32 %v9800_v45, %v7365_v25  ;;  %v7707_v41 = vadd.f32 %v15305_v15, %v7668_v62 }
 0x586   : > { %v7592_v21 = vpop.f32.mrf.mxu1  ;;  %v15468_v39 = vmax.f32 %v7737_v38, %v7803_v17  ;;  %v7860_v14 = vmax.f32 %v15442_v37, %v15454_v51  ;;  %v7741_v28 = vmax.f32 %v15457_v16, 0.0  ;;  %v17598_v23 = vmax.f32 %v15416_v20, %v15442_v37 }
 0x587   : > { %v7804_v26 = vsel %vm1353_vm3, %v7768_v30, %v7769_v46  ;;  %v7805_v25 = vsel %vm1353_vm3, %v7767_v0, %v7768_v30  ;;  %v15477_v12 = vadd.f32 %v15305_v15, %v7671_v13  ;;  %v7669_v45 = vadd.f32 %v7592_v21, %v7363_v24  ;;  %v9775_v13 = vpop.f32.mrf.mxu0 }
 0x588   : > { %v15479_v4 = vmax.f32 %v7736_v3, %v7804_v26  ;;  %v7739_v38 = vmax.f32 %v7707_v41, 0.0  ;;  %v9803_v62 = vpop.f32.mrf.mxu1  ;;  %v15482_v17 = vmax.f32 %v7735_v53, %v7805_v25  ;;  %v7370_v26 = vadd.f32 %v7315_v48, %v15276_v10 }
 0x589   : > { %v7742_v46 = vmax.f32 %v15477_v12, 0.0  ;;  %v7708_v11 = vadd.f32 %v15305_v15, %v7669_v45  ;;  %v7674_v0 = vadd.f32 %v9803_v62, %v7368_v33  ;;  %v7372_v33 = vadd.f32 %v15409_v1, %v15271_v49 }
 0x58a   : > { %v7862_v30 = vmax.f32 %v15454_v51, %v15479_v4  ;;  %v7771_v24 = vrot.slane %v7739_v38, 1  ;;  %v7605_v3 = vpop.f32.mrf.mxu1  ;;  %v7863_v16 = vmax.f32 %v15482_v17, %v15468_v39  ;;  %v7861_v53 = vmax.f32 %v15440_v5, %v15482_v17  ;;  %v7887_v17 = vld [vmem:[%s15734_s6 + $0x20] sm:$0xff] }
 0x58b   : > { %v7774_v41 = vrot.slane %v7742_v46, 1  ;;  %v7740_v21 = vmax.f32 %v7708_v11, 0.0  ;;  %v15495_v8 = vadd.f32 %v15305_v15, %v7674_v0  ;;  %v7672_v22 = vadd.f32 %v7605_v3, %v7366_v61 }
 0x58c   : > { %v7773_v25 = vrot.slane %v7741_v28, 1  ;;  %v7802_v12 = vsel %vm1353_vm3, %v7770_v9, %v7771_v24  ;;  %v9804_v45 = vpop.f32.mrf.mxu1  ;;  %v7373_v62 = vadd.f32 %v9772_v44, %v15279_v52  ;;  %v7371_v61 = vadd.f32 %v7318_v57, %v15284_v40  ;;  %v7331_v9 = vpop.f32.mrf.mxu0 }
 0x58d   : > { %v7772_v50 = vrot.slane %v7740_v21, 1  ;;  %v15503_v2 = vmax.f32 %v7738_v55, %v7802_v12  ;;  %v15506_v11 = vadd.f32 %v15305_v15, %v7672_v22  ;;  %v7071_v49 = vadd.f32 %v15294_v42, %v15326_v63 }
 0x58e   : > { %v7675_v1 = vadd.f32 %v9804_v45, %v7369_v35  ;;  %v7608_v10 = vpop.f32.mrf.mxu1  ;;  %v7799_v48 = vsel %vm1353_vm3, %v7773_v25, %v7774_v41  ;;  %v7745_v44 = vmax.f32 %v15495_v8, 0.0  ;;  %v9776_v45 = vpop.f32.mrf.mxu0  ;;  %v17600_v51 = vmax.f32 %v15397_v47, %v15416_v20 }
 0x58f   : > { %v7800_v52 = vsel %vm1353_vm3, %v7772_v50, %v7773_v25  ;;  %v7801_v55 = vsel %vm1353_vm3, %v7771_v24, %v7772_v50  ;;  %v7743_v0 = vmax.f32 %v15506_v11, 0.0  ;;  %v7673_v63 = vadd.f32 %v7608_v10, %v7367_v34 }
 0x590   : > { %v15519_v40 = vmax.f32 %v7740_v21, %v7800_v52  ;;  %v7714_v42 = vadd.f32 %v15305_v15, %v7675_v1  ;;  %v9807_v35 = vpop.f32.mrf.mxu1  ;;  %v15522_v57 = vmax.f32 %v7739_v38, %v7801_v55  ;;  %v7864_v25 = vmax.f32 %v15479_v4, %v15503_v2 }
 0x591   : > { %v7775_v3 = vrot.slane %v7743_v0, 1  ;;  %v7678_v22 = vadd.f32 %v9807_v35, %v7372_v33  ;;  %v15526_v12 = vmax.f32 %v7741_v28, %v7799_v48  ;;  %v7712_v21 = vadd.f32 %v15305_v15, %v7673_v63 }
 0x592   : > { %v7866_v50 = vmax.f32 %v15503_v2, %v15519_v40  ;;  %v7746_v24 = vmax.f32 %v7714_v42, 0.0  ;;  %v7621_v8 = vpop.f32.mrf.mxu1  ;;  %v7865_v34 = vmax.f32 %v15468_v39, %v15522_v57  ;;  %v7777_v1 = vrot.slane %v7745_v44, 1 }
 0x593   : > { %v7717_v38 = vadd.f32 %v15305_v15, %v7678_v22  ;;  %v7676_v11 = vadd.f32 %v7621_v8, %v7370_v26  ;;  %v7798_v33 = vsel %vm1353_vm3, %v7774_v41, %v7775_v3  ;;  %v7744_v48 = vmax.f32 %v7712_v21, 0.0 }
 0x594   : > { %v7778_v10 = vrot.slane %v7746_v24, 1  ;;  %v9808_v52 = vpop.f32.mrf.mxu1  ;;  %v15538_v55 = vmax.f32 %v7742_v46, %v7798_v33  ;;  %v7376_v42 = vadd.f32 %v9775_v13, %v15287_v54  ;;  %v7069_v63 = vadd.f32 %v15296_v32, %v15331_v43  ;;  %v7334_v33 = vpop.f32.mrf.mxu0 }
 0x595   : > { %v7715_v35 = vadd.f32 %v15305_v15, %v7676_v11  ;;  %v7679_v26 = vadd.f32 %v9808_v52, %v7373_v62  ;;  %v7776_v22 = vrot.slane %v7744_v48, 1  ;;  %v7749_v8 = vmax.f32 %v7717_v38, 0.0 }
 0x596   : > { %v7624_v41 = vpop.f32.mrf.mxu1  ;;  %v7795_v28 = vsel %vm1353_vm3, %v7777_v1, %v7778_v10  ;;  %v7374_v46 = vadd.f32 %v7331_v9, %v17597_v29  ;;  %v7377_v32 = vadd.f32 %v9776_v45, %v7071_v49  ;;  %v7375_v9 = vadd.f32 %v7334_v33, %v7069_v63 }
 0x597   : > { %v7747_v27 = vmax.f32 %v7715_v35, 0.0  ;;  %v7718_v54 = vadd.f32 %v15305_v15, %v7679_v26  ;;  %v7677_v13 = vadd.f32 %v7624_v41, %v7371_v61  ;;  %v7796_v43 = vsel %vm1353_vm3, %v7776_v22, %v7777_v1 }
 0x598   : > { %v9811_v62 = vpop.f32.mrf.mxu1  ;;  %v15552_v38 = vmax.f32 %v7745_v44, %v7795_v28  ;;  %v7797_v11 = vsel %vm1353_vm3, %v7775_v3, %v7776_v22  ;;  %v15556_v52 = vmax.f32 %v7744_v48, %v7796_v43  ;;  %v7781_v35 = vrot.slane %v7749_v8, 1 }
 0x599   : > { %v7779_v21 = vrot.slane %v7747_v27, 1  ;;  %v7750_v6 = vmax.f32 %v7718_v54, 0.0  ;;  %v7716_v29 = vadd.f32 %v15305_v15, %v7677_v13  ;;  %v7682_v26 = vadd.f32 %v9811_v62, %v7376_v42 }
 0x59a   : > { %v7637_v61 = vpop.f32.mrf.mxu1  ;;  %v15559_v49 = vmax.f32 %v7743_v0, %v7797_v11  ;;  %v17599_v2 = vmax.f32 %v15400_v18, %v15448_v59  ;;  %v17602_v5 = vmax.f32 %v15404_v60, %v15400_v18  ;;  %v17603_v37 = vmax.f32 %v15538_v55, %v15556_v52 }
 0x59b   : > { %v7782_v45 = vrot.slane %v7750_v6, 1  ;;  %v7748_v1 = vmax.f32 %v7716_v29, 0.0  ;;  %v7680_v41 = vadd.f32 %v7637_v61, %v7374_v46  ;;  %v7794_v44 = vsel %vm1353_vm3, %v7778_v10, %v7779_v21 }
 0x59c   : > { %v7721_v3 = vadd.f32 %v15305_v15, %v7682_v26  ;;  %v9812_v28 = vpop.f32.mrf.mxu1  ;;  %v15564_v48 = vmax.f32 %v7746_v24, %v7794_v44  ;;  %v7869_v43 = vmax.f32 %v15526_v12, %v15559_v49  ;;  %v17601_v39 = vmax.f32 %v15559_v49, %v15552_v38 }
 0x59d   : > { %v7780_v63 = vrot.slane %v7748_v1, 1  ;;  %v7719_v0 = vadd.f32 %v15305_v15, %v7680_v41  ;;  %v7683_v33 = vadd.f32 %v9812_v28, %v7377_v32  ;;  %v7791_v46 = vsel %vm1353_vm3, %v7781_v35, %v7782_v45 }
 0x59e   : > { %v7753_v54 = vmax.f32 %v7721_v3, 0.0  ;;  %v7640_v10 = vpop.f32.mrf.mxu1  ;;  %v7845_v13 = vmax.f32 %v7749_v8, %v7791_v46  ;;  %v7872_v24 = vmax.f32 %v15556_v52, %v15564_v48  ;;  %v17604_v59 = vmax.f32 %v15372_v31, %v15397_v47 }
 0x59f   : > { %v7792_v62 = vsel %vm1353_vm3, %v7780_v63, %v7781_v35  ;;  %v7751_v11 = vmax.f32 %v7719_v0, 0.0  ;;  %v7722_v29 = vadd.f32 %v15305_v15, %v7683_v33  ;;  %v7681_v26 = vadd.f32 %v7640_v10, %v7375_v9 }
 0x5a0   : > { %v7844_v32 = vmax.f32 %v7748_v1, %v7792_v62  ;;  %v7793_v61 = vsel %vm1353_vm3, %v7779_v21, %v7780_v63  ;;  %v7785_v28 = vrot.slane %v7753_v54, 1  ;;  %v17605_v20 = vmax.f32 %v15341_v19, %v15404_v60  ;;  %v7886_v60 = vld [vmem:[%s15734_s6 + $0x18] sm:$0xff] }
 0x5a1   : > { %v7783_v41 = vrot.slane %v7751_v11, 1  ;;  %v7754_v44 = vmax.f32 %v7722_v29, 0.0  ;;  %v7720_v8 = vadd.f32 %v15305_v15, %v7681_v26  ;;  %v7843_v3 = vmax.f32 %v7747_v27, %v7793_v61 }
 0x5a2   : > { %v7874_v46 = vmax.f32 %v15564_v48, %v7844_v32  ;;  %v17607_v18 = vmax.f32 %v15350_v36, %v15372_v31  ;;  %v17608_v47 = vmax.f32 %v15522_v57, %v15526_v12  ;;  %v17609_v4 = vmax.f32 %v15357_v56, %v15341_v19  ;;  %v7888_v31 = vld [vmem:[%s15734_s6 + $0x28] sm:$0xff]  ;;  %v7890_v19 = vld [vmem:[%s15734_s6 + $0x38] sm:$0xff] }
 0x5a3   : > { %v7786_v42 = vrot.slane %v7754_v44, 1  ;;  %v7752_v22 = vmax.f32 %v7720_v8, 0.0  ;;  %v7790_v35 = vsel %vm1353_vm3, %v7782_v45, %v7783_v41  ;;  %v7875_v0 = vmax.f32 %v7843_v3, %v7845_v13  ;;  %v7896_v57 = vld [vmem:[%s15734_s6 + $0x68] sm:$0xff]  ;;  %v7898_v12 = vld [vmem:[%s15734_s6 + $0x78] sm:$0xff] }
 0x5a4   : > { %v7846_v33 = vmax.f32 %v7750_v6, %v7790_v35  ;;  %v7873_v9 = vmax.f32 %v15552_v38, %v7843_v3 }
 0x5a5   : > { %v7818_v21 = vsel %vm1353_vm3, %v7786_v42, %v15338_v7  ;;  %v7784_v1 = vrot.slane %v7752_v22, 1  ;;  %v7787_v15 = vsel %vm1353_vm3, %v7785_v28, %v7786_v42 }
 0x5a6   : > { %v7850_v27 = vmax.f32 %v7754_v44, %v7818_v21  ;;  %v7849_v63 = vmax.f32 %v7753_v54, %v7787_v15  ;;  %v7876_v48 = vmax.f32 %v7844_v32, %v7846_v33 }
 0x5a7   : > { %v7788_v10 = vsel %vm1353_vm3, %v7784_v1, %v7785_v28  ;;  %v7789_v45 = vsel %vm1353_vm3, %v7783_v41, %v7784_v1 }
 0x5a8   : > { %v7848_v6 = vmax.f32 %v7752_v22, %v7788_v10  ;;  %v7882_v62 = vmax.f32 %v7850_v27, %v15350_v36  ;;  %v7881_v29 = vmax.f32 %v7849_v63, %v15357_v56  ;;  %v7847_v26 = vmax.f32 %v7751_v11, %v7789_v45  ;;  %v7885_v36 = vld [vmem:[%s15734_s6 + $0x10] sm:$0xff] }
 0x5a9   : > { %v7889_v56 = vld [vmem:[%s15734_s6 + $0x30] sm:$0xff] }
 0x5aa   : > { %9127 = vmatprep.subr.mxu0 %v7882_v62  ;;  %v7880_v7 = vmax.f32 %v7848_v6, %v7850_v27  ;;  %v7879_v61 = vmax.f32 %v7847_v26, %v7849_v63  ;;  %v7878_v8 = vmax.f32 %v7846_v33, %v7848_v6  ;;  %v7877_v42 = vmax.f32 %v7845_v13, %v7847_v26 }
 0x5ab   : > { %9128 = vmatpush3.msra.mxu0 %v7866_v50  ;;  %v7897_v50 = vld [vmem:[%s15734_s6 + $0x70] sm:$0xff] }
 0x5ac   : > { %9129 = vmatprep.subr.mxu0 %v7881_v29 }
 0x5ad   : > { %9130 = vmatpush3.msra.mxu0 %v7865_v34 }
 0x5ae   : > { %9131 = vmatprep.subr.mxu0 %v7880_v7 }
 0x5af   : > { %9132 = vmatpush3.msra.mxu0 %v7864_v25  ;;  %v7895_v25 = vld [vmem:[%s15734_s6 + $0x60] sm:$0xff] }
 0x5b0   : > { %9133 = vmatprep.subr.mxu0 %v7879_v61 }
 0x5b1   : > { %9134 = vmatpush3.msra.mxu0 %v7863_v16  ;;  %v7891_v16 = vld [vmem:[%s15734_s6 + $0x40] sm:$0xff] }
 0x5b2   : > { %9135 = vmatprep.subr.mxu0 %v7878_v8 }
 0x5b3   : > { %9136 = vmatpush3.msra.mxu0 %v7862_v30  ;;  %v7892_v30 = vld [vmem:[%s15734_s6 + $0x48] sm:$0xff] }
 0x5b4   : > { %9137 = vmatprep.subr.mxu0 %v7877_v42 }
 0x5b5   : > { %9138 = vmatpush3.msra.mxu0 %v7861_v53  ;;  %v7894_v53 = vld [vmem:[%s15734_s6 + $0x58] sm:$0xff] }
 0x5b6   : > { %9139 = vmatprep.subr.mxu0 %v7876_v48 }
 0x5b7   : > { %9140 = vmatpush3.msra.mxu0 %v7860_v14  ;;  %v7883_v14 = vld [vmem:[%s15734_s6] sm:$0xff] }
 0x5b8   : > { %9141 = vmatprep.subr.mxu0 %v7875_v0 }
 0x5b9   : > { %9142 = vmatpush3.msra.mxu0 %v7859_v58  ;;  %v17606_v58 = vmax.f32 %v15519_v40, %v15538_v55  ;;  %v7893_v40 = vld [vmem:[%s15734_s6 + $0x50] sm:$0xff] }
 0x5ba   : > { %9143 = vmatprep.subr.mxu0 %v7874_v46 }
 0x5bb   : > { %9144 = vmatpush3.msra.mxu0 %v17598_v23 }
 0x5bc   : > { %9145 = vmatprep.subr.mxu0 %v7873_v9 }
 0x5bd   : > { %9146 = vmatpush3.msra.mxu0 %v17599_v2 }
 0x5be   : > { %9147 = vmatprep.subr.mxu0 %v7872_v24 }
 0x5bf   : > { %9148 = vmatpush3.msra.mxu0 %v17600_v51 }
 0x5c0   : > { %9149 = vmatprep.subr.mxu0 %v17601_v39 }
 0x5c1   : > { %9150 = vmatpush3.msra.mxu0 %v17602_v5 }
 0x5c2   : > { %9151 = vmatprep.subr.mxu0 %v17603_v37 }
 0x5c3   : > { %9152 = vmatpush3.msra.mxu0 %v17604_v59 }
 0x5c4   : > { %9153 = vmatprep.subr.mxu0 %v7869_v43 }
 0x5c5   : > { %9154 = vmatpush3.msra.mxu0 %v17605_v20 }
 0x5c6   : > { %9155 = vmatprep.subr.mxu0 %v17606_v58 }
 0x5c7   : > { %9156 = vmatpush3.msra.mxu0 %v17607_v18 }
 0x5c8   : > { %9157 = vmatprep.subr.mxu0 %v17608_v47 }
 0x5c9   : > { %9158 = vmatpush3.msra.mxu0 %v17609_v4 }
 0x5ca   : > { %7964 = vmatmul.mubr.f32.vlgmr.msra.gmra.mxu0 %v7883_v14 }
 0x5cb   : > { %7968 = vmatprep.mubr.f32.mxu0 %v7886_v60 }
 0x5ce   : > { %7969 = vmatmul.mubr.f32.gmra.mxu0 %v7885_v36 }
 0x5cf   : > { %7973 = vmatprep.mubr.f32.mxu0 %v7888_v31 }
 0x5d2   : > { %7974 = vmatmul.mubr.f32.gmra.mxu0 %v7887_v17 }
 0x5d3   : > { %7978 = vmatprep.mubr.f32.mxu0 %v7890_v19 }
 0x5d6   : > { %7979 = vmatmul.mubr.f32.gmra.mxu0 %v7889_v56 }
 0x5d7   : > { %7983 = vmatprep.mubr.f32.mxu0 %v7892_v30 }
 0x5da   : > { %7984 = vmatmul.mubr.f32.gmra.mxu0 %v7891_v16 }
 0x5db   : > { %7988 = vmatprep.mubr.f32.mxu0 %v7894_v53 }
 0x5de   : > { %7989 = vmatmul.mubr.f32.gmra.mxu0 %v7893_v40 }
 0x5df   : > { %7993 = vmatprep.mubr.f32.mxu0 %v7896_v57 }
 0x5e2   : > { %7994 = vmatmul.mubr.f32.gmra.mxu0 %v7895_v25 }
 0x5e3   : > { %7998 = vmatprep.mubr.f32.mxu0 %v7898_v12 }
 0x5e6   : > { %7999 = vmatmul.mubr.f32.gmra.mxu0 %v7897_v50 }
 0x68a   : > { %v9159_v34 = vpop.f32.mrf.mxu0 }
 0x68c   : > { %v9160_v55 = vpop.f32.mrf.mxu0 }
 0x68d   : > { %v9161_v38 = vadd.f32 %v9160_v55, %v9159_v34 }
 0x68e   : > { %v9162_v52 = vpop.f32.mrf.mxu0 }
 0x68f   : > { %v8725_v49 = vpack.c.bf16 %v9161_v38, %v9161_v38 }
 0x690   : > { %v9163_v22 = vpop.f32.mrf.mxu0 }
 0x691   : > { %8037 = vst.msk [vmem:[%s15707_s29] sm:$0xf] %vm8036_vm5, %v8725_v49  ;;  %v9164_v54 = vadd.f32 %v9163_v22, %v9162_v52 }
 0x692   : > { %v9165_v13 = vpop.f32.mrf.mxu0 }
 0x693   : > { %v8726_v24 = vpack.c.bf16 %v9164_v54, %v9164_v54 }
 0x694   : > { %v9166_v43 = vpop.f32.mrf.mxu0 }
 0x695   : > { %8038 = vst.msk [vmem:[%s15707_s29 + $0x4] sm:$0xf] %vm8036_vm5, %v8726_v24  ;;  %v9167_v11 = vadd.f32 %v9166_v43, %v9165_v13 }
 0x696   : > { %v9168_v32 = vpop.f32.mrf.mxu0 }
 0x697   : > { %v8727_v41 = vpack.c.bf16 %v9167_v11, %v9167_v11 }
 0x698   : > { %v9169_v44 = vpop.f32.mrf.mxu0 }
 0x699   : > { %8039 = vst.msk [vmem:[%s15707_s29 + $0x8] sm:$0xf] %vm8036_vm5, %v8727_v41  ;;  %v9170_v3 = vadd.f32 %v9169_v44, %v9168_v32 }
 0x69a   : > { %v9171_v28 = vpop.f32.mrf.mxu0 }
 0x69b   : > { %v8728_v46 = vpack.c.bf16 %v9170_v3, %v9170_v3 }
 0x69c   : > { %v9172_v35 = vpop.f32.mrf.mxu0 }
 0x69d   : > { %8040 = vst.msk [vmem:[%s15707_s29 + $0xc] sm:$0xf] %vm8036_vm5, %v8728_v46  ;;  %v9173_v0 = vadd.f32 %v9172_v35, %v9171_v28 }
 0x69e   : > { %v9174_v33 = vpop.f32.mrf.mxu0 }
 0x69f   : > { %v8729_v9 = vpack.c.bf16 %v9173_v0, %v9173_v0 }
 0x6a0   : > { %v9175_v21 = vpop.f32.mrf.mxu0 }
 0x6a1   : > { %8041 = vst.msk [vmem:[%s15707_s29 + $0x10] sm:$0xf] %vm8036_vm5, %v8729_v9  ;;  %v9176_v1 = vadd.f32 %v9175_v21, %v9174_v33 }
 0x6a2   : > { %v9177_v15 = vpop.f32.mrf.mxu0 }
 0x6a3   : > { %v8730_v27 = vpack.c.bf16 %v9176_v1, %v9176_v1 }
 0x6a4   : > { %v9178_v63 = vpop.f32.mrf.mxu0 }
 0x6a5   : > { %8042 = vst.msk [vmem:[%s15707_s29 + $0x14] sm:$0xf] %vm8036_vm5, %v8730_v27  ;;  %v9179_v48 = vadd.f32 %v9178_v63, %v9177_v15 }
 0x6a6   : > { %v9180_v10 = vpop.f32.mrf.mxu0 }
 0x6a7   : > { %v8731_v45 = vpack.c.bf16 %v9179_v48, %v9179_v48 }
 0x6a8   : > { %v9181_v6 = vpop.f32.mrf.mxu0 }
 0x6a9   : > { %8043 = vst.msk [vmem:[%s15707_s29 + $0x18] sm:$0xf] %vm8036_vm5, %v8731_v45  ;;  %v9182_v62 = vadd.f32 %v9181_v6, %v9180_v10 }
 0x6ab   : > { %v8732_v29 = vpack.c.bf16 %v9182_v62, %v9182_v62 }
 0x6ad   : > { %8044 = vst.msk [vmem:[%s15707_s29 + $0x1c] sm:$0xf] %vm8036_vm5, %v8732_v29 }
 0x6ae PF: > { %s17_s24 = sadd.s32 1, %s9860_s24  }
 0x6af   : > { %p14_p4 = scmp.ge.s32.totalorder %s17_s24, 4  }
 0x6b1   :  { %16 = sbr.rel (!%p14_p4) target bundleno = 1 (0x1), region = 102 }

</bundles_post_ra>
